<compile_context>
chip_gen: v5e
topology: v5e:2x2
jax: 0.10.0
libtpu: 0.0.40
codegen_flags: <defaults>
</compile_context>

<pallas_src>
import jax
import jax.numpy as jnp
from jax import lax
from jax.experimental import pallas as pl
from jax.experimental.pallas import tpu as pltpu

NEG_SLOPE = 0.2
TILE_B = 256  # batch rows per grid step (multiple of 8 and of 128 for the lane-dense output)


def _leaky_relu(x):
    # slope 0.2 > 0  =>  max(x, 0.2*x) == LeakyReLU_{0.2}(x); pure VPU.
    return jnp.maximum(x, NEG_SLOPE * x)


def _vanilla_d_kernel(x_ref,
                      w1_ref, b1_ref,
                      w2_ref, b2_ref,
                      w3_ref, b3_ref,
                      w4_ref, b4_ref,
                      w5t_ref, b5_ref,
                      o_ref):
    # Matmuls run bf16 x bf16 -> f32 on the MXU; everything else stays f32.
    h = x_ref[...].astype(jnp.bfloat16)
    h = _leaky_relu(
        jnp.dot(h, w1_ref[...], preferred_element_type=jnp.float32) + b1_ref[...])
    h = _leaky_relu(
        jnp.dot(h.astype(jnp.bfloat16), w2_ref[...],
                preferred_element_type=jnp.float32) + b2_ref[...])
    h = _leaky_relu(
        jnp.dot(h.astype(jnp.bfloat16), w3_ref[...],
                preferred_element_type=jnp.float32) + b3_ref[...])
    h = _leaky_relu(
        jnp.dot(h.astype(jnp.bfloat16), w4_ref[...],
                preferred_element_type=jnp.float32) + b4_ref[...])
    # Final Linear(128 -> 1), computed transposed so the stored slab is a
    # lane-dense (1, tb) row: w5t (1,128) contracted with h (tb,128) on dim 1.
    z = lax.dot_general(w5t_ref[...], h.astype(jnp.bfloat16),
                        (((1,), (1,)), ((), ())),
                        preferred_element_type=jnp.float32) + b5_ref[...]
    # Sigmoid (f32; overflow to inf gives the correct 0/1 limits).
    o_ref[...] = (1.0 / (1.0 + jnp.exp(-z))).astype(o_ref.dtype)


def _build_call(B, F, tb, grid_b, shapes, vmem_limit, single_buffer_weights):
    """Construct the pallas_call for the fused MLP."""
    (w1s, b1s, w2s, b2s, w3s, b3s, w4s, b4s, w5s, b5s) = shapes
    use_single = single_buffer_weights and hasattr(pl, "Buffered")

    def const_spec(shape):
        # Constant index_map => operand stays resident across all grid steps.
        if use_single:
            return pl.BlockSpec(shape, lambda i: (0, 0),
                                pipeline_mode=pl.Buffered(1))
        return pl.BlockSpec(shape, lambda i: (0, 0))

    return pl.pallas_call(
        _vanilla_d_kernel,
        out_shape=jax.ShapeDtypeStruct((1, B), jnp.float32),
        grid_spec=pltpu.PrefetchScalarGridSpec(
            num_scalar_prefetch=0,
            grid=(grid_b,),
            in_specs=[
                pl.BlockSpec((tb, F), lambda i: (i, 0)),          # x batch tile
                const_spec(w1s), const_spec(b1s),
                const_spec(w2s), const_spec(b2s),
                const_spec(w3s), const_spec(b3s),
                const_spec(w4s), const_spec(b4s),
                const_spec(w5s), const_spec(b5s),
            ],
            # Lane-dense output: one (1, tb) slab per grid step.
            out_specs=pl.BlockSpec((1, tb), lambda i: (0, i)),
        ),
        compiler_params=pltpu.CompilerParams(
            # TODO(synk): consider pltpu.CORE_PARALLEL on the batch axis for
            # explicit v7x megacore sharding when grid_b >= 2.
            dimension_semantics=("parallel",),
            vmem_limit_bytes=vmem_limit,
        ),
    )


def vanilla_d_forward(x, params, *, tile_b=TILE_B):
    """Pallas forward for vanilla_D.  x: [B, ...] with prod(...) == F."""
    w1, b1, w2, b2, w3, b3, w4, b4, w5, b5 = params
    B = x.shape[0]
    F = w1.shape[0]
    x2d = jnp.reshape(x, (B, -1))          # no wrapper-side dtype cast of x
    assert x2d.shape[1] == F, (x2d.shape, F)

    # Weights in bf16 (halves resident VMEM + weight DMA); biases stay f32 as
    # lane-friendly row vectors.  x is cast per-tile inside the kernel.
    w1b, w2b, w3b, w4b = (w.astype(jnp.bfloat16) for w in (w1, w2, w3, w4))
    w5t = jnp.reshape(w5, (1, -1)).astype(jnp.bfloat16)   # (1, 128)
    b1r = jnp.reshape(b1, (1, -1)).astype(jnp.float32)
    b2r = jnp.reshape(b2, (1, -1)).astype(jnp.float32)
    b3r = jnp.reshape(b3, (1, -1)).astype(jnp.float32)
    b4r = jnp.reshape(b4, (1, -1)).astype(jnp.float32)
    b5r = jnp.reshape(b5, (1, 1)).astype(jnp.float32)

    # Batch tiling: no jnp.pad of x.  Small batches use a single full-dim block;
    # large batches tile at tile_b and the partial last block is store-masked.
    tb = B if B <= tile_b else tile_b
    grid_b = pl.cdiv(B, tb)

    # Explicit VMEM budget: weights (x2 headroom in case of double-buffering)
    # + double-buffered x tile + f32/bf16 activation working set + output.
    x_item = jnp.dtype(x2d.dtype).itemsize
    weight_bytes = 2 * (F * 1024 + 1024 * 512 + 512 * 256 + 256 * 128 + 128)
    bias_bytes = 4 * 2 * (1024 + 512 + 256 + 128 + 1)
    x_tile_bytes = 2 * tb * F * x_item
    act_bytes = tb * (1024 + 512 + 256 + 128) * 6
    out_bytes = 2 * tb * 4
    vmem_limit = int(max(2 * weight_bytes + bias_bytes + x_tile_bytes
                         + act_bytes + out_bytes + (4 << 20), 8 << 20))

    shapes = (w1b.shape, b1r.shape, w2b.shape, b2r.shape, w3b.shape, b3r.shape,
              w4b.shape, b4r.shape, w5t.shape, b5r.shape)
    args = (x2d, w1b, b1r, w2b, b2r, w3b, b3r, w4b, b4r, w5t, b5r)
    try:
        out = _build_call(B, F, tb, grid_b, shapes, vmem_limit, True)(*args)
    except Exception:
        # Fallback for JAX builds where pipeline_mode=pl.Buffered(1) is not
        # supported on resident operands; semantics are identical.
        out = _build_call(B, F, tb, grid_b, shapes, vmem_limit, False)(*args)

    return jnp.reshape(out, (B, 1))


def _init_linear(key, fan_in, fan_out):
    """PyTorch-default-style uniform init; weight stored as (in, out)."""
    kw, kb = jax.random.split(key)
    bound = 1.0 / (fan_in ** 0.5)
    w = jax.random.uniform(kw, (fan_in, fan_out), jnp.float32, -bound, bound)
    b = jax.random.uniform(kb, (fan_out,), jnp.float32, -bound, bound)
    return w, b


def make_params(key, img_size):
    dims = [img_size * img_size, 1024, 512, 256, 128, 1]
    params = []
    for i in range(5):
        key, sub = jax.random.split(key)
        w, b = _init_linear(sub, dims[i], dims[i + 1])
        params.extend([w, b])
    return tuple(params)


def vanilla_d_ref(x, params):
    """Pure-JAX f32 reference (same math as the PyTorch module)."""
    w1, b1, w2, b2, w3, b3, w4, b4, w5, b5 = params
    h = jnp.reshape(x, (x.shape[0], -1)).astype(jnp.float32)
    for w, b in ((w1, b1), (w2, b2), (w3, b3), (w4, b4)):
        h = jnp.dot(h, w) + b
        h = jnp.where(h >= 0, h, NEG_SLOPE * h)
    z = jnp.dot(h, w5) + b5
    return jax.nn.sigmoid(z)


if __name__ == "__main__":
    key = jax.random.PRNGKey(0)
    img_size = 16                      # F = 256
    k_x, k_p, k_x2 = jax.random.split(key, 3)
    params = make_params(k_p, img_size)

    # Small-batch path (single full-dim block).
    batch = 2
    x = jax.random.normal(k_x, (batch, 1, img_size, img_size), dtype=jnp.float32)
    out = vanilla_d_forward(x, params)
    jax.block_until_ready(out)
    ref = vanilla_d_ref(x, params)
    assert out.shape == (batch, 1), out.shape
    # bf16 MXU path => looser tolerance than a pure-f32 comparison.
    assert jnp.allclose(out, ref, rtol=2e-2, atol=2e-2), (out, ref)

    # Multi-block grid with a partial (store-masked) last batch block.
    batch2 = 300
    x2 = jax.random.normal(k_x2, (batch2, 1, img_size, img_size), dtype=jnp.float32)
    out2 = vanilla_d_forward(x2, params)
    jax.block_until_ready(out2)
    ref2 = vanilla_d_ref(x2, params)
    assert out2.shape == (batch2, 1), out2.shape
    assert jnp.allclose(out2, ref2, rtol=2e-2, atol=2e-2)

    print("KERNEL_OK")
</pallas_src>

<mosaic_0001>
module attributes {stable_mosaic.version = 11 : i64} {
  func.func @_vanilla_d_kernel(%arg0: i32, %arg1: memref<2x256xf32, #tpu.memory_space<vmem>>, %arg2: memref<256x1024xbf16, #tpu.memory_space<vmem>>, %arg3: memref<1x1024xf32, #tpu.memory_space<vmem>>, %arg4: memref<1024x512xbf16, #tpu.memory_space<vmem>>, %arg5: memref<1x512xf32, #tpu.memory_space<vmem>>, %arg6: memref<512x256xbf16, #tpu.memory_space<vmem>>, %arg7: memref<1x256xf32, #tpu.memory_space<vmem>>, %arg8: memref<256x128xbf16, #tpu.memory_space<vmem>>, %arg9: memref<1x128xf32, #tpu.memory_space<vmem>>, %arg10: memref<1x128xbf16, #tpu.memory_space<vmem>>, %arg11: memref<1x1xf32, #tpu.memory_space<vmem>>, %arg12: memref<1x2xf32, #tpu.memory_space<vmem>>) attributes {dimension_semantics = [#tpu.dimension_semantics<parallel>], iteration_bounds = array<i64: 1>, scalar_prefetch = 0 : i64, scratch_operands = 0 : i64, tpu.core_type = #tpu.core_type<tc>, window_params = [{transform_indices = @transform_0, window_bounds = array<i64: 2, 256>}, {pipeline_mode = #tpu.pipeline_mode<synchronous>, transform_indices = @transform_1, window_bounds = array<i64: 256, 1024>}, {pipeline_mode = #tpu.pipeline_mode<synchronous>, transform_indices = @transform_2, window_bounds = array<i64: 1, 1024>}, {pipeline_mode = #tpu.pipeline_mode<synchronous>, transform_indices = @transform_3, window_bounds = array<i64: 1024, 512>}, {pipeline_mode = #tpu.pipeline_mode<synchronous>, transform_indices = @transform_4, window_bounds = array<i64: 1, 512>}, {pipeline_mode = #tpu.pipeline_mode<synchronous>, transform_indices = @transform_5, window_bounds = array<i64: 512, 256>}, {pipeline_mode = #tpu.pipeline_mode<synchronous>, transform_indices = @transform_6, window_bounds = array<i64: 1, 256>}, {pipeline_mode = #tpu.pipeline_mode<synchronous>, transform_indices = @transform_7, window_bounds = array<i64: 256, 128>}, {pipeline_mode = #tpu.pipeline_mode<synchronous>, transform_indices = @transform_8, window_bounds = array<i64: 1, 128>}, {pipeline_mode = #tpu.pipeline_mode<synchronous>, transform_indices = @transform_9, window_bounds = array<i64: 1, 128>}, {pipeline_mode = #tpu.pipeline_mode<synchronous>, transform_indices = @transform_10, window_bounds = array<i64: 1, 1>}, {transform_indices = @transform_11, window_bounds = array<i64: 1, 2>}]} {
    %c0 = arith.constant 0 : index
    %c0_0 = arith.constant 0 : index
    %0 = vector.load %arg1[%c0, %c0_0] : memref<2x256xf32, #tpu.memory_space<vmem>>, vector<2x256xf32>
    %1 = arith.truncf %0 : vector<2x256xf32> to vector<2x256xbf16>
    %c0_1 = arith.constant 0 : index
    %c0_2 = arith.constant 0 : index
    %2 = vector.load %arg2[%c0_1, %c0_2] : memref<256x1024xbf16, #tpu.memory_space<vmem>>, vector<256x1024xbf16>
    %cst = arith.constant dense<0.000000e+00> : vector<2x1024xf32>
    %3 = tpu.matmul %1, %2, %cst {dimension_numbers = #tpu.dot_dimension_numbers<[1], [0], [0], [1], [0, 0, 1, 1], [], []>} : vector<2x256xbf16>, vector<256x1024xbf16>, vector<2x1024xf32> -> vector<2x1024xf32>
    %c0_3 = arith.constant 0 : index
    %c0_4 = arith.constant 0 : index
    %4 = vector.load %arg3[%c0_3, %c0_4] : memref<1x1024xf32, #tpu.memory_space<vmem>>, vector<1x1024xf32>
    %5 = vector.broadcast %4 : vector<1x1024xf32> to vector<2x1024xf32>
    %6 = arith.addf %3, %5 : vector<2x1024xf32>
    %cst_5 = arith.constant 2.000000e-01 : f32
    %7 = vector.broadcast %cst_5 : f32 to vector<2x1024xf32>
    %8 = arith.mulf %7, %6 : vector<2x1024xf32>
    %9 = arith.maximumf %6, %8 : vector<2x1024xf32>
    %10 = arith.truncf %9 : vector<2x1024xf32> to vector<2x1024xbf16>
    %c0_6 = arith.constant 0 : index
    %c0_7 = arith.constant 0 : index
    %11 = vector.load %arg4[%c0_6, %c0_7] : memref<1024x512xbf16, #tpu.memory_space<vmem>>, vector<1024x512xbf16>
    %cst_8 = arith.constant dense<0.000000e+00> : vector<2x512xf32>
    %12 = tpu.matmul %10, %11, %cst_8 {dimension_numbers = #tpu.dot_dimension_numbers<[1], [0], [0], [1], [0, 0, 1, 1], [], []>} : vector<2x1024xbf16>, vector<1024x512xbf16>, vector<2x512xf32> -> vector<2x512xf32>
    %c0_9 = arith.constant 0 : index
    %c0_10 = arith.constant 0 : index
    %13 = vector.load %arg5[%c0_9, %c0_10] : memref<1x512xf32, #tpu.memory_space<vmem>>, vector<1x512xf32>
    %14 = vector.broadcast %13 : vector<1x512xf32> to vector<2x512xf32>
    %15 = arith.addf %12, %14 : vector<2x512xf32>
    %cst_11 = arith.constant 2.000000e-01 : f32
    %16 = vector.broadcast %cst_11 : f32 to vector<2x512xf32>
    %17 = arith.mulf %16, %15 : vector<2x512xf32>
    %18 = arith.maximumf %15, %17 : vector<2x512xf32>
    %19 = arith.truncf %18 : vector<2x512xf32> to vector<2x512xbf16>
    %c0_12 = arith.constant 0 : index
    %c0_13 = arith.constant 0 : index
    %20 = vector.load %arg6[%c0_12, %c0_13] : memref<512x256xbf16, #tpu.memory_space<vmem>>, vector<512x256xbf16>
    %cst_14 = arith.constant dense<0.000000e+00> : vector<2x256xf32>
    %21 = tpu.matmul %19, %20, %cst_14 {dimension_numbers = #tpu.dot_dimension_numbers<[1], [0], [0], [1], [0, 0, 1, 1], [], []>} : vector<2x512xbf16>, vector<512x256xbf16>, vector<2x256xf32> -> vector<2x256xf32>
    %c0_15 = arith.constant 0 : index
    %c0_16 = arith.constant 0 : index
    %22 = vector.load %arg7[%c0_15, %c0_16] : memref<1x256xf32, #tpu.memory_space<vmem>>, vector<1x256xf32>
    %23 = vector.broadcast %22 : vector<1x256xf32> to vector<2x256xf32>
    %24 = arith.addf %21, %23 : vector<2x256xf32>
    %cst_17 = arith.constant 2.000000e-01 : f32
    %25 = vector.broadcast %cst_17 : f32 to vector<2x256xf32>
    %26 = arith.mulf %25, %24 : vector<2x256xf32>
    %27 = arith.maximumf %24, %26 : vector<2x256xf32>
    %28 = arith.truncf %27 : vector<2x256xf32> to vector<2x256xbf16>
    %c0_18 = arith.constant 0 : index
    %c0_19 = arith.constant 0 : index
    %29 = vector.load %arg8[%c0_18, %c0_19] : memref<256x128xbf16, #tpu.memory_space<vmem>>, vector<256x128xbf16>
    %cst_20 = arith.constant dense<0.000000e+00> : vector<2x128xf32>
    %30 = tpu.matmul %28, %29, %cst_20 {dimension_numbers = #tpu.dot_dimension_numbers<[1], [0], [0], [1], [0, 0, 1, 1], [], []>} : vector<2x256xbf16>, vector<256x128xbf16>, vector<2x128xf32> -> vector<2x128xf32>
    %c0_21 = arith.constant 0 : index
    %c0_22 = arith.constant 0 : index
    %31 = vector.load %arg9[%c0_21, %c0_22] : memref<1x128xf32, #tpu.memory_space<vmem>>, vector<1x128xf32>
    %32 = vector.broadcast %31 : vector<1x128xf32> to vector<2x128xf32>
    %33 = arith.addf %30, %32 : vector<2x128xf32>
    %cst_23 = arith.constant 2.000000e-01 : f32
    %34 = vector.broadcast %cst_23 : f32 to vector<2x128xf32>
    %35 = arith.mulf %34, %33 : vector<2x128xf32>
    %36 = arith.maximumf %33, %35 : vector<2x128xf32>
    %c0_24 = arith.constant 0 : index
    %c0_25 = arith.constant 0 : index
    %37 = vector.load %arg10[%c0_24, %c0_25] : memref<1x128xbf16, #tpu.memory_space<vmem>>, vector<1x128xbf16>
    %38 = arith.truncf %36 : vector<2x128xf32> to vector<2x128xbf16>
    %cst_26 = arith.constant dense<0.000000e+00> : vector<1x2xf32>
    %39 = tpu.matmul %37, %38, %cst_26 {dimension_numbers = #tpu.dot_dimension_numbers<[1], [1], [0], [0], [0, 0, 1, 0], [], []>} : vector<1x128xbf16>, vector<2x128xbf16>, vector<1x2xf32> -> vector<1x2xf32>
    %c0_27 = arith.constant 0 : index
    %c0_28 = arith.constant 0 : index
    %40 = vector.load %arg11[%c0_27, %c0_28] : memref<1x1xf32, #tpu.memory_space<vmem>>, vector<1x1xf32>
    %41 = vector.broadcast %40 : vector<1x1xf32> to vector<1x2xf32>
    %42 = arith.addf %39, %41 : vector<1x2xf32>
    %cst_29 = arith.constant 0.000000e+00 : f32
    %43 = vector.broadcast %cst_29 : f32 to vector<1x2xf32>
    %44 = arith.subf %43, %42 : vector<1x2xf32>
    %45 = math.exp %44 : vector<1x2xf32>
    %cst_30 = arith.constant 1.000000e+00 : f32
    %46 = vector.broadcast %cst_30 : f32 to vector<1x2xf32>
    %47 = arith.addf %46, %45 : vector<1x2xf32>
    %cst_31 = arith.constant 1.000000e+00 : f32
    %48 = vector.broadcast %cst_31 : f32 to vector<1x2xf32>
    %49 = arith.divf %48, %47 : vector<1x2xf32>
    %c0_32 = arith.constant 0 : index
    %c0_33 = arith.constant 0 : index
    %50 = vector.load %arg12[%c0_32, %c0_33] : memref<1x2xf32, #tpu.memory_space<vmem>>, vector<1x2xf32>
    tpu.vector_store %arg12[%c0_32, %c0_33], %49 {strides = array<i32>} : memref<1x2xf32, #tpu.memory_space<vmem>>, vector<1x2xf32>,
    return
  }
  func.func @transform_0(%arg0: i32) -> (i32, i32) {
    %c0_i32 = arith.constant 0 : i32
    %c0_i32_0 = arith.constant 0 : i32
    return %arg0, %c0_i32 : i32, i32
  }
  func.func @transform_1(%arg0: i32) -> (i32, i32) {
    %c0_i32 = arith.constant 0 : i32
    %c0_i32_0 = arith.constant 0 : i32
    %c0_i32_1 = arith.constant 0 : i32
    return %c0_i32, %c0_i32_0 : i32, i32
  }
  func.func @transform_2(%arg0: i32) -> (i32, i32) {
    %c0_i32 = arith.constant 0 : i32
    %c0_i32_0 = arith.constant 0 : i32
    %c0_i32_1 = arith.constant 0 : i32
    return %c0_i32, %c0_i32_0 : i32, i32
  }
  func.func @transform_3(%arg0: i32) -> (i32, i32) {
    %c0_i32 = arith.constant 0 : i32
    %c0_i32_0 = arith.constant 0 : i32
    %c0_i32_1 = arith.constant 0 : i32
    return %c0_i32, %c0_i32_0 : i32, i32
  }
  func.func @transform_4(%arg0: i32) -> (i32, i32) {
    %c0_i32 = arith.constant 0 : i32
    %c0_i32_0 = arith.constant 0 : i32
    %c0_i32_1 = arith.constant 0 : i32
    return %c0_i32, %c0_i32_0 : i32, i32
  }
  func.func @transform_5(%arg0: i32) -> (i32, i32) {
    %c0_i32 = arith.constant 0 : i32
    %c0_i32_0 = arith.constant 0 : i32
    %c0_i32_1 = arith.constant 0 : i32
    return %c0_i32, %c0_i32_0 : i32, i32
  }
  func.func @transform_6(%arg0: i32) -> (i32, i32) {
    %c0_i32 = arith.constant 0 : i32
    %c0_i32_0 = arith.constant 0 : i32
    %c0_i32_1 = arith.constant 0 : i32
    return %c0_i32, %c0_i32_0 : i32, i32
  }
  func.func @transform_7(%arg0: i32) -> (i32, i32) {
    %c0_i32 = arith.constant 0 : i32
    %c0_i32_0 = arith.constant 0 : i32
    %c0_i32_1 = arith.constant 0 : i32
    return %c0_i32, %c0_i32_0 : i32, i32
  }
  func.func @transform_8(%arg0: i32) -> (i32, i32) {
    %c0_i32 = arith.constant 0 : i32
    %c0_i32_0 = arith.constant 0 : i32
    %c0_i32_1 = arith.constant 0 : i32
    return %c0_i32, %c0_i32_0 : i32, i32
  }
  func.func @transform_9(%arg0: i32) -> (i32, i32) {
    %c0_i32 = arith.constant 0 : i32
    %c0_i32_0 = arith.constant 0 : i32
    %c0_i32_1 = arith.constant 0 : i32
    return %c0_i32, %c0_i32_0 : i32, i32
  }
  func.func @transform_10(%arg0: i32) -> (i32, i32) {
    %c0_i32 = arith.constant 0 : i32
    %c0_i32_0 = arith.constant 0 : i32
    %c0_i32_1 = arith.constant 0 : i32
    return %c0_i32, %c0_i32_0 : i32, i32
  }
  func.func @transform_11(%arg0: i32) -> (i32, i32) {
    %c0_i32 = arith.constant 0 : i32
    %c0_i32_0 = arith.constant 0 : i32
    return %c0_i32, %arg0 : i32, i32
  }
}

module attributes {stable_mosaic.version = 11 : i64} {
  func.func @_vanilla_d_kernel(%arg0: i32, %arg1: memref<2x256xf32, #tpu.memory_space<vmem>>, %arg2: memref<256x1024xbf16, #tpu.memory_space<vmem>>, %arg3: memref<1x1024xf32, #tpu.memory_space<vmem>>, %arg4: memref<1024x512xbf16, #tpu.memory_space<vmem>>, %arg5: memref<1x512xf32, #tpu.memory_space<vmem>>, %arg6: memref<512x256xbf16, #tpu.memory_space<vmem>>, %arg7: memref<1x256xf32, #tpu.memory_space<vmem>>, %arg8: memref<256x128xbf16, #tpu.memory_space<vmem>>, %arg9: memref<1x128xf32, #tpu.memory_space<vmem>>, %arg10: memref<1x128xbf16, #tpu.memory_space<vmem>>, %arg11: memref<1x1xf32, #tpu.memory_space<vmem>>, %arg12: memref<1x2xf32, #tpu.memory_space<vmem>>) attributes {dimension_semantics = [#tpu.dimension_semantics<parallel>], iteration_bounds = array<i64: 1>, scalar_prefetch = 0 : i64, scratch_operands = 0 : i64, tpu.core_type = #tpu.core_type<tc>, window_params = [{transform_indices = @transform_0, window_bounds = array<i64: 2, 256>}, {pipeline_mode = #tpu.pipeline_mode<synchronous>, transform_indices = @transform_1, window_bounds = array<i64: 256, 1024>}, {pipeline_mode = #tpu.pipeline_mode<synchronous>, transform_indices = @transform_2, window_bounds = array<i64: 1, 1024>}, {pipeline_mode = #tpu.pipeline_mode<synchronous>, transform_indices = @transform_3, window_bounds = array<i64: 1024, 512>}, {pipeline_mode = #tpu.pipeline_mode<synchronous>, transform_indices = @transform_4, window_bounds = array<i64: 1, 512>}, {pipeline_mode = #tpu.pipeline_mode<synchronous>, transform_indices = @transform_5, window_bounds = array<i64: 512, 256>}, {pipeline_mode = #tpu.pipeline_mode<synchronous>, transform_indices = @transform_6, window_bounds = array<i64: 1, 256>}, {pipeline_mode = #tpu.pipeline_mode<synchronous>, transform_indices = @transform_7, window_bounds = array<i64: 256, 128>}, {pipeline_mode = #tpu.pipeline_mode<synchronous>, transform_indices = @transform_8, window_bounds = array<i64: 1, 128>}, {pipeline_mode = #tpu.pipeline_mode<synchronous>, transform_indices = @transform_9, window_bounds = array<i64: 1, 128>}, {pipeline_mode = #tpu.pipeline_mode<synchronous>, transform_indices = @transform_10, window_bounds = array<i64: 1, 1>}, {transform_indices = @transform_11, window_bounds = array<i64: 1, 2>}]} {
    %c0 = arith.constant 0 : index
    %c0_0 = arith.constant 0 : index
    %0 = vector.load %arg1[%c0, %c0_0] : memref<2x256xf32, #tpu.memory_space<vmem>>, vector<2x256xf32>
    %1 = arith.truncf %0 : vector<2x256xf32> to vector<2x256xbf16>
    %c0_1 = arith.constant 0 : index
    %c0_2 = arith.constant 0 : index
    %2 = vector.load %arg2[%c0_1, %c0_2] : memref<256x1024xbf16, #tpu.memory_space<vmem>>, vector<256x1024xbf16>
    %cst = arith.constant dense<0.000000e+00> : vector<2x1024xf32>
    %3 = tpu.matmul %1, %2, %cst {dimension_numbers = #tpu.dot_dimension_numbers<[1], [0], [0], [1], [0, 0, 1, 1], [], []>} : vector<2x256xbf16>, vector<256x1024xbf16>, vector<2x1024xf32> -> vector<2x1024xf32>
    %c0_3 = arith.constant 0 : index
    %c0_4 = arith.constant 0 : index
    %4 = vector.load %arg3[%c0_3, %c0_4] : memref<1x1024xf32, #tpu.memory_space<vmem>>, vector<1x1024xf32>
    %5 = vector.broadcast %4 : vector<1x1024xf32> to vector<2x1024xf32>
    %6 = arith.addf %3, %5 : vector<2x1024xf32>
    %cst_5 = arith.constant 2.000000e-01 : f32
    %7 = vector.broadcast %cst_5 : f32 to vector<2x1024xf32>
    %8 = arith.mulf %7, %6 : vector<2x1024xf32>
    %9 = arith.maximumf %6, %8 : vector<2x1024xf32>
    %10 = arith.truncf %9 : vector<2x1024xf32> to vector<2x1024xbf16>
    %c0_6 = arith.constant 0 : index
    %c0_7 = arith.constant 0 : index
    %11 = vector.load %arg4[%c0_6, %c0_7] : memref<1024x512xbf16, #tpu.memory_space<vmem>>, vector<1024x512xbf16>
    %cst_8 = arith.constant dense<0.000000e+00> : vector<2x512xf32>
    %12 = tpu.matmul %10, %11, %cst_8 {dimension_numbers = #tpu.dot_dimension_numbers<[1], [0], [0], [1], [0, 0, 1, 1], [], []>} : vector<2x1024xbf16>, vector<1024x512xbf16>, vector<2x512xf32> -> vector<2x512xf32>
    %c0_9 = arith.constant 0 : index
    %c0_10 = arith.constant 0 : index
    %13 = vector.load %arg5[%c0_9, %c0_10] : memref<1x512xf32, #tpu.memory_space<vmem>>, vector<1x512xf32>
    %14 = vector.broadcast %13 : vector<1x512xf32> to vector<2x512xf32>
    %15 = arith.addf %12, %14 : vector<2x512xf32>
    %cst_11 = arith.constant 2.000000e-01 : f32
    %16 = vector.broadcast %cst_11 : f32 to vector<2x512xf32>
    %17 = arith.mulf %16, %15 : vector<2x512xf32>
    %18 = arith.maximumf %15, %17 : vector<2x512xf32>
    %19 = arith.truncf %18 : vector<2x512xf32> to vector<2x512xbf16>
    %c0_12 = arith.constant 0 : index
    %c0_13 = arith.constant 0 : index
    %20 = vector.load %arg6[%c0_12, %c0_13] : memref<512x256xbf16, #tpu.memory_space<vmem>>, vector<512x256xbf16>
    %cst_14 = arith.constant dense<0.000000e+00> : vector<2x256xf32>
    %21 = tpu.matmul %19, %20, %cst_14 {dimension_numbers = #tpu.dot_dimension_numbers<[1], [0], [0], [1], [0, 0, 1, 1], [], []>} : vector<2x512xbf16>, vector<512x256xbf16>, vector<2x256xf32> -> vector<2x256xf32>
    %c0_15 = arith.constant 0 : index
    %c0_16 = arith.constant 0 : index
    %22 = vector.load %arg7[%c0_15, %c0_16] : memref<1x256xf32, #tpu.memory_space<vmem>>, vector<1x256xf32>
    %23 = vector.broadcast %22 : vector<1x256xf32> to vector<2x256xf32>
    %24 = arith.addf %21, %23 : vector<2x256xf32>
    %cst_17 = arith.constant 2.000000e-01 : f32
    %25 = vector.broadcast %cst_17 : f32 to vector<2x256xf32>
    %26 = arith.mulf %25, %24 : vector<2x256xf32>
    %27 = arith.maximumf %24, %26 : vector<2x256xf32>
    %28 = arith.truncf %27 : vector<2x256xf32> to vector<2x256xbf16>
    %c0_18 = arith.constant 0 : index
    %c0_19 = arith.constant 0 : index
    %29 = vector.load %arg8[%c0_18, %c0_19] : memref<256x128xbf16, #tpu.memory_space<vmem>>, vector<256x128xbf16>
    %cst_20 = arith.constant dense<0.000000e+00> : vector<2x128xf32>
    %30 = tpu.matmul %28, %29, %cst_20 {dimension_numbers = #tpu.dot_dimension_numbers<[1], [0], [0], [1], [0, 0, 1, 1], [], []>} : vector<2x256xbf16>, vector<256x128xbf16>, vector<2x128xf32> -> vector<2x128xf32>
    %c0_21 = arith.constant 0 : index
    %c0_22 = arith.constant 0 : index
    %31 = vector.load %arg9[%c0_21, %c0_22] : memref<1x128xf32, #tpu.memory_space<vmem>>, vector<1x128xf32>
    %32 = vector.broadcast %31 : vector<1x128xf32> to vector<2x128xf32>
    %33 = arith.addf %30, %32 : vector<2x128xf32>
    %cst_23 = arith.constant 2.000000e-01 : f32
    %34 = vector.broadcast %cst_23 : f32 to vector<2x128xf32>
    %35 = arith.mulf %34, %33 : vector<2x128xf32>
    %36 = arith.maximumf %33, %35 : vector<2x128xf32>
    %c0_24 = arith.constant 0 : index
    %c0_25 = arith.constant 0 : index
    %37 = vector.load %arg10[%c0_24, %c0_25] : memref<1x128xbf16, #tpu.memory_space<vmem>>, vector<1x128xbf16>
    %38 = arith.truncf %36 : vector<2x128xf32> to vector<2x128xbf16>
    %cst_26 = arith.constant dense<0.000000e+00> : vector<1x2xf32>
    %39 = tpu.matmul %37, %38, %cst_26 {dimension_numbers = #tpu.dot_dimension_numbers<[1], [1], [0], [0], [0, 0, 1, 0], [], []>} : vector<1x128xbf16>, vector<2x128xbf16>, vector<1x2xf32> -> vector<1x2xf32>
    %c0_27 = arith.constant 0 : index
    %c0_28 = arith.constant 0 : index
    %40 = vector.load %arg11[%c0_27, %c0_28] : memref<1x1xf32, #tpu.memory_space<vmem>>, vector<1x1xf32>
    %41 = vector.broadcast %40 : vector<1x1xf32> to vector<1x2xf32>
    %42 = arith.addf %39, %41 : vector<1x2xf32>
    %cst_29 = arith.constant 0.000000e+00 : f32
    %43 = vector.broadcast %cst_29 : f32 to vector<1x2xf32>
    %44 = arith.subf %43, %42 : vector<1x2xf32>
    %45 = math.exp %44 : vector<1x2xf32>
    %cst_30 = arith.constant 1.000000e+00 : f32
    %46 = vector.broadcast %cst_30 : f32 to vector<1x2xf32>
    %47 = arith.addf %46, %45 : vector<1x2xf32>
    %cst_31 = arith.constant 1.000000e+00 : f32
    %48 = vector.broadcast %cst_31 : f32 to vector<1x2xf32>
    %49 = arith.divf %48, %47 : vector<1x2xf32>
    %c0_32 = arith.constant 0 : index
    %c0_33 = arith.constant 0 : index
    %50 = vector.load %arg12[%c0_32, %c0_33] : memref<1x2xf32, #tpu.memory_space<vmem>>, vector<1x2xf32>
    tpu.vector_store %arg12[%c0_32, %c0_33], %49 {strides = array<i32>} : memref<1x2xf32, #tpu.memory_space<vmem>>, vector<1x2xf32>,
    return
  }
  func.func @transform_0(%arg0: i32) -> (i32, i32) {
    %c0_i32 = arith.constant 0 : i32
    %c0_i32_0 = arith.constant 0 : i32
    return %arg0, %c0_i32 : i32, i32
  }
  func.func @transform_1(%arg0: i32) -> (i32, i32) {
    %c0_i32 = arith.constant 0 : i32
    %c0_i32_0 = arith.constant 0 : i32
    %c0_i32_1 = arith.constant 0 : i32
    return %c0_i32, %c0_i32_0 : i32, i32
  }
  func.func @transform_2(%arg0: i32) -> (i32, i32) {
    %c0_i32 = arith.constant 0 : i32
    %c0_i32_0 = arith.constant 0 : i32
    %c0_i32_1 = arith.constant 0 : i32
    return %c0_i32, %c0_i32_0 : i32, i32
  }
  func.func @transform_3(%arg0: i32) -> (i32, i32) {
    %c0_i32 = arith.constant 0 : i32
    %c0_i32_0 = arith.constant 0 : i32
    %c0_i32_1 = arith.constant 0 : i32
    return %c0_i32, %c0_i32_0 : i32, i32
  }
  func.func @transform_4(%arg0: i32) -> (i32, i32) {
    %c0_i32 = arith.constant 0 : i32
    %c0_i32_0 = arith.constant 0 : i32
    %c0_i32_1 = arith.constant 0 : i32
    return %c0_i32, %c0_i32_0 : i32, i32
  }
  func.func @transform_5(%arg0: i32) -> (i32, i32) {
    %c0_i32 = arith.constant 0 : i32
    %c0_i32_0 = arith.constant 0 : i32
    %c0_i32_1 = arith.constant 0 : i32
    return %c0_i32, %c0_i32_0 : i32, i32
  }
  func.func @transform_6(%arg0: i32) -> (i32, i32) {
    %c0_i32 = arith.constant 0 : i32
    %c0_i32_0 = arith.constant 0 : i32
    %c0_i32_1 = arith.constant 0 : i32
    return %c0_i32, %c0_i32_0 : i32, i32
  }
  func.func @transform_7(%arg0: i32) -> (i32, i32) {
    %c0_i32 = arith.constant 0 : i32
    %c0_i32_0 = arith.constant 0 : i32
    %c0_i32_1 = arith.constant 0 : i32
    return %c0_i32, %c0_i32_0 : i32, i32
  }
  func.func @transform_8(%arg0: i32) -> (i32, i32) {
    %c0_i32 = arith.constant 0 : i32
    %c0_i32_0 = arith.constant 0 : i32
    %c0_i32_1 = arith.constant 0 : i32
    return %c0_i32, %c0_i32_0 : i32, i32
  }
  func.func @transform_9(%arg0: i32) -> (i32, i32) {
    %c0_i32 = arith.constant 0 : i32
    %c0_i32_0 = arith.constant 0 : i32
    %c0_i32_1 = arith.constant 0 : i32
    return %c0_i32, %c0_i32_0 : i32, i32
  }
  func.func @transform_10(%arg0: i32) -> (i32, i32) {
    %c0_i32 = arith.constant 0 : i32
    %c0_i32_0 = arith.constant 0 : i32
    %c0_i32_1 = arith.constant 0 : i32
    return %c0_i32, %c0_i32_0 : i32, i32
  }
  func.func @transform_11(%arg0: i32) -> (i32, i32) {
    %c0_i32 = arith.constant 0 : i32
    %c0_i32_0 = arith.constant 0 : i32
    return %c0_i32, %arg0 : i32, i32
  }
}

</mosaic_0001>

<bundles_post_ra>
// kernel: tpu_custom_call.1
= control target key start
LH: loop header
LB: loop body
LE: loop exit
PB: predicated region body
PF: predicated region fallthrough
CT: control target
= control target key end

     0   :  { %s6618_s0 = inlined_call_operand.hbm [shape: f32[2,256], index: 0, kind: input, shape index: {}]   ;;  %s6619_s1 = inlined_call_operand.hbm [shape: bf16[256,1024], index: 1, kind: input, shape index: {}]   ;;  %s6620_s2 = inlined_call_operand.hbm [shape: f32[1,1024], index: 2, kind: input, shape index: {}]   ;;  %s6621_s3 = inlined_call_operand.hbm [shape: bf16[1024,512], index: 3, kind: input, shape index: {}]   ;;  %s6622_s4 = inlined_call_operand.vmem [shape: f32[1,512], index: 4, kind: input, shape index: {}]   ;;  %s6623_s5 = inlined_call_operand.hbm [shape: bf16[512,256], index: 5, kind: input, shape index: {}]   ;;  %s6624_s6 = inlined_call_operand.vmem [shape: f32[1,256], index: 6, kind: input, shape index: {}]   ;;  %s6625_s7 = inlined_call_operand.hbm [shape: bf16[256,128], index: 7, kind: input, shape index: {}]   ;;  %s6626_s8 = inlined_call_operand.vmem [shape: f32[1,128], index: 8, kind: input, shape index: {}]   ;;  %s6627_s9 = inlined_call_operand.vmem [shape: bf16[1,128], index: 9, kind: input, shape index: {}]   ;;  %s6628_s10 = inlined_call_operand.<no memory space> [shape: f32[1,1], index: 10, kind: input, shape index: {}]   ;;  %s6629_s11 = inlined_call_operand.hbm [shape: f32[1,2], index: 11, kind: output, shape index: {}]  }
   0x1   :  { %v16_v0 = vstv %s6628_s10 }
   0x2   :  { %17 = vst [vmem:[#allocation2] sm:$0x1] %v16_v0 }
   0x3   :  { %18 = vsyncpa [#allocation4], 0 }
   0x4   :  { %19 = vsyncpa [#allocation7], 0 }
   0x5   :  { %20 = vsyncpa [#allocation10], 0 }
   0x6   :  { %21 = vsyncpa [#allocation13], 0  ;;  %s38_s21 = sshll.u32 %s6619_s1, 4  ;;  %s39_s21 = int_to_ptr.hbm [resolvable:$true] %s38_s21 }
   0x7   :  { %22 = vsyncpa [#allocation5], 0  ;;  %s6377_s22 = smov [#allocation6]   ;;  %s62_s26 = sshll.u32 %s6621_s3, 4  ;;  %s63_s26 = int_to_ptr.hbm [resolvable:$true] %s62_s26 }
   0x8   :  { %s40_s23 = sshll.u32 %s6377_s22, 4  ;;  %s6378_s27 = smov 512   ;;  %s41_s23 = int_to_ptr.vmem [resolvable:$true] %s40_s23 }
   0x9   :  { %s6379_s10 = smov 32   ;;  %s6380_s28 = smov [#allocation9]  }
   0xa   :  { %46 = dma.hbm_to_vmem [thread:$0]  %s39_s21, 16384, %s41_s23, [#allocation7], %s6378_s27, %s6378_s27, %s6379_s10  }
   0xb   :  { %s64_s29 = sshll.u32 %s6380_s28, 4  ;;  %s6381_s30 = smov 256   ;;  %s65_s29 = int_to_ptr.vmem [resolvable:$true] %s64_s29 }
   0xc   :  { %s6382_s12 = smov 16   ;;  %s28_s14 = sshll.u32 %s6618_s0, 4  ;;  %s29_s14 = int_to_ptr.hbm [resolvable:$true] %s28_s14 }
   0xd   :  { %70 = dma.hbm_to_vmem [thread:$0]  %s63_s26, 32768, %s65_s29, [#allocation10], %s6381_s30, %s6381_s30, %s6382_s12  }
   0xe   :  { %s6383_s15 = smov [#allocation3]   ;;  %s52_s18 = sshll.u32 %s6620_s2, 4  ;;  %s53_s18 = int_to_ptr.hbm [resolvable:$true] %s52_s18 }
   0xf   :  { %s30_s16 = sshll.u32 %s6383_s15, 4  ;;  %s6384_s19 = smov [#allocation8]   ;;  %s31_s16 = int_to_ptr.vmem [resolvable:$true] %s30_s16 }
  0x10   :  { %33 = dma.hbm_to_vmem [thread:$0]  %s29_s14, 64, %s31_s16, [#allocation4]  }
  0x11   :  { %s54_s20 = sshll.u32 %s6384_s19, 4  ;;  %s77_s23 = sshll.u32 %s6623_s5, 4  ;;  %s55_s20 = int_to_ptr.vmem [resolvable:$true] %s54_s20  ;;  %s78_s23 = int_to_ptr.hbm [resolvable:$true] %s77_s23 }
  0x12   :  { %57 = dma.hbm_to_vmem [thread:$0]  %s53_s18, 128, %s55_s20, [#allocation7]  }
  0x13   :  { %s6385_s0 = smov [#allocation11]   ;;  %s92_s27 = sshll.u32 %s6625_s7, 4  ;;  %s93_s27 = int_to_ptr.hbm [resolvable:$true] %s92_s27 }
  0x14   :  { %s79_s24 = sshll.u32 %s6385_s0, 4  ;;  %s6386_s10 = smov 128   ;;  %s80_s24 = int_to_ptr.vmem [resolvable:$true] %s79_s24 }
  0x15   :  { %s6387_s2 = smov 8   ;;  %s6388_s28 = smov [#allocation12]  }
  0x16   :  { %85 = dma.hbm_to_vmem [thread:$0]  %s78_s23, 8192, %s80_s24, [#allocation10], %s6386_s10, %s6386_s10, %s6387_s2  }
  0x17   :  { %s94_s29 = sshll.u32 %s6388_s28, 4  ;;  %s6389_s30 = smov 64   ;;  %s95_s29 = int_to_ptr.vmem [resolvable:$true] %s94_s29 }
  0x18   :  { %s6390_s12 = smov 4  }
  0x19   :  { %100 = dma.hbm_to_vmem [thread:$0]  %s93_s27, 2048, %s95_s29, [#allocation13], %s6389_s30, %s6389_s30, %s6390_s12  }
  0x1a   :  { %6367 = dma.done.wait [#allocation4], 64  }
  0x1b   :  { %6368 = vsyncadd [#allocation4], 4294967232 }
  0x1c   :  { %6369 = dma.done.wait [#allocation7], 16512  }
  0x1d   :  { %6370 = vsyncadd [#allocation7], 4294950784 }
  0x1e   :  { %6371 = dma.done.wait [#allocation10], 40960  }
  0x1f   :  { %6372 = vsyncadd [#allocation10], 4294926336 }
  0x20   :  { %6373 = dma.done.wait [#allocation13], 2048  }
  0x21   :  { %6374 = vsyncadd [#allocation13], 4294965248  ;;  %v4082_v1 = vld [vmem:[#allocation6 + $0x1c0] sm:$0xf]  ;;  %v5768_v6 = vld [vmem:[#allocation6 + $0x1c4] sm:$0xf] }
  0x22   :  { %v5772_v2 = vld [vmem:[#allocation6 + $0x1dc] sm:$0xf0]  ;;  %v4084_v7 = vld [vmem:[#allocation6 + $0x1e0] sm:$0xf0]  ;;  %s3843_s19 = sshll.u32 %s6629_s11, 4  ;;  %vm3834_vm3 = vcmask 8192   ;;  %s3844_s19 = int_to_ptr.hbm [resolvable:$true] %s3843_s19 }
  0x23   :  { %v4338_v3 = vld [vmem:[#allocation6 + $0x3c0] sm:$0xf]  ;;  %v4083_v4 = vor.u32 %v5772_v2, %v4082_v1  ;;  %v4087_v9 = vor.u32 %v5768_v6, %v4084_v7  ;;  %v5832_v10 = vld [vmem:[#allocation6 + $0x3c4] sm:$0xf] }
  0x24   :  { %v5836_v5 = vld [vmem:[#allocation6 + $0x3dc] sm:$0xf0]  ;;  %v4340_v11 = vld [vmem:[#allocation6 + $0x3e0] sm:$0xf0] }
  0x25   :  { %v4339_v8 = vor.u32 %v5836_v5, %v4338_v3  ;;  %v4050_v12 = vld [vmem:[#allocation6 + $0x180] sm:$0xf]  ;;  %927 = vmatpush.bf16.msra.mxu0 %v4083_v4  ;;  %v4343_v13 = vor.u32 %v5832_v10, %v4340_v11  ;;  %953 = vmatpush.bf16.msra.mxu2 %v4087_v9  ;;  %v5760_v19 = vld [vmem:[#allocation6 + $0x184] sm:$0xf] }
  0x26   :  { %v5764_v14 = vld [vmem:[#allocation6 + $0x19c] sm:$0xf0]  ;;  %v4052_v20 = vld [vmem:[#allocation6 + $0x1a0] sm:$0xf0] }
  0x27   :  { %v4306_v15 = vld [vmem:[#allocation6 + $0x380] sm:$0xf]  ;;  %940 = vmatpush.bf16.msra.mxu1 %v4339_v8  ;;  %v4051_v17 = vor.u32 %v5764_v14, %v4050_v12  ;;  %v5824_v21 = vld [vmem:[#allocation6 + $0x384] sm:$0xf]  ;;  %966 = vmatpush.bf16.msra.mxu3 %v4343_v13  ;;  %v4055_v22 = vor.u32 %v5760_v19, %v4052_v20 }
  0x28   :  { %v5828_v16 = vld [vmem:[#allocation6 + $0x39c] sm:$0xf0]  ;;  %v4308_v23 = vld [vmem:[#allocation6 + $0x3a0] sm:$0xf0] }
  0x29   :  { %v4307_v18 = vor.u32 %v5828_v16, %v4306_v15  ;;  %v4018_v24 = vld [vmem:[#allocation6 + $0x140] sm:$0xf]  ;;  %v4311_v26 = vor.u32 %v5824_v21, %v4308_v23  ;;  %v5752_v29 = vld [vmem:[#allocation6 + $0x144] sm:$0xf]  ;;  %928 = vmatpush.bf16.msra.mxu0 %v4051_v17  ;;  %954 = vmatpush.bf16.msra.mxu2 %v4055_v22 }
  0x2a   :  { %v5756_v25 = vld [vmem:[#allocation6 + $0x15c] sm:$0xf0]  ;;  %v4020_v31 = vld [vmem:[#allocation6 + $0x160] sm:$0xf0] }
  0x2b   :  { %v4274_v27 = vld [vmem:[#allocation6 + $0x340] sm:$0xf]  ;;  %v4019_v30 = vor.u32 %v5756_v25, %v4018_v24  ;;  %v5816_v32 = vld [vmem:[#allocation6 + $0x344] sm:$0xf]  ;;  %941 = vmatpush.bf16.msra.mxu1 %v4307_v18  ;;  %v4023_v35 = vor.u32 %v5752_v29, %v4020_v31  ;;  %967 = vmatpush.bf16.msra.mxu3 %v4311_v26  ;;  %v4090_v29 = vld [vmem:[#allocation6 + $0x1c8] sm:$0xf] }
  0x2c   :  { %v5820_v28 = vld [vmem:[#allocation6 + $0x35c] sm:$0xf0]  ;;  %v4276_v33 = vld [vmem:[#allocation6 + $0x360] sm:$0xf0]  ;;  %v4346_v31 = vld [vmem:[#allocation6 + $0x3c8] sm:$0xf] }
  0x2d   :  { %v4275_v34 = vor.u32 %v5820_v28, %v4274_v27  ;;  %v3986_v36 = vld [vmem:[#allocation6 + $0x100] sm:$0xf]  ;;  %v4279_v39 = vor.u32 %v5816_v32, %v4276_v33  ;;  %v5744_v41 = vld [vmem:[#allocation6 + $0x104] sm:$0xf]  ;;  %929 = vmatpush.bf16.msra.mxu0 %v4019_v30  ;;  %955 = vmatpush.bf16.msra.mxu2 %v4023_v35  ;;  %v5773_v30 = vld [vmem:[#allocation6 + $0x1e4] sm:$0xf0] }
  0x2e   :  { %v5748_v37 = vld [vmem:[#allocation6 + $0x11c] sm:$0xf0]  ;;  %v3988_v42 = vld [vmem:[#allocation6 + $0x120] sm:$0xf0]  ;;  %v5837_v33 = vld [vmem:[#allocation6 + $0x3e4] sm:$0xf0] }
  0x2f   :  { %v4242_v38 = vld [vmem:[#allocation6 + $0x300] sm:$0xf]  ;;  %v5808_v43 = vld [vmem:[#allocation6 + $0x304] sm:$0xf]  ;;  %v3987_v45 = vor.u32 %v5748_v37, %v3986_v36  ;;  %942 = vmatpush.bf16.msra.mxu1 %v4275_v34  ;;  %v3991_v47 = vor.u32 %v5744_v41, %v3988_v42  ;;  %968 = vmatpush.bf16.msra.mxu3 %v4279_v39  ;;  %v5769_v34 = vld [vmem:[#allocation6 + $0x1cc] sm:$0xf]  ;;  %v4091_v41 = vor.u32 %v5773_v30, %v4090_v29 }
  0x30   :  { %v5812_v40 = vld [vmem:[#allocation6 + $0x31c] sm:$0xf0]  ;;  %v4244_v44 = vld [vmem:[#allocation6 + $0x320] sm:$0xf0]  ;;  %v4092_v35 = vld [vmem:[#allocation6 + $0x1e8] sm:$0xf0]  ;;  %v4347_v42 = vor.u32 %v5837_v33, %v4346_v31 }
  0x31   :  { %v4243_v46 = vor.u32 %v5812_v40, %v4242_v38  ;;  %v3954_v48 = vld [vmem:[#allocation6 + $0xc0] sm:$0xf]  ;;  %v4247_v51 = vor.u32 %v5808_v43, %v4244_v44  ;;  %v5736_v53 = vld [vmem:[#allocation6 + $0xc4] sm:$0xf]  ;;  %930 = vmatpush.bf16.msra.mxu0 %v3987_v45  ;;  %956 = vmatpush.bf16.msra.mxu2 %v3991_v47  ;;  %v5833_v38 = vld [vmem:[#allocation6 + $0x3cc] sm:$0xf]  ;;  %v4095_v43 = vor.u32 %v5769_v34, %v4092_v35 }
  0x32   :  { %v5740_v49 = vld [vmem:[#allocation6 + $0xdc] sm:$0xf0]  ;;  %v3956_v54 = vld [vmem:[#allocation6 + $0xe0] sm:$0xf0]  ;;  %v4348_v39 = vld [vmem:[#allocation6 + $0x3e8] sm:$0xf0] }
  0x33   :  { %v4210_v50 = vld [vmem:[#allocation6 + $0x2c0] sm:$0xf]  ;;  %v5800_v55 = vld [vmem:[#allocation6 + $0x2c4] sm:$0xf]  ;;  %v3955_v57 = vor.u32 %v5740_v49, %v3954_v48  ;;  %943 = vmatpush.bf16.msra.mxu1 %v4243_v46  ;;  %v3959_v59 = vor.u32 %v5736_v53, %v3956_v54  ;;  %969 = vmatpush.bf16.msra.mxu3 %v4247_v51  ;;  %v4058_v44 = vld [vmem:[#allocation6 + $0x188] sm:$0xf]  ;;  %v4351_v47 = vor.u32 %v5833_v38, %v4348_v39 }
  0x34   :  { %v5804_v52 = vld [vmem:[#allocation6 + $0x2dc] sm:$0xf0]  ;;  %v4212_v56 = vld [vmem:[#allocation6 + $0x2e0] sm:$0xf0]  ;;  %v5765_v45 = vld [vmem:[#allocation6 + $0x1a4] sm:$0xf0] }
  0x35   :  { %v4211_v58 = vor.u32 %v5804_v52, %v4210_v50  ;;  %v3922_v60 = vld [vmem:[#allocation6 + $0x80] sm:$0xf]  ;;  %v4215_v63 = vor.u32 %v5800_v55, %v4212_v56  ;;  %v5728_v1 = vld [vmem:[#allocation6 + $0x84] sm:$0xf]  ;;  %931 = vmatpush.bf16.msra.mxu0 %v3955_v57  ;;  %957 = vmatpush.bf16.msra.mxu2 %v3959_v59  ;;  %v4314_v46 = vld [vmem:[#allocation6 + $0x388] sm:$0xf]  ;;  %v4059_v54 = vor.u32 %v5765_v45, %v4058_v44 }
  0x36   :  { %v5732_v61 = vld [vmem:[#allocation6 + $0x9c] sm:$0xf0]  ;;  %v3924_v2 = vld [vmem:[#allocation6 + $0xa0] sm:$0xf0]  ;;  %v5829_v48 = vld [vmem:[#allocation6 + $0x3a4] sm:$0xf0] }
  0x37   :  { %v4178_v62 = vld [vmem:[#allocation6 + $0x280] sm:$0xf]  ;;  %v5792_v3 = vld [vmem:[#allocation6 + $0x284] sm:$0xf]  ;;  %v3923_v5 = vor.u32 %v5732_v61, %v3922_v60  ;;  %944 = vmatpush.bf16.msra.mxu1 %v4211_v58  ;;  %v3927_v7 = vor.u32 %v5728_v1, %v3924_v2  ;;  %970 = vmatpush.bf16.msra.mxu3 %v4215_v63  ;;  %v5761_v49 = vld [vmem:[#allocation6 + $0x18c] sm:$0xf]  ;;  %v4315_v55 = vor.u32 %v5829_v48, %v4314_v46 }
  0x38   :  { %v5796_v0 = vld [vmem:[#allocation6 + $0x29c] sm:$0xf0]  ;;  %v4180_v4 = vld [vmem:[#allocation6 + $0x2a0] sm:$0xf0]  ;;  %v4060_v50 = vld [vmem:[#allocation6 + $0x1a8] sm:$0xf0] }
  0x39   :  { %v4179_v6 = vor.u32 %v5796_v0, %v4178_v62  ;;  %v3890_v8 = vld [vmem:[#allocation6 + $0x40] sm:$0xf]  ;;  %v4183_v11 = vor.u32 %v5792_v3, %v4180_v4  ;;  %v5720_v13 = vld [vmem:[#allocation6 + $0x44] sm:$0xf]  ;;  %932 = vmatpush.bf16.msra.mxu0 %v3923_v5  ;;  %958 = vmatpush.bf16.msra.mxu2 %v3927_v7  ;;  %v5825_v51 = vld [vmem:[#allocation6 + $0x38c] sm:$0xf]  ;;  %v4063_v56 = vor.u32 %v5761_v49, %v4060_v50 }
  0x3a   :  { %v5724_v9 = vld [vmem:[#allocation6 + $0x5c] sm:$0xf0]  ;;  %v3892_v14 = vld [vmem:[#allocation6 + $0x60] sm:$0xf0]  ;;  %v4316_v52 = vld [vmem:[#allocation6 + $0x3a8] sm:$0xf0] }
  0x3b   :  { %v4146_v10 = vld [vmem:[#allocation6 + $0x240] sm:$0xf]  ;;  %v5784_v15 = vld [vmem:[#allocation6 + $0x244] sm:$0xf]  ;;  %v3891_v17 = vor.u32 %v5724_v9, %v3890_v8  ;;  %945 = vmatpush.bf16.msra.mxu1 %v4179_v6  ;;  %v3895_v21 = vor.u32 %v5720_v13, %v3892_v14  ;;  %971 = vmatpush.bf16.msra.mxu3 %v4183_v11  ;;  %v132_v53 = vld [vmem:[#allocation3] sm:$0xf]  ;;  %v4319_v60 = vor.u32 %v5825_v51, %v4316_v52 }
  0x3c   :  { %v5788_v12 = vld [vmem:[#allocation6 + $0x25c] sm:$0xf0]  ;;  %v4148_v16 = vld [vmem:[#allocation6 + $0x260] sm:$0xf0]  ;;  %134 = vst [vmem:[#allocation1] ss:$4 sm:$0xff] %v132_v53 }
  0x3d   :  { %v3858_v18 = vld [vmem:[#allocation6] sm:$0xf]  ;;  %v4147_v20 = vor.u32 %v5788_v12, %v4146_v10  ;;  %v5712_v24 = vld [vmem:[#allocation6 + $0x4] sm:$0xf]  ;;  %v4151_v25 = vor.u32 %v5784_v15, %v4148_v16  ;;  %933 = vmatpush.bf16.msra.mxu0 %v3891_v17  ;;  %959 = vmatpush.bf16.msra.mxu2 %v3895_v21  ;;  %v4026_v57 = vld [vmem:[#allocation6 + $0x148] sm:$0xf] }
  0x3e   :  { %v5716_v19 = vld [vmem:[#allocation6 + $0x1c] sm:$0xf0]  ;;  %v3860_v26 = vld [vmem:[#allocation6 + $0x20] sm:$0xf0]  ;;  %v5757_v58 = vld [vmem:[#allocation6 + $0x164] sm:$0xf0] }
  0x3f   :  { %v4114_v22 = vld [vmem:[#allocation6 + $0x200] sm:$0xf]  ;;  %v5776_v27 = vld [vmem:[#allocation6 + $0x204] sm:$0xf]  ;;  %v3859_v32 = vor.u32 %v5716_v19, %v3858_v18  ;;  %946 = vmatpush.bf16.msra.mxu1 %v4147_v20  ;;  %v3863_v37 = vor.u32 %v5712_v24, %v3860_v26  ;;  %972 = vmatpush.bf16.msra.mxu3 %v4151_v25  ;;  %v4282_v59 = vld [vmem:[#allocation6 + $0x348] sm:$0xf]  ;;  %v4027_v2 = vor.u32 %v5757_v58, %v4026_v57 }
  0x40   :  { %v5780_v23 = vld [vmem:[#allocation6 + $0x21c] sm:$0xf0]  ;;  %v4116_v28 = vld [vmem:[#allocation6 + $0x220] sm:$0xf0]  ;;  %v5821_v61 = vld [vmem:[#allocation6 + $0x364] sm:$0xf0] }
  0x41   :  { %v4115_v36 = vor.u32 %v5780_v23, %v4114_v22  ;;  %v4119_v40 = vor.u32 %v5776_v27, %v4116_v28  ;;  %934 = vmatpush.bf16.msra.mxu0 %v3859_v32  ;;  %960 = vmatpush.bf16.msra.mxu2 %v3863_v37  ;;  %v5753_v62 = vld [vmem:[#allocation6 + $0x14c] sm:$0xf]  ;;  %v3994_v3 = vld [vmem:[#allocation6 + $0x108] sm:$0xf]  ;;  %v4283_v5 = vor.u32 %v5821_v61, %v4282_v59 }
  0x42   :  { %v4028_v63 = vld [vmem:[#allocation6 + $0x168] sm:$0xf0]  ;;  %v5749_v4 = vld [vmem:[#allocation6 + $0x124] sm:$0xf0] }
  0x43   :  { %947 = vmatpush.bf16.msra.mxu1 %v4115_v36  ;;  %973 = vmatpush.bf16.msra.mxu3 %v4119_v40  ;;  %v5817_v0 = vld [vmem:[#allocation6 + $0x34c] sm:$0xf]  ;;  %v4031_v6 = vor.u32 %v5753_v62, %v4028_v63  ;;  %v4250_v7 = vld [vmem:[#allocation6 + $0x308] sm:$0xf]  ;;  %v3995_v16 = vor.u32 %v5749_v4, %v3994_v3  ;;  %v5774_v3 = vld [vmem:[#allocation6 + $0x1ec] sm:$0xf0] }
  0x44   :  { %v4284_v1 = vld [vmem:[#allocation6 + $0x368] sm:$0xf0]  ;;  %v5813_v8 = vld [vmem:[#allocation6 + $0x324] sm:$0xf0]  ;;  %v4354_v4 = vld [vmem:[#allocation6 + $0x3d0] sm:$0xf] }
  0x45   :  { %979 = vmatpush.bf16.msrb.mxu0 %v4091_v41  ;;  %1005 = vmatpush.bf16.msrb.mxu2 %v4095_v43  ;;  %v5745_v9 = vld [vmem:[#allocation6 + $0x10c] sm:$0xf]  ;;  %v4287_v10 = vor.u32 %v5817_v0, %v4284_v1  ;;  %v135_v14 = vld.sshfl [vmem:[#allocation1] sm:$0xff pattern:$0x73625140]  ;;  %v4251_v19 = vor.u32 %v5813_v8, %v4250_v7 }
  0x46   :  { %v3996_v11 = vld [vmem:[#allocation6 + $0x128] sm:$0xf0]  ;;  %v136_v15 = vld.sshfl [vmem:[#allocation1 + $0x8] sm:$0xff pattern:$0x73625140]  ;;  %v6474_v17 = vpack.c.bf16 %v135_v14, %v135_v14 }
  0x47   :  { %992 = vmatpush.bf16.msrb.mxu1 %v4347_v42  ;;  %1018 = vmatpush.bf16.msrb.mxu3 %v4351_v47  ;;  %v5809_v12 = vld [vmem:[#allocation6 + $0x30c] sm:$0xf]  ;;  %v6476_v18 = vpack.c.bf16 %v136_v15, %v136_v15  ;;  %v3999_v20 = vor.u32 %v5745_v9, %v3996_v11  ;;  %v3962_v21 = vld [vmem:[#allocation6 + $0xc8] sm:$0xf]  ;;  %v5770_v7 = vld [vmem:[#allocation6 + $0x1d4] sm:$0xf] }
  0x48   :  { %v4252_v13 = vld [vmem:[#allocation6 + $0x328] sm:$0xf0]  ;;  %v5741_v22 = vld [vmem:[#allocation6 + $0xe4] sm:$0xf0]  ;;  %935 = vmatmul.bf16.vlgmr.msra.gmra.mxu0 %v6474_v17  ;;  %961 = vmatmul.bf16.vlgmr.msra.gmra.mxu2 %v6474_v17  ;;  %v4100_v8 = vld [vmem:[#allocation6 + $0x1f0] sm:$0xf0] }
  0x49   :  { %980 = vmatpush.bf16.msrb.mxu0 %v4059_v54  ;;  %1006 = vmatpush.bf16.msrb.mxu2 %v4063_v56  ;;  %v4218_v23 = vld [vmem:[#allocation6 + $0x2c8] sm:$0xf]  ;;  %v4255_v24 = vor.u32 %v5809_v12, %v4252_v13  ;;  %v5737_v26 = vld [vmem:[#allocation6 + $0xcc] sm:$0xf]  ;;  %v3963_v30 = vor.u32 %v5741_v22, %v3962_v21  ;;  %v5834_v11 = vld [vmem:[#allocation6 + $0x3d4] sm:$0xf] }
  0x4a   :  { %v5805_v25 = vld [vmem:[#allocation6 + $0x2e4] sm:$0xf0]  ;;  %v3964_v27 = vld [vmem:[#allocation6 + $0xe8] sm:$0xf0]  ;;  %948 = vmatmul.bf16.vlgmr.msra.gmra.mxu1 %v6476_v18  ;;  %974 = vmatmul.bf16.vlgmr.msra.gmra.mxu3 %v6476_v18  ;;  %v4356_v12 = vld [vmem:[#allocation6 + $0x3f0] sm:$0xf0] }
  0x4b   :  { %993 = vmatpush.bf16.msrb.mxu1 %v4315_v55  ;;  %1019 = vmatpush.bf16.msrb.mxu3 %v4319_v60  ;;  %v5801_v28 = vld [vmem:[#allocation6 + $0x2cc] sm:$0xf]  ;;  %v4219_v31 = vor.u32 %v5805_v25, %v4218_v23  ;;  %v3967_v32 = vor.u32 %v5737_v26, %v3964_v27  ;;  %v3930_v33 = vld [vmem:[#allocation6 + $0x88] sm:$0xf]  ;;  %v4322_v21 = vld [vmem:[#allocation6 + $0x390] sm:$0xf]  ;;  %v4359_v22 = vor.u32 %v5834_v11, %v4356_v12 }
  0x4c   :  { %v4220_v29 = vld [vmem:[#allocation6 + $0x2e8] sm:$0xf0]  ;;  %v5733_v34 = vld [vmem:[#allocation6 + $0xa4] sm:$0xf0]  ;;  %v5830_v23 = vld [vmem:[#allocation6 + $0x3ac] sm:$0xf0] }
  0x4d   :  { %981 = vmatpush.bf16.msrb.mxu0 %v4027_v2  ;;  %1007 = vmatpush.bf16.msrb.mxu2 %v4031_v6  ;;  %v4186_v35 = vld [vmem:[#allocation6 + $0x288] sm:$0xf]  ;;  %v4223_v36 = vor.u32 %v5801_v28, %v4220_v29  ;;  %v5729_v38 = vld [vmem:[#allocation6 + $0x8c] sm:$0xf]  ;;  %v3931_v42 = vor.u32 %v5733_v34, %v3930_v33  ;;  %v4098_v2 = vld [vmem:[#allocation6 + $0x1d0] sm:$0xf]  ;;  %v4323_v29 = vor.u32 %v5830_v23, %v4322_v21 }
  0x4e   :  { %v5797_v37 = vld [vmem:[#allocation6 + $0x2a4] sm:$0xf0]  ;;  %v3932_v39 = vld [vmem:[#allocation6 + $0xa8] sm:$0xf0]  ;;  %v5838_v6 = vld [vmem:[#allocation6 + $0x3ec] sm:$0xf0]  ;;  %v4099_v14 = vor.u32 %v5774_v3, %v4098_v2 }
  0x4f   :  { %994 = vmatpush.bf16.msrb.mxu1 %v4283_v5  ;;  %1020 = vmatpush.bf16.msrb.mxu3 %v4287_v10  ;;  %v5793_v40 = vld [vmem:[#allocation6 + $0x28c] sm:$0xf]  ;;  %v4187_v43 = vor.u32 %v5797_v37, %v4186_v35  ;;  %v3935_v44 = vor.u32 %v5729_v38, %v3932_v39  ;;  %v3898_v45 = vld [vmem:[#allocation6 + $0x48] sm:$0xf]  ;;  %v4355_v15 = vor.u32 %v5838_v6, %v4354_v4  ;;  %v4068_v25 = vld [vmem:[#allocation6 + $0x1b0] sm:$0xf0] }
  0x50   :  { %v4188_v41 = vld [vmem:[#allocation6 + $0x2a8] sm:$0xf0]  ;;  %v5725_v46 = vld [vmem:[#allocation6 + $0x64] sm:$0xf0]  ;;  %v5826_v26 = vld [vmem:[#allocation6 + $0x394] sm:$0xf] }
  0x51   :  { %982 = vmatpush.bf16.msrb.mxu0 %v3995_v16  ;;  %1008 = vmatpush.bf16.msrb.mxu2 %v3999_v20  ;;  %v4154_v47 = vld [vmem:[#allocation6 + $0x248] sm:$0xf]  ;;  %v4191_v48 = vor.u32 %v5793_v40, %v4188_v41  ;;  %v5721_v50 = vld [vmem:[#allocation6 + $0x4c] sm:$0xf]  ;;  %v3899_v54 = vor.u32 %v5725_v46, %v3898_v45  ;;  %v4103_v16 = vor.u32 %v5770_v7, %v4100_v8  ;;  %v5766_v20 = vld [vmem:[#allocation6 + $0x1ac] sm:$0xf0] }
  0x52   :  { %v5789_v49 = vld [vmem:[#allocation6 + $0x264] sm:$0xf0]  ;;  %v3900_v51 = vld [vmem:[#allocation6 + $0x68] sm:$0xf0]  ;;  %v4324_v27 = vld [vmem:[#allocation6 + $0x3b0] sm:$0xf0] }
  0x53   :  { %995 = vmatpush.bf16.msrb.mxu1 %v4251_v19  ;;  %1021 = vmatpush.bf16.msrb.mxu3 %v4255_v24  ;;  %v5785_v52 = vld [vmem:[#allocation6 + $0x24c] sm:$0xf]  ;;  %v3866_v55 = vld [vmem:[#allocation6 + $0x8] sm:$0xf]  ;;  %v4155_v57 = vor.u32 %v5789_v49, %v4154_v47  ;;  %v3903_v58 = vor.u32 %v5721_v50, %v3900_v51  ;;  %v4066_v19 = vld [vmem:[#allocation6 + $0x190] sm:$0xf]  ;;  %v4327_v34 = vor.u32 %v5826_v26, %v4324_v27 }
  0x54   :  { %v4156_v53 = vld [vmem:[#allocation6 + $0x268] sm:$0xf0]  ;;  %v5717_v56 = vld [vmem:[#allocation6 + $0x24] sm:$0xf0]  ;;  %v5762_v24 = vld [vmem:[#allocation6 + $0x194] sm:$0xf]  ;;  %v4067_v28 = vor.u32 %v5766_v20, %v4066_v19 }
  0x55   :  { %983 = vmatpush.bf16.msrb.mxu0 %v3963_v30  ;;  %1009 = vmatpush.bf16.msrb.mxu2 %v3967_v32  ;;  %v4122_v59 = vld [vmem:[#allocation6 + $0x208] sm:$0xf]  ;;  %v5713_v61 = vld [vmem:[#allocation6 + $0xc] sm:$0xf]  ;;  %v4159_v62 = vor.u32 %v5785_v52, %v4156_v53  ;;  %v3867_v5 = vor.u32 %v5717_v56, %v3866_v55  ;;  %v4071_v30 = vor.u32 %v5762_v24, %v4068_v25  ;;  %v5758_v32 = vld [vmem:[#allocation6 + $0x16c] sm:$0xf0] }
  0x56   :  { %v5781_v60 = vld [vmem:[#allocation6 + $0x224] sm:$0xf0]  ;;  %v3868_v63 = vld [vmem:[#allocation6 + $0x28] sm:$0xf0]  ;;  %v4290_v33 = vld [vmem:[#allocation6 + $0x350] sm:$0xf] }
  0x57   :  { %996 = vmatpush.bf16.msrb.mxu1 %v4219_v31  ;;  %1022 = vmatpush.bf16.msrb.mxu3 %v4223_v36  ;;  %v5777_v0 = vld [vmem:[#allocation6 + $0x20c] sm:$0xf]  ;;  %v4123_v9 = vor.u32 %v5781_v60, %v4122_v59  ;;  %v3871_v10 = vor.u32 %v5713_v61, %v3868_v63  ;;  %v4034_v31 = vld [vmem:[#allocation6 + $0x150] sm:$0xf]  ;;  %v5754_v36 = vld [vmem:[#allocation6 + $0x154] sm:$0xf] }
  0x58   :  { %v4124_v1 = vld [vmem:[#allocation6 + $0x228] sm:$0xf0]  ;;  %v5822_v35 = vld [vmem:[#allocation6 + $0x36c] sm:$0xf0]  ;;  %v4036_v37 = vld [vmem:[#allocation6 + $0x170] sm:$0xf0]  ;;  %v4035_v40 = vor.u32 %v5758_v32, %v4034_v31 }
  0x59   :  { %984 = vmatpush.bf16.msrb.mxu0 %v3931_v42  ;;  %1010 = vmatpush.bf16.msrb.mxu2 %v3935_v44  ;;  %v4127_v13 = vor.u32 %v5777_v0, %v4124_v1  ;;  %v5818_v38 = vld [vmem:[#allocation6 + $0x354] sm:$0xf]  ;;  %v4291_v41 = vor.u32 %v5822_v35, %v4290_v33  ;;  %v4039_v42 = vor.u32 %v5754_v36, %v4036_v37  ;;  %v5750_v44 = vld [vmem:[#allocation6 + $0x12c] sm:$0xf0] }
  0x5a   :  { %v4292_v39 = vld [vmem:[#allocation6 + $0x370] sm:$0xf0]  ;;  %v4258_v45 = vld [vmem:[#allocation6 + $0x310] sm:$0xf] }
  0x5b   :  { %997 = vmatpush.bf16.msrb.mxu1 %v4187_v43  ;;  %1023 = vmatpush.bf16.msrb.mxu3 %v4191_v48  ;;  %v4002_v43 = vld [vmem:[#allocation6 + $0x110] sm:$0xf]  ;;  %v4295_v46 = vor.u32 %v5818_v38, %v4292_v39  ;;  %v5746_v48 = vld [vmem:[#allocation6 + $0x114] sm:$0xf]  ;;  %v4106_v38 = vld [vmem:[#allocation6 + $0x1d8] sm:$0xf] }
  0x5c   :  { %v5814_v47 = vld [vmem:[#allocation6 + $0x32c] sm:$0xf0]  ;;  %v4004_v49 = vld [vmem:[#allocation6 + $0x130] sm:$0xf0]  ;;  %v4003_v52 = vor.u32 %v5750_v44, %v4002_v43  ;;  %v5775_v39 = vld [vmem:[#allocation6 + $0x1f4] sm:$0xf0] }
  0x5d   :  { %985 = vmatpush.bf16.msrb.mxu0 %v3899_v54  ;;  %1011 = vmatpush.bf16.msrb.mxu2 %v3903_v58  ;;  %v5810_v50 = vld [vmem:[#allocation6 + $0x314] sm:$0xf]  ;;  %v4259_v53 = vor.u32 %v5814_v47, %v4258_v45  ;;  %v4007_v54 = vor.u32 %v5746_v48, %v4004_v49  ;;  %v3970_v55 = vld [vmem:[#allocation6 + $0xd0] sm:$0xf]  ;;  %v5771_v43 = vld [vmem:[#allocation6 + $0x1dc] sm:$0xf] }
  0x5e   :  { %v4260_v51 = vld [vmem:[#allocation6 + $0x330] sm:$0xf0]  ;;  %v5742_v56 = vld [vmem:[#allocation6 + $0xec] sm:$0xf0]  ;;  %v4108_v44 = vld [vmem:[#allocation6 + $0x1f8] sm:$0xf0] }
  0x5f   :  { %998 = vmatpush.bf16.msrb.mxu1 %v4155_v57  ;;  %1024 = vmatpush.bf16.msrb.mxu3 %v4159_v62  ;;  %v4226_v57 = vld [vmem:[#allocation6 + $0x2d0] sm:$0xf]  ;;  %v4263_v58 = vor.u32 %v5810_v50, %v4260_v51  ;;  %v5738_v60 = vld [vmem:[#allocation6 + $0xd4] sm:$0xf]  ;;  %v3971_v0 = vor.u32 %v5742_v56, %v3970_v55  ;;  %v5835_v47 = vld [vmem:[#allocation6 + $0x3dc] sm:$0xf]  ;;  %v4107_v50 = vor.u32 %v5775_v39, %v4106_v38 }
  0x60   :  { %v5806_v59 = vld [vmem:[#allocation6 + $0x2ec] sm:$0xf0]  ;;  %v3972_v61 = vld [vmem:[#allocation6 + $0xf0] sm:$0xf0]  ;;  %v4364_v48 = vld [vmem:[#allocation6 + $0x3f8] sm:$0xf0] }
  0x61   :  { %986 = vmatpush.bf16.msrb.mxu0 %v3867_v5  ;;  %1012 = vmatpush.bf16.msrb.mxu2 %v3871_v10  ;;  %v5802_v62 = vld [vmem:[#allocation6 + $0x2d4] sm:$0xf]  ;;  %v4227_v1 = vor.u32 %v5806_v59, %v4226_v57  ;;  %v3975_v2 = vor.u32 %v5738_v60, %v3972_v61  ;;  %v3938_v3 = vld [vmem:[#allocation6 + $0x90] sm:$0xf]  ;;  %v4330_v55 = vld [vmem:[#allocation6 + $0x398] sm:$0xf]  ;;  %v4367_v56 = vor.u32 %v5835_v47, %v4364_v48 }
  0x62   :  { %v4228_v63 = vld [vmem:[#allocation6 + $0x2f0] sm:$0xf0]  ;;  %v5734_v4 = vld [vmem:[#allocation6 + $0xac] sm:$0xf0]  ;;  %v5831_v57 = vld [vmem:[#allocation6 + $0x3b4] sm:$0xf0] }
  0x63   :  { %999 = vmatpush.bf16.msrb.mxu1 %v4123_v9  ;;  %1025 = vmatpush.bf16.msrb.mxu3 %v4127_v13  ;;  %v4194_v5 = vld [vmem:[#allocation6 + $0x290] sm:$0xf]  ;;  %v4231_v6 = vor.u32 %v5802_v62, %v4228_v63  ;;  %v5730_v8 = vld [vmem:[#allocation6 + $0x94] sm:$0xf]  ;;  %v3939_v12 = vor.u32 %v5734_v4, %v3938_v3  ;;  %v4076_v59 = vld [vmem:[#allocation6 + $0x1b8] sm:$0xf0]  ;;  %v4331_v63 = vor.u32 %v5831_v57, %v4330_v55 }
  0x64   :  { %987 = vmatmul.bf16.vlgmr.msrb.gmra.mxu0 %v6474_v17  ;;  %1013 = vmatmul.bf16.vlgmr.msrb.gmra.mxu2 %v6474_v17  ;;  %v5798_v7 = vld [vmem:[#allocation6 + $0x2ac] sm:$0xf0]  ;;  %v3940_v9 = vld [vmem:[#allocation6 + $0xb0] sm:$0xf0]  ;;  %v5827_v60 = vld [vmem:[#allocation6 + $0x39c] sm:$0xf] }
  0x65   :  { %1031 = vmatpush.bf16.msra.mxu0 %v4099_v14  ;;  %1057 = vmatpush.bf16.msra.mxu2 %v4103_v16  ;;  %v5794_v10 = vld [vmem:[#allocation6 + $0x294] sm:$0xf]  ;;  %v4195_v13 = vor.u32 %v5798_v7, %v4194_v5  ;;  %v3943_v14 = vor.u32 %v5730_v8, %v3940_v9  ;;  %v5726_v16 = vld [vmem:[#allocation6 + $0x6c] sm:$0xf0]  ;;  %v4332_v61 = vld [vmem:[#allocation6 + $0x3b8] sm:$0xf0] }
  0x66   :  { %1000 = vmatmul.bf16.vlgmr.msrb.gmra.mxu1 %v6476_v18  ;;  %1026 = vmatmul.bf16.vlgmr.msrb.gmra.mxu3 %v6476_v18  ;;  %v4196_v11 = vld [vmem:[#allocation6 + $0x2b0] sm:$0xf0]  ;;  %v4162_v19 = vld [vmem:[#allocation6 + $0x250] sm:$0xf]  ;;  %v4298_v3 = vld [vmem:[#allocation6 + $0x358] sm:$0xf]  ;;  %v4335_v4 = vor.u32 %v5827_v60, %v4332_v61 }
  0x67   :  { %1044 = vmatpush.bf16.msra.mxu1 %v4355_v15  ;;  %1070 = vmatpush.bf16.msra.mxu3 %v4359_v22  ;;  %v3906_v15 = vld [vmem:[#allocation6 + $0x50] sm:$0xf]  ;;  %v4199_v20 = vor.u32 %v5794_v10, %v4196_v11  ;;  %v5722_v22 = vld [vmem:[#allocation6 + $0x54] sm:$0xf]  ;;  %v5823_v5 = vld [vmem:[#allocation6 + $0x374] sm:$0xf0] }
  0x68   :  { %v5790_v21 = vld [vmem:[#allocation6 + $0x26c] sm:$0xf0]  ;;  %v3908_v23 = vld [vmem:[#allocation6 + $0x70] sm:$0xf0]  ;;  %v3907_v26 = vor.u32 %v5726_v16, %v3906_v15  ;;  %v4044_v7 = vld [vmem:[#allocation6 + $0x178] sm:$0xf0]  ;;  %v4299_v11 = vor.u32 %v5823_v5, %v4298_v3 }
  0x69   :  { %1032 = vmatpush.bf16.msra.mxu0 %v4067_v28  ;;  %1058 = vmatpush.bf16.msra.mxu2 %v4071_v30  ;;  %v5786_v24 = vld [vmem:[#allocation6 + $0x254] sm:$0xf]  ;;  %v3874_v27 = vld [vmem:[#allocation6 + $0x10] sm:$0xf]  ;;  %v3911_v30 = vor.u32 %v5722_v22, %v3908_v23  ;;  %v5819_v8 = vld [vmem:[#allocation6 + $0x35c] sm:$0xf] }
  0x6a   :  { %v4164_v25 = vld [vmem:[#allocation6 + $0x270] sm:$0xf0]  ;;  %v5718_v28 = vld [vmem:[#allocation6 + $0x2c] sm:$0xf0]  ;;  %v4300_v9 = vld [vmem:[#allocation6 + $0x378] sm:$0xf0] }
  0x6b   :  { %1045 = vmatpush.bf16.msra.mxu1 %v4323_v29  ;;  %1071 = vmatpush.bf16.msra.mxu3 %v4327_v34  ;;  %v4163_v29 = vor.u32 %v5790_v21, %v4162_v19  ;;  %v4130_v31 = vld [vmem:[#allocation6 + $0x210] sm:$0xf]  ;;  %v5714_v33 = vld [vmem:[#allocation6 + $0x14] sm:$0xf]  ;;  %v4167_v34 = vor.u32 %v5786_v24, %v4164_v25  ;;  %v4266_v15 = vld [vmem:[#allocation6 + $0x318] sm:$0xf]  ;;  %v4303_v16 = vor.u32 %v5819_v8, %v4300_v9 }
  0x6c   :  { %v5782_v32 = vld [vmem:[#allocation6 + $0x22c] sm:$0xf0]  ;;  %v3876_v35 = vld [vmem:[#allocation6 + $0x30] sm:$0xf0]  ;;  %v5815_v19 = vld [vmem:[#allocation6 + $0x334] sm:$0xf0] }
  0x6d   :  { %1033 = vmatpush.bf16.msra.mxu0 %v4035_v40  ;;  %1059 = vmatpush.bf16.msra.mxu2 %v4039_v42  ;;  %v5778_v36 = vld [vmem:[#allocation6 + $0x214] sm:$0xf]  ;;  %v4362_v40 = vld [vmem:[#allocation6 + $0x3d8] sm:$0xf]  ;;  %v4131_v45 = vor.u32 %v5782_v32, %v4130_v31  ;;  %v4012_v21 = vld [vmem:[#allocation6 + $0x138] sm:$0xf0]  ;;  %v4267_v25 = vor.u32 %v5815_v19, %v4266_v15 }
  0x6e   :  { %v4132_v37 = vld [vmem:[#allocation6 + $0x230] sm:$0xf0]  ;;  %v5839_v42 = vld [vmem:[#allocation6 + $0x3f4] sm:$0xf0]  ;;  %v5811_v22 = vld [vmem:[#allocation6 + $0x31c] sm:$0xf] }
  0x6f   :  { %1046 = vmatpush.bf16.msra.mxu1 %v4291_v41  ;;  %1072 = vmatpush.bf16.msra.mxu3 %v4295_v46  ;;  %v3875_v41 = vor.u32 %v5718_v28, %v3874_v27  ;;  %v3879_v46 = vor.u32 %v5714_v33, %v3876_v35  ;;  %v4135_v49 = vor.u32 %v5778_v36, %v4132_v37  ;;  %v4268_v23 = vld [vmem:[#allocation6 + $0x338] sm:$0xf0]  ;;  %v3978_v27 = vld [vmem:[#allocation6 + $0xd8] sm:$0xf]  ;;  %v4482_v8 = vld [vmem:[#allocation9 + $0xe0] sm:$0xf] }
  0x70   :  { %v4363_v51 = vor.u32 %v5839_v42, %v4362_v40  ;;  %v5743_v28 = vld [vmem:[#allocation6 + $0xf4] sm:$0xf0]  ;;  %v5739_v32 = vld [vmem:[#allocation6 + $0xdc] sm:$0xf]  ;;  %v4738_v19 = vld [vmem:[#allocation9 + $0x2e0] sm:$0xf] }
  0x71   :  { %1034 = vmatpush.bf16.msra.mxu0 %v4003_v52  ;;  %1060 = vmatpush.bf16.msra.mxu2 %v4007_v54  ;;  %v4111_v52 = vor.u32 %v5771_v43, %v4108_v44  ;;  %v5767_v54 = vld [vmem:[#allocation6 + $0x1b4] sm:$0xf0]  ;;  %v3980_v33 = vld [vmem:[#allocation6 + $0xf8] sm:$0xf0]  ;;  %v3979_v36 = vor.u32 %v5743_v28, %v3978_v27  ;;  %v4450_v28 = vld [vmem:[#allocation9 + $0xa0] sm:$0xf] }
  0x72   :  { %v5807_v31 = vld [vmem:[#allocation6 + $0x2f4] sm:$0xf0]  ;;  %v4236_v35 = vld [vmem:[#allocation6 + $0x2f8] sm:$0xf0]  ;;  %v3983_v38 = vor.u32 %v5739_v32, %v3980_v33 }
  0x73   :  { %1047 = vmatpush.bf16.msra.mxu1 %v4259_v53  ;;  %1073 = vmatpush.bf16.msra.mxu3 %v4263_v58  ;;  %v4074_v53 = vld [vmem:[#allocation6 + $0x198] sm:$0xf]  ;;  %v5763_v58 = vld [vmem:[#allocation6 + $0x19c] sm:$0xf] }
  0x74   :  { %v4075_v62 = vor.u32 %v5767_v54, %v4074_v53  ;;  %v3946_v39 = vld [vmem:[#allocation6 + $0x98] sm:$0xf]  ;;  %v5731_v44 = vld [vmem:[#allocation6 + $0x9c] sm:$0xf] }
  0x75   :  { %1035 = vmatpush.bf16.msra.mxu0 %v3971_v0  ;;  %1061 = vmatpush.bf16.msra.mxu2 %v3975_v2  ;;  %v4079_v0 = vor.u32 %v5763_v58, %v4076_v59  ;;  %v5759_v2 = vld [vmem:[#allocation6 + $0x174] sm:$0xf0]  ;;  %v4204_v47 = vld [vmem:[#allocation6 + $0x2b8] sm:$0xf0] }
  0x76   :  { %v5735_v40 = vld [vmem:[#allocation6 + $0xb4] sm:$0xf0]  ;;  %v3916_v57 = vld [vmem:[#allocation6 + $0x78] sm:$0xf0] }
  0x77   :  { %1048 = vmatpush.bf16.msra.mxu1 %v4227_v1  ;;  %1074 = vmatpush.bf16.msra.mxu3 %v4231_v6  ;;  %v4042_v1 = vld [vmem:[#allocation6 + $0x158] sm:$0xf]  ;;  %v5755_v6 = vld [vmem:[#allocation6 + $0x15c] sm:$0xf]  ;;  %v3947_v48 = vor.u32 %v5735_v40, %v3946_v39  ;;  %v4418_v40 = vld [vmem:[#allocation9 + $0x60] sm:$0xf] }
  0x78   :  { %v4043_v10 = vor.u32 %v5759_v2, %v4042_v1  ;;  %v5799_v43 = vld [vmem:[#allocation6 + $0x2b4] sm:$0xf0]  ;;  %v5787_v58 = vld [vmem:[#allocation6 + $0x25c] sm:$0xf] }
  0x79   :  { %1036 = vmatpush.bf16.msra.mxu0 %v3939_v12  ;;  %1062 = vmatpush.bf16.msra.mxu2 %v3943_v14  ;;  %v4047_v12 = vor.u32 %v5755_v6, %v4044_v7  ;;  %v5751_v14 = vld [vmem:[#allocation6 + $0x134] sm:$0xf0]  ;;  %v4172_v59 = vld [vmem:[#allocation6 + $0x278] sm:$0xf0] }
  0x7a   :  { %v4170_v53 = vld [vmem:[#allocation6 + $0x258] sm:$0xf]  ;;  %v4175_v3 = vor.u32 %v5787_v58, %v4172_v59  ;;  %v3884_v5 = vld [vmem:[#allocation6 + $0x38] sm:$0xf0]  ;;  %v4370_v59 = vld [vmem:[#allocation9] sm:$0xf] }
  0x7b   :  { %1049 = vmatpush.bf16.msra.mxu1 %v4195_v13  ;;  %1075 = vmatpush.bf16.msra.mxu3 %v4199_v20  ;;  %v4010_v13 = vld [vmem:[#allocation6 + $0x118] sm:$0xf]  ;;  %v5747_v20 = vld [vmem:[#allocation6 + $0x11c] sm:$0xf] }
  0x7c   :  { %v4011_v24 = vor.u32 %v5751_v14, %v4010_v13  ;;  %v5791_v55 = vld [vmem:[#allocation6 + $0x274] sm:$0xf0]  ;;  %v5779_v6 = vld [vmem:[#allocation6 + $0x21c] sm:$0xf] }
  0x7d   :  { %1037 = vmatpush.bf16.msra.mxu0 %v3907_v26  ;;  %1063 = vmatpush.bf16.msra.mxu2 %v3911_v30  ;;  %v4015_v26 = vor.u32 %v5747_v20, %v4012_v21  ;;  %v4271_v30 = vor.u32 %v5811_v22, %v4268_v23  ;;  %v3882_v61 = vld [vmem:[#allocation6 + $0x18] sm:$0xf]  ;;  %v4140_v7 = vld [vmem:[#allocation6 + $0x238] sm:$0xf0]  ;;  %v4466_v21 = vld [vmem:[#allocation9 + $0xc0] sm:$0xf] }
  0x7e   :  { %v4138_v1 = vld [vmem:[#allocation6 + $0x218] sm:$0xf]  ;;  %v4143_v15 = vor.u32 %v5779_v6, %v4140_v7  ;;  %v5122_v7 = vld [vmem:[#allocation9 + $0x5e0] sm:$0xf] }
  0x7f   :  { %1050 = vmatpush.bf16.msra.mxu1 %v4163_v29  ;;  %1076 = vmatpush.bf16.msra.mxu3 %v4167_v34  ;;  %v4234_v29 = vld [vmem:[#allocation6 + $0x2d8] sm:$0xf]  ;;  %v5803_v34 = vld [vmem:[#allocation6 + $0x2dc] sm:$0xf] }
  0x80   :  { %v4235_v37 = vor.u32 %v5807_v31, %v4234_v29  ;;  %v4239_v42 = vor.u32 %v5803_v34, %v4236_v35  ;;  %v5783_v2 = vld [vmem:[#allocation6 + $0x234] sm:$0xf0]  ;;  %v4578_v31 = vld [vmem:[#allocation9 + $0x1a0] sm:$0xf] }
  0x81   :  { %1038 = vmatpush.bf16.msra.mxu0 %v3875_v41  ;;  %1064 = vmatpush.bf16.msra.mxu2 %v3879_v46  ;;  %v4202_v41 = vld [vmem:[#allocation6 + $0x298] sm:$0xf]  ;;  %v5795_v46 = vld [vmem:[#allocation6 + $0x29c] sm:$0xf]  ;;  %v4139_v13 = vor.u32 %v5783_v2, %v4138_v1  ;;  %v4434_v34 = vld [vmem:[#allocation9 + $0x80] sm:$0xf] }
  0x82   :  { %v4207_v54 = vor.u32 %v5795_v46, %v4204_v47  ;;  %v5870_v9 = vld [vmem:[#allocation9 + $0xec] sm:$0xf0]  ;;  %v4530_v47 = vld [vmem:[#allocation9 + $0x140] sm:$0xf] }
  0x83   :  { %1051 = vmatpush.bf16.msra.mxu1 %v4131_v45  ;;  %1077 = vmatpush.bf16.msra.mxu3 %v4135_v49  ;;  %v3948_v45 = vld [vmem:[#allocation6 + $0xb8] sm:$0xf0]  ;;  %v4203_v49 = vor.u32 %v5799_v43, %v4202_v41  ;;  %v5934_v20 = vld [vmem:[#allocation9 + $0x2ec] sm:$0xf0] }
  0x84   :  { %1039 = vmatmul.bf16.vlgmr.msra.gmra.mxu0 %v6474_v17  ;;  %1065 = vmatmul.bf16.vlgmr.msra.gmra.mxu2 %v6474_v17  ;;  %v5866_v22 = vld [vmem:[#allocation9 + $0xcc] sm:$0xf0] }
  0x85   :  { %1083 = vmatpush.bf16.msrb.mxu0 %v4107_v50  ;;  %1109 = vmatpush.bf16.msrb.mxu2 %v4111_v52  ;;  %v3951_v50 = vor.u32 %v5731_v44, %v3948_v45  ;;  %v5727_v52 = vld [vmem:[#allocation6 + $0x74] sm:$0xf0]  ;;  %v4467_v27 = vor.u32 %v5866_v22, %v4466_v21  ;;  %v4690_v21 = vld [vmem:[#allocation9 + $0x280] sm:$0xf] }
  0x86   :  { %1052 = vmatmul.bf16.vlgmr.msra.gmra.mxu1 %v6476_v18  ;;  %1078 = vmatmul.bf16.vlgmr.msra.gmra.mxu3 %v6476_v18  ;;  %v5862_v29 = vld [vmem:[#allocation9 + $0xac] sm:$0xf0] }
  0x87   :  { %1096 = vmatpush.bf16.msrb.mxu1 %v4363_v51  ;;  %1122 = vmatpush.bf16.msrb.mxu3 %v4367_v56  ;;  %v3914_v51 = vld [vmem:[#allocation6 + $0x58] sm:$0xf]  ;;  %v5723_v56 = vld [vmem:[#allocation6 + $0x5c] sm:$0xf]  ;;  %v4451_v33 = vor.u32 %v5862_v29, %v4450_v28  ;;  %v4834_v28 = vld [vmem:[#allocation9 + $0x3a0] sm:$0xf] }
  0x88   :  { %v3915_v60 = vor.u32 %v5727_v52, %v3914_v51  ;;  %v5894_v32 = vld [vmem:[#allocation9 + $0x1ac] sm:$0xf0] }
  0x89   :  { %1084 = vmatpush.bf16.msrb.mxu0 %v4075_v62  ;;  %1110 = vmatpush.bf16.msrb.mxu2 %v4079_v0  ;;  %v4171_v62 = vor.u32 %v5791_v55, %v4170_v53  ;;  %v5719_v0 = vld [vmem:[#allocation6 + $0x34] sm:$0xf0]  ;;  %v4386_v53 = vld [vmem:[#allocation9 + $0x20] sm:$0xf] }
  0x8a   :  { %v5858_v35 = vld [vmem:[#allocation9 + $0x8c] sm:$0xf0] }
  0x8b   :  { %1097 = vmatpush.bf16.msrb.mxu1 %v4331_v63  ;;  %1123 = vmatpush.bf16.msrb.mxu3 %v4335_v4  ;;  %v3919_v63 = vor.u32 %v5723_v56, %v3916_v57  ;;  %v5715_v4 = vld [vmem:[#allocation6 + $0x1c] sm:$0xf]  ;;  %v4435_v39 = vor.u32 %v5858_v35, %v4434_v34  ;;  %v5854_v41 = vld [vmem:[#allocation9 + $0x6c] sm:$0xf0]  ;;  %v4514_v56 = vld [vmem:[#allocation9 + $0x120] sm:$0xf] }
  0x8c   :  { %v3887_v14 = vor.u32 %v5715_v4, %v3884_v5  ;;  %v5886_v43 = vld [vmem:[#allocation9 + $0x16c] sm:$0xf0]  ;;  %v4419_v44 = vor.u32 %v5854_v41, %v4418_v40  ;;  %v4706_v5 = vld [vmem:[#allocation9 + $0x2a0] sm:$0xf] }
  0x8d   :  { %1085 = vmatpush.bf16.msrb.mxu0 %v4043_v10  ;;  %1111 = vmatpush.bf16.msrb.mxu2 %v4047_v12  ;;  %v3883_v10 = vor.u32 %v5719_v0, %v3882_v61  ;;  %v5902_v12 = vld [vmem:[#allocation9 + $0x1ec] sm:$0xf0]  ;;  %v4994_v61 = vld [vmem:[#allocation9 + $0x4e0] sm:$0xf] }
  0x8e   :  { %v5850_v45 = vld [vmem:[#allocation9 + $0x4c] sm:$0xf0] }
  0x8f   :  { %1098 = vmatpush.bf16.msrb.mxu1 %v4299_v11  ;;  %1124 = vmatpush.bf16.msrb.mxu3 %v4303_v16  ;;  %v4610_v11 = vld [vmem:[#allocation9 + $0x1e0] sm:$0xf]  ;;  %v4483_v16 = vor.u32 %v5870_v9, %v4482_v8  ;;  %v5878_v57 = vld [vmem:[#allocation9 + $0x12c] sm:$0xf0] }
  0x90   :  { %v4611_v23 = vor.u32 %v5902_v12, %v4610_v11  ;;  %v5966_v0 = vld [vmem:[#allocation9 + $0x3ec] sm:$0xf0]  ;;  %v4850_v11 = vld [vmem:[#allocation9 + $0x3c0] sm:$0xf] }
  0x91   :  { %1086 = vmatpush.bf16.msrb.mxu0 %v4011_v24  ;;  %1112 = vmatpush.bf16.msrb.mxu2 %v4015_v26  ;;  %v4594_v24 = vld [vmem:[#allocation9 + $0x1c0] sm:$0xf]  ;;  %v4739_v26 = vor.u32 %v5934_v20, %v4738_v19  ;;  %v5998_v1 = vld [vmem:[#allocation9 + $0x4ec] sm:$0xf0] }
  0x92   :  { %v5874_v4 = vld [vmem:[#allocation9 + $0x10c] sm:$0xf0]  ;;  %v4995_v12 = vor.u32 %v5998_v1, %v4994_v61  ;;  %v4914_v1 = vld [vmem:[#allocation9 + $0x440] sm:$0xf] }
  0x93   :  { %1099 = vmatpush.bf16.msrb.mxu1 %v4267_v25  ;;  %1125 = vmatpush.bf16.msrb.mxu3 %v4271_v30  ;;  %v5898_v25 = vld [vmem:[#allocation9 + $0x1cc] sm:$0xf0] }
  0x94   :  { %v4595_v30 = vor.u32 %v5898_v25, %v4594_v24  ;;  %v5926_v6 = vld [vmem:[#allocation9 + $0x2ac] sm:$0xf0] }
  0x95   :  { %1087 = vmatpush.bf16.msrb.mxu0 %v3979_v36  ;;  %1113 = vmatpush.bf16.msrb.mxu2 %v3983_v38  ;;  %v4579_v36 = vor.u32 %v5894_v32, %v4578_v31  ;;  %v5890_v38 = vld [vmem:[#allocation9 + $0x18c] sm:$0xf0]  ;;  %v4707_v9 = vor.u32 %v5926_v6, %v4706_v5  ;;  %v4626_v5 = vld [vmem:[#allocation9 + $0x200] sm:$0xf] }
  0x96   :  { %v5922_v22 = vld [vmem:[#allocation9 + $0x28c] sm:$0xf0] }
  0x97   :  { %1100 = vmatpush.bf16.msrb.mxu1 %v4235_v37  ;;  %1126 = vmatpush.bf16.msrb.mxu3 %v4239_v42  ;;  %v4562_v37 = vld [vmem:[#allocation9 + $0x180] sm:$0xf]  ;;  %v4691_v24 = vor.u32 %v5922_v22, %v4690_v21  ;;  %v6026_v25 = vld [vmem:[#allocation9 + $0x5cc] sm:$0xf0] }
  0x98   :  { %v4563_v42 = vor.u32 %v5890_v38, %v4562_v37  ;;  %v5958_v29 = vld [vmem:[#allocation9 + $0x3ac] sm:$0xf0]  ;;  %v4818_v38 = vld [vmem:[#allocation9 + $0x380] sm:$0xf] }
  0x99   :  { %1088 = vmatpush.bf16.msrb.mxu0 %v3947_v48  ;;  %1114 = vmatpush.bf16.msrb.mxu2 %v3951_v50  ;;  %v5882_v48 = vld [vmem:[#allocation9 + $0x14c] sm:$0xf0]  ;;  %v4835_v32 = vor.u32 %v5958_v29, %v4834_v28  ;;  %v5250_v22 = vld [vmem:[#allocation9 + $0x6e0] sm:$0xf] }
  0x9a   :  { %v5930_v50 = vld [vmem:[#allocation9 + $0x2cc] sm:$0xf0]  ;;  %v4531_v55 = vor.u32 %v5882_v48, %v4530_v47  ;;  %v4882_v28 = vld [vmem:[#allocation9 + $0x400] sm:$0xf] }
  0x9b   :  { %1101 = vmatpush.bf16.msrb.mxu1 %v4203_v49  ;;  %1127 = vmatpush.bf16.msrb.mxu3 %v4207_v54  ;;  %v4722_v49 = vld [vmem:[#allocation9 + $0x2c0] sm:$0xf]  ;;  %v5846_v54 = vld [vmem:[#allocation9 + $0x2c] sm:$0xf0] }
  0x9c   :  { %v4723_v51 = vor.u32 %v5930_v50, %v4722_v49  ;;  %v4387_v58 = vor.u32 %v5846_v54, %v4386_v53  ;;  %v5918_v34 = vld [vmem:[#allocation9 + $0x26c] sm:$0xf0]  ;;  %v4802_v49 = vld [vmem:[#allocation9 + $0x360] sm:$0xf] }
  0x9d   :  { %1089 = vmatpush.bf16.msrb.mxu0 %v3915_v60  ;;  %1115 = vmatpush.bf16.msrb.mxu2 %v3919_v63  ;;  %v5842_v60 = vld [vmem:[#allocation9 + $0xc] sm:$0xf0]  ;;  %v4866_v63 = vld [vmem:[#allocation9 + $0x3e0] sm:$0xf] }
  0x9e   :  { %v4867_v2 = vor.u32 %v5966_v0, %v4866_v63  ;;  %v4371_v8 = vor.u32 %v5842_v60, %v4370_v59  ;;  %v6022_v37 = vld [vmem:[#allocation9 + $0x5ac] sm:$0xf0] }
  0x9f   :  { %1102 = vmatpush.bf16.msrb.mxu1 %v4171_v62  ;;  %1128 = vmatpush.bf16.msrb.mxu3 %v4175_v3  ;;  %v4515_v62 = vor.u32 %v5878_v57, %v4514_v56  ;;  %v4498_v3 = vld [vmem:[#allocation9 + $0x100] sm:$0xf]  ;;  %v6018_v47 = vld [vmem:[#allocation9 + $0x58c] sm:$0xf0] }
  0xa0   :  { %v5950_v50 = vld [vmem:[#allocation9 + $0x36c] sm:$0xf0]  ;;  %v4642_v56 = vld [vmem:[#allocation9 + $0x220] sm:$0xf] }
  0xa1   :  { %1090 = vmatpush.bf16.msrb.mxu0 %v3883_v10  ;;  %1116 = vmatpush.bf16.msrb.mxu2 %v3887_v14  ;;  %v6030_v10 = vld [vmem:[#allocation9 + $0x5ec] sm:$0xf0] }
  0xa2   :  { %v5962_v14 = vld [vmem:[#allocation9 + $0x3cc] sm:$0xf0]  ;;  %v5123_v19 = vor.u32 %v6030_v10, %v5122_v7 }
  0xa3   :  { %1103 = vmatpush.bf16.msrb.mxu1 %v4139_v13  ;;  %1129 = vmatpush.bf16.msrb.mxu3 %v4143_v15  ;;  %v4499_v13 = vor.u32 %v5874_v4, %v4498_v3  ;;  %v4978_v15 = vld [vmem:[#allocation9 + $0x4c0] sm:$0xf]  ;;  %v4851_v20 = vor.u32 %v5962_v14, %v4850_v11  ;;  %v5982_v53 = vld [vmem:[#allocation9 + $0x46c] sm:$0xf0] }
  0xa4   :  { %1091 = vmatmul.bf16.vlgmr.msrb.gmra.mxu0 %v6474_v17  ;;  %1117 = vmatmul.bf16.vlgmr.msrb.gmra.mxu2 %v6474_v17  ;;  %v4546_v17 = vld [vmem:[#allocation9 + $0x160] sm:$0xf]  ;;  %v5910_v57 = vld [vmem:[#allocation9 + $0x22c] sm:$0xf0] }
  0xa5   :  { %2705 = vmatpush.bf16.msra.mxu0 %v4483_v16  ;;  %2731 = vmatpush.bf16.msra.mxu2 %v4739_v26  ;;  %v4547_v46 = vor.u32 %v5886_v43, %v4546_v17  ;;  %v5994_v16 = vld [vmem:[#allocation9 + $0x4cc] sm:$0xf0]  ;;  %v4643_v59 = vor.u32 %v5910_v57, %v4642_v56  ;;  %v5864_v56 = vld [vmem:[#allocation9 + $0xc4] sm:$0xf] }
  0xa6   :  { %1104 = vmatmul.bf16.vlgmr.msrb.gmra.mxu1 %v6476_v18  ;;  %1130 = vmatmul.bf16.vlgmr.msrb.gmra.mxu3 %v6476_v18  ;;  %v4402_v18 = vld [vmem:[#allocation9 + $0x40] sm:$0xf]  ;;  %v4979_v26 = vor.u32 %v5994_v16, %v4978_v15  ;;  %v5986_v17 = vld [vmem:[#allocation9 + $0x48c] sm:$0xf0] }
  0xa7   :  { %2718 = vmatpush.bf16.msra.mxu1 %v4611_v23  ;;  %v4403_v52 = vor.u32 %v5850_v45, %v4402_v18  ;;  %2744 = vmatpush.bf16.msra.mxu3 %v4867_v2  ;;  %v5106_v23 = vld [vmem:[#allocation9 + $0x5c0] sm:$0xf]  ;;  %v5914_v18 = vld [vmem:[#allocation9 + $0x24c] sm:$0xf0] }
  0xa8   :  { %v5107_v31 = vor.u32 %v6026_v25, %v5106_v23  ;;  %v5074_v45 = vld [vmem:[#allocation9 + $0x580] sm:$0xf]  ;;  %v6014_v60 = vld [vmem:[#allocation9 + $0x56c] sm:$0xf0] }
  0xa9   :  { %2706 = vmatpush.bf16.msra.mxu0 %v4467_v27  ;;  %2732 = vmatpush.bf16.msra.mxu2 %v4723_v51  ;;  %v4962_v27 = vld [vmem:[#allocation9 + $0x4a0] sm:$0xf]  ;;  %v6494_v51 = vld [vmem:[#allocation8] sm:$0xff]  ;;  %v5075_v54 = vor.u32 %v6018_v47, %v5074_v45  ;;  %v5946_v63 = vld [vmem:[#allocation9 + $0x34c] sm:$0xf0] }
  0xaa   :  { %v271_v0 = vperm.slane %v6494_v51, 0  ;;  %v5978_v2 = vld [vmem:[#allocation9 + $0x44c] sm:$0xf0]  ;;  %v5026_v25 = vld [vmem:[#allocation9 + $0x520] sm:$0xf] }
  0xab   :  { %2719 = vmatpush.bf16.msra.mxu1 %v4595_v30  ;;  %2745 = vmatpush.bf16.msra.mxu3 %v4851_v20  ;;  %v5990_v30 = vld [vmem:[#allocation9 + $0x4ac] sm:$0xf0]  ;;  %v4915_v11 = vor.u32 %v5978_v2, %v4914_v1  ;;  %v5202_v1 = vld [vmem:[#allocation9 + $0x680] sm:$0xf] }
  0xac   :  { %v4963_v40 = vor.u32 %v5990_v30, %v4962_v27  ;;  %v5906_v6 = vld [vmem:[#allocation9 + $0x20c] sm:$0xf0]  ;;  %v272_v27 = vperm.slane %v6494_v51, 1 }
  0xad   :  { %2707 = vmatpush.bf16.msra.mxu0 %v4451_v33  ;;  %2733 = vmatpush.bf16.msra.mxu2 %v4707_v9  ;;  %v4674_v33 = vld [vmem:[#allocation9 + $0x260] sm:$0xf]  ;;  %v4627_v7 = vor.u32 %v5906_v6, %v4626_v5  ;;  %v6010_v9 = vld [vmem:[#allocation9 + $0x54c] sm:$0xf0]  ;;  %v4612_v5 = vld [vmem:[#allocation9 + $0x1f0] sm:$0xf0] }
  0xae   :  { %v4675_v35 = vor.u32 %v5918_v34, %v4674_v33  ;;  %v5942_v14 = vld [vmem:[#allocation9 + $0x32c] sm:$0xf0] }
  0xaf   :  { %2720 = vmatpush.bf16.msra.mxu1 %v4579_v36  ;;  %v5090_v36 = vld [vmem:[#allocation9 + $0x5a0] sm:$0xf]  ;;  %2746 = vmatpush.bf16.msra.mxu3 %v4835_v32  ;;  %v6062_v23 = vld [vmem:[#allocation9 + $0x6ec] sm:$0xf0] }
  0xb0   :  { %v5091_v43 = vor.u32 %v6022_v37, %v5090_v36  ;;  %v6006_v29 = vld [vmem:[#allocation9 + $0x52c] sm:$0xf0]  ;;  %v4754_v32 = vld [vmem:[#allocation9 + $0x300] sm:$0xf] }
  0xb1   :  { %2708 = vmatpush.bf16.msra.mxu0 %v4435_v39  ;;  %2734 = vmatpush.bf16.msra.mxu2 %v4691_v24  ;;  %v5954_v39 = vld [vmem:[#allocation9 + $0x38c] sm:$0xf0]  ;;  %v5251_v24 = vor.u32 %v6062_v23, %v5250_v22  ;;  %v5234_v37 = vld [vmem:[#allocation9 + $0x6c0] sm:$0xf]  ;;  %v5896_v22 = vld [vmem:[#allocation9 + $0x1c4] sm:$0xf] }
  0xb2   :  { %v4819_v41 = vor.u32 %v5954_v39, %v4818_v38  ;;  %v5938_v33 = vld [vmem:[#allocation9 + $0x30c] sm:$0xf0]  ;;  %v5868_v39 = vld [vmem:[#allocation9 + $0xe4] sm:$0xf]  ;;  %v4596_v23 = vld [vmem:[#allocation9 + $0x1d0] sm:$0xf0] }
  0xb3   :  { %2721 = vmatpush.bf16.msra.mxu1 %v4563_v42  ;;  %v4946_v42 = vld [vmem:[#allocation9 + $0x480] sm:$0xf]  ;;  %v4755_v36 = vor.u32 %v5938_v33, %v4754_v32  ;;  %v6058_v38 = vld [vmem:[#allocation9 + $0x6cc] sm:$0xf0]  ;;  %v5892_v32 = vld [vmem:[#allocation9 + $0x1a4] sm:$0xf] }
  0xb4   :  { %2747 = vmatpush.bf16.msra.mxu3 %v4819_v41  ;;  %v4947_v48 = vor.u32 %v5986_v17, %v4946_v42  ;;  %v5235_v41 = vor.u32 %v6058_v38, %v5234_v37  ;;  %v5010_v42 = vld [vmem:[#allocation9 + $0x500] sm:$0xf]  ;;  %v6094_v45 = vld [vmem:[#allocation9 + $0x7ec] sm:$0xf0]  ;;  %v4580_v33 = vld [vmem:[#allocation9 + $0x1b0] sm:$0xf0] }
  0xb5   :  { %2709 = vmatpush.bf16.msra.mxu0 %v4419_v44  ;;  %2735 = vmatpush.bf16.msra.mxu2 %v4675_v35  ;;  %v4658_v44 = vld [vmem:[#allocation9 + $0x240] sm:$0xf]  ;;  %v5027_v35 = vor.u32 %v6006_v29, %v5026_v25  ;;  %v6050_v2 = vld [vmem:[#allocation9 + $0x68c] sm:$0xf0]  ;;  %v4599_v29 = vor.u32 %v5896_v22, %v4596_v23  ;;  %v5880_v23 = vld [vmem:[#allocation9 + $0x144] sm:$0xf] }
  0xb6   :  { %v5203_v6 = vor.u32 %v6050_v2, %v5202_v1  ;;  %v6042_v37 = vld [vmem:[#allocation9 + $0x64c] sm:$0xf0] }
  0xb7   :  { %2722 = vmatpush.bf16.msra.mxu1 %v4547_v46  ;;  %v4659_v46 = vor.u32 %v5914_v18, %v4658_v44  ;;  %v6002_v44 = vld [vmem:[#allocation9 + $0x50c] sm:$0xf0]  ;;  %v5378_v18 = vld [vmem:[#allocation9 + $0x7e0] sm:$0xf] }
  0xb8   :  { %v5011_v57 = vor.u32 %v6002_v44, %v5010_v42  ;;  %v5314_v44 = vld [vmem:[#allocation9 + $0x760] sm:$0xf] }
  0xb9   :  { %2710 = vmatpush.bf16.msra.mxu0 %v4403_v52  ;;  %v4930_v52 = vld [vmem:[#allocation9 + $0x460] sm:$0xf]  ;;  %2736 = vmatpush.bf16.msra.mxu2 %v4659_v46 }
  0xba   :  { %v4931_v61 = vor.u32 %v5982_v53, %v4930_v52  ;;  %v5218_v52 = vld [vmem:[#allocation9 + $0x6a0] sm:$0xf] }
  0xbb   :  { %2723 = vmatpush.bf16.msra.mxu1 %v4531_v55  ;;  %v4803_v55 = vor.u32 %v5950_v50, %v4802_v49  ;;  %v5379_v50 = vor.u32 %v6094_v45, %v5378_v18  ;;  %v6078_v18 = vld [vmem:[#allocation9 + $0x76c] sm:$0xf0]  ;;  %v5888_v45 = vld [vmem:[#allocation9 + $0x184] sm:$0xf] }
  0xbd   :  { %2711 = vmatpush.bf16.msra.mxu0 %v4387_v58  ;;  %v5058_v58 = vld [vmem:[#allocation9 + $0x560] sm:$0xf]  ;;  %2748 = vmatpush.bf16.msra.mxu3 %v4803_v55 }
  0xbe   :  { %2737 = vmatpush.bf16.msra.mxu2 %v4643_v59  ;;  %v5059_v3 = vor.u32 %v6014_v60, %v5058_v58  ;;  %v6054_v58 = vld [vmem:[#allocation9 + $0x6ac] sm:$0xf0]  ;;  %v4468_v60 = vld [vmem:[#allocation9 + $0xd0] sm:$0xf0] }
  0xbf   :  { %2724 = vmatpush.bf16.msra.mxu1 %v4515_v62  ;;  %v4786_v62 = vld [vmem:[#allocation9 + $0x340] sm:$0xf] }
  0xc0   :  { %v4787_v4 = vor.u32 %v5946_v63, %v4786_v62  ;;  %v5362_v62 = vld [vmem:[#allocation9 + $0x7c0] sm:$0xf]  ;;  %v6090_v63 = vld [vmem:[#allocation9 + $0x7cc] sm:$0xf0] }
  0xc1   :  { %2712 = vmatpush.bf16.msra.mxu0 %v4371_v8  ;;  %v5042_v8 = vld [vmem:[#allocation9 + $0x540] sm:$0xf] }
  0xc2   :  { %2749 = vmatpush.bf16.msra.mxu3 %v4787_v4  ;;  %2738 = vmatpush.bf16.msra.mxu2 %v4627_v7  ;;  %v5043_v20 = vor.u32 %v6010_v9, %v5042_v8  ;;  %v5900_v4 = vld [vmem:[#allocation9 + $0x1e4] sm:$0xf]  ;;  %v4471_v7 = vor.u32 %v5864_v56, %v4468_v60  ;;  %v5346_v9 = vld [vmem:[#allocation9 + $0x7a0] sm:$0xf]  ;;  %v4404_v56 = vld [vmem:[#allocation9 + $0x50] sm:$0xf0] }
  0xc3   :  { %2725 = vmatpush.bf16.msra.mxu1 %v4499_v13  ;;  %v4770_v13 = vld [vmem:[#allocation9 + $0x320] sm:$0xf]  ;;  %v5860_v8 = vld [vmem:[#allocation9 + $0xa4] sm:$0xf] }
  0xc4   :  { %v4771_v21 = vor.u32 %v5942_v14, %v4770_v13  ;;  %v5186_v14 = vld [vmem:[#allocation9 + $0x660] sm:$0xf] }
  0xc5   :  { %2757 = vmatpush.bf16.msrb.mxu0 %v4995_v12  ;;  %v936_v10 = vpop.f32.mrf.mxu0  ;;  %v4898_v12 = vld [vmem:[#allocation9 + $0x420] sm:$0xf] }
  0xc6   :  { %v937_v15 = vadd.f32 %v936_v10, %v271_v0  ;;  %2750 = vmatpush.bf16.msra.mxu3 %v4771_v21  ;;  %2783 = vmatpush.bf16.msrb.mxu2 %v5251_v24  ;;  %v5363_v0 = vor.u32 %v6090_v63, %v5362_v62  ;;  %v6086_v10 = vld [vmem:[#allocation9 + $0x7ac] sm:$0xf0]  ;;  %v5298_v60 = vld [vmem:[#allocation9 + $0x740] sm:$0xf]  ;;  %v4548_v62 = vld [vmem:[#allocation9 + $0x170] sm:$0xf0] }
  0xc7   :  { %2770 = vmatpush.bf16.msrb.mxu1 %v5123_v19  ;;  %v949_v16 = vpop.f32.mrf.mxu1  ;;  %v5974_v19 = vld [vmem:[#allocation9 + $0x42c] sm:$0xf0]  ;;  %v5347_v13 = vor.u32 %v6086_v10, %v5346_v9  ;;  %v4388_v10 = vld [vmem:[#allocation9 + $0x30] sm:$0xf0] }
  0xc8   :  { %v4899_v30 = vor.u32 %v5974_v19, %v4898_v12  ;;  %v4452_v12 = vld [vmem:[#allocation9 + $0xb0] sm:$0xf0]  ;;  %v4615_v19 = vor.u32 %v5900_v4, %v4612_v5  ;;  %v6074_v63 = vld [vmem:[#allocation9 + $0x74c] sm:$0xf0]  ;;  %v5138_v5 = vld [vmem:[#allocation9 + $0x600] sm:$0xf] }
  0xc9   :  { %2758 = vmatpush.bf16.msrb.mxu0 %v4979_v26  ;;  %v950_v26 = vadd.f32 %v949_v16, %v937_v15  ;;  %v6046_v15 = vld [vmem:[#allocation9 + $0x66c] sm:$0xf0]  ;;  %v4455_v25 = vor.u32 %v5860_v8, %v4452_v12  ;;  %v5299_v4 = vor.u32 %v6074_v63, %v5298_v60  ;;  %v5932_v12 = vld [vmem:[#allocation9 + $0x2e4] sm:$0xf] }
  0xca   :  { %2751 = vmatpush.bf16.msra.mxu3 %v4755_v36  ;;  %2784 = vmatpush.bf16.msrb.mxu2 %v5235_v41  ;;  %v5187_v24 = vor.u32 %v6046_v15, %v5186_v14  ;;  %v5170_v36 = vld [vmem:[#allocation9 + $0x640] sm:$0xf] }
  0xcb   :  { %2771 = vmatpush.bf16.msrb.mxu1 %v5107_v31  ;;  %v5970_v31 = vld [vmem:[#allocation9 + $0x40c] sm:$0xf0]  ;;  %v1135_v34 = vmul.f32 0.2, %v950_v26  ;;  %v5171_v41 = vor.u32 %v6042_v37, %v5170_v36  ;;  %v5876_v37 = vld [vmem:[#allocation9 + $0x124] sm:$0xf] }
  0xcc   :  { %v4883_v49 = vor.u32 %v5970_v31, %v4882_v28  ;;  %v273_v28 = vperm.slane %v6494_v51, 2  ;;  %v6082_v31 = vld [vmem:[#allocation9 + $0x78c] sm:$0xf0] }
  0xcd   :  { %2759 = vmatpush.bf16.msrb.mxu0 %v4963_v40  ;;  %v4484_v40 = vld [vmem:[#allocation9 + $0xf0] sm:$0xf0]  ;;  %v1143_v17 = vmax.f32 %v950_v26, %v1135_v34  ;;  %v938_v47 = vpop.f32.mrf.mxu0  ;;  %v5856_v26 = vld [vmem:[#allocation9 + $0x84] sm:$0xf] }
  0xce   :  { %v4487_v55 = vor.u32 %v5868_v39, %v4484_v40  ;;  %2796 = vmatpush.bf16.msrb.mxu3 %v5379_v50  ;;  %v5852_v39 = vld [vmem:[#allocation9 + $0x64] sm:$0xf]  ;;  %v4420_v40 = vld [vmem:[#allocation9 + $0x70] sm:$0xf0]  ;;  %v5315_v47 = vor.u32 %v6078_v18, %v5314_v44  ;;  %v5154_v50 = vld [vmem:[#allocation9 + $0x620] sm:$0xf] }
  0xcf   :  { %2772 = vmatpush.bf16.msrb.mxu1 %v5091_v43  ;;  %v962_v43 = vpop.f32.mrf.mxu2  ;;  %v6498_v53 = vpack.c.bf16 %v1143_v17, %v1143_v17 }
  0xd0   :  { %v963_v46 = vadd.f32 %v962_v43, %v272_v27  ;;  %v4436_v27 = vld [vmem:[#allocation9 + $0x90] sm:$0xf0]  ;;  %v4583_v43 = vor.u32 %v5892_v32, %v4580_v33 }
  0xd1   :  { %2760 = vmatpush.bf16.msrb.mxu0 %v4947_v48  ;;  %v975_v48 = vpop.f32.mrf.mxu3  ;;  %v4724_v32 = vld [vmem:[#allocation9 + $0x2d0] sm:$0xf0] }
  0xd2   :  { %v976_v59 = vadd.f32 %v975_v48, %v963_v46  ;;  %2713 = vmatmul.bf16.vlgmr.msra.gmra.mxu0 %v6498_v53  ;;  %2797 = vmatpush.bf16.msrb.mxu3 %v5363_v0  ;;  %v4564_v46 = vld [vmem:[#allocation9 + $0x190] sm:$0xf0] }
  0xd3   :  { %2773 = vmatpush.bf16.msrb.mxu1 %v5075_v54  ;;  %v951_v54 = vpop.f32.mrf.mxu1 }
  0xd4   :  { %v274_v54 = vperm.slane %v6494_v51, 3 }
  0xd5   :  { %2761 = vmatpush.bf16.msrb.mxu0 %v4931_v61  ;;  %v5219_v61 = vor.u32 %v6054_v58, %v5218_v52  ;;  %v6038_v52 = vld [vmem:[#allocation9 + $0x62c] sm:$0xf0] }
  0xd6   :  { %2798 = vmatpush.bf16.msrb.mxu3 %v5347_v13  ;;  %v4740_v13 = vld [vmem:[#allocation9 + $0x2f0] sm:$0xf0] }
  0xd7   :  { %2774 = vmatpush.bf16.msrb.mxu1 %v5059_v3  ;;  %v1136_v3 = vmul.f32 0.2, %v976_v59  ;;  %2785 = vmatpush.bf16.msrb.mxu2 %v5219_v61  ;;  %v964_v16 = vpop.f32.mrf.mxu2  ;;  %v5884_v61 = vld [vmem:[#allocation9 + $0x164] sm:$0xf] }
  0xd8   :  { %v4551_v16 = vor.u32 %v5884_v61, %v4548_v62  ;;  %v5956_v61 = vld [vmem:[#allocation9 + $0x3a4] sm:$0xf]  ;;  %v4836_v62 = vld [vmem:[#allocation9 + $0x3b0] sm:$0xf0] }
  0xd9   :  { %2762 = vmatpush.bf16.msrb.mxu0 %v4915_v11  ;;  %v1144_v11 = vmax.f32 %v976_v59, %v1136_v3  ;;  %v977_v21 = vpop.f32.mrf.mxu3  ;;  %v4567_v59 = vor.u32 %v5888_v45, %v4564_v46  ;;  %v5844_v3 = vld [vmem:[#allocation9 + $0x24] sm:$0xf]  ;;  %v4839_v63 = vor.u32 %v5956_v61, %v4836_v62 }
  0xda   :  { %v5282_v21 = vld [vmem:[#allocation9 + $0x720] sm:$0xf]  ;;  %v5924_v46 = vld [vmem:[#allocation9 + $0x2a4] sm:$0xf] }
  0xdb   :  { %2775 = vmatpush.bf16.msrb.mxu1 %v5043_v20  ;;  %v6501_v20 = vpack.c.bf16 %v1144_v11, %v1144_v11  ;;  %2786 = vmatpush.bf16.msrb.mxu2 %v5203_v6  ;;  %v6034_v6 = vld [vmem:[#allocation9 + $0x60c] sm:$0xf0] }
  0xdc   :  { %v5139_v11 = vor.u32 %v6034_v6, %v5138_v5  ;;  %v275_v5 = vperm.slane %v6494_v51, 4 }
  0xdd   :  { %2763 = vmatpush.bf16.msrb.mxu0 %v4899_v30  ;;  %2726 = vmatmul.bf16.vlgmr.msra.gmra.mxu1 %v6501_v20  ;;  %v5330_v30 = vld [vmem:[#allocation9 + $0x780] sm:$0xf] }
  0xde   :  { %v5331_v34 = vor.u32 %v6082_v31, %v5330_v30  ;;  %v5928_v31 = vld [vmem:[#allocation9 + $0x2c4] sm:$0xf] }
  0xdf   :  { %2776 = vmatpush.bf16.msrb.mxu1 %v5027_v35  ;;  %2787 = vmatpush.bf16.msrb.mxu2 %v5187_v24  ;;  %v4439_v35 = vor.u32 %v5856_v26, %v4436_v27  ;;  %v4532_v24 = vld [vmem:[#allocation9 + $0x150] sm:$0xf0]  ;;  %v4391_v26 = vor.u32 %v5844_v3, %v4388_v10  ;;  %v5840_v27 = vld [vmem:[#allocation9 + $0x4] sm:$0xf] }
  0xe0   :  { %2799 = vmatpush.bf16.msrb.mxu3 %v5331_v34  ;;  %v4535_v33 = vor.u32 %v5880_v23, %v4532_v24  ;;  %v4727_v34 = vor.u32 %v5928_v31, %v4724_v32  ;;  %v5952_v3 = vld [vmem:[#allocation9 + $0x384] sm:$0xf]  ;;  %v276_v24 = vperm.slane %v6494_v51, 5  ;;  %v4628_v32 = vld [vmem:[#allocation9 + $0x210] sm:$0xf0] }
  0xe1   :  { %2764 = vmatpush.bf16.msrb.mxu0 %v4883_v49  ;;  %v988_v38 = vpop.f32.mrf.mxu0  ;;  %v4423_v49 = vor.u32 %v5852_v39, %v4420_v40  ;;  %v6066_v39 = vld [vmem:[#allocation9 + $0x70c] sm:$0xf0]  ;;  %v5904_v31 = vld [vmem:[#allocation9 + $0x204] sm:$0xf] }
  0xe2   :  { %v989_v42 = vadd.f32 %v988_v38, %v273_v28  ;;  %v4372_v28 = vld [vmem:[#allocation9 + $0x10] sm:$0xf0] }
  0xe3   :  { %2777 = vmatpush.bf16.msrb.mxu1 %v5011_v57  ;;  %v1001_v17 = vpop.f32.mrf.mxu1  ;;  %2788 = vmatpush.bf16.msrb.mxu2 %v5171_v41  ;;  %v5155_v57 = vor.u32 %v6038_v52, %v5154_v50  ;;  %v4516_v38 = vld [vmem:[#allocation9 + $0x130] sm:$0xf0]  ;;  %v4375_v41 = vor.u32 %v5840_v27, %v4372_v28  ;;  %v5996_v28 = vld [vmem:[#allocation9 + $0x4e4] sm:$0xf] }
  0xe4   :  { %v1002_v48 = vadd.f32 %v1001_v17, %v989_v42  ;;  %2800 = vmatpush.bf16.msrb.mxu3 %v5315_v47  ;;  %v5964_v17 = vld [vmem:[#allocation9 + $0x3e4] sm:$0xf]  ;;  %v4708_v47 = vld [vmem:[#allocation9 + $0x2b0] sm:$0xf0] }
  0xe5   :  { %2809 = vmatpush.bf16.msra.mxu0 %v4487_v55  ;;  %v5848_v55 = vld [vmem:[#allocation9 + $0x44] sm:$0xf]  ;;  %v4711_v50 = vor.u32 %v5924_v46, %v4708_v47  ;;  %v4500_v52 = vld [vmem:[#allocation9 + $0x110] sm:$0xf0] }
  0xe6   :  { %v1137_v58 = vmul.f32 0.2, %v1002_v48  ;;  %v4407_v2 = vor.u32 %v5848_v55, %v4404_v56  ;;  %v4852_v55 = vld [vmem:[#allocation9 + $0x3d0] sm:$0xf0]  ;;  %v6028_v47 = vld [vmem:[#allocation9 + $0x5e4] sm:$0xf] }
  0xe7   :  { %2822 = vmatpush.bf16.msra.mxu1 %v4615_v19  ;;  %2789 = vmatpush.bf16.msrb.mxu2 %v5155_v57  ;;  %v1014_v1 = vpop.f32.mrf.mxu2  ;;  %v4743_v19 = vor.u32 %v5932_v12, %v4740_v13  ;;  %v5920_v57 = vld [vmem:[#allocation9 + $0x284] sm:$0xf]  ;;  %v4804_v12 = vld [vmem:[#allocation9 + $0x370] sm:$0xf0] }
  0xe8   :  { %v1145_v0 = vmax.f32 %v1002_v48, %v1137_v58  ;;  %2801 = vmatpush.bf16.msrb.mxu3 %v5299_v4  ;;  %v4519_v48 = vor.u32 %v5876_v37, %v4516_v38  ;;  %v4692_v58 = vld [vmem:[#allocation9 + $0x290] sm:$0xf0] }
  0xe9   :  { %2810 = vmatpush.bf16.msra.mxu0 %v4471_v7  ;;  %v1015_v7 = vadd.f32 %v1014_v1, %v274_v54  ;;  %v1027_v8 = vpop.f32.mrf.mxu3  ;;  %v990_v9 = vpop.f32.mrf.mxu0  ;;  %v5960_v54 = vld [vmem:[#allocation9 + $0x3c4] sm:$0xf]  ;;  %v4695_v60 = vor.u32 %v5920_v57, %v4692_v58  ;;  %v4676_v1 = vld [vmem:[#allocation9 + $0x270] sm:$0xf0] }
  0xea   :  { %v6506_v14 = vpack.c.bf16 %v1145_v0, %v1145_v0  ;;  %v4855_v56 = vor.u32 %v5960_v54, %v4852_v55  ;;  %v5916_v0 = vld [vmem:[#allocation9 + $0x264] sm:$0xf]  ;;  %v4820_v4 = vld [vmem:[#allocation9 + $0x390] sm:$0xf0] }
  0xeb   :  { %2823 = vmatpush.bf16.msra.mxu1 %v4599_v29  ;;  %v1003_v15 = vpop.f32.mrf.mxu1  ;;  %v1028_v22 = vadd.f32 %v1027_v8, %v1015_v7  ;;  %2790 = vmatpush.bf16.msrb.mxu2 %v5139_v11  ;;  %v4823_v6 = vor.u32 %v5952_v3, %v4820_v4  ;;  %v5912_v7 = vld [vmem:[#allocation9 + $0x244] sm:$0xf]  ;;  %v4660_v8 = vld [vmem:[#allocation9 + $0x250] sm:$0xf0] }
  0xec   :  { %2739 = vmatmul.bf16.vlgmr.msra.gmra.mxu2 %v6506_v14  ;;  %v4663_v9 = vor.u32 %v5912_v7, %v4660_v8  ;;  %v5948_v11 = vld [vmem:[#allocation9 + $0x364] sm:$0xf]  ;;  %v4964_v55 = vld [vmem:[#allocation9 + $0x4b0] sm:$0xf0] }
  0xed   :  { %2811 = vmatpush.bf16.msra.mxu0 %v4455_v25  ;;  %v6070_v25 = vld [vmem:[#allocation9 + $0x72c] sm:$0xf0]  ;;  %v1138_v30 = vmul.f32 0.2, %v1028_v22  ;;  %v5988_v54 = vld [vmem:[#allocation9 + $0x4a4] sm:$0xf] }
  0xee   :  { %v5283_v29 = vor.u32 %v6070_v25, %v5282_v21  ;;  %v4644_v21 = vld [vmem:[#allocation9 + $0x230] sm:$0xf0]  ;;  %v5944_v25 = vld [vmem:[#allocation9 + $0x344] sm:$0xf]  ;;  %v4967_v62 = vor.u32 %v5988_v54, %v4964_v55 }
  0xef   :  { %2824 = vmatpush.bf16.msra.mxu1 %v4583_v43  ;;  %2835 = vmatpush.bf16.msra.mxu2 %v4743_v19  ;;  %v1146_v36 = vmax.f32 %v1028_v22, %v1138_v30  ;;  %v1016_v40 = vpop.f32.mrf.mxu2  ;;  %v4868_v43 = vld [vmem:[#allocation9 + $0x3f0] sm:$0xf0]  ;;  %v5908_v19 = vld [vmem:[#allocation9 + $0x224] sm:$0xf] }
  0xf0   :  { %2802 = vmatpush.bf16.msrb.mxu3 %v5283_v29  ;;  %v4871_v45 = vor.u32 %v5964_v17, %v4868_v43  ;;  %v4647_v23 = vor.u32 %v5908_v19, %v4644_v21  ;;  %v4996_v29 = vld [vmem:[#allocation9 + $0x4f0] sm:$0xf0]  ;;  %v5940_v40 = vld [vmem:[#allocation9 + $0x324] sm:$0xf]  ;;  %v277_v19 = vperm.slane %v6494_v51, 6 }
  0xf1   :  { %2812 = vmatpush.bf16.msra.mxu0 %v4439_v35  ;;  %v5266_v35 = vld [vmem:[#allocation9 + $0x700] sm:$0xf]  ;;  %v6509_v44 = vpack.c.bf16 %v1146_v36, %v1146_v36  ;;  %v1029_v18 = vpop.f32.mrf.mxu3  ;;  %v4999_v38 = vor.u32 %v5996_v28, %v4996_v29  ;;  %v4980_v17 = vld [vmem:[#allocation9 + $0x4d0] sm:$0xf0]  ;;  %v5980_v8 = vld [vmem:[#allocation9 + $0x464] sm:$0xf] }
  0xf2   :  { %v5267_v42 = vor.u32 %v6066_v39, %v5266_v35  ;;  %v4631_v35 = vor.u32 %v5904_v31, %v4628_v32  ;;  %v4772_v18 = vld [vmem:[#allocation9 + $0x330] sm:$0xf0]  ;;  %v278_v31 = vperm.slane %v6494_v51, 7  ;;  %v6056_v55 = vld [vmem:[#allocation9 + $0x6c4] sm:$0xf] }
  0xf3   :  { %2825 = vmatpush.bf16.msra.mxu1 %v4567_v59  ;;  %2836 = vmatpush.bf16.msra.mxu2 %v4727_v34  ;;  %v4775_v46 = vor.u32 %v5940_v40, %v4772_v18  ;;  %v4948_v3 = vld [vmem:[#allocation9 + $0x490] sm:$0xf0] }
  0xf4   :  { %2803 = vmatpush.bf16.msrb.mxu3 %v5267_v42  ;;  %v5992_v42 = vld [vmem:[#allocation9 + $0x4c4] sm:$0xf]  ;;  %v5092_v7 = vld [vmem:[#allocation9 + $0x5b0] sm:$0xf0] }
  0xf5   :  { %2813 = vmatpush.bf16.msra.mxu0 %v4423_v49  ;;  %v5872_v49 = vld [vmem:[#allocation9 + $0x104] sm:$0xf]  ;;  %2752 = vmatmul.bf16.vlgmr.msra.gmra.mxu3 %v6509_v44 }
  0xf6   :  { %v4503_v59 = vor.u32 %v5872_v49, %v4500_v52  ;;  %v4983_v49 = vor.u32 %v5992_v42, %v4980_v17  ;;  %v5936_v52 = vld [vmem:[#allocation9 + $0x304] sm:$0xf]  ;;  %v4490_v42 = vld [vmem:[#allocation9 + $0xe8] sm:$0xf]  ;;  %v5871_v17 = vld [vmem:[#allocation9 + $0xf4] sm:$0xf0] }
  0xf7   :  { %2826 = vmatpush.bf16.msra.mxu1 %v4551_v16  ;;  %2837 = vmatpush.bf16.msra.mxu2 %v4711_v50  ;;  %v4807_v16 = vor.u32 %v5948_v11, %v4804_v12  ;;  %v5124_v50 = vld [vmem:[#allocation9 + $0x5f0] sm:$0xf0]  ;;  %v6016_v12 = vld [vmem:[#allocation9 + $0x584] sm:$0xf]  ;;  %v4491_v54 = vor.u32 %v5871_v17, %v4490_v42  ;;  %v5895_v42 = vld [vmem:[#allocation9 + $0x1b4] sm:$0xf0] }
  0xf8   :  { %2848 = vmatpush.bf16.msra.mxu3 %v4871_v45  ;;  %v4426_v17 = vld [vmem:[#allocation9 + $0x68] sm:$0xf] }
  0xf9   :  { %2814 = vmatpush.bf16.msra.mxu0 %v4407_v2  ;;  %v4679_v2 = vor.u32 %v5916_v0, %v4676_v1  ;;  %v6024_v0 = vld [vmem:[#allocation9 + $0x5c4] sm:$0xf]  ;;  %v5108_v1 = vld [vmem:[#allocation9 + $0x5d0] sm:$0xf0] }
  0xfa   :  { %v5111_v4 = vor.u32 %v6024_v0, %v5108_v1  ;;  %v6000_v0 = vld [vmem:[#allocation9 + $0x504] sm:$0xf]  ;;  %v5012_v1 = vld [vmem:[#allocation9 + $0x510] sm:$0xf0] }
  0xfb   :  { %2827 = vmatpush.bf16.msra.mxu1 %v4535_v33  ;;  %2838 = vmatpush.bf16.msra.mxu2 %v4695_v60 }
  0xfc   :  { %2849 = vmatpush.bf16.msra.mxu3 %v4855_v56  ;;  %v4756_v56 = vld [vmem:[#allocation9 + $0x310] sm:$0xf0] }
  0xfd   :  { %2815 = vmatpush.bf16.msra.mxu0 %v4391_v26  ;;  %v4788_v26 = vld [vmem:[#allocation9 + $0x350] sm:$0xf0]  ;;  %v4759_v58 = vor.u32 %v5936_v52, %v4756_v56 }
  0xfe   :  { %v4791_v30 = vor.u32 %v5944_v25, %v4788_v26  ;;  %v5972_v26 = vld [vmem:[#allocation9 + $0x424] sm:$0xf] }
  0xff   :  { %2828 = vmatpush.bf16.msra.mxu1 %v4519_v48  ;;  %2839 = vmatpush.bf16.msra.mxu2 %v4679_v2  ;;  %v5984_v2 = vld [vmem:[#allocation9 + $0x484] sm:$0xf] }
 0x100   :  { %2850 = vmatpush.bf16.msra.mxu3 %v4839_v63 }
 0x101   :  { %2816 = vmatpush.bf16.msra.mxu0 %v4375_v41  ;;  %v1040_v10 = vpop.f32.mrf.mxu0 }
 0x102   :  { %v1041_v13 = vadd.f32 %v1040_v10, %v275_v5  ;;  %v4951_v5 = vor.u32 %v5984_v2, %v4948_v3  ;;  %v6092_v2 = vld [vmem:[#allocation9 + $0x7e4] sm:$0xf]  ;;  %v5380_v3 = vld [vmem:[#allocation9 + $0x7f0] sm:$0xf0] }
 0x103   :  { %2829 = vmatpush.bf16.msra.mxu1 %v4503_v59  ;;  %v1053_v15 = vpop.f32.mrf.mxu1  ;;  %2840 = vmatpush.bf16.msra.mxu2 %v4663_v9  ;;  %v5127_v59 = vor.u32 %v6028_v47, %v5124_v50  ;;  %v4932_v9 = vld [vmem:[#allocation9 + $0x470] sm:$0xf0] }
 0x104   :  { %2851 = vmatpush.bf16.msra.mxu3 %v4823_v6  ;;  %v1054_v22 = vadd.f32 %v1053_v15, %v1041_v13  ;;  %v6020_v6 = vld [vmem:[#allocation9 + $0x5a4] sm:$0xf]  ;;  %v4935_v11 = vor.u32 %v5980_v8, %v4932_v9  ;;  %v5076_v13 = vld [vmem:[#allocation9 + $0x590] sm:$0xf0]  ;;  %v5903_v8 = vld [vmem:[#allocation9 + $0x1f4] sm:$0xf0] }
 0x105   :  { %v5095_v10 = vor.u32 %v6020_v6, %v5092_v7  ;;  %v5976_v15 = vld [vmem:[#allocation9 + $0x444] sm:$0xf]  ;;  %v5079_v21 = vor.u32 %v6016_v12, %v5076_v13  ;;  %v5028_v47 = vld [vmem:[#allocation9 + $0x530] sm:$0xf0]  ;;  %v5863_v12 = vld [vmem:[#allocation9 + $0xb4] sm:$0xf0] }
 0x106   :  { %v1139_v27 = vmul.f32 0.2, %v1054_v22  ;;  %v6052_v9 = vld [vmem:[#allocation9 + $0x6a4] sm:$0xf] }
 0x107   :  { %2841 = vmatpush.bf16.msra.mxu2 %v4647_v23  ;;  %v1066_v34 = vpop.f32.mrf.mxu2  ;;  %v6012_v23 = vld [vmem:[#allocation9 + $0x564] sm:$0xf] }
 0x108   :  { %2852 = vmatpush.bf16.msra.mxu3 %v4807_v16  ;;  %v1147_v33 = vmax.f32 %v1054_v22, %v1139_v27  ;;  %v1067_v36 = vadd.f32 %v1066_v34, %v276_v24  ;;  %v4916_v16 = vld [vmem:[#allocation9 + $0x450] sm:$0xf0]  ;;  %v6008_v34 = vld [vmem:[#allocation9 + $0x544] sm:$0xf] }
 0x109   :  { %v1079_v37 = vpop.f32.mrf.mxu3  ;;  %v1042_v39 = vpop.f32.mrf.mxu0  ;;  %v4919_v22 = vor.u32 %v5976_v15, %v4916_v16  ;;  %v5060_v24 = vld [vmem:[#allocation9 + $0x570] sm:$0xf0]  ;;  %v5015_v15 = vor.u32 %v6000_v0, %v5012_v1 }
 0x10a   :  { %v6514_v41 = vpack.c.bf16 %v1147_v33, %v1147_v33  ;;  %v1080_v45 = vadd.f32 %v1079_v37, %v1067_v36  ;;  %v4900_v27 = vld [vmem:[#allocation9 + $0x430] sm:$0xf0]  ;;  %v5968_v36 = vld [vmem:[#allocation9 + $0x404] sm:$0xf] }
 0x10b   :  { %v1055_v43 = vpop.f32.mrf.mxu1  ;;  %2842 = vmatpush.bf16.msra.mxu2 %v4631_v35  ;;  %v4903_v33 = vor.u32 %v5972_v26, %v4900_v27  ;;  %v5044_v35 = vld [vmem:[#allocation9 + $0x550] sm:$0xf0] }
 0x10c   :  { %2853 = vmatpush.bf16.msra.mxu3 %v4791_v30  ;;  %2765 = vmatmul.bf16.vlgmr.msrb.gmra.mxu0 %v6514_v41  ;;  %v1140_v48 = vmul.f32 0.2, %v1080_v45  ;;  %v5063_v30 = vor.u32 %v6012_v23, %v5060_v24  ;;  %v4884_v37 = vld [vmem:[#allocation9 + $0x410] sm:$0xf0]  ;;  %v5047_v43 = vor.u32 %v6008_v34, %v5044_v35 }
 0x10d   :  { %2861 = vmatpush.bf16.msrb.mxu0 %v4999_v38  ;;  %v6060_v38 = vld [vmem:[#allocation9 + $0x6e4] sm:$0xf]  ;;  %v5252_v39 = vld [vmem:[#allocation9 + $0x6f0] sm:$0xf0]  ;;  %v4887_v51 = vor.u32 %v5968_v36, %v4884_v37 }
 0x10e   :  { %v1148_v57 = vmax.f32 %v1080_v45, %v1140_v48  ;;  %v5255_v52 = vor.u32 %v6060_v38, %v5252_v39  ;;  %v5364_v23 = vld [vmem:[#allocation9 + $0x7d0] sm:$0xf0]  ;;  %v6084_v36 = vld [vmem:[#allocation9 + $0x7a4] sm:$0xf] }
 0x10f   :  { %v1068_v60 = vpop.f32.mrf.mxu2  ;;  %v5348_v39 = vld [vmem:[#allocation9 + $0x7b0] sm:$0xf0] }
 0x110   :  { %2854 = vmatpush.bf16.msra.mxu3 %v4775_v46  ;;  %v6517_v61 = vpack.c.bf16 %v1148_v57, %v1148_v57  ;;  %v6004_v46 = vld [vmem:[#allocation9 + $0x524] sm:$0xf]  ;;  %v5867_v60 = vld [vmem:[#allocation9 + $0xd4] sm:$0xf0]  ;;  %v5316_v1 = vld [vmem:[#allocation9 + $0x770] sm:$0xf0] }
 0x111   :  { %2862 = vmatpush.bf16.msrb.mxu0 %v4983_v49  ;;  %v1081_v63 = vpop.f32.mrf.mxu3 }
 0x112   :  { %2778 = vmatmul.bf16.vlgmr.msrb.gmra.mxu1 %v6517_v61  ;;  %v5031_v63 = vor.u32 %v6004_v46, %v5028_v47  ;;  %v6080_v47 = vld [vmem:[#allocation9 + $0x784] sm:$0xf] }
 0x113   :  { %2874 = vmatpush.bf16.msrb.mxu1 %v5127_v59  ;;  %v4474_v59 = vld [vmem:[#allocation9 + $0xc8] sm:$0xf] }
 0x114   :  { %2855 = vmatpush.bf16.msra.mxu3 %v4759_v58  ;;  %v5236_v58 = vld [vmem:[#allocation9 + $0x6d0] sm:$0xf0]  ;;  %v4475_v7 = vor.u32 %v5867_v60, %v4474_v59 }
 0x115   :  { %2863 = vmatpush.bf16.msrb.mxu0 %v4967_v62  ;;  %v5239_v6 = vor.u32 %v6056_v55, %v5236_v58  ;;  %v4410_v55 = vld [vmem:[#allocation9 + $0x48] sm:$0xf]  ;;  %v6040_v58 = vld [vmem:[#allocation9 + $0x644] sm:$0xf]  ;;  %v5172_v59 = vld [vmem:[#allocation9 + $0x650] sm:$0xf0] }
 0x117   :  { %2875 = vmatpush.bf16.msrb.mxu1 %v5111_v4  ;;  %v4618_v4 = vld [vmem:[#allocation9 + $0x1e8] sm:$0xf] }
 0x119   :  { %2864 = vmatpush.bf16.msrb.mxu0 %v4951_v5 }
 0x11b   :  { %2876 = vmatpush.bf16.msrb.mxu1 %v5095_v10  ;;  %v5220_v10 = vld [vmem:[#allocation9 + $0x6b0] sm:$0xf0] }
 0x11c   :  { %2817 = vmatmul.bf16.vlgmr.msra.gmra.mxu0 %v6498_v53  ;;  %v5223_v26 = vor.u32 %v6052_v9, %v5220_v10 }
 0x11d   :  { %2865 = vmatpush.bf16.msrb.mxu0 %v4935_v11  ;;  %v4458_v11 = vld [vmem:[#allocation9 + $0xa8] sm:$0xf] }
 0x11e   :  { %v4459_v27 = vor.u32 %v5863_v12, %v4458_v11  ;;  %v6072_v11 = vld [vmem:[#allocation9 + $0x744] sm:$0xf] }
 0x11f   :  { %2877 = vmatpush.bf16.msrb.mxu1 %v5079_v21  ;;  %v4619_v21 = vor.u32 %v5903_v8, %v4618_v4  ;;  %v5175_v4 = vor.u32 %v6040_v58, %v5172_v59  ;;  %v5156_v8 = vld [vmem:[#allocation9 + $0x630] sm:$0xf0]  ;;  %v4970_v58 = vld [vmem:[#allocation9 + $0x4a8] sm:$0xf]  ;;  %v5991_v59 = vld [vmem:[#allocation9 + $0x4b4] sm:$0xf0] }
 0x121   :  { %v1092_v25 = vpop.f32.mrf.mxu0  ;;  %2866 = vmatpush.bf16.msrb.mxu0 %v4919_v22  ;;  %v6088_v22 = vld [vmem:[#allocation9 + $0x7c4] sm:$0xf] }
 0x122   :  { %v1093_v28 = vadd.f32 %v1092_v25, %v277_v19  ;;  %2830 = vmatmul.bf16.vlgmr.msra.gmra.mxu1 %v6501_v20  ;;  %v5383_v19 = vor.u32 %v6092_v2, %v5380_v3  ;;  %v5367_v34 = vor.u32 %v6088_v22, %v5364_v23  ;;  %v4554_v2 = vld [vmem:[#allocation9 + $0x168] sm:$0xf]  ;;  %v5887_v3 = vld [vmem:[#allocation9 + $0x174] sm:$0xf0] }
 0x123   :  { %v1105_v29 = vpop.f32.mrf.mxu1  ;;  %2878 = vmatpush.bf16.msrb.mxu1 %v5063_v30  ;;  %v6048_v30 = vld [vmem:[#allocation9 + $0x684] sm:$0xf]  ;;  %v4555_v10 = vor.u32 %v5887_v3, %v4554_v2  ;;  %v4378_v22 = vld [vmem:[#allocation9 + $0x8] sm:$0xf]  ;;  %v5843_v23 = vld [vmem:[#allocation9 + $0x14] sm:$0xf0] }
 0x124   :  { %v1106_v32 = vadd.f32 %v1105_v29, %v1093_v28  ;;  %v4602_v28 = vld [vmem:[#allocation9 + $0x1c8] sm:$0xf]  ;;  %v5899_v29 = vld [vmem:[#allocation9 + $0x1d4] sm:$0xf0] }
 0x125   :  { %2867 = vmatpush.bf16.msrb.mxu0 %v4903_v33  ;;  %v5859_v33 = vld [vmem:[#allocation9 + $0x94] sm:$0xf0]  ;;  %v4603_v35 = vor.u32 %v5899_v29, %v4602_v28  ;;  %v4858_v3 = vld [vmem:[#allocation9 + $0x3c8] sm:$0xf] }
 0x126   :  { %v1141_v40 = vmul.f32 0.2, %v1106_v32 }
 0x127   :  { %v1118_v45 = vpop.f32.mrf.mxu2  ;;  %2879 = vmatpush.bf16.msrb.mxu1 %v5047_v43  ;;  %v5855_v43 = vld [vmem:[#allocation9 + $0x74] sm:$0xf0] }
 0x128   :  { %v1149_v18 = vmax.f32 %v1106_v32, %v1141_v40  ;;  %v1119_v48 = vadd.f32 %v1118_v45, %v278_v31  ;;  %v5204_v31 = vld [vmem:[#allocation9 + $0x690] sm:$0xf0]  ;;  %v4442_v32 = vld [vmem:[#allocation9 + $0x88] sm:$0xf] }
 0x129   :  { %v1131_v49 = vpop.f32.mrf.mxu3  ;;  %v1094_v50 = vpop.f32.mrf.mxu0  ;;  %2868 = vmatpush.bf16.msrb.mxu0 %v4887_v51  ;;  %v5207_v37 = vor.u32 %v6048_v30, %v5204_v31  ;;  %v4443_v38 = vor.u32 %v5859_v33, %v4442_v32  ;;  %v4586_v40 = vld [vmem:[#allocation9 + $0x1a8] sm:$0xf]  ;;  %v5188_v45 = vld [vmem:[#allocation9 + $0x670] sm:$0xf0]  ;;  %v5351_v51 = vor.u32 %v6084_v36, %v5348_v39  ;;  %v5935_v31 = vld [vmem:[#allocation9 + $0x2f4] sm:$0xf0]  ;;  %v4379_v33 = vor.u32 %v5843_v23, %v4378_v22 }
 0x12a   :  { %v6524_v56 = vpack.c.bf16 %v1149_v18, %v1149_v18  ;;  %v1132_v62 = vadd.f32 %v1131_v49, %v1119_v48  ;;  %v6044_v18 = vld [vmem:[#allocation9 + $0x664] sm:$0xf]  ;;  %v4587_v46 = vor.u32 %v5895_v42, %v4586_v40  ;;  %v4427_v48 = vor.u32 %v5855_v43, %v4426_v17  ;;  %v5332_v49 = vld [vmem:[#allocation9 + $0x790] sm:$0xf0]  ;;  %v4570_v50 = vld [vmem:[#allocation9 + $0x188] sm:$0xf] }
 0x12b   :  { %v1107_v57 = vpop.f32.mrf.mxu1  ;;  %2880 = vmatpush.bf16.msrb.mxu1 %v5031_v63  ;;  %v5335_v60 = vor.u32 %v6080_v47, %v5332_v49  ;;  %v6076_v63 = vld [vmem:[#allocation9 + $0x764] sm:$0xf]  ;;  %v4746_v30 = vld [vmem:[#allocation9 + $0x2e8] sm:$0xf]  ;;  %v5879_v36 = vld [vmem:[#allocation9 + $0x134] sm:$0xf0] }
 0x12c   :  { %2791 = vmatmul.bf16.vlgmr.msrb.gmra.mxu2 %v6524_v56  ;;  %v1142_v5 = vmul.f32 0.2, %v1132_v62  ;;  %2869 = vmatmul.bf16.vlgmr.msrb.gmra.mxu0 %v6514_v41  ;;  %v5851_v57 = vld [vmem:[#allocation9 + $0x54] sm:$0xf0]  ;;  %v5319_v9 = vor.u32 %v6076_v63, %v5316_v1  ;;  %v6068_v32 = vld [vmem:[#allocation9 + $0x724] sm:$0xf]  ;;  %v4747_v39 = vor.u32 %v5935_v31, %v4746_v30 }
 0x12d   :  { %2887 = vmatpush.bf16.msrb.mxu2 %v5255_v52  ;;  %2913 = vmatpush.bf16.msra.mxu0 %v4491_v54  ;;  %v5891_v52 = vld [vmem:[#allocation9 + $0x194] sm:$0xf0]  ;;  %v5191_v54 = vor.u32 %v6044_v18, %v5188_v45  ;;  %v4411_v0 = vor.u32 %v5851_v57, %v4410_v55  ;;  %v4730_v40 = vld [vmem:[#allocation9 + $0x2c8] sm:$0xf] }
 0x12e   :  { %v1150_v13 = vmax.f32 %v1132_v62, %v1142_v5  ;;  %v4571_v62 = vor.u32 %v5891_v52, %v4570_v50  ;;  %v4394_v5 = vld [vmem:[#allocation9 + $0x28] sm:$0xf]  ;;  %v5995_v17 = vld [vmem:[#allocation9 + $0x4d4] sm:$0xf0] }
 0x12f   :  { %v1120_v16 = vpop.f32.mrf.mxu2  ;;  %2881 = vmatpush.bf16.msrb.mxu1 %v5015_v15  ;;  %v4538_v15 = vld [vmem:[#allocation9 + $0x148] sm:$0xf]  ;;  %v5931_v45 = vld [vmem:[#allocation9 + $0x2d4] sm:$0xf0] }
 0x130   :  { %v6528_v24 = vpack.c.bf16 %v1150_v13, %v1150_v13  ;;  %v5300_v13 = vld [vmem:[#allocation9 + $0x750] sm:$0xf0]  ;;  %v5883_v16 = vld [vmem:[#allocation9 + $0x154] sm:$0xf0]  ;;  %v4986_v42 = vld [vmem:[#allocation9 + $0x4c8] sm:$0xf]  ;;  %v4731_v57 = vor.u32 %v5931_v45, %v4730_v40 }
 0x131   :  { %v1133_v25 = vpop.f32.mrf.mxu3  ;;  %2888 = vmatpush.bf16.msrb.mxu2 %v5239_v6  ;;  %2914 = vmatpush.bf16.msra.mxu0 %v4475_v7  ;;  %v5847_v6 = vld [vmem:[#allocation9 + $0x34] sm:$0xf0]  ;;  %v6036_v7 = vld [vmem:[#allocation9 + $0x624] sm:$0xf]  ;;  %v5303_v28 = vor.u32 %v6072_v11, %v5300_v13  ;;  %v4539_v29 = vor.u32 %v5883_v16, %v4538_v15  ;;  %v4506_v47 = vld [vmem:[#allocation9 + $0x108] sm:$0xf]  ;;  %v4987_v50 = vor.u32 %v5995_v17, %v4986_v42 }
 0x132   :  { %2804 = vmatmul.bf16.vlgmr.msrb.gmra.mxu3 %v6528_v24  ;;  %2882 = vmatmul.bf16.vlgmr.msrb.gmra.mxu1 %v6517_v61  ;;  %v4395_v12 = vor.u32 %v5847_v6, %v4394_v5  ;;  %v5140_v25 = vld [vmem:[#allocation9 + $0x610] sm:$0xf0]  ;;  %v4874_v49 = vld [vmem:[#allocation9 + $0x3e8] sm:$0xf]  ;;  %v5967_v52 = vld [vmem:[#allocation9 + $0x3f4] sm:$0xf0] }
 0x133   :  { %2900 = vmatpush.bf16.msrb.mxu3 %v5383_v19  ;;  %2926 = vmatpush.bf16.msra.mxu1 %v4619_v21  ;;  %v5159_v19 = vor.u32 %v6036_v7, %v5156_v8  ;;  %v6032_v21 = vld [vmem:[#allocation9 + $0x604] sm:$0xf]  ;;  %v6031_v55 = vld [vmem:[#allocation9 + $0x5f4] sm:$0xf0]  ;;  %v4714_v63 = vld [vmem:[#allocation9 + $0x2a8] sm:$0xf]  ;;  %v4875_v1 = vor.u32 %v5967_v52, %v4874_v49 }
 0x134   :  { %v5963_v5 = vld [vmem:[#allocation9 + $0x3d4] sm:$0xf0]  ;;  %v5114_v6 = vld [vmem:[#allocation9 + $0x5c8] sm:$0xf] }
 0x135   :  { %2889 = vmatpush.bf16.msrb.mxu2 %v5223_v26  ;;  %2915 = vmatpush.bf16.msra.mxu0 %v4459_v27  ;;  %v5002_v26 = vld [vmem:[#allocation9 + $0x4e8] sm:$0xf]  ;;  %v5999_v27 = vld [vmem:[#allocation9 + $0x4f4] sm:$0xf0]  ;;  %v4859_v13 = vor.u32 %v5963_v5, %v4858_v3 }
 0x136   :  { %v6027_v7 = vld [vmem:[#allocation9 + $0x5d4] sm:$0xf0]  ;;  %v4698_v11 = vld [vmem:[#allocation9 + $0x288] sm:$0xf] }
 0x137   :  { %2901 = vmatpush.bf16.msrb.mxu3 %v5367_v34  ;;  %2927 = vmatpush.bf16.msra.mxu1 %v4603_v35  ;;  %v5284_v34 = vld [vmem:[#allocation9 + $0x730] sm:$0xf0]  ;;  %v4522_v35 = vld [vmem:[#allocation9 + $0x128] sm:$0xf]  ;;  %v5115_v15 = vor.u32 %v6027_v7, %v5114_v6  ;;  %v6023_v23 = vld [vmem:[#allocation9 + $0x5b4] sm:$0xf0] }
 0x138   :  { %v5287_v43 = vor.u32 %v6068_v32, %v5284_v34  ;;  %v4523_v18 = vor.u32 %v5879_v36, %v4522_v35  ;;  %v4842_v16 = vld [vmem:[#allocation9 + $0x3a8] sm:$0xf]  ;;  %v5955_v35 = vld [vmem:[#allocation9 + $0x394] sm:$0xf0] }
 0x139   :  { %2890 = vmatpush.bf16.msrb.mxu2 %v5207_v37  ;;  %2916 = vmatpush.bf16.msra.mxu0 %v4443_v38  ;;  %v5143_v37 = vor.u32 %v6032_v21, %v5140_v25  ;;  %v5003_v38 = vor.u32 %v5999_v27, %v5002_v26  ;;  %v5959_v21 = vld [vmem:[#allocation9 + $0x3b4] sm:$0xf0]  ;;  %v5098_v22 = vld [vmem:[#allocation9 + $0x5a8] sm:$0xf] }
 0x13a   :  { %v4938_v26 = vld [vmem:[#allocation9 + $0x468] sm:$0xf]  ;;  %v5983_v27 = vld [vmem:[#allocation9 + $0x474] sm:$0xf0]  ;;  %v4843_v30 = vor.u32 %v5959_v21, %v4842_v16  ;;  %v5099_v31 = vor.u32 %v6023_v23, %v5098_v22 }
 0x13b   :  { %2902 = vmatpush.bf16.msrb.mxu3 %v5351_v51  ;;  %2928 = vmatpush.bf16.msra.mxu1 %v4587_v46  ;;  %v6064_v51 = vld [vmem:[#allocation9 + $0x704] sm:$0xf]  ;;  %v5268_v46 = vld [vmem:[#allocation9 + $0x710] sm:$0xf0]  ;;  %v4826_v32 = vld [vmem:[#allocation9 + $0x388] sm:$0xf]  ;;  %v4939_v34 = vor.u32 %v5983_v27, %v4938_v26 }
 0x13c   :  { %2843 = vmatmul.bf16.vlgmr.msra.gmra.mxu2 %v6506_v14  ;;  %v5082_v36 = vld [vmem:[#allocation9 + $0x588] sm:$0xf]  ;;  %v5979_v40 = vld [vmem:[#allocation9 + $0x454] sm:$0xf0]  ;;  %v4827_v45 = vor.u32 %v5955_v35, %v4826_v32  ;;  %v5865_v32 = vld [vmem:[#allocation9 + $0xcc] sm:$0xf] }
 0x13d   :  { %2917 = vmatpush.bf16.msra.mxu0 %v4427_v48  ;;  %2891 = vmatpush.bf16.msrb.mxu2 %v5191_v54  ;;  %v5875_v48 = vld [vmem:[#allocation9 + $0x114] sm:$0xf0]  ;;  %v5130_v54 = vld [vmem:[#allocation9 + $0x5e8] sm:$0xf] }
 0x13e   :  { %v5131_v2 = vor.u32 %v6031_v55, %v5130_v54  ;;  %v4666_v42 = vld [vmem:[#allocation9 + $0x248] sm:$0xf]  ;;  %v5915_v17 = vld [vmem:[#allocation9 + $0x254] sm:$0xf0] }
 0x13f   :  { %2903 = vmatpush.bf16.msrb.mxu3 %v5335_v60  ;;  %2929 = vmatpush.bf16.msra.mxu1 %v4571_v62  ;;  %v5271_v60 = vor.u32 %v6064_v51, %v5268_v46  ;;  %v4507_v62 = vor.u32 %v5875_v48, %v4506_v47  ;;  %v4810_v46 = vld [vmem:[#allocation9 + $0x368] sm:$0xf]  ;;  %v5951_v48 = vld [vmem:[#allocation9 + $0x374] sm:$0xf0]  ;;  %v4667_v52 = vor.u32 %v5915_v17, %v4666_v42 }
 0x140   :  { %v5066_v49 = vld [vmem:[#allocation9 + $0x568] sm:$0xf]  ;;  %v5975_v55 = vld [vmem:[#allocation9 + $0x434] sm:$0xf0] }
 0x141   :  { %2918 = vmatpush.bf16.msra.mxu0 %v4411_v0  ;;  %2892 = vmatpush.bf16.msrb.mxu2 %v5175_v4  ;;  %v5927_v0 = vld [vmem:[#allocation9 + $0x2b4] sm:$0xf0]  ;;  %v4971_v4 = vor.u32 %v5991_v59, %v4970_v58  ;;  %v4906_v54 = vld [vmem:[#allocation9 + $0x428] sm:$0xf] }
 0x142   :  { %2856 = vmatmul.bf16.vlgmr.msra.gmra.mxu3 %v6509_v44  ;;  %v4715_v8 = vor.u32 %v5927_v0, %v4714_v63  ;;  %v5911_v58 = vld [vmem:[#allocation9 + $0x234] sm:$0xf0]  ;;  %v4794_v63 = vld [vmem:[#allocation9 + $0x348] sm:$0xf]  ;;  %v4907_v0 = vor.u32 %v5975_v55, %v4906_v54 }
 0x143   :  { %2904 = vmatpush.bf16.msrb.mxu3 %v5319_v9  ;;  %2930 = vmatpush.bf16.msra.mxu1 %v4555_v10  ;;  %v4954_v9 = vld [vmem:[#allocation9 + $0x488] sm:$0xf]  ;;  %v5987_v10 = vld [vmem:[#allocation9 + $0x494] sm:$0xf0] }
 0x144   :  { %v6011_v3 = vld [vmem:[#allocation9 + $0x554] sm:$0xf0]  ;;  %v4634_v5 = vld [vmem:[#allocation9 + $0x208] sm:$0xf] }
 0x145   :  { %2919 = vmatpush.bf16.msra.mxu0 %v4395_v12  ;;  %2893 = vmatpush.bf16.msrb.mxu2 %v5159_v19  ;;  %v5923_v12 = vld [vmem:[#allocation9 + $0x294] sm:$0xf0]  ;;  %v4955_v19 = vor.u32 %v5987_v10, %v4954_v9  ;;  %v4890_v6 = vld [vmem:[#allocation9 + $0x408] sm:$0xf]  ;;  %v5869_v10 = vld [vmem:[#allocation9 + $0xec] sm:$0xf] }
 0x146   :  { %v4699_v25 = vor.u32 %v5923_v12, %v4698_v11  ;;  %v5971_v7 = vld [vmem:[#allocation9 + $0x414] sm:$0xf0]  ;;  %v4492_v11 = vld [vmem:[#allocation9 + $0xf8] sm:$0xf0]  ;;  %v4778_v22 = vld [vmem:[#allocation9 + $0x328] sm:$0xf] }
 0x147   :  { %2905 = vmatpush.bf16.msrb.mxu3 %v5303_v28  ;;  %2931 = vmatpush.bf16.msra.mxu1 %v4539_v29  ;;  %v4682_v28 = vld [vmem:[#allocation9 + $0x268] sm:$0xf]  ;;  %v5919_v29 = vld [vmem:[#allocation9 + $0x274] sm:$0xf0]  ;;  %v4891_v23 = vor.u32 %v5971_v7, %v4890_v6 }
 0x148   :  { %v5907_v9 = vld [vmem:[#allocation9 + $0x214] sm:$0xf0]  ;;  %v5034_v26 = vld [vmem:[#allocation9 + $0x528] sm:$0xf] }
 0x149   :  { %2920 = vmatpush.bf16.msra.mxu0 %v4379_v33  ;;  %2894 = vmatpush.bf16.msrb.mxu2 %v5143_v37  ;;  %v1415_v33 = vld [vmem:[%s6622_s4] sm:$0xf]  ;;  %v6019_v37 = vld [vmem:[#allocation9 + $0x594] sm:$0xf0] }
 0x14a   :  { %v5083_v51 = vor.u32 %v6019_v37, %v5082_v36  ;;  %v6063_v21 = vld [vmem:[#allocation9 + $0x6f4] sm:$0xf0]  ;;  %v4762_v37 = vld [vmem:[#allocation9 + $0x308] sm:$0xf] }
 0x14b   :  { %2906 = vmatpush.bf16.msrb.mxu3 %v5287_v43  ;;  %2932 = vmatpush.bf16.msra.mxu1 %v4523_v18  ;;  %v1417_v43 = vperm.slane %v1415_v33, 0  ;;  %v6007_v27 = vld [vmem:[#allocation9 + $0x534] sm:$0xf0]  ;;  %v4476_v33 = vld [vmem:[#allocation9 + $0xd8] sm:$0xf0] }
 0x14c   :  { %2921 = vmatmul.bf16.vlgmr.msra.gmra.mxu0 %v6498_v53  ;;  %2895 = vmatmul.bf16.vlgmr.msrb.gmra.mxu2 %v6524_v56  ;;  %v5035_v35 = vor.u32 %v6007_v27, %v5034_v26  ;;  %v6059_v36 = vld [vmem:[#allocation9 + $0x6d4] sm:$0xf0]  ;;  %v5386_v42 = vld [vmem:[#allocation9 + $0x7e8] sm:$0xf]  ;;  %v4479_v17 = vor.u32 %v5865_v32, %v4476_v33  ;;  %v4412_v32 = vld [vmem:[#allocation9 + $0x58] sm:$0xf0] }
 0x14d   :  { %2965 = vmatpush.bf16.msrb.mxu0 %v5003_v38  ;;  %2939 = vmatpush.bf16.msra.mxu2 %v4747_v39  ;;  %v4683_v38 = vor.u32 %v5919_v29, %v4682_v28  ;;  %v4922_v39 = vld [vmem:[#allocation9 + $0x448] sm:$0xf]  ;;  %v4635_v28 = vor.u32 %v5907_v9, %v4634_v5  ;;  %v4495_v29 = vor.u32 %v5869_v10, %v4492_v11  ;;  %v6051_v6 = vld [vmem:[#allocation9 + $0x694] sm:$0xf0]  ;;  %v5893_v10 = vld [vmem:[#allocation9 + $0x1ac] sm:$0xf] }
 0x14e   :  { %v4923_v47 = vor.u32 %v5979_v40, %v4922_v39  ;;  %v5018_v39 = vld [vmem:[#allocation9 + $0x508] sm:$0xf]  ;;  %v6003_v40 = vld [vmem:[#allocation9 + $0x514] sm:$0xf0]  ;;  %v4588_v11 = vld [vmem:[#allocation9 + $0x1b8] sm:$0xf0] }
 0x14f   :  { %2907 = vmatpush.bf16.msrb.mxu3 %v5271_v60  ;;  %2933 = vmatpush.bf16.msra.mxu1 %v4507_v62  ;;  %v2714_v18 = vpop.f32.mrf.mxu0  ;;  %v4811_v60 = vor.u32 %v5951_v48, %v4810_v46  ;;  %v4460_v48 = vld [vmem:[#allocation9 + $0xb8] sm:$0xf0]  ;;  %v5226_v55 = vld [vmem:[#allocation9 + $0x6a8] sm:$0xf]  ;;  %v6087_v9 = vld [vmem:[#allocation9 + $0x7b4] sm:$0xf0] }
 0x150   :  { %v2715_v59 = vadd.f32 %v2714_v18, %v1417_v43  ;;  %v6095_v43 = vld [vmem:[#allocation9 + $0x7f4] sm:$0xf0]  ;;  %v5901_v18 = vld [vmem:[#allocation9 + $0x1ec] sm:$0xf]  ;;  %v5210_v5 = vld [vmem:[#allocation9 + $0x688] sm:$0xf] }
 0x151   :  { %2966 = vmatpush.bf16.msrb.mxu0 %v4987_v50  ;;  %2940 = vmatpush.bf16.msra.mxu2 %v4731_v57  ;;  %v6015_v50 = vld [vmem:[#allocation9 + $0x574] sm:$0xf0]  ;;  %v4650_v57 = vld [vmem:[#allocation9 + $0x228] sm:$0xf] }
 0x152   :  { %2934 = vmatmul.bf16.vlgmr.msra.gmra.mxu1 %v6501_v20  ;;  %2908 = vmatmul.bf16.vlgmr.msrb.gmra.mxu3 %v6528_v24  ;;  %v5067_v62 = vor.u32 %v6015_v50, %v5066_v49  ;;  %v5019_v50 = vor.u32 %v6003_v40, %v5018_v39  ;;  %v5354_v7 = vld [vmem:[#allocation9 + $0x7a8] sm:$0xf]  ;;  %v6083_v27 = vld [vmem:[#allocation9 + $0x794] sm:$0xf0] }
 0x153   :  { %2952 = vmatpush.bf16.msra.mxu3 %v4875_v1  ;;  %2978 = vmatpush.bf16.msrb.mxu1 %v5131_v2  ;;  %v5947_v1 = vld [vmem:[#allocation9 + $0x354] sm:$0xf0]  ;;  %v5050_v2 = vld [vmem:[#allocation9 + $0x548] sm:$0xf] }
 0x154   :  { %v5051_v16 = vor.u32 %v6011_v3, %v5050_v2  ;;  %v6079_v40 = vld [vmem:[#allocation9 + $0x774] sm:$0xf0] }
 0x155   :  { %2967 = vmatpush.bf16.msrb.mxu0 %v4971_v4  ;;  %2941 = vmatpush.bf16.msra.mxu2 %v4715_v8  ;;  %v4651_v4 = vor.u32 %v5911_v58, %v4650_v57  ;;  %v6055_v57 = vld [vmem:[#allocation9 + $0x6b4] sm:$0xf0]  ;;  %v5370_v58 = vld [vmem:[#allocation9 + $0x7c8] sm:$0xf] }
 0x156   :  { %v5227_v2 = vor.u32 %v6055_v57, %v5226_v55  ;;  %v5881_v55 = vld [vmem:[#allocation9 + $0x14c] sm:$0xf]  ;;  %v4540_v57 = vld [vmem:[#allocation9 + $0x158] sm:$0xf0] }
 0x157   :  { %2953 = vmatpush.bf16.msra.mxu3 %v4859_v13  ;;  %2979 = vmatpush.bf16.msrb.mxu1 %v5115_v15  ;;  %v2716_v13 = vpop.f32.mrf.mxu0  ;;  %v4795_v15 = vor.u32 %v5947_v1, %v4794_v63  ;;  %v4604_v63 = vld [vmem:[#allocation9 + $0x1d8] sm:$0xf0] }
 0x158   :  { %v4444_v1 = vld [vmem:[#allocation9 + $0x98] sm:$0xf0]  ;;  %v5853_v13 = vld [vmem:[#allocation9 + $0x6c] sm:$0xf] }
 0x159   :  { %2968 = vmatpush.bf16.msrb.mxu0 %v4955_v19  ;;  %2942 = vmatpush.bf16.msra.mxu2 %v4699_v25  ;;  %v5258_v19 = vld [vmem:[#allocation9 + $0x6e8] sm:$0xf]  ;;  %v5943_v25 = vld [vmem:[#allocation9 + $0x334] sm:$0xf0] }
 0x15a   :  { %v2727_v8 = vpop.f32.mrf.mxu1 }
 0x15b   :  { %2954 = vmatpush.bf16.msra.mxu3 %v4843_v30  ;;  %2980 = vmatpush.bf16.msrb.mxu1 %v5099_v31  ;;  %v6541_v12 = vadd.f32 %v2727_v8, %v2715_v59  ;;  %v5259_v30 = vor.u32 %v6063_v21, %v5258_v19  ;;  %v5242_v31 = vld [vmem:[#allocation9 + $0x6c8] sm:$0xf]  ;;  %v5355_v19 = vor.u32 %v6087_v9, %v5354_v7  ;;  %v4748_v7 = vld [vmem:[#allocation9 + $0x2f8] sm:$0xf0]  ;;  %v6071_v9 = vld [vmem:[#allocation9 + $0x734] sm:$0xf0] }
 0x15c   :  { %v5243_v46 = vor.u32 %v6059_v36, %v5242_v31  ;;  %v4591_v21 = vor.u32 %v5893_v10, %v4588_v11  ;;  %v5849_v31 = vld [vmem:[#allocation9 + $0x4c] sm:$0xf]  ;;  %v5178_v36 = vld [vmem:[#allocation9 + $0x648] sm:$0xf] }
 0x15d   :  { %2969 = vmatpush.bf16.msrb.mxu0 %v4939_v34  ;;  %2943 = vmatpush.bf16.msra.mxu2 %v4683_v38  ;;  %v4779_v34 = vor.u32 %v5943_v25, %v4778_v22  ;;  %v5939_v38 = vld [vmem:[#allocation9 + $0x314] sm:$0xf0]  ;;  %v5194_v22 = vld [vmem:[#allocation9 + $0x668] sm:$0xf]  ;;  %v4415_v39 = vor.u32 %v5849_v31, %v4412_v32  ;;  %v5877_v11 = vld [vmem:[#allocation9 + $0x12c] sm:$0xf] }
 0x15e   :  { %v4763_v49 = vor.u32 %v5939_v38, %v4762_v37  ;;  %v5338_v25 = vld [vmem:[#allocation9 + $0x788] sm:$0xf]  ;;  %v6043_v37 = vld [vmem:[#allocation9 + $0x654] sm:$0xf0]  ;;  %v4508_v31 = vld [vmem:[#allocation9 + $0x118] sm:$0xf0] }
 0x15f   :  { %2955 = vmatpush.bf16.msra.mxu3 %v4827_v45  ;;  %2981 = vmatpush.bf16.msrb.mxu1 %v5083_v51  ;;  %v4620_v45 = vld [vmem:[#allocation9 + $0x1f8] sm:$0xf0]  ;;  %v5322_v38 = vld [vmem:[#allocation9 + $0x768] sm:$0xf] }
 0x160   :  { %v4623_v54 = vor.u32 %v5901_v18, %v4620_v45  ;;  %v4396_v18 = vld [vmem:[#allocation9 + $0x38] sm:$0xf0]  ;;  %v5179_v45 = vor.u32 %v6043_v37, %v5178_v36  ;;  %v6029_v36 = vld [vmem:[#allocation9 + $0x5ec] sm:$0xf] }
 0x161   :  { %2970 = vmatpush.bf16.msrb.mxu0 %v4923_v47  ;;  %2944 = vmatpush.bf16.msra.mxu2 %v4667_v52  ;;  %v5861_v47 = vld [vmem:[#allocation9 + $0xac] sm:$0xf]  ;;  %v5387_v52 = vor.u32 %v6095_v43, %v5386_v42  ;;  %v5132_v37 = vld [vmem:[#allocation9 + $0x5f8] sm:$0xf0] }
 0x162   :  { %v2729_v51 = vpop.f32.mrf.mxu1  ;;  %v4463_v59 = vor.u32 %v5861_v47, %v4460_v48  ;;  %v5885_v42 = vld [vmem:[#allocation9 + $0x16c] sm:$0xf]  ;;  %v5162_v47 = vld [vmem:[#allocation9 + $0x628] sm:$0xf]  ;;  %v6039_v48 = vld [vmem:[#allocation9 + $0x634] sm:$0xf0] }
 0x163   :  { %2956 = vmatpush.bf16.msra.mxu3 %v4811_v60  ;;  %2982 = vmatpush.bf16.msrb.mxu1 %v5067_v62  ;;  %v6091_v60 = vld [vmem:[#allocation9 + $0x7d4] sm:$0xf0]  ;;  %v5897_v62 = vld [vmem:[#allocation9 + $0x1cc] sm:$0xf]  ;;  %v5323_v51 = vor.u32 %v6079_v40, %v5322_v38 }
 0x164   :  { %v5371_v3 = vor.u32 %v6091_v60, %v5370_v58  ;;  %v5845_v43 = vld [vmem:[#allocation9 + $0x2c] sm:$0xf] }
 0x165   :  { %2971 = vmatpush.bf16.msrb.mxu0 %v4907_v0  ;;  %2945 = vmatpush.bf16.msra.mxu2 %v4651_v4  ;;  %v5857_v0 = vld [vmem:[#allocation9 + $0x8c] sm:$0xf]  ;;  %v4607_v4 = vor.u32 %v5897_v62, %v4604_v63  ;;  %v5163_v62 = vor.u32 %v6039_v48, %v5162_v47  ;;  %v4860_v48 = vld [vmem:[#allocation9 + $0x3d8] sm:$0xf0] }
 0x166   :  { %v4447_v8 = vor.u32 %v5857_v0, %v4444_v1  ;;  %v5841_v58 = vld [vmem:[#allocation9 + $0xc] sm:$0xf]  ;;  %v5004_v0 = vld [vmem:[#allocation9 + $0x4f8] sm:$0xf0] }
 0x167   :  { %2957 = vmatpush.bf16.msra.mxu3 %v4795_v15  ;;  %2983 = vmatpush.bf16.msrb.mxu1 %v5051_v16  ;;  %v4428_v15 = vld [vmem:[#allocation9 + $0x78] sm:$0xf0]  ;;  %v5211_v16 = vor.u32 %v6051_v6, %v5210_v5  ;;  %v5997_v63 = vld [vmem:[#allocation9 + $0x4ec] sm:$0xf] }
 0x168   :  { %v4431_v26 = vor.u32 %v5853_v13, %v4428_v15  ;;  %v5933_v5 = vld [vmem:[#allocation9 + $0x2ec] sm:$0xf]  ;;  %v5007_v10 = vor.u32 %v5997_v63, %v5004_v0  ;;  %v4524_v13 = vld [vmem:[#allocation9 + $0x138] sm:$0xf0] }
 0x169   :  { %2972 = vmatpush.bf16.msrb.mxu0 %v4891_v23  ;;  %2946 = vmatpush.bf16.msra.mxu2 %v4635_v28  ;;  %v6047_v23 = vld [vmem:[#allocation9 + $0x674] sm:$0xf0]  ;;  %v5889_v28 = vld [vmem:[#allocation9 + $0x18c] sm:$0xf] }
 0x16a   :  { %v5195_v33 = vor.u32 %v6047_v23, %v5194_v22  ;;  %v5929_v23 = vld [vmem:[#allocation9 + $0x2cc] sm:$0xf] }
 0x16b   :  { %2958 = vmatpush.bf16.msra.mxu3 %v4779_v34  ;;  %2984 = vmatpush.bf16.msrb.mxu1 %v5035_v35  ;;  %v5339_v34 = vor.u32 %v6083_v27, %v5338_v25  ;;  %v4732_v25 = vld [vmem:[#allocation9 + $0x2d8] sm:$0xf0]  ;;  %v4527_v27 = vor.u32 %v5877_v11, %v4524_v13  ;;  %v5989_v38 = vld [vmem:[#allocation9 + $0x4ac] sm:$0xf] }
 0x16c   :  { %2947 = vmatmul.bf16.vlgmr.msra.gmra.mxu2 %v6506_v14  ;;  %2973 = vmatmul.bf16.vlgmr.msrb.gmra.mxu0 %v6514_v41  ;;  %v4735_v40 = vor.u32 %v5929_v23, %v4732_v25  ;;  %v5961_v47 = vld [vmem:[#allocation9 + $0x3cc] sm:$0xf] }
 0x16d   :  { %3017 = vmatpush.bf16.msra.mxu0 %v4495_v29  ;;  %2991 = vmatpush.bf16.msrb.mxu2 %v5259_v30  ;;  %v4572_v29 = vld [vmem:[#allocation9 + $0x198] sm:$0xf0]  ;;  %v5957_v0 = vld [vmem:[#allocation9 + $0x3ac] sm:$0xf] }
 0x16e   :  { %v4575_v35 = vor.u32 %v5889_v28, %v4572_v29  ;;  %v6067_v28 = vld [vmem:[#allocation9 + $0x714] sm:$0xf0]  ;;  %v5873_v29 = vld [vmem:[#allocation9 + $0x10c] sm:$0xf] }
 0x16f   :  { %2959 = vmatpush.bf16.msra.mxu3 %v4763_v49  ;;  %2985 = vmatpush.bf16.msrb.mxu1 %v5019_v50  ;;  %v6547_v30 = vpop.f32.mrf.mxu2  ;;  %v5306_v49 = vld [vmem:[#allocation9 + $0x748] sm:$0xf]  ;;  %v5953_v13 = vld [vmem:[#allocation9 + $0x38c] sm:$0xf] }
 0x171   :  { %3018 = vmatpush.bf16.msra.mxu0 %v4479_v17  ;;  %2992 = vmatpush.bf16.msrb.mxu2 %v5243_v46  ;;  %v4556_v17 = vld [vmem:[#allocation9 + $0x178] sm:$0xf0] }
 0x172   :  { %2960 = vmatmul.bf16.vlgmr.msra.gmra.mxu3 %v6509_v44  ;;  %2986 = vmatmul.bf16.vlgmr.msrb.gmra.mxu1 %v6517_v61  ;;  %v4559_v46 = vor.u32 %v5885_v42, %v4556_v17  ;;  %v4511_v17 = vor.u32 %v5873_v29, %v4508_v31 }
 0x173   :  { %3004 = vmatpush.bf16.msrb.mxu3 %v5387_v52  ;;  %3030 = vmatpush.bf16.msra.mxu1 %v4623_v54  ;;  %v4399_v52 = vor.u32 %v5845_v43, %v4396_v18  ;;  %v6075_v54 = vld [vmem:[#allocation9 + $0x754] sm:$0xf0]  ;;  %v5925_v18 = vld [vmem:[#allocation9 + $0x2ac] sm:$0xf] }
 0x174   :  { %v5307_v1 = vor.u32 %v6075_v54, %v5306_v49  ;;  %v6025_v49 = vld [vmem:[#allocation9 + $0x5cc] sm:$0xf] }
 0x175   :  { %3019 = vmatpush.bf16.msra.mxu0 %v4463_v59  ;;  %2993 = vmatpush.bf16.msrb.mxu2 %v5227_v2  ;;  %v4380_v59 = vld [vmem:[#allocation9 + $0x18] sm:$0xf0]  ;;  %v4543_v2 = vor.u32 %v5881_v55, %v4540_v57  ;;  %v5985_v54 = vld [vmem:[#allocation9 + $0x48c] sm:$0xf] }
 0x176   :  { %v4383_v6 = vor.u32 %v5841_v58, %v4380_v59  ;;  %v4956_v55 = vld [vmem:[#allocation9 + $0x498] sm:$0xf0]  ;;  %v5921_v58 = vld [vmem:[#allocation9 + $0x28c] sm:$0xf] }
 0x177   :  { %3005 = vmatpush.bf16.msrb.mxu3 %v5371_v3  ;;  %3031 = vmatpush.bf16.msra.mxu1 %v4607_v4  ;;  %v2742_v60 = vpop.f32.mrf.mxu2  ;;  %v5146_v3 = vld [vmem:[#allocation9 + $0x608] sm:$0xf]  ;;  %v6035_v4 = vld [vmem:[#allocation9 + $0x614] sm:$0xf0]  ;;  %v4700_v59 = vld [vmem:[#allocation9 + $0x298] sm:$0xf0]  ;;  %v4959_v63 = vor.u32 %v5985_v54, %v4956_v55 }
 0x178   :  { %v6549_v50 = vpop.f32.mrf.mxu3  ;;  %v5147_v15 = vor.u32 %v6035_v4, %v5146_v3  ;;  %v5100_v3 = vld [vmem:[#allocation9 + $0x5b8] sm:$0xf0]  ;;  %v5981_v4 = vld [vmem:[#allocation9 + $0x46c] sm:$0xf]  ;;  %v6111_v54 = vld [vmem:[#allocation11 + $0x74] sm:$0xf0] }
 0x179   :  { %3020 = vmatpush.bf16.msra.mxu0 %v4447_v8  ;;  %2994 = vmatpush.bf16.msrb.mxu2 %v5211_v16  ;;  %v5290_v8 = vld [vmem:[#allocation9 + $0x728] sm:$0xf]  ;;  %v5993_v16 = vld [vmem:[#allocation9 + $0x4cc] sm:$0xf] }
 0x17a   :  { %v5291_v22 = vor.u32 %v6071_v9, %v5290_v8  ;;  %v5917_v8 = vld [vmem:[#allocation9 + $0x26c] sm:$0xf]  ;;  %v4684_v9 = vld [vmem:[#allocation9 + $0x278] sm:$0xf0] }
 0x17b   :  { %3006 = vmatpush.bf16.msrb.mxu3 %v5355_v19  ;;  %3032 = vmatpush.bf16.msra.mxu1 %v4591_v21  ;;  %v4988_v19 = vld [vmem:[#allocation9 + $0x4d8] sm:$0xf0]  ;;  %v4751_v21 = vor.u32 %v5933_v5, %v4748_v7  ;;  %v4687_v23 = vor.u32 %v5917_v8, %v4684_v9  ;;  %v5442_v8 = vld [vmem:[#allocation11 + $0x60] sm:$0xf]  ;;  %v6109_v9 = vld [vmem:[#allocation11 + $0x64] sm:$0xf0] }
 0x17c   :  { %v4940_v5 = vld [vmem:[#allocation9 + $0x478] sm:$0xf0] }
 0x17d   :  { %3021 = vmatpush.bf16.msra.mxu0 %v4431_v26  ;;  %2995 = vmatpush.bf16.msrb.mxu2 %v5195_v33  ;;  %v5274_v26 = vld [vmem:[#allocation9 + $0x708] sm:$0xf]  ;;  %v4991_v33 = vor.u32 %v5993_v16, %v4988_v19  ;;  %v4943_v11 = vor.u32 %v5981_v4, %v4940_v5  ;;  %v6017_v16 = vld [vmem:[#allocation9 + $0x58c] sm:$0xf]  ;;  %v5084_v19 = vld [vmem:[#allocation9 + $0x598] sm:$0xf0] }
 0x17e   :  { %v5275_v42 = vor.u32 %v6067_v28, %v5274_v26  ;;  %v5913_v26 = vld [vmem:[#allocation9 + $0x24c] sm:$0xf]  ;;  %v5087_v29 = vor.u32 %v6017_v16, %v5084_v19 }
 0x17f   :  { %3007 = vmatpush.bf16.msrb.mxu3 %v5339_v34  ;;  %3033 = vmatpush.bf16.msra.mxu1 %v4575_v35  ;;  %v5965_v34 = vld [vmem:[#allocation9 + $0x3ec] sm:$0xf]  ;;  %v4876_v35 = vld [vmem:[#allocation9 + $0x3f8] sm:$0xf0] }
 0x180   :  { %v2755_v32 = vpop.f32.mrf.mxu3  ;;  %v4879_v43 = vor.u32 %v5965_v34, %v4876_v35  ;;  %v6013_v34 = vld [vmem:[#allocation9 + $0x56c] sm:$0xf]  ;;  %v5068_v35 = vld [vmem:[#allocation9 + $0x578] sm:$0xf0] }
 0x181   :  { %3022 = vmatpush.bf16.msra.mxu0 %v4415_v39  ;;  %2996 = vmatpush.bf16.msrb.mxu2 %v5179_v45  ;;  %v4972_v39 = vld [vmem:[#allocation9 + $0x4b8] sm:$0xf0]  ;;  %v5949_v32 = vld [vmem:[#allocation9 + $0x36c] sm:$0xf] }
 0x182   :  { %v4716_v45 = vld [vmem:[#allocation9 + $0x2b8] sm:$0xf0]  ;;  %v6005_v5 = vld [vmem:[#allocation9 + $0x52c] sm:$0xf] }
 0x183   :  { %3008 = vmatpush.bf16.msrb.mxu3 %v5323_v51  ;;  %3034 = vmatpush.bf16.msra.mxu1 %v4559_v46  ;;  %v5135_v51 = vor.u32 %v6029_v36, %v5132_v37  ;;  %v4975_v46 = vor.u32 %v5989_v38, %v4972_v39  ;;  %v4719_v57 = vor.u32 %v5925_v18, %v4716_v45  ;;  %v5973_v36 = vld [vmem:[#allocation9 + $0x42c] sm:$0xf]  ;;  %v4908_v37 = vld [vmem:[#allocation9 + $0x438] sm:$0xf0] }
 0x184   :  { %v5945_v18 = vld [vmem:[#allocation9 + $0x34c] sm:$0xf]  ;;  %v4796_v45 = vld [vmem:[#allocation9 + $0x358] sm:$0xf0] }
 0x185   :  { %3023 = vmatpush.bf16.msra.mxu0 %v4399_v52  ;;  %2997 = vmatpush.bf16.msrb.mxu2 %v5163_v62  ;;  %v5116_v52 = vld [vmem:[#allocation9 + $0x5d8] sm:$0xf0]  ;;  %v5937_v16 = vld [vmem:[#allocation9 + $0x30c] sm:$0xf] }
 0x186   :  { %v5119_v62 = vor.u32 %v6025_v49, %v5116_v52  ;;  %v5450_v52 = vld [vmem:[#allocation11 + $0x70] sm:$0xf] }
 0x187   :  { %3009 = vmatpush.bf16.msrb.mxu3 %v5307_v1  ;;  %3035 = vmatpush.bf16.msra.mxu1 %v4543_v2  ;;  %v4844_v1 = vld [vmem:[#allocation9 + $0x3b8] sm:$0xf0]  ;;  %v6021_v2 = vld [vmem:[#allocation9 + $0x5ac] sm:$0xf]  ;;  %v5451_v4 = vor.u32 %v6111_v54, %v5450_v52 }
 0x188   :  { %v4847_v7 = vor.u32 %v5957_v0, %v4844_v1  ;;  %v5260_v1 = vld [vmem:[#allocation9 + $0x6f8] sm:$0xf0] }
 0x189   :  { %3024 = vmatpush.bf16.msra.mxu0 %v4383_v6  ;;  %2998 = vmatpush.bf16.msrb.mxu2 %v5147_v15  ;;  %v6553_v60 = vpop.f32.mrf.mxu0  ;;  %v4703_v6 = vor.u32 %v5921_v58, %v4700_v59  ;;  %v4828_v15 = vld [vmem:[#allocation9 + $0x398] sm:$0xf0]  ;;  %v6061_v59 = vld [vmem:[#allocation9 + $0x6ec] sm:$0xf] }
 0x18a   :  { %v4831_v25 = vor.u32 %v5953_v13, %v4828_v15  ;;  %v4636_v58 = vld [vmem:[#allocation9 + $0x218] sm:$0xf0]  ;;  %v6057_v13 = vld [vmem:[#allocation9 + $0x6cc] sm:$0xf] }
 0x18b   :  { %3010 = vmatpush.bf16.msrb.mxu3 %v5291_v22  ;;  %3036 = vmatpush.bf16.msra.mxu1 %v4527_v27  ;;  %v4924_v22 = vld [vmem:[#allocation9 + $0x458] sm:$0xf0] }
 0x18c   :  { %3025 = vmatmul.bf16.vlgmr.msra.gmra.mxu0 %v6498_v53  ;;  %2999 = vmatmul.bf16.vlgmr.msrb.gmra.mxu2 %v6524_v56  ;;  %v4863_v53 = vor.u32 %v5961_v47, %v4860_v48  ;;  %v4668_v27 = vld [vmem:[#allocation9 + $0x258] sm:$0xf0]  ;;  %v5969_v47 = vld [vmem:[#allocation9 + $0x40c] sm:$0xf] }
 0x18d   :  { %3069 = vmatpush.bf16.msrb.mxu0 %v5007_v10  ;;  %3043 = vmatpush.bf16.msra.mxu2 %v4751_v21  ;;  %v5103_v10 = vor.u32 %v6021_v2, %v5100_v3  ;;  %v5977_v21 = vld [vmem:[#allocation9 + $0x44c] sm:$0xf]  ;;  %v4671_v38 = vor.u32 %v5913_v26, %v4668_v27  ;;  %v4892_v48 = vld [vmem:[#allocation9 + $0x418] sm:$0xf0] }
 0x18e   :  { %v4927_v31 = vor.u32 %v5977_v21, %v4924_v22  ;;  %v4895_v0 = vor.u32 %v5969_v47, %v4892_v48  ;;  %v5941_v2 = vld [vmem:[#allocation9 + $0x32c] sm:$0xf]  ;;  %v4780_v3 = vld [vmem:[#allocation9 + $0x338] sm:$0xf0]  ;;  %v6125_v47 = vld [vmem:[#allocation11 + $0xe4] sm:$0xf0] }
 0x18f   :  { %3011 = vmatpush.bf16.msrb.mxu3 %v5275_v42  ;;  %3037 = vmatpush.bf16.msra.mxu1 %v4511_v17  ;;  %v4652_v42 = vld [vmem:[#allocation9 + $0x238] sm:$0xf0]  ;;  %v5071_v17 = vor.u32 %v6013_v34, %v5068_v35  ;;  %v6001_v22 = vld [vmem:[#allocation9 + $0x50c] sm:$0xf] }
 0x190   :  { %v5244_v15 = vld [vmem:[#allocation9 + $0x6d8] sm:$0xf0]  ;;  %v6093_v26 = vld [vmem:[#allocation9 + $0x7ec] sm:$0xf] }
 0x191   :  { %3070 = vmatpush.bf16.msrb.mxu0 %v4991_v33  ;;  %3044 = vmatpush.bf16.msra.mxu2 %v4735_v40  ;;  %v2768_v28 = vpop.f32.mrf.mxu0  ;;  %v4812_v33 = vld [vmem:[#allocation9 + $0x378] sm:$0xf0]  ;;  %v5909_v40 = vld [vmem:[#allocation9 + $0x22c] sm:$0xf]  ;;  %v5247_v34 = vor.u32 %v6057_v13, %v5244_v15  ;;  %v6121_v13 = vld [vmem:[#allocation11 + $0xc4] sm:$0xf0] }
 0x192   :  { %3012 = vmatmul.bf16.vlgmr.msrb.gmra.mxu3 %v6528_v24  ;;  %3038 = vmatmul.bf16.vlgmr.msra.gmra.mxu1 %v6501_v20  ;;  %v6557_v20 = vpop.f32.mrf.mxu1  ;;  %v4815_v39 = vor.u32 %v5949_v32, %v4812_v33  ;;  %v4655_v49 = vor.u32 %v5909_v40, %v4652_v42  ;;  %v4764_v21 = vld [vmem:[#allocation9 + $0x318] sm:$0xf0]  ;;  %v5434_v28 = vld [vmem:[#allocation11 + $0x50] sm:$0xf]  ;;  %v6127_v32 = vld [vmem:[#allocation11 + $0xf4] sm:$0xf0] }
 0x193   :  { %3056 = vmatpush.bf16.msra.mxu3 %v4879_v43  ;;  %3082 = vmatpush.bf16.msrb.mxu1 %v5135_v51  ;;  %v4911_v43 = vor.u32 %v5973_v36, %v4908_v37  ;;  %v6009_v51 = vld [vmem:[#allocation9 + $0x54c] sm:$0xf]  ;;  %v5388_v27 = vld [vmem:[#allocation9 + $0x7f8] sm:$0xf0]  ;;  %v4767_v35 = vor.u32 %v5937_v16, %v4764_v21 }
 0x194   :  { %v5228_v40 = vld [vmem:[#allocation9 + $0x6b8] sm:$0xf0] }
 0x195   :  { %3071 = vmatpush.bf16.msrb.mxu0 %v4975_v46  ;;  %3045 = vmatpush.bf16.msra.mxu2 %v4719_v57  ;;  %v5052_v46 = vld [vmem:[#allocation9 + $0x558] sm:$0xf0]  ;;  %v4799_v57 = vor.u32 %v5945_v18, %v4796_v45  ;;  %v5426_v18 = vld [vmem:[#allocation11 + $0x40] sm:$0xf] }
 0x196   :  { %v5212_v52 = vld [vmem:[#allocation9 + $0x698] sm:$0xf0] }
 0x197   :  { %3057 = vmatpush.bf16.msra.mxu3 %v4863_v53  ;;  %3083 = vmatpush.bf16.msrb.mxu1 %v5119_v62  ;;  %v5905_v53 = vld [vmem:[#allocation9 + $0x20c] sm:$0xf] }
 0x199   :  { %3072 = vmatpush.bf16.msrb.mxu0 %v4959_v63  ;;  %3046 = vmatpush.bf16.msra.mxu2 %v4703_v6  ;;  %v6559_v62 = vpop.f32.mrf.mxu0  ;;  %v5055_v63 = vor.u32 %v6009_v51, %v5052_v46  ;;  %v5036_v6 = vld [vmem:[#allocation9 + $0x538] sm:$0xf0]  ;;  %v6105_v51 = vld [vmem:[#allocation11 + $0x44] sm:$0xf0]  ;;  %v5506_v46 = vld [vmem:[#allocation11 + $0xe0] sm:$0xf] }
 0x19a   :  { %v2781_v55 = vpop.f32.mrf.mxu1  ;;  %v5039_v19 = vor.u32 %v6005_v5, %v5036_v6  ;;  %v5427_v54 = vor.u32 %v6105_v51, %v5426_v18  ;;  %v5196_v5 = vld [vmem:[#allocation9 + $0x678] sm:$0xf0]  ;;  %v2741_v6 = vadd.f32 %v6547_v30, %v6541_v12  ;;  %v6097_v51 = vld [vmem:[#allocation11 + $0x4] sm:$0xf0] }
 0x19b   :  { %3058 = vmatpush.bf16.msra.mxu3 %v4847_v7  ;;  %3084 = vmatpush.bf16.msrb.mxu1 %v5103_v10  ;;  %v4639_v7 = vor.u32 %v5905_v53, %v4636_v58  ;;  %v5263_v10 = vor.u32 %v6061_v59, %v5260_v1  ;;  %v5356_v55 = vld [vmem:[#allocation9 + $0x7b8] sm:$0xf0]  ;;  %v5507_v53 = vor.u32 %v6125_v47, %v5506_v46  ;;  %v6103_v58 = vld [vmem:[#allocation11 + $0x34] sm:$0xf0]  ;;  %v5498_v59 = vld [vmem:[#allocation11 + $0xd0] sm:$0xf] }
 0x19c   :  { %v2754_v15 = vadd.f32 %v6549_v50, %v2741_v6  ;;  %v6117_v46 = vld [vmem:[#allocation11 + $0xa4] sm:$0xf0] }
 0x19d   :  { %3073 = vmatpush.bf16.msrb.mxu0 %v4943_v11  ;;  %3047 = vmatpush.bf16.msra.mxu2 %v4687_v23  ;;  %v4783_v11 = vor.u32 %v5941_v2, %v4780_v3  ;;  %v5020_v23 = vld [vmem:[#allocation9 + $0x518] sm:$0xf0] }
 0x19e   :  { %v5023_v37 = vor.u32 %v6001_v22, %v5020_v23  ;;  %v6041_v22 = vld [vmem:[#allocation9 + $0x64c] sm:$0xf]  ;;  %v5180_v23 = vld [vmem:[#allocation9 + $0x658] sm:$0xf0]  ;;  %v2767_v12 = vadd.f32 %v6553_v60, %v2754_v15 }
 0x19f   :  { %3059 = vmatpush.bf16.msra.mxu3 %v4831_v25  ;;  %3085 = vmatpush.bf16.msrb.mxu1 %v5087_v29  ;;  %v5443_v25 = vor.u32 %v6109_v9, %v5442_v8  ;;  %v6107_v29 = vld [vmem:[#allocation11 + $0x54] sm:$0xf0]  ;;  %v5340_v8 = vld [vmem:[#allocation9 + $0x798] sm:$0xf0]  ;;  %v5410_v9 = vld [vmem:[#allocation11 + $0x20] sm:$0xf] }
 0x1a0   :  { %v5435_v42 = vor.u32 %v6107_v29, %v5434_v28  ;;  %v6099_v29 = vld [vmem:[#allocation11 + $0x14] sm:$0xf0]  ;;  %v2780_v50 = vadd.f32 %v6557_v20, %v2767_v12  ;;  %v6037_v60 = vld [vmem:[#allocation9 + $0x62c] sm:$0xf]  ;;  %v5474_v20 = vld [vmem:[#allocation11 + $0xa0] sm:$0xf] }
 0x1a1   :  { %3074 = vmatpush.bf16.msrb.mxu0 %v4927_v31  ;;  %3048 = vmatpush.bf16.msra.mxu2 %v4671_v38  ;;  %v5514_v31 = vld [vmem:[#allocation11 + $0xf0] sm:$0xf]  ;;  %v2820_v36 = vpop.f32.mrf.mxu0  ;;  %v5391_v38 = vor.u32 %v6093_v26, %v5388_v27  ;;  %v5324_v26 = vld [vmem:[#allocation9 + $0x778] sm:$0xf0] }
 0x1a2   :  { %v6561_v33 = vpop.f32.mrf.mxu1  ;;  %v5515_v45 = vor.u32 %v6127_v32, %v5514_v31  ;;  %v5402_v27 = vld [vmem:[#allocation11 + $0x10] sm:$0xf]  ;;  %v6119_v32 = vld [vmem:[#allocation11 + $0xb4] sm:$0xf0]  ;;  %v5516_v12 = vld [vmem:[#allocation11 + $0xf8] sm:$0xf0] }
 0x1a3   :  { %3060 = vmatpush.bf16.msra.mxu3 %v4815_v39  ;;  %3086 = vmatpush.bf16.msrb.mxu1 %v5071_v17  ;;  %v6053_v39 = vld [vmem:[#allocation9 + $0x6ac] sm:$0xf]  ;;  %v5482_v31 = vld [vmem:[#allocation11 + $0xb0] sm:$0xf] }
 0x1a4   :  { %v6089_v17 = vld [vmem:[#allocation9 + $0x7cc] sm:$0xf]  ;;  %v5231_v48 = vor.u32 %v6053_v39, %v5228_v40  ;;  %v5403_v40 = vor.u32 %v6099_v29, %v5402_v27  ;;  %v5483_v18 = vor.u32 %v6119_v32, %v5482_v31  ;;  %v6104_v31 = vld [vmem:[#allocation11 + $0x44] sm:$0xf] }
 0x1a5   :  { %3075 = vmatpush.bf16.msrb.mxu0 %v4911_v43  ;;  %3049 = vmatpush.bf16.msra.mxu2 %v4655_v49  ;;  %v5372_v43 = vld [vmem:[#allocation9 + $0x7d8] sm:$0xf0]  ;;  %v6049_v49 = vld [vmem:[#allocation9 + $0x68c] sm:$0xf] }
 0x1a6   :  { %v5215_v1 = vor.u32 %v6049_v49, %v5212_v52  ;;  %v6110_v49 = vld [vmem:[#allocation11 + $0x74] sm:$0xf]  ;;  %v5452_v52 = vld [vmem:[#allocation11 + $0x78] sm:$0xf0]  ;;  %v6582_v27 = vld [vmem:[%s6622_s4] sm:$0xf] }
 0x1a7   :  { %3061 = vmatpush.bf16.msra.mxu3 %v4799_v57  ;;  %3087 = vmatpush.bf16.msrb.mxu1 %v5055_v63  ;;  %v5418_v57 = vld [vmem:[#allocation11 + $0x30] sm:$0xf]  ;;  %v6123_v63 = vld [vmem:[#allocation11 + $0xd4] sm:$0xf0] }
 0x1a9   :  { %3076 = vmatpush.bf16.msrb.mxu0 %v4895_v0  ;;  %3050 = vmatpush.bf16.msra.mxu2 %v4639_v7  ;;  %v6567_v2 = vpop.f32.mrf.mxu0  ;;  %v5419_v7 = vor.u32 %v6103_v58, %v5418_v57  ;;  %v6069_v58 = vld [vmem:[#allocation9 + $0x72c] sm:$0xf] }
 0x1aa   :  { %v2833_v0 = vpop.f32.mrf.mxu1 }
 0x1ab   :  { %3062 = vmatpush.bf16.msra.mxu3 %v4783_v11  ;;  %3088 = vmatpush.bf16.msrb.mxu1 %v5039_v19  ;;  %v5490_v11 = vld [vmem:[#allocation11 + $0xc0] sm:$0xf]  ;;  %v5455_v0 = vor.u32 %v6110_v49, %v5452_v52  ;;  %v5578_v49 = vld [vmem:[#allocation11 + $0x170] sm:$0xf]  ;;  %v6143_v52 = vld [vmem:[#allocation11 + $0x174] sm:$0xf0] }
 0x1ac   :  { %3077 = vmatmul.bf16.vlgmr.msrb.gmra.mxu0 %v6514_v41  ;;  %3051 = vmatmul.bf16.vlgmr.msra.gmra.mxu2 %v6506_v14  ;;  %v5375_v41 = vor.u32 %v6089_v17, %v5372_v43  ;;  %v6085_v14 = vld [vmem:[#allocation9 + $0x7ac] sm:$0xf]  ;;  %v5491_v28 = vor.u32 %v6121_v13, %v5490_v11  ;;  %v5308_v17 = vld [vmem:[#allocation9 + $0x758] sm:$0xf0]  ;;  %v5394_v43 = vld [vmem:[#allocation11] sm:$0xf] }
 0x1ad   :  { %3523 = vmatpush.bf16.msra.mxu0 %v5451_v4  ;;  %3095 = vmatpush.bf16.msrb.mxu2 %v5263_v10  ;;  %v5359_v3 = vor.u32 %v6085_v14, %v5356_v55  ;;  %v6045_v4 = vld [vmem:[#allocation9 + $0x66c] sm:$0xf]  ;;  %v5499_v10 = vor.u32 %v6123_v63, %v5498_v59  ;;  %v5148_v55 = vld [vmem:[#allocation9 + $0x618] sm:$0xf0]  ;;  %v5475_v63 = vor.u32 %v6117_v46, %v5474_v20 }
 0x1ae   :  { %v5199_v19 = vor.u32 %v6045_v4, %v5196_v5  ;;  %v6033_v14 = vld [vmem:[#allocation9 + $0x60c] sm:$0xf]  ;;  %v5292_v59 = vld [vmem:[#allocation9 + $0x738] sm:$0xf0] }
 0x1af   :  { %3063 = vmatpush.bf16.msra.mxu3 %v4767_v35  ;;  %3089 = vmatpush.bf16.msrb.mxu1 %v5023_v37  ;;  %v2792_v16 = vpop.f32.mrf.mxu2  ;;  %v5183_v35 = vor.u32 %v6041_v22, %v5180_v23  ;;  %v5151_v6 = vor.u32 %v6033_v14, %v5148_v55  ;;  %v5436_v22 = vld [vmem:[#allocation11 + $0x58] sm:$0xf0]  ;;  %v6126_v23 = vld [vmem:[#allocation11 + $0xf4] sm:$0xf]  ;;  %v5412_v46 = vld [vmem:[#allocation11 + $0x28] sm:$0xf0] }
 0x1b0   :  { %v2793_v39 = vadd.f32 %v2792_v16, %v2780_v50  ;;  %v6106_v16 = vld [vmem:[#allocation11 + $0x54] sm:$0xf]  ;;  %v5519_v32 = vor.u32 %v6126_v23, %v5516_v12  ;;  %v5428_v50 = vld [vmem:[#allocation11 + $0x48] sm:$0xf0]  ;;  %v5554_v23 = vld [vmem:[#allocation11 + $0x140] sm:$0xf] }
 0x1b1   :  { %3524 = vmatpush.bf16.msra.mxu0 %v5443_v25  ;;  %3096 = vmatpush.bf16.msrb.mxu2 %v5247_v34  ;;  %v6077_v25 = vld [vmem:[#allocation9 + $0x76c] sm:$0xf]  ;;  %v2872_v36 = vpop.f32.mrf.mxu0  ;;  %v5439_v29 = vor.u32 %v6106_v16, %v5436_v22  ;;  %v6137_v12 = vld [vmem:[#allocation11 + $0x144] sm:$0xf0] }
 0x1b2   :  { %3064 = vmatmul.bf16.vlgmr.msra.gmra.mxu3 %v6509_v44  ;;  %3090 = vmatmul.bf16.vlgmr.msrb.gmra.mxu1 %v6517_v61  ;;  %v6081_v44 = vld [vmem:[#allocation9 + $0x78c] sm:$0xf]  ;;  %v6101_v61 = vld [vmem:[#allocation11 + $0x24] sm:$0xf0]  ;;  %v6574_v34 = vpop.f32.mrf.mxu1  ;;  %v5327_v37 = vor.u32 %v6077_v25, %v5324_v26 }
 0x1b3   :  { %3108 = vmatpush.bf16.msrb.mxu3 %v5391_v38  ;;  %3536 = vmatpush.bf16.msra.mxu1 %v5515_v45  ;;  %v5343_v21 = vor.u32 %v6081_v44, %v5340_v8  ;;  %v5411_v30 = vor.u32 %v6101_v61, %v5410_v9  ;;  %v5164_v38 = vld [vmem:[#allocation9 + $0x638] sm:$0xf0]  ;;  %v5444_v44 = vld [vmem:[#allocation11 + $0x68] sm:$0xf0]  ;;  %v5295_v8 = vor.u32 %v6069_v58, %v5292_v59  ;;  %v6118_v58 = vld [vmem:[#allocation11 + $0xb4] sm:$0xf] }
 0x1b4   :  { %v5276_v61 = vld [vmem:[#allocation9 + $0x718] sm:$0xf0]  ;;  %v5508_v36 = vld [vmem:[#allocation11 + $0xe8] sm:$0xf0] }
 0x1b5   :  { %3525 = vmatpush.bf16.msra.mxu0 %v5435_v42  ;;  %3097 = vmatpush.bf16.msrb.mxu2 %v5231_v48  ;;  %v6073_v42 = vld [vmem:[#allocation9 + $0x74c] sm:$0xf]  ;;  %v2805_v45 = vpop.f32.mrf.mxu3  ;;  %v5484_v59 = vld [vmem:[#allocation11 + $0xb8] sm:$0xf0] }
 0x1b6   :  { %v2806_v47 = vadd.f32 %v2805_v45, %v2793_v39  ;;  %v6102_v39 = vld [vmem:[#allocation11 + $0x34] sm:$0xf] }
 0x1b7   :  { %3109 = vmatpush.bf16.msrb.mxu3 %v5375_v41  ;;  %3537 = vmatpush.bf16.msra.mxu1 %v5507_v53  ;;  %v2794_v48 = vpop.f32.mrf.mxu2  ;;  %v5167_v41 = vor.u32 %v6037_v60, %v5164_v38  ;;  %v5395_v53 = vor.u32 %v6097_v51, %v5394_v43  ;;  %v5431_v38 = vor.u32 %v6104_v31, %v5428_v50 }
 0x1b8   :  { %v3121_v57 = vmul.f32 0.2, %v2806_v47  ;;  %v6120_v48 = vld [vmem:[#allocation11 + $0xc4] sm:$0xf] }
 0x1b9   :  { %3526 = vmatpush.bf16.msra.mxu0 %v5427_v54  ;;  %3098 = vmatpush.bf16.msrb.mxu2 %v5215_v1  ;;  %v5311_v54 = vor.u32 %v6073_v42, %v5308_v17  ;;  %v5466_v1 = vld [vmem:[#allocation11 + $0x90] sm:$0xf]  ;;  %v6122_v42 = vld [vmem:[#allocation11 + $0xd4] sm:$0xf]  ;;  %v5500_v17 = vld [vmem:[#allocation11 + $0xd8] sm:$0xf0] }
 0x1ba   :  { %v3125_v4 = vmax.f32 %v2806_v47, %v3121_v57  ;;  %v2885_v5 = vpop.f32.mrf.mxu1  ;;  %v5503_v47 = vor.u32 %v6122_v42, %v5500_v17  ;;  %v5404_v57 = vld [vmem:[#allocation11 + $0x18] sm:$0xf0] }
 0x1bb   :  { %3110 = vmatpush.bf16.msrb.mxu3 %v5359_v3  ;;  %3538 = vmatpush.bf16.msra.mxu1 %v5499_v10  ;;  %v6115_v3 = vld [vmem:[#allocation11 + $0x94] sm:$0xf0]  ;;  %v6065_v10 = vld [vmem:[#allocation9 + $0x70c] sm:$0xf] }
 0x1bc   :  { %v6576_v9 = vpack.c.bf16 %v3125_v4, %v3125_v4  ;;  %v5467_v11 = vor.u32 %v6115_v3, %v5466_v1  ;;  %v5279_v25 = vor.u32 %v6065_v10, %v5276_v61  ;;  %v5487_v10 = vor.u32 %v6118_v58, %v5484_v59  ;;  %v6116_v61 = vld [vmem:[#allocation11 + $0xa4] sm:$0xf]  ;;  %v5564_v58 = vld [vmem:[#allocation11 + $0x158] sm:$0xf0] }
 0x1bd   :  { %3527 = vmatpush.bf16.msra.mxu0 %v5419_v7  ;;  %3099 = vmatpush.bf16.msrb.mxu2 %v5199_v19  ;;  %v6108_v7 = vld [vmem:[#allocation11 + $0x64] sm:$0xf]  ;;  %v2807_v13 = vpop.f32.mrf.mxu3  ;;  %v5458_v19 = vld [vmem:[#allocation11 + $0x80] sm:$0xf] }
 0x1be   :  { %v5447_v15 = vor.u32 %v6108_v7, %v5444_v44  ;;  %v6096_v44 = vld [vmem:[#allocation11 + $0x4] sm:$0xf]  ;;  %v5562_v13 = vld [vmem:[#allocation11 + $0x150] sm:$0xf] }
 0x1bf   :  { %3111 = vmatpush.bf16.msrb.mxu3 %v5343_v21  ;;  %3539 = vmatpush.bf16.msra.mxu1 %v5491_v28  ;;  %v6113_v21 = vld [vmem:[#allocation11 + $0x84] sm:$0xf0]  ;;  %v1418_v28 = vperm.slane %v6582_v27, 1 }
 0x1c0   :  { %v5459_v26 = vor.u32 %v6113_v21, %v5458_v19 }
 0x1c1   :  { %3528 = vmatpush.bf16.msra.mxu0 %v5411_v30  ;;  %3100 = vmatpush.bf16.msrb.mxu2 %v5183_v35  ;;  %v2844_v30 = vpop.f32.mrf.mxu2  ;;  %v6124_v35 = vld [vmem:[#allocation11 + $0xe4] sm:$0xf] }
 0x1c3   :  { %3112 = vmatpush.bf16.msrb.mxu3 %v5327_v37  ;;  %3540 = vmatpush.bf16.msra.mxu1 %v5483_v18  ;;  %v2819_v37 = vadd.f32 %v6559_v62, %v1418_v28  ;;  %v6100_v62 = vld [vmem:[#allocation11 + $0x24] sm:$0xf]  ;;  %v5555_v28 = vor.u32 %v6137_v12, %v5554_v23  ;;  %v5524_v12 = vld [vmem:[#allocation11 + $0x108] sm:$0xf0] }
 0x1c4   :  { %v5415_v55 = vor.u32 %v6100_v62, %v5412_v46  ;;  %v5522_v46 = vld [vmem:[#allocation11 + $0x100] sm:$0xf]  ;;  %v6128_v23 = vld [vmem:[#allocation11 + $0x104] sm:$0xf] }
 0x1c5   :  { %3529 = vmatpush.bf16.msra.mxu0 %v5403_v40  ;;  %3101 = vmatpush.bf16.msrb.mxu2 %v5167_v41  ;;  %v2857_v60 = vpop.f32.mrf.mxu3  ;;  %v5511_v40 = vor.u32 %v6124_v35, %v5508_v36  ;;  %v2832_v43 = vadd.f32 %v6561_v33, %v2819_v37  ;;  %v5492_v41 = vld [vmem:[#allocation11 + $0xc8] sm:$0xf0]  ;;  %v6098_v33 = vld [vmem:[#allocation11 + $0x14] sm:$0xf]  ;;  %v6112_v35 = vld [vmem:[#allocation11 + $0x84] sm:$0xf] }
 0x1c6   :  { %v5407_v7 = vor.u32 %v6098_v33, %v5404_v57  ;;  %v5460_v36 = vld [vmem:[#allocation11 + $0x88] sm:$0xf0]  ;;  %v5546_v37 = vld [vmem:[#allocation11 + $0x130] sm:$0xf] }
 0x1c7   :  { %3113 = vmatpush.bf16.msrb.mxu3 %v5311_v54  ;;  %3541 = vmatpush.bf16.msra.mxu1 %v5475_v63  ;;  %v2845_v45 = vadd.f32 %v2844_v30, %v2832_v43  ;;  %v5579_v54 = vor.u32 %v6143_v52, %v5578_v49  ;;  %v5570_v63 = vld [vmem:[#allocation11 + $0x160] sm:$0xf]  ;;  %v5463_v17 = vor.u32 %v6112_v35, %v5460_v36  ;;  %v6142_v49 = vld [vmem:[#allocation11 + $0x174] sm:$0xf]  ;;  %v5580_v52 = vld [vmem:[#allocation11 + $0x178] sm:$0xf0] }
 0x1c9   :  { %3530 = vmatpush.bf16.msra.mxu0 %v5395_v53  ;;  %3102 = vmatpush.bf16.msrb.mxu2 %v5151_v6  ;;  %v2846_v18 = vpop.f32.mrf.mxu2  ;;  %v6589_v51 = vpop.f32.mrf.mxu0  ;;  %v5495_v53 = vor.u32 %v6120_v48, %v5492_v41 }
 0x1cb   :  { %3114 = vmatpush.bf16.msrb.mxu3 %v5295_v8  ;;  %3542 = vmatpush.bf16.msra.mxu1 %v5467_v11  ;;  %v5396_v8 = vld [vmem:[#allocation11 + $0x8] sm:$0xf0] }
 0x1cc   :  { %3531 = vmatmul.bf16.vlgmr.msra.gmra.mxu0 %v6576_v9  ;;  %3103 = vmatmul.bf16.vlgmr.msrb.gmra.mxu2 %v6524_v56  ;;  %v5420_v56 = vld [vmem:[#allocation11 + $0x38] sm:$0xf0]  ;;  %v5476_v11 = vld [vmem:[#allocation11 + $0xa8] sm:$0xf0]  ;;  %v5399_v21 = vor.u32 %v6096_v44, %v5396_v8 }
 0x1cd   :  { %3575 = vmatpush.bf16.msrb.mxu0 %v5455_v0  ;;  %v5423_v20 = vor.u32 %v6102_v39, %v5420_v56  ;;  %v2859_v14 = vpop.f32.mrf.mxu3  ;;  %3549 = vmatpush.bf16.msra.mxu2 %v5579_v54  ;;  %v6141_v0 = vld [vmem:[#allocation11 + $0x164] sm:$0xf0]  ;;  %v5479_v22 = vor.u32 %v6116_v61, %v5476_v11  ;;  %v5572_v54 = vld [vmem:[#allocation11 + $0x168] sm:$0xf0]  ;;  %v5548_v44 = vld [vmem:[#allocation11 + $0x138] sm:$0xf0] }
 0x1ce   :  { %v5571_v5 = vor.u32 %v6141_v0, %v5570_v63  ;;  %v6133_v56 = vld [vmem:[#allocation11 + $0x124] sm:$0xf0]  ;;  %v6136_v0 = vld [vmem:[#allocation11 + $0x144] sm:$0xf]  ;;  %v5540_v61 = vld [vmem:[#allocation11 + $0x128] sm:$0xf0] }
 0x1cf   :  { %3115 = vmatpush.bf16.msrb.mxu3 %v5279_v25  ;;  %3543 = vmatpush.bf16.msra.mxu1 %v5459_v26  ;;  %v6592_v3 = vpop.f32.mrf.mxu1  ;;  %v6114_v25 = vld [vmem:[#allocation11 + $0x94] sm:$0xf]  ;;  %v5468_v26 = vld [vmem:[#allocation11 + $0x98] sm:$0xf0]  ;;  %v1419_v11 = vperm.slane %v6582_v27, 2 }
 0x1d1   :  { %3576 = vmatpush.bf16.msrb.mxu0 %v5447_v15  ;;  %v2896_v4 = vpop.f32.mrf.mxu2  ;;  %v2924_v6 = vpop.f32.mrf.mxu0  ;;  %3550 = vmatpush.bf16.msra.mxu2 %v5571_v5  ;;  %v6139_v15 = vld [vmem:[#allocation11 + $0x154] sm:$0xf0] }
 0x1d2   :  { %3116 = vmatmul.bf16.vlgmr.msrb.gmra.mxu3 %v6528_v24  ;;  %v2858_v24 = vadd.f32 %v2857_v60, %v2845_v45  ;;  %v5563_v19 = vor.u32 %v6139_v15, %v5562_v13  ;;  %v6135_v60 = vld [vmem:[#allocation11 + $0x134] sm:$0xf0]  ;;  %v5530_v45 = vld [vmem:[#allocation11 + $0x110] sm:$0xf] }
 0x1d3   :  { %3588 = vmatpush.bf16.msrb.mxu1 %v5519_v32  ;;  %v5547_v39 = vor.u32 %v6135_v60, %v5546_v37 }
 0x1d4   :  { %v2871_v1 = vadd.f32 %v6567_v2, %v2858_v24  ;;  %v6140_v24 = vld [vmem:[#allocation11 + $0x164] sm:$0xf] }
 0x1d5   :  { %3577 = vmatpush.bf16.msrb.mxu0 %v5439_v29  ;;  %v2909_v30 = vpop.f32.mrf.mxu3  ;;  %3551 = vmatpush.bf16.msra.mxu2 %v5563_v19  ;;  %v5575_v33 = vor.u32 %v6140_v24, %v5572_v54  ;;  %v6130_v19 = vld [vmem:[#allocation11 + $0x114] sm:$0xf] }
 0x1d6   :  { %v2884_v16 = vadd.f32 %v6574_v34, %v2871_v1  ;;  %v5471_v34 = vor.u32 %v6114_v25, %v5468_v26  ;;  %v5556_v1 = vld [vmem:[#allocation11 + $0x148] sm:$0xf0]  ;;  %v5527_v26 = vor.u32 %v6128_v23, %v5524_v12  ;;  %v6150_v23 = vld [vmem:[#allocation11 + $0x1b4] sm:$0xf]  ;;  %v5612_v12 = vld [vmem:[#allocation11 + $0x1b8] sm:$0xf0] }
 0x1d7   :  { %3589 = vmatpush.bf16.msrb.mxu1 %v5511_v40  ;;  %v2937_v31 = vpop.f32.mrf.mxu1  ;;  %v5538_v40 = vld [vmem:[#allocation11 + $0x120] sm:$0xf]  ;;  %v5559_v6 = vor.u32 %v6136_v0, %v5556_v1  ;;  %v6158_v0 = vld [vmem:[#allocation11 + $0x1f4] sm:$0xf]  ;;  %v5644_v1 = vld [vmem:[#allocation11 + $0x1f8] sm:$0xf0] }
 0x1d8   :  { %v2897_v2 = vadd.f32 %v2896_v4, %v2884_v16  ;;  %v5539_v18 = vor.u32 %v6133_v56, %v5538_v40  ;;  %v2923_v16 = vadd.f32 %v6589_v51, %v1419_v11  ;;  %v6159_v31 = vld [vmem:[#allocation11 + $0x1f4] sm:$0xf0]  ;;  %v5628_v11 = vld [vmem:[#allocation11 + $0x1d8] sm:$0xf0] }
 0x1d9   :  { %3578 = vmatpush.bf16.msrb.mxu0 %v5431_v38  ;;  %v2898_v32 = vpop.f32.mrf.mxu2  ;;  %3552 = vmatpush.bf16.msra.mxu2 %v5555_v28 }
 0x1da   :  { %v2910_v29 = vadd.f32 %v2909_v30, %v2897_v2  ;;  %v5532_v2 = vld [vmem:[#allocation11 + $0x118] sm:$0xf0] }
 0x1db   :  { %3590 = vmatpush.bf16.msrb.mxu1 %v5503_v47  ;;  %v6129_v47 = vld [vmem:[#allocation11 + $0x104] sm:$0xf0] }
 0x1dc   :  { %v3122_v50 = vmul.f32 0.2, %v2910_v29  ;;  %v5523_v41 = vor.u32 %v6129_v47, %v5522_v46 }
 0x1dd   :  { %3579 = vmatpush.bf16.msrb.mxu0 %v5423_v20  ;;  %v2911_v43 = vpop.f32.mrf.mxu3  ;;  %3553 = vmatpush.bf16.msra.mxu2 %v5547_v39  ;;  %v6131_v20 = vld [vmem:[#allocation11 + $0x114] sm:$0xf0] }
 0x1de   :  { %v3126_v38 = vmax.f32 %v2910_v29, %v3122_v50  ;;  %v5531_v62 = vor.u32 %v6131_v20, %v5530_v45  ;;  %v5642_v29 = vld [vmem:[#allocation11 + $0x1f0] sm:$0xf]  ;;  %v5634_v50 = vld [vmem:[#allocation11 + $0x1e0] sm:$0xf]  ;;  %v6155_v39 = vld [vmem:[#allocation11 + $0x1d4] sm:$0xf0] }
 0x1df   :  { %3591 = vmatpush.bf16.msrb.mxu1 %v5495_v53  ;;  %v6138_v53 = vld [vmem:[#allocation11 + $0x154] sm:$0xf]  ;;  %v5643_v32 = vor.u32 %v6159_v31, %v5642_v29  ;;  %v6153_v43 = vld [vmem:[#allocation11 + $0x1c4] sm:$0xf0]  ;;  %v1420_v29 = vperm.slane %v6582_v27, 3 }
 0x1e0   :  { %v3130_v42 = vpack.c.bf16 %v3126_v38, %v3126_v38  ;;  %v5567_v59 = vor.u32 %v6138_v53, %v5564_v58  ;;  %v5626_v38 = vld [vmem:[#allocation11 + $0x1d0] sm:$0xf]  ;;  %v5586_v53 = vld [vmem:[#allocation11 + $0x180] sm:$0xf]  ;;  %v6145_v58 = vld [vmem:[#allocation11 + $0x184] sm:$0xf0] }
 0x1e1   :  { %3580 = vmatpush.bf16.msrb.mxu0 %v5415_v55  ;;  %3554 = vmatpush.bf16.msra.mxu2 %v5539_v18  ;;  %v5627_v40 = vor.u32 %v6155_v39, %v5626_v38  ;;  %v6144_v38 = vld [vmem:[#allocation11 + $0x184] sm:$0xf]  ;;  %v5588_v39 = vld [vmem:[#allocation11 + $0x188] sm:$0xf0] }
 0x1e2   :  { %3544 = vmatmul.bf16.vlgmr.msra.gmra.mxu1 %v3130_v42  ;;  %3562 = vmatpush.bf16.msra.mxu3 %v5643_v32 }
 0x1e3   :  { %3592 = vmatpush.bf16.msrb.mxu1 %v5487_v10  ;;  %v6132_v10 = vld [vmem:[#allocation11 + $0x124] sm:$0xf] }
 0x1e4   :  { %v5543_v15 = vor.u32 %v6132_v10, %v5540_v61  ;;  %v6154_v61 = vld [vmem:[#allocation11 + $0x1d4] sm:$0xf] }
 0x1e5   :  { %3581 = vmatpush.bf16.msrb.mxu0 %v5407_v7  ;;  %3555 = vmatpush.bf16.msra.mxu2 %v5531_v62  ;;  %v6134_v7 = vld [vmem:[#allocation11 + $0x134] sm:$0xf] }
 0x1e6   :  { %v5551_v8 = vor.u32 %v6134_v7, %v5548_v44 }
 0x1e7   :  { %3593 = vmatpush.bf16.msrb.mxu1 %v5479_v22  ;;  %v5535_v22 = vor.u32 %v6130_v19, %v5532_v2  ;;  %v5620_v19 = vld [vmem:[#allocation11 + $0x1c8] sm:$0xf0] }
 0x1e9   :  { %3582 = vmatpush.bf16.msrb.mxu0 %v5399_v21  ;;  %v2974_v48 = vpop.f32.mrf.mxu0  ;;  %3556 = vmatpush.bf16.msra.mxu2 %v5523_v41  ;;  %v2936_v21 = vadd.f32 %v6592_v3, %v2923_v16  ;;  %v6151_v41 = vld [vmem:[#allocation11 + $0x1b4] sm:$0xf0]  ;;  %v6152_v16 = vld [vmem:[#allocation11 + $0x1c4] sm:$0xf] }
 0x1ea   :  { %v5623_v2 = vor.u32 %v6152_v16, %v5620_v19  ;;  %v6172_v16 = vld [vmem:[#allocation12 + $0x60] sm:$0xff]  ;;  %v6171_v19 = vld [vmem:[#allocation12 + $0x58] sm:$0xff] }
 0x1eb   :  { %3594 = vmatpush.bf16.msrb.mxu1 %v5471_v34  ;;  %v6157_v34 = vld [vmem:[#allocation11 + $0x1e4] sm:$0xf0] }
 0x1ec   :  { %3583 = vmatmul.bf16.vlgmr.msrb.gmra.mxu0 %v6576_v9  ;;  %v5583_v9 = vor.u32 %v6142_v49, %v5580_v52  ;;  %v5635_v35 = vor.u32 %v6157_v34, %v5634_v50  ;;  %v5602_v49 = vld [vmem:[#allocation11 + $0x1a0] sm:$0xf]  ;;  %v6146_v50 = vld [vmem:[#allocation11 + $0x194] sm:$0xf]  ;;  %v5596_v34 = vld [vmem:[#allocation11 + $0x198] sm:$0xf0] }
 0x1ee   :  { %3601 = vmatpush.bf16.msrb.mxu2 %v5583_v9  ;;  %3563 = vmatpush.bf16.msra.mxu3 %v5635_v35  ;;  %v6149_v9 = vld [vmem:[#allocation11 + $0x1a4] sm:$0xf0] }
 0x1ef   :  { %3595 = vmatpush.bf16.msrb.mxu1 %v5463_v17  ;;  %v2948_v14 = vpop.f32.mrf.mxu2  ;;  %v2987_v55 = vpop.f32.mrf.mxu1  ;;  %v5618_v17 = vld [vmem:[#allocation11 + $0x1c0] sm:$0xf] }
 0x1f0   :  { %v2949_v30 = vadd.f32 %v2948_v14, %v2936_v21  ;;  %v5619_v45 = vor.u32 %v6153_v43, %v5618_v17  ;;  %v5603_v14 = vor.u32 %v6149_v9, %v5602_v49 }
 0x1f1   :  { %v2976_v57 = vpop.f32.mrf.mxu0 }
 0x1f2   :  { %3596 = vmatmul.bf16.vlgmr.msrb.gmra.mxu1 %v3130_v42  ;;  %3602 = vmatpush.bf16.msrb.mxu2 %v5575_v33  ;;  %v6147_v33 = vld [vmem:[#allocation11 + $0x194] sm:$0xf0] }
 0x1f3   :  { %3564 = vmatpush.bf16.msra.mxu3 %v5627_v40 }
 0x1f5   :  { %v2961_v63 = vpop.f32.mrf.mxu3 }
 0x1f6   :  { %3603 = vmatpush.bf16.msrb.mxu2 %v5567_v59  ;;  %v2962_v28 = vadd.f32 %v2961_v63, %v2949_v30  ;;  %v5587_v59 = vor.u32 %v6145_v58, %v5586_v53  ;;  %v5615_v30 = vor.u32 %v6150_v23, %v5612_v12 }
 0x1f7   :  { %v2950_v4 = vpop.f32.mrf.mxu2  ;;  %v2989_v5 = vpop.f32.mrf.mxu1  ;;  %3565 = vmatpush.bf16.msra.mxu3 %v5619_v45 }
 0x1f8   :  { %v2975_v51 = vadd.f32 %v2974_v48, %v2962_v28  ;;  %v5610_v48 = vld [vmem:[#allocation11 + $0x1b0] sm:$0xf]  ;;  %v5647_v4 = vor.u32 %v6158_v0, %v5644_v1  ;;  %v6156_v5 = vld [vmem:[#allocation11 + $0x1e4] sm:$0xf]  ;;  %v5604_v28 = vld [vmem:[#allocation11 + $0x1a8] sm:$0xf0] }
 0x1f9   :  { %v5611_v52 = vor.u32 %v6151_v41, %v5610_v48  ;;  %v3197_v48 = vld [vmem:[%s6624_s6] sm:$0x3]  ;;  %v6166_v0 = vld [vmem:[#allocation12 + $0x30] sm:$0xff] }
 0x1fa   :  { %3604 = vmatpush.bf16.msrb.mxu2 %v5559_v6  ;;  %v2988_v60 = vadd.f32 %v2987_v55, %v2975_v51  ;;  %v5594_v55 = vld [vmem:[#allocation11 + $0x190] sm:$0xf]  ;;  %v5636_v6 = vld [vmem:[#allocation11 + $0x1e8] sm:$0xf0]  ;;  %v3199_v41 = vperm.slane %v3197_v48, 0 }
 0x1fb   :  { %3566 = vmatpush.bf16.msra.mxu3 %v5611_v52  ;;  %v5595_v57 = vor.u32 %v6147_v33, %v5594_v55  ;;  %v5639_v7 = vor.u32 %v6156_v5, %v5636_v6  ;;  %v3200_v55 = vperm.slane %v3197_v48, 1  ;;  %v6174_v1 = vld [vmem:[#allocation12 + $0x70] sm:$0xff]  ;;  %v6164_v6 = vld [vmem:[#allocation12 + $0x20] sm:$0xff] }
 0x1fd   :  { %v2963_v13 = vpop.f32.mrf.mxu3 }
 0x1fe   :  { %3605 = vmatpush.bf16.msrb.mxu2 %v5551_v8  ;;  %v5631_v13 = vor.u32 %v6154_v61, %v5628_v11  ;;  %v6161_v11 = vld [vmem:[#allocation12 + $0x8] sm:$0xff] }
 0x1ff   :  { %3567 = vmatpush.bf16.msra.mxu3 %v5603_v14 }
 0x202   :  { %3606 = vmatpush.bf16.msrb.mxu2 %v5543_v15 }
 0x203   :  { %3568 = vmatpush.bf16.msra.mxu3 %v5595_v57 }
 0x206   :  { %3607 = vmatpush.bf16.msrb.mxu2 %v5535_v22 }
 0x207   :  { %3569 = vmatpush.bf16.msra.mxu3 %v5587_v59  ;;  %v6167_v59 = vld [vmem:[#allocation12 + $0x38] sm:$0xff] }
 0x208   :  { %3765 = vmatpush.bf16.msra.mxu0 %v6167_v59 }
 0x209   :  { %v6599_v25 = vpop.f32.mrf.mxu0 }
 0x20a   :  { %3608 = vmatpush.bf16.msrb.mxu2 %v5527_v26  ;;  %v6148_v26 = vld [vmem:[#allocation11 + $0x1a4] sm:$0xf]  ;;  %v3027_v51 = vadd.f32 %v6599_v25, %v1420_v29 }
 0x20b   :  { %3614 = vmatpush.bf16.msrb.mxu3 %v5647_v4  ;;  %v5607_v32 = vor.u32 %v6148_v26, %v5604_v28  ;;  %v6165_v4 = vld [vmem:[#allocation12 + $0x28] sm:$0xff] }
 0x20c   :  { %3766 = vmatpush.bf16.msra.mxu0 %v6166_v0 }
 0x20f   :  { %v3000_v36 = vpop.f32.mrf.mxu2  ;;  %v6601_v3 = vpop.f32.mrf.mxu1  ;;  %3615 = vmatpush.bf16.msrb.mxu3 %v5639_v7  ;;  %v6163_v7 = vld [vmem:[#allocation12 + $0x18] sm:$0xff] }
 0x210   :  { %v3001_v56 = vadd.f32 %v3000_v36, %v2988_v60  ;;  %v3040_v35 = vadd.f32 %v6601_v3, %v3027_v51  ;;  %v5599_v36 = vor.u32 %v6146_v50, %v5596_v34  ;;  %3767 = vmatpush.bf16.msra.mxu0 %v6165_v4 }
 0x211   :  { %v3028_v37 = vpop.f32.mrf.mxu0 }
 0x213   :  { %3616 = vmatpush.bf16.msrb.mxu3 %v5631_v13  ;;  %v6173_v13 = vld [vmem:[#allocation12 + $0x68] sm:$0xff] }
 0x214   :  { %3768 = vmatpush.bf16.msra.mxu0 %v6164_v6 }
 0x215   :  { %v3013_v42 = vpop.f32.mrf.mxu3 }
 0x216   :  { %v3014_v18 = vadd.f32 %v3013_v42, %v3001_v56  ;;  %v5591_v56 = vor.u32 %v6144_v38, %v5588_v39  ;;  %v3795_v38 = vld [vmem:[#allocation2] sm:$0x1]  ;;  %v6391_v39 = vmov 0  }
 0x217   :  { %v3002_v62 = vpop.f32.mrf.mxu2  ;;  %v3041_v46 = vpop.f32.mrf.mxu1  ;;  %3617 = vmatpush.bf16.msrb.mxu3 %v5623_v2  ;;  %v6170_v2 = vld [vmem:[#allocation12 + $0x50] sm:$0xff]  ;;  %6192 = vset.pattern.permute.xlu0 %v6391_v39 }
 0x218   :  { %v3123_v20 = vmul.f32 0.2, %v3014_v18  ;;  %3769 = vmatpush.bf16.msra.mxu0 %v6163_v7  ;;  %3798 = vperm.xlu0 %6192, %v3795_v38  }
 0x21a   :  { %v3127_v47 = vmax.f32 %v3014_v18, %v3123_v20 }
 0x21b   :  { %3618 = vmatpush.bf16.msrb.mxu3 %v5615_v30 }
 0x21c   :  { %v3131_v24 = vpack.c.bf16 %v3127_v47, %v3127_v47 }
 0x21d   :  { %v3015_v54 = vpop.f32.mrf.mxu3 }
 0x21e   :  { %3557 = vmatmul.bf16.vlgmr.msra.gmra.mxu2 %v3131_v24 }
 0x21f   :  { %3619 = vmatpush.bf16.msrb.mxu3 %v5607_v32 }
 0x223   :  { %3620 = vmatpush.bf16.msrb.mxu3 %v5599_v36 }
 0x227   :  { %3621 = vmatpush.bf16.msrb.mxu3 %v5591_v56  ;;  %v6193_v56 = vld [vmem:[%s6626_s8] ss:$0 sm:$0xff]  ;;  %s6392_s8 = smov [#allocation14]  }
 0x229   :  { %v3078_v63 = vpop.f32.mrf.mxu0 }
 0x22e   :  { %3609 = vmatmul.bf16.vlgmr.msrb.gmra.mxu2 %v3131_v24 }
 0x22f   :  { %v3052_v44 = vpop.f32.mrf.mxu2  ;;  %v3091_v8 = vpop.f32.mrf.mxu1 }
 0x230   :  { %v3053_v37 = vadd.f32 %v3052_v44, %v3040_v35 }
 0x231   :  { %v3080_v10 = vpop.f32.mrf.mxu0 }
 0x235   :  { %v3065_v15 = vpop.f32.mrf.mxu3 }
 0x236   :  { %v3066_v40 = vadd.f32 %v3065_v15, %v3053_v37  ;;  %v6160_v15 = vld [vmem:[#allocation12] sm:$0xff] }
 0x237   :  { %v3054_v21 = vpop.f32.mrf.mxu2  ;;  %v3093_v22 = vpop.f32.mrf.mxu1 }
 0x238   :  { %v3079_v27 = vadd.f32 %v3078_v63, %v3066_v40  ;;  %v6175_v63 = vld [vmem:[#allocation12 + $0x78] sm:$0xff]  ;;  %v6169_v21 = vld [vmem:[#allocation12 + $0x48] sm:$0xff]  ;;  %v6168_v22 = vld [vmem:[#allocation12 + $0x40] sm:$0xff] }
 0x239   :  { %3778 = vmatpush.bf16.msra.mxu1 %v6175_v63 }
 0x23a   :  { %v3092_v43 = vadd.f32 %v3091_v8, %v3079_v27  ;;  %v6162_v8 = vld [vmem:[#allocation12 + $0x10] sm:$0xff] }
 0x23b   :  { %3770 = vmatpush.bf16.msra.mxu0 %v6162_v8 }
 0x23d   :  { %v3067_v31 = vpop.f32.mrf.mxu3  ;;  %3779 = vmatpush.bf16.msra.mxu1 %v6174_v1 }
 0x23f   :  { %3771 = vmatpush.bf16.msra.mxu0 %v6161_v11 }
 0x241   :  { %3780 = vmatpush.bf16.msra.mxu1 %v6173_v13 }
 0x243   :  { %3772 = vmatpush.bf16.msra.mxu0 %v6160_v15 }
 0x245   :  { %3781 = vmatpush.bf16.msra.mxu1 %v6172_v16 }
 0x249   :  { %v3532_v60 = vpop.f32.mrf.mxu0  ;;  %3782 = vmatpush.bf16.msra.mxu1 %v6171_v19 }
 0x24a   :  { %v3533_v52 = vadd.f32 %v3532_v60, %v3199_v41 }
 0x24d   :  { %3783 = vmatpush.bf16.msra.mxu1 %v6170_v2 }
 0x24f   :  { %v3104_v42 = vpop.f32.mrf.mxu2 }
 0x250   :  { %v3105_v18 = vadd.f32 %v3104_v42, %v3092_v43 }
 0x251   :  { %v3534_v17 = vpop.f32.mrf.mxu0  ;;  %3784 = vmatpush.bf16.msra.mxu1 %v6169_v21 }
 0x255   :  { %v3117_v25 = vpop.f32.mrf.mxu3  ;;  %3785 = vmatpush.bf16.msra.mxu1 %v6168_v22 }
 0x256   :  { %v3118_v45 = vadd.f32 %v3117_v25, %v3105_v18 }
 0x257   :  { %v3106_v62 = vpop.f32.mrf.mxu2 }
 0x258   :  { %v3124_v20 = vmul.f32 0.2, %v3118_v45 }
 0x25a   :  { %v3128_v46 = vmax.f32 %v3118_v45, %v3124_v20  ;;  %v3793_v20 = vld [vmem:[%s6627_s9] sm:$0x1]  ;;  %s3841_s9 = sshll.u32 %s6392_s8, 4  ;;  %s3842_s9 = int_to_ptr.vmem [resolvable:$true] %s3841_s9 }
 0x25c   :  { %v3132_v3 = vpack.c.bf16 %v3128_v46, %v3128_v46 }
 0x25d   :  { %v3119_v47 = vpop.f32.mrf.mxu3 }
 0x25e   :  { %3570 = vmatmul.bf16.vlgmr.msra.gmra.mxu3 %v3132_v3 }
 0x25f   :  { %v3545_v9 = vpop.f32.mrf.mxu1 }
 0x260   :  { %v3546_v24 = vadd.f32 %v3545_v9, %v3533_v52 }
 0x267   :  { %v3547_v14 = vpop.f32.mrf.mxu1 }
 0x269   :  { %v3584_v49 = vpop.f32.mrf.mxu0 }
 0x26a   :  { %v3585_v33 = vadd.f32 %v3584_v49, %v3200_v55 }
 0x26e   :  { %3622 = vmatmul.bf16.vlgmr.msrb.gmra.mxu3 %v3132_v3 }
 0x26f   :  { %v3597_v57 = vpop.f32.mrf.mxu1 }
 0x270   :  { %v3598_v53 = vadd.f32 %v3597_v57, %v3585_v33 }
 0x271   :  { %v3586_v54 = vpop.f32.mrf.mxu0 }
 0x277   :  { %v3599_v58 = vpop.f32.mrf.mxu1 }
 0x28a   :  { %v3799_v62 = vpop.permute.xlu0 %3798 }
 0x28b   :  { %v3801_v46 = vperm.slane %v3799_v62, 0 }
 0x2a1   :  { %v3558_v5 = vpop.f32.mrf.mxu2 }
 0x2a2   :  { %v3559_v23 = vadd.f32 %v3558_v5, %v3546_v24 }
 0x2a9   :  { %v3560_v44 = vpop.f32.mrf.mxu2 }
 0x2b1   :  { %v3610_v10 = vpop.f32.mrf.mxu2 }
 0x2b2   :  { %v3611_v32 = vadd.f32 %v3610_v10, %v3598_v53 }
 0x2b9   :  { %v3612_v61 = vpop.f32.mrf.mxu2 }
 0x2e1   :  { %v3571_v12 = vpop.f32.mrf.mxu3 }
 0x2e2   :  { %v3572_v30 = vadd.f32 %v3571_v12, %v3559_v23 }
 0x2e4   :  { %v3627_v26 = vmul.f32 0.2, %v3572_v30 }
 0x2e6   :  { %v3629_v28 = vmax.f32 %v3572_v30, %v3627_v26 }
 0x2e8   :  { %v3631_v29 = vpack.c.bf16 %v3629_v28, %v3629_v28 }
 0x2e9   :  { %v3573_v31 = vpop.f32.mrf.mxu3 }
 0x2ea   :  { %3773 = vmatmul.bf16.vlgmr.msra.gmra.mxu0 %v3631_v29 }
 0x2f1   :  { %v3623_v51 = vpop.f32.mrf.mxu3 }
 0x2f2   :  { %v3624_v50 = vadd.f32 %v3623_v51, %v3611_v32 }
 0x2f4   :  { %v3628_v34 = vmul.f32 0.2, %v3624_v50 }
 0x2f6   :  { %v3630_v35 = vmax.f32 %v3624_v50, %v3628_v34 }
 0x2f8   :  { %v3632_v36 = vpack.c.bf16 %v3630_v35, %v3630_v35 }
 0x2f9   :  { %v3625_v37 = vpop.f32.mrf.mxu3 }
 0x2fa   :  { %3786 = vmatmul.bf16.vlgmr.msra.gmra.mxu1 %v3632_v36 }
 0x367   :  { %v3774_v60 = vpop.f32.mrf.mxu0 }
 0x368   :  { %v3775_v27 = vadd.f32 %v6193_v56, %v3774_v60 }
 0x36f   :  { %v3776_v40 = vpop.f32.mrf.mxu0 }
 0x377   :  { %v3787_v42 = vpop.f32.mrf.mxu1 }
 0x378   :  { %v3788_v17 = vadd.f32 %v3787_v42, %v3775_v27 }
 0x37a   :  { %v3791_v43 = vmul.f32 0.2, %v3788_v17 }
 0x37c   :  { %v3792_v18 = vmax.f32 %v3788_v17, %v3791_v43 }
 0x37e   :  { %v3794_v25 = vpack.c.bf16 %v3792_v18, %v3792_v18 }
 0x37f   :  { %v3789_v45 = vpop.f32.mrf.mxu1 }
 0x380   :  { %3809 = vmatpush.bf16.xpose.msra.mxu2 %v3794_v25 }
 0x387   :  { %3810 = vmatmul.bf16.vlgmr.msra.gmra.mxu2 %v3793_v20 }
 0x40a   :  { %v3811_v3 = vpop.f32.mrf.mxu2 }
 0x40b   :  { %v3812_v47 = vadd.f32 %v3811_v3, %v3801_v46 }
 0x40d   :  { %v3815_v48 = vsub.f32 0.0, %v3812_v47 }
 0x40f   :  { %v3816_v41 = vmul.f32 1.442695, %v3815_v48 }
 0x411   :  { %6194 = vpow2.f32 %v3816_v41 }
 0x412   :  { %v3813_v49 = vpop.f32.mrf.mxu2 }
 0x417   :  { %v6195_v52 = vpop.eup %6194 }
 0x418   :  { %v3818_v9 = vadd.f32 1.0, %v6195_v52 }
 0x41a   :  { %6196 = vrcp.f32 %v3818_v9  ;;  %v3830_v55 = vand.u32 2147483648, %v3818_v9  ;;  %v3828_v57 = vand.u32 2147483647, %v3818_v9  ;;  %vm3824_vm1 = vweird.f32 %v3818_v9 }
 0x41c   :  { %v3831_v58 = vor.u32 1.1754944e-38, %v3830_v55  ;;  %vm3829_vm4 = vcmp.eq.f32.partialorder %v3828_v57, 8.507059e+37 }
 0x420   :  { %v6197_v24 = vpop.eup %6196 }
 0x421   :  { %v3820_v54 = vmul.f32 %v6197_v24, %v3818_v9  ;;  %vm3825_vm0 = vweird.f32 %v6197_v24 }
 0x422   :  { %vm3826_vm2 = vmor %vm3824_vm1, %vm3825_vm0 }
 0x423   :  { %v3821_v14 = vsub.f32 1.0, %v3820_v54 }
 0x425   :  { %v3822_v33 = vmul.f32 %v6197_v24, %v3821_v14 }
 0x427   :  { %v3823_v53 = vadd.f32 %v6197_v24, %v3822_v33 }
 0x429   :  { %v3827_v59 = vsel %vm3826_vm2, %v6197_v24, %v3823_v53 }
 0x42a   :  { %v3832_v63 = vsel %vm3829_vm4, %v3831_v58, %v3827_v59 }
 0x42b   :  { %3835 = vst.msk [vmem:[#allocation14] sm:$0x1] %vm3834_vm3, %v3832_v63 }
 0x42c   :  { %3846 = dma.vmem_to_hbm [thread:$0]  %s3842_s9, 16, %s3844_s19, [#allocation5]  }
 0x42d   :  { %6375 = dma.done.wait [#allocation5], 16  }
 0x42e   :  { %6376 = vsyncadd [#allocation5], 4294967280 }
 0x42f   :  { %3851 = vsyncpa [#allocation4], 1 }
 0x430   :  { %3852 = vsyncpa [#allocation7], 1 }
 0x431   :  { %3853 = vsyncpa [#allocation10], 1 }
 0x432   :  { %3854 = vsyncpa [#allocation13], 1 }
 0x433   :  { %3855 = vsyncpa [#allocation5], 1 }

// kernel: tpu_custom_call.1
= control target key start
LH: loop header
LB: loop body
LE: loop exit
PB: predicated region body
PF: predicated region fallthrough
CT: control target
= control target key end

     0   :  { %s6618_s0 = inlined_call_operand.hbm [shape: f32[2,256], index: 0, kind: input, shape index: {}]   ;;  %s6619_s1 = inlined_call_operand.hbm [shape: bf16[256,1024], index: 1, kind: input, shape index: {}]   ;;  %s6620_s2 = inlined_call_operand.hbm [shape: f32[1,1024], index: 2, kind: input, shape index: {}]   ;;  %s6621_s3 = inlined_call_operand.hbm [shape: bf16[1024,512], index: 3, kind: input, shape index: {}]   ;;  %s6622_s4 = inlined_call_operand.vmem [shape: f32[1,512], index: 4, kind: input, shape index: {}]   ;;  %s6623_s5 = inlined_call_operand.hbm [shape: bf16[512,256], index: 5, kind: input, shape index: {}]   ;;  %s6624_s6 = inlined_call_operand.vmem [shape: f32[1,256], index: 6, kind: input, shape index: {}]   ;;  %s6625_s7 = inlined_call_operand.hbm [shape: bf16[256,128], index: 7, kind: input, shape index: {}]   ;;  %s6626_s8 = inlined_call_operand.vmem [shape: f32[1,128], index: 8, kind: input, shape index: {}]   ;;  %s6627_s9 = inlined_call_operand.vmem [shape: bf16[1,128], index: 9, kind: input, shape index: {}]   ;;  %s6628_s10 = inlined_call_operand.<no memory space> [shape: f32[1,1], index: 10, kind: input, shape index: {}]   ;;  %s6629_s11 = inlined_call_operand.hbm [shape: f32[1,2], index: 11, kind: output, shape index: {}]  }
   0x1   :  { %v16_v0 = vstv %s6628_s10 }
   0x2   :  { %17 = vst [vmem:[#allocation2] sm:$0x1] %v16_v0 }
   0x3   :  { %18 = vsyncpa [#allocation4], 0 }
   0x4   :  { %19 = vsyncpa [#allocation7], 0 }
   0x5   :  { %20 = vsyncpa [#allocation10], 0 }
   0x6   :  { %21 = vsyncpa [#allocation13], 0  ;;  %s38_s21 = sshll.u32 %s6619_s1, 4  ;;  %s39_s21 = int_to_ptr.hbm [resolvable:$true] %s38_s21 }
   0x7   :  { %22 = vsyncpa [#allocation5], 0  ;;  %s6377_s22 = smov [#allocation6]   ;;  %s62_s26 = sshll.u32 %s6621_s3, 4  ;;  %s63_s26 = int_to_ptr.hbm [resolvable:$true] %s62_s26 }
   0x8   :  { %s40_s23 = sshll.u32 %s6377_s22, 4  ;;  %s6378_s27 = smov 512   ;;  %s41_s23 = int_to_ptr.vmem [resolvable:$true] %s40_s23 }
   0x9   :  { %s6379_s10 = smov 32   ;;  %s6380_s28 = smov [#allocation9]  }
   0xa   :  { %46 = dma.hbm_to_vmem [thread:$0]  %s39_s21, 16384, %s41_s23, [#allocation7], %s6378_s27, %s6378_s27, %s6379_s10  }
   0xb   :  { %s64_s29 = sshll.u32 %s6380_s28, 4  ;;  %s6381_s30 = smov 256   ;;  %s65_s29 = int_to_ptr.vmem [resolvable:$true] %s64_s29 }
   0xc   :  { %s6382_s12 = smov 16   ;;  %s28_s14 = sshll.u32 %s6618_s0, 4  ;;  %s29_s14 = int_to_ptr.hbm [resolvable:$true] %s28_s14 }
   0xd   :  { %70 = dma.hbm_to_vmem [thread:$0]  %s63_s26, 32768, %s65_s29, [#allocation10], %s6381_s30, %s6381_s30, %s6382_s12  }
   0xe   :  { %s6383_s15 = smov [#allocation3]   ;;  %s52_s18 = sshll.u32 %s6620_s2, 4  ;;  %s53_s18 = int_to_ptr.hbm [resolvable:$true] %s52_s18 }
   0xf   :  { %s30_s16 = sshll.u32 %s6383_s15, 4  ;;  %s6384_s19 = smov [#allocation8]   ;;  %s31_s16 = int_to_ptr.vmem [resolvable:$true] %s30_s16 }
  0x10   :  { %33 = dma.hbm_to_vmem [thread:$0]  %s29_s14, 64, %s31_s16, [#allocation4]  }
  0x11   :  { %s54_s20 = sshll.u32 %s6384_s19, 4  ;;  %s77_s23 = sshll.u32 %s6623_s5, 4  ;;  %s55_s20 = int_to_ptr.vmem [resolvable:$true] %s54_s20  ;;  %s78_s23 = int_to_ptr.hbm [resolvable:$true] %s77_s23 }
  0x12   :  { %57 = dma.hbm_to_vmem [thread:$0]  %s53_s18, 128, %s55_s20, [#allocation7]  }
  0x13   :  { %s6385_s0 = smov [#allocation11]   ;;  %s92_s27 = sshll.u32 %s6625_s7, 4  ;;  %s93_s27 = int_to_ptr.hbm [resolvable:$true] %s92_s27 }
  0x14   :  { %s79_s24 = sshll.u32 %s6385_s0, 4  ;;  %s6386_s10 = smov 128   ;;  %s80_s24 = int_to_ptr.vmem [resolvable:$true] %s79_s24 }
  0x15   :  { %s6387_s2 = smov 8   ;;  %s6388_s28 = smov [#allocation12]  }
  0x16   :  { %85 = dma.hbm_to_vmem [thread:$0]  %s78_s23, 8192, %s80_s24, [#allocation10], %s6386_s10, %s6386_s10, %s6387_s2  }
  0x17   :  { %s94_s29 = sshll.u32 %s6388_s28, 4  ;;  %s6389_s30 = smov 64   ;;  %s95_s29 = int_to_ptr.vmem [resolvable:$true] %s94_s29 }
  0x18   :  { %s6390_s12 = smov 4  }
  0x19   :  { %100 = dma.hbm_to_vmem [thread:$0]  %s93_s27, 2048, %s95_s29, [#allocation13], %s6389_s30, %s6389_s30, %s6390_s12  }
  0x1a   :  { %6367 = dma.done.wait [#allocation4], 64  }
  0x1b   :  { %6368 = vsyncadd [#allocation4], 4294967232 }
  0x1c   :  { %6369 = dma.done.wait [#allocation7], 16512  }
  0x1d   :  { %6370 = vsyncadd [#allocation7], 4294950784 }
  0x1e   :  { %6371 = dma.done.wait [#allocation10], 40960  }
  0x1f   :  { %6372 = vsyncadd [#allocation10], 4294926336 }
  0x20   :  { %6373 = dma.done.wait [#allocation13], 2048  }
  0x21   :  { %6374 = vsyncadd [#allocation13], 4294965248  ;;  %v4082_v1 = vld [vmem:[#allocation6 + $0x1c0] sm:$0xf]  ;;  %v5768_v6 = vld [vmem:[#allocation6 + $0x1c4] sm:$0xf] }
  0x22   :  { %v5772_v2 = vld [vmem:[#allocation6 + $0x1dc] sm:$0xf0]  ;;  %v4084_v7 = vld [vmem:[#allocation6 + $0x1e0] sm:$0xf0]  ;;  %s3843_s19 = sshll.u32 %s6629_s11, 4  ;;  %vm3834_vm3 = vcmask 8192   ;;  %s3844_s19 = int_to_ptr.hbm [resolvable:$true] %s3843_s19 }
  0x23   :  { %v4338_v3 = vld [vmem:[#allocation6 + $0x3c0] sm:$0xf]  ;;  %v4083_v4 = vor.u32 %v5772_v2, %v4082_v1  ;;  %v4087_v9 = vor.u32 %v5768_v6, %v4084_v7  ;;  %v5832_v10 = vld [vmem:[#allocation6 + $0x3c4] sm:$0xf] }
  0x24   :  { %v5836_v5 = vld [vmem:[#allocation6 + $0x3dc] sm:$0xf0]  ;;  %v4340_v11 = vld [vmem:[#allocation6 + $0x3e0] sm:$0xf0] }
  0x25   :  { %v4339_v8 = vor.u32 %v5836_v5, %v4338_v3  ;;  %v4050_v12 = vld [vmem:[#allocation6 + $0x180] sm:$0xf]  ;;  %927 = vmatpush.bf16.msra.mxu0 %v4083_v4  ;;  %v4343_v13 = vor.u32 %v5832_v10, %v4340_v11  ;;  %953 = vmatpush.bf16.msra.mxu2 %v4087_v9  ;;  %v5760_v19 = vld [vmem:[#allocation6 + $0x184] sm:$0xf] }
  0x26   :  { %v5764_v14 = vld [vmem:[#allocation6 + $0x19c] sm:$0xf0]  ;;  %v4052_v20 = vld [vmem:[#allocation6 + $0x1a0] sm:$0xf0] }
  0x27   :  { %v4306_v15 = vld [vmem:[#allocation6 + $0x380] sm:$0xf]  ;;  %940 = vmatpush.bf16.msra.mxu1 %v4339_v8  ;;  %v4051_v17 = vor.u32 %v5764_v14, %v4050_v12  ;;  %v5824_v21 = vld [vmem:[#allocation6 + $0x384] sm:$0xf]  ;;  %966 = vmatpush.bf16.msra.mxu3 %v4343_v13  ;;  %v4055_v22 = vor.u32 %v5760_v19, %v4052_v20 }
  0x28   :  { %v5828_v16 = vld [vmem:[#allocation6 + $0x39c] sm:$0xf0]  ;;  %v4308_v23 = vld [vmem:[#allocation6 + $0x3a0] sm:$0xf0] }
  0x29   :  { %v4307_v18 = vor.u32 %v5828_v16, %v4306_v15  ;;  %v4018_v24 = vld [vmem:[#allocation6 + $0x140] sm:$0xf]  ;;  %v4311_v26 = vor.u32 %v5824_v21, %v4308_v23  ;;  %v5752_v29 = vld [vmem:[#allocation6 + $0x144] sm:$0xf]  ;;  %928 = vmatpush.bf16.msra.mxu0 %v4051_v17  ;;  %954 = vmatpush.bf16.msra.mxu2 %v4055_v22 }
  0x2a   :  { %v5756_v25 = vld [vmem:[#allocation6 + $0x15c] sm:$0xf0]  ;;  %v4020_v31 = vld [vmem:[#allocation6 + $0x160] sm:$0xf0] }
  0x2b   :  { %v4274_v27 = vld [vmem:[#allocation6 + $0x340] sm:$0xf]  ;;  %v4019_v30 = vor.u32 %v5756_v25, %v4018_v24  ;;  %v5816_v32 = vld [vmem:[#allocation6 + $0x344] sm:$0xf]  ;;  %941 = vmatpush.bf16.msra.mxu1 %v4307_v18  ;;  %v4023_v35 = vor.u32 %v5752_v29, %v4020_v31  ;;  %967 = vmatpush.bf16.msra.mxu3 %v4311_v26  ;;  %v4090_v29 = vld [vmem:[#allocation6 + $0x1c8] sm:$0xf] }
  0x2c   :  { %v5820_v28 = vld [vmem:[#allocation6 + $0x35c] sm:$0xf0]  ;;  %v4276_v33 = vld [vmem:[#allocation6 + $0x360] sm:$0xf0]  ;;  %v4346_v31 = vld [vmem:[#allocation6 + $0x3c8] sm:$0xf] }
  0x2d   :  { %v4275_v34 = vor.u32 %v5820_v28, %v4274_v27  ;;  %v3986_v36 = vld [vmem:[#allocation6 + $0x100] sm:$0xf]  ;;  %v4279_v39 = vor.u32 %v5816_v32, %v4276_v33  ;;  %v5744_v41 = vld [vmem:[#allocation6 + $0x104] sm:$0xf]  ;;  %929 = vmatpush.bf16.msra.mxu0 %v4019_v30  ;;  %955 = vmatpush.bf16.msra.mxu2 %v4023_v35  ;;  %v5773_v30 = vld [vmem:[#allocation6 + $0x1e4] sm:$0xf0] }
  0x2e   :  { %v5748_v37 = vld [vmem:[#allocation6 + $0x11c] sm:$0xf0]  ;;  %v3988_v42 = vld [vmem:[#allocation6 + $0x120] sm:$0xf0]  ;;  %v5837_v33 = vld [vmem:[#allocation6 + $0x3e4] sm:$0xf0] }
  0x2f   :  { %v4242_v38 = vld [vmem:[#allocation6 + $0x300] sm:$0xf]  ;;  %v5808_v43 = vld [vmem:[#allocation6 + $0x304] sm:$0xf]  ;;  %v3987_v45 = vor.u32 %v5748_v37, %v3986_v36  ;;  %942 = vmatpush.bf16.msra.mxu1 %v4275_v34  ;;  %v3991_v47 = vor.u32 %v5744_v41, %v3988_v42  ;;  %968 = vmatpush.bf16.msra.mxu3 %v4279_v39  ;;  %v5769_v34 = vld [vmem:[#allocation6 + $0x1cc] sm:$0xf]  ;;  %v4091_v41 = vor.u32 %v5773_v30, %v4090_v29 }
  0x30   :  { %v5812_v40 = vld [vmem:[#allocation6 + $0x31c] sm:$0xf0]  ;;  %v4244_v44 = vld [vmem:[#allocation6 + $0x320] sm:$0xf0]  ;;  %v4092_v35 = vld [vmem:[#allocation6 + $0x1e8] sm:$0xf0]  ;;  %v4347_v42 = vor.u32 %v5837_v33, %v4346_v31 }
  0x31   :  { %v4243_v46 = vor.u32 %v5812_v40, %v4242_v38  ;;  %v3954_v48 = vld [vmem:[#allocation6 + $0xc0] sm:$0xf]  ;;  %v4247_v51 = vor.u32 %v5808_v43, %v4244_v44  ;;  %v5736_v53 = vld [vmem:[#allocation6 + $0xc4] sm:$0xf]  ;;  %930 = vmatpush.bf16.msra.mxu0 %v3987_v45  ;;  %956 = vmatpush.bf16.msra.mxu2 %v3991_v47  ;;  %v5833_v38 = vld [vmem:[#allocation6 + $0x3cc] sm:$0xf]  ;;  %v4095_v43 = vor.u32 %v5769_v34, %v4092_v35 }
  0x32   :  { %v5740_v49 = vld [vmem:[#allocation6 + $0xdc] sm:$0xf0]  ;;  %v3956_v54 = vld [vmem:[#allocation6 + $0xe0] sm:$0xf0]  ;;  %v4348_v39 = vld [vmem:[#allocation6 + $0x3e8] sm:$0xf0] }
  0x33   :  { %v4210_v50 = vld [vmem:[#allocation6 + $0x2c0] sm:$0xf]  ;;  %v5800_v55 = vld [vmem:[#allocation6 + $0x2c4] sm:$0xf]  ;;  %v3955_v57 = vor.u32 %v5740_v49, %v3954_v48  ;;  %943 = vmatpush.bf16.msra.mxu1 %v4243_v46  ;;  %v3959_v59 = vor.u32 %v5736_v53, %v3956_v54  ;;  %969 = vmatpush.bf16.msra.mxu3 %v4247_v51  ;;  %v4058_v44 = vld [vmem:[#allocation6 + $0x188] sm:$0xf]  ;;  %v4351_v47 = vor.u32 %v5833_v38, %v4348_v39 }
  0x34   :  { %v5804_v52 = vld [vmem:[#allocation6 + $0x2dc] sm:$0xf0]  ;;  %v4212_v56 = vld [vmem:[#allocation6 + $0x2e0] sm:$0xf0]  ;;  %v5765_v45 = vld [vmem:[#allocation6 + $0x1a4] sm:$0xf0] }
  0x35   :  { %v4211_v58 = vor.u32 %v5804_v52, %v4210_v50  ;;  %v3922_v60 = vld [vmem:[#allocation6 + $0x80] sm:$0xf]  ;;  %v4215_v63 = vor.u32 %v5800_v55, %v4212_v56  ;;  %v5728_v1 = vld [vmem:[#allocation6 + $0x84] sm:$0xf]  ;;  %931 = vmatpush.bf16.msra.mxu0 %v3955_v57  ;;  %957 = vmatpush.bf16.msra.mxu2 %v3959_v59  ;;  %v4314_v46 = vld [vmem:[#allocation6 + $0x388] sm:$0xf]  ;;  %v4059_v54 = vor.u32 %v5765_v45, %v4058_v44 }
  0x36   :  { %v5732_v61 = vld [vmem:[#allocation6 + $0x9c] sm:$0xf0]  ;;  %v3924_v2 = vld [vmem:[#allocation6 + $0xa0] sm:$0xf0]  ;;  %v5829_v48 = vld [vmem:[#allocation6 + $0x3a4] sm:$0xf0] }
  0x37   :  { %v4178_v62 = vld [vmem:[#allocation6 + $0x280] sm:$0xf]  ;;  %v5792_v3 = vld [vmem:[#allocation6 + $0x284] sm:$0xf]  ;;  %v3923_v5 = vor.u32 %v5732_v61, %v3922_v60  ;;  %944 = vmatpush.bf16.msra.mxu1 %v4211_v58  ;;  %v3927_v7 = vor.u32 %v5728_v1, %v3924_v2  ;;  %970 = vmatpush.bf16.msra.mxu3 %v4215_v63  ;;  %v5761_v49 = vld [vmem:[#allocation6 + $0x18c] sm:$0xf]  ;;  %v4315_v55 = vor.u32 %v5829_v48, %v4314_v46 }
  0x38   :  { %v5796_v0 = vld [vmem:[#allocation6 + $0x29c] sm:$0xf0]  ;;  %v4180_v4 = vld [vmem:[#allocation6 + $0x2a0] sm:$0xf0]  ;;  %v4060_v50 = vld [vmem:[#allocation6 + $0x1a8] sm:$0xf0] }
  0x39   :  { %v4179_v6 = vor.u32 %v5796_v0, %v4178_v62  ;;  %v3890_v8 = vld [vmem:[#allocation6 + $0x40] sm:$0xf]  ;;  %v4183_v11 = vor.u32 %v5792_v3, %v4180_v4  ;;  %v5720_v13 = vld [vmem:[#allocation6 + $0x44] sm:$0xf]  ;;  %932 = vmatpush.bf16.msra.mxu0 %v3923_v5  ;;  %958 = vmatpush.bf16.msra.mxu2 %v3927_v7  ;;  %v5825_v51 = vld [vmem:[#allocation6 + $0x38c] sm:$0xf]  ;;  %v4063_v56 = vor.u32 %v5761_v49, %v4060_v50 }
  0x3a   :  { %v5724_v9 = vld [vmem:[#allocation6 + $0x5c] sm:$0xf0]  ;;  %v3892_v14 = vld [vmem:[#allocation6 + $0x60] sm:$0xf0]  ;;  %v4316_v52 = vld [vmem:[#allocation6 + $0x3a8] sm:$0xf0] }
  0x3b   :  { %v4146_v10 = vld [vmem:[#allocation6 + $0x240] sm:$0xf]  ;;  %v5784_v15 = vld [vmem:[#allocation6 + $0x244] sm:$0xf]  ;;  %v3891_v17 = vor.u32 %v5724_v9, %v3890_v8  ;;  %945 = vmatpush.bf16.msra.mxu1 %v4179_v6  ;;  %v3895_v21 = vor.u32 %v5720_v13, %v3892_v14  ;;  %971 = vmatpush.bf16.msra.mxu3 %v4183_v11  ;;  %v132_v53 = vld [vmem:[#allocation3] sm:$0xf]  ;;  %v4319_v60 = vor.u32 %v5825_v51, %v4316_v52 }
  0x3c   :  { %v5788_v12 = vld [vmem:[#allocation6 + $0x25c] sm:$0xf0]  ;;  %v4148_v16 = vld [vmem:[#allocation6 + $0x260] sm:$0xf0]  ;;  %134 = vst [vmem:[#allocation1] ss:$4 sm:$0xff] %v132_v53 }
  0x3d   :  { %v3858_v18 = vld [vmem:[#allocation6] sm:$0xf]  ;;  %v4147_v20 = vor.u32 %v5788_v12, %v4146_v10  ;;  %v5712_v24 = vld [vmem:[#allocation6 + $0x4] sm:$0xf]  ;;  %v4151_v25 = vor.u32 %v5784_v15, %v4148_v16  ;;  %933 = vmatpush.bf16.msra.mxu0 %v3891_v17  ;;  %959 = vmatpush.bf16.msra.mxu2 %v3895_v21  ;;  %v4026_v57 = vld [vmem:[#allocation6 + $0x148] sm:$0xf] }
  0x3e   :  { %v5716_v19 = vld [vmem:[#allocation6 + $0x1c] sm:$0xf0]  ;;  %v3860_v26 = vld [vmem:[#allocation6 + $0x20] sm:$0xf0]  ;;  %v5757_v58 = vld [vmem:[#allocation6 + $0x164] sm:$0xf0] }
  0x3f   :  { %v4114_v22 = vld [vmem:[#allocation6 + $0x200] sm:$0xf]  ;;  %v5776_v27 = vld [vmem:[#allocation6 + $0x204] sm:$0xf]  ;;  %v3859_v32 = vor.u32 %v5716_v19, %v3858_v18  ;;  %946 = vmatpush.bf16.msra.mxu1 %v4147_v20  ;;  %v3863_v37 = vor.u32 %v5712_v24, %v3860_v26  ;;  %972 = vmatpush.bf16.msra.mxu3 %v4151_v25  ;;  %v4282_v59 = vld [vmem:[#allocation6 + $0x348] sm:$0xf]  ;;  %v4027_v2 = vor.u32 %v5757_v58, %v4026_v57 }
  0x40   :  { %v5780_v23 = vld [vmem:[#allocation6 + $0x21c] sm:$0xf0]  ;;  %v4116_v28 = vld [vmem:[#allocation6 + $0x220] sm:$0xf0]  ;;  %v5821_v61 = vld [vmem:[#allocation6 + $0x364] sm:$0xf0] }
  0x41   :  { %v4115_v36 = vor.u32 %v5780_v23, %v4114_v22  ;;  %v4119_v40 = vor.u32 %v5776_v27, %v4116_v28  ;;  %934 = vmatpush.bf16.msra.mxu0 %v3859_v32  ;;  %960 = vmatpush.bf16.msra.mxu2 %v3863_v37  ;;  %v5753_v62 = vld [vmem:[#allocation6 + $0x14c] sm:$0xf]  ;;  %v3994_v3 = vld [vmem:[#allocation6 + $0x108] sm:$0xf]  ;;  %v4283_v5 = vor.u32 %v5821_v61, %v4282_v59 }
  0x42   :  { %v4028_v63 = vld [vmem:[#allocation6 + $0x168] sm:$0xf0]  ;;  %v5749_v4 = vld [vmem:[#allocation6 + $0x124] sm:$0xf0] }
  0x43   :  { %947 = vmatpush.bf16.msra.mxu1 %v4115_v36  ;;  %973 = vmatpush.bf16.msra.mxu3 %v4119_v40  ;;  %v5817_v0 = vld [vmem:[#allocation6 + $0x34c] sm:$0xf]  ;;  %v4031_v6 = vor.u32 %v5753_v62, %v4028_v63  ;;  %v4250_v7 = vld [vmem:[#allocation6 + $0x308] sm:$0xf]  ;;  %v3995_v16 = vor.u32 %v5749_v4, %v3994_v3  ;;  %v5774_v3 = vld [vmem:[#allocation6 + $0x1ec] sm:$0xf0] }
  0x44   :  { %v4284_v1 = vld [vmem:[#allocation6 + $0x368] sm:$0xf0]  ;;  %v5813_v8 = vld [vmem:[#allocation6 + $0x324] sm:$0xf0]  ;;  %v4354_v4 = vld [vmem:[#allocation6 + $0x3d0] sm:$0xf] }
  0x45   :  { %979 = vmatpush.bf16.msrb.mxu0 %v4091_v41  ;;  %1005 = vmatpush.bf16.msrb.mxu2 %v4095_v43  ;;  %v5745_v9 = vld [vmem:[#allocation6 + $0x10c] sm:$0xf]  ;;  %v4287_v10 = vor.u32 %v5817_v0, %v4284_v1  ;;  %v135_v14 = vld.sshfl [vmem:[#allocation1] sm:$0xff pattern:$0x73625140]  ;;  %v4251_v19 = vor.u32 %v5813_v8, %v4250_v7 }
  0x46   :  { %v3996_v11 = vld [vmem:[#allocation6 + $0x128] sm:$0xf0]  ;;  %v136_v15 = vld.sshfl [vmem:[#allocation1 + $0x8] sm:$0xff pattern:$0x73625140]  ;;  %v6474_v17 = vpack.c.bf16 %v135_v14, %v135_v14 }
  0x47   :  { %992 = vmatpush.bf16.msrb.mxu1 %v4347_v42  ;;  %1018 = vmatpush.bf16.msrb.mxu3 %v4351_v47  ;;  %v5809_v12 = vld [vmem:[#allocation6 + $0x30c] sm:$0xf]  ;;  %v6476_v18 = vpack.c.bf16 %v136_v15, %v136_v15  ;;  %v3999_v20 = vor.u32 %v5745_v9, %v3996_v11  ;;  %v3962_v21 = vld [vmem:[#allocation6 + $0xc8] sm:$0xf]  ;;  %v5770_v7 = vld [vmem:[#allocation6 + $0x1d4] sm:$0xf] }
  0x48   :  { %v4252_v13 = vld [vmem:[#allocation6 + $0x328] sm:$0xf0]  ;;  %v5741_v22 = vld [vmem:[#allocation6 + $0xe4] sm:$0xf0]  ;;  %935 = vmatmul.bf16.vlgmr.msra.gmra.mxu0 %v6474_v17  ;;  %961 = vmatmul.bf16.vlgmr.msra.gmra.mxu2 %v6474_v17  ;;  %v4100_v8 = vld [vmem:[#allocation6 + $0x1f0] sm:$0xf0] }
  0x49   :  { %980 = vmatpush.bf16.msrb.mxu0 %v4059_v54  ;;  %1006 = vmatpush.bf16.msrb.mxu2 %v4063_v56  ;;  %v4218_v23 = vld [vmem:[#allocation6 + $0x2c8] sm:$0xf]  ;;  %v4255_v24 = vor.u32 %v5809_v12, %v4252_v13  ;;  %v5737_v26 = vld [vmem:[#allocation6 + $0xcc] sm:$0xf]  ;;  %v3963_v30 = vor.u32 %v5741_v22, %v3962_v21  ;;  %v5834_v11 = vld [vmem:[#allocation6 + $0x3d4] sm:$0xf] }
  0x4a   :  { %v5805_v25 = vld [vmem:[#allocation6 + $0x2e4] sm:$0xf0]  ;;  %v3964_v27 = vld [vmem:[#allocation6 + $0xe8] sm:$0xf0]  ;;  %948 = vmatmul.bf16.vlgmr.msra.gmra.mxu1 %v6476_v18  ;;  %974 = vmatmul.bf16.vlgmr.msra.gmra.mxu3 %v6476_v18  ;;  %v4356_v12 = vld [vmem:[#allocation6 + $0x3f0] sm:$0xf0] }
  0x4b   :  { %993 = vmatpush.bf16.msrb.mxu1 %v4315_v55  ;;  %1019 = vmatpush.bf16.msrb.mxu3 %v4319_v60  ;;  %v5801_v28 = vld [vmem:[#allocation6 + $0x2cc] sm:$0xf]  ;;  %v4219_v31 = vor.u32 %v5805_v25, %v4218_v23  ;;  %v3967_v32 = vor.u32 %v5737_v26, %v3964_v27  ;;  %v3930_v33 = vld [vmem:[#allocation6 + $0x88] sm:$0xf]  ;;  %v4322_v21 = vld [vmem:[#allocation6 + $0x390] sm:$0xf]  ;;  %v4359_v22 = vor.u32 %v5834_v11, %v4356_v12 }
  0x4c   :  { %v4220_v29 = vld [vmem:[#allocation6 + $0x2e8] sm:$0xf0]  ;;  %v5733_v34 = vld [vmem:[#allocation6 + $0xa4] sm:$0xf0]  ;;  %v5830_v23 = vld [vmem:[#allocation6 + $0x3ac] sm:$0xf0] }
  0x4d   :  { %981 = vmatpush.bf16.msrb.mxu0 %v4027_v2  ;;  %1007 = vmatpush.bf16.msrb.mxu2 %v4031_v6  ;;  %v4186_v35 = vld [vmem:[#allocation6 + $0x288] sm:$0xf]  ;;  %v4223_v36 = vor.u32 %v5801_v28, %v4220_v29  ;;  %v5729_v38 = vld [vmem:[#allocation6 + $0x8c] sm:$0xf]  ;;  %v3931_v42 = vor.u32 %v5733_v34, %v3930_v33  ;;  %v4098_v2 = vld [vmem:[#allocation6 + $0x1d0] sm:$0xf]  ;;  %v4323_v29 = vor.u32 %v5830_v23, %v4322_v21 }
  0x4e   :  { %v5797_v37 = vld [vmem:[#allocation6 + $0x2a4] sm:$0xf0]  ;;  %v3932_v39 = vld [vmem:[#allocation6 + $0xa8] sm:$0xf0]  ;;  %v5838_v6 = vld [vmem:[#allocation6 + $0x3ec] sm:$0xf0]  ;;  %v4099_v14 = vor.u32 %v5774_v3, %v4098_v2 }
  0x4f   :  { %994 = vmatpush.bf16.msrb.mxu1 %v4283_v5  ;;  %1020 = vmatpush.bf16.msrb.mxu3 %v4287_v10  ;;  %v5793_v40 = vld [vmem:[#allocation6 + $0x28c] sm:$0xf]  ;;  %v4187_v43 = vor.u32 %v5797_v37, %v4186_v35  ;;  %v3935_v44 = vor.u32 %v5729_v38, %v3932_v39  ;;  %v3898_v45 = vld [vmem:[#allocation6 + $0x48] sm:$0xf]  ;;  %v4355_v15 = vor.u32 %v5838_v6, %v4354_v4  ;;  %v4068_v25 = vld [vmem:[#allocation6 + $0x1b0] sm:$0xf0] }
  0x50   :  { %v4188_v41 = vld [vmem:[#allocation6 + $0x2a8] sm:$0xf0]  ;;  %v5725_v46 = vld [vmem:[#allocation6 + $0x64] sm:$0xf0]  ;;  %v5826_v26 = vld [vmem:[#allocation6 + $0x394] sm:$0xf] }
  0x51   :  { %982 = vmatpush.bf16.msrb.mxu0 %v3995_v16  ;;  %1008 = vmatpush.bf16.msrb.mxu2 %v3999_v20  ;;  %v4154_v47 = vld [vmem:[#allocation6 + $0x248] sm:$0xf]  ;;  %v4191_v48 = vor.u32 %v5793_v40, %v4188_v41  ;;  %v5721_v50 = vld [vmem:[#allocation6 + $0x4c] sm:$0xf]  ;;  %v3899_v54 = vor.u32 %v5725_v46, %v3898_v45  ;;  %v4103_v16 = vor.u32 %v5770_v7, %v4100_v8  ;;  %v5766_v20 = vld [vmem:[#allocation6 + $0x1ac] sm:$0xf0] }
  0x52   :  { %v5789_v49 = vld [vmem:[#allocation6 + $0x264] sm:$0xf0]  ;;  %v3900_v51 = vld [vmem:[#allocation6 + $0x68] sm:$0xf0]  ;;  %v4324_v27 = vld [vmem:[#allocation6 + $0x3b0] sm:$0xf0] }
  0x53   :  { %995 = vmatpush.bf16.msrb.mxu1 %v4251_v19  ;;  %1021 = vmatpush.bf16.msrb.mxu3 %v4255_v24  ;;  %v5785_v52 = vld [vmem:[#allocation6 + $0x24c] sm:$0xf]  ;;  %v3866_v55 = vld [vmem:[#allocation6 + $0x8] sm:$0xf]  ;;  %v4155_v57 = vor.u32 %v5789_v49, %v4154_v47  ;;  %v3903_v58 = vor.u32 %v5721_v50, %v3900_v51  ;;  %v4066_v19 = vld [vmem:[#allocation6 + $0x190] sm:$0xf]  ;;  %v4327_v34 = vor.u32 %v5826_v26, %v4324_v27 }
  0x54   :  { %v4156_v53 = vld [vmem:[#allocation6 + $0x268] sm:$0xf0]  ;;  %v5717_v56 = vld [vmem:[#allocation6 + $0x24] sm:$0xf0]  ;;  %v5762_v24 = vld [vmem:[#allocation6 + $0x194] sm:$0xf]  ;;  %v4067_v28 = vor.u32 %v5766_v20, %v4066_v19 }
  0x55   :  { %983 = vmatpush.bf16.msrb.mxu0 %v3963_v30  ;;  %1009 = vmatpush.bf16.msrb.mxu2 %v3967_v32  ;;  %v4122_v59 = vld [vmem:[#allocation6 + $0x208] sm:$0xf]  ;;  %v5713_v61 = vld [vmem:[#allocation6 + $0xc] sm:$0xf]  ;;  %v4159_v62 = vor.u32 %v5785_v52, %v4156_v53  ;;  %v3867_v5 = vor.u32 %v5717_v56, %v3866_v55  ;;  %v4071_v30 = vor.u32 %v5762_v24, %v4068_v25  ;;  %v5758_v32 = vld [vmem:[#allocation6 + $0x16c] sm:$0xf0] }
  0x56   :  { %v5781_v60 = vld [vmem:[#allocation6 + $0x224] sm:$0xf0]  ;;  %v3868_v63 = vld [vmem:[#allocation6 + $0x28] sm:$0xf0]  ;;  %v4290_v33 = vld [vmem:[#allocation6 + $0x350] sm:$0xf] }
  0x57   :  { %996 = vmatpush.bf16.msrb.mxu1 %v4219_v31  ;;  %1022 = vmatpush.bf16.msrb.mxu3 %v4223_v36  ;;  %v5777_v0 = vld [vmem:[#allocation6 + $0x20c] sm:$0xf]  ;;  %v4123_v9 = vor.u32 %v5781_v60, %v4122_v59  ;;  %v3871_v10 = vor.u32 %v5713_v61, %v3868_v63  ;;  %v4034_v31 = vld [vmem:[#allocation6 + $0x150] sm:$0xf]  ;;  %v5754_v36 = vld [vmem:[#allocation6 + $0x154] sm:$0xf] }
  0x58   :  { %v4124_v1 = vld [vmem:[#allocation6 + $0x228] sm:$0xf0]  ;;  %v5822_v35 = vld [vmem:[#allocation6 + $0x36c] sm:$0xf0]  ;;  %v4036_v37 = vld [vmem:[#allocation6 + $0x170] sm:$0xf0]  ;;  %v4035_v40 = vor.u32 %v5758_v32, %v4034_v31 }
  0x59   :  { %984 = vmatpush.bf16.msrb.mxu0 %v3931_v42  ;;  %1010 = vmatpush.bf16.msrb.mxu2 %v3935_v44  ;;  %v4127_v13 = vor.u32 %v5777_v0, %v4124_v1  ;;  %v5818_v38 = vld [vmem:[#allocation6 + $0x354] sm:$0xf]  ;;  %v4291_v41 = vor.u32 %v5822_v35, %v4290_v33  ;;  %v4039_v42 = vor.u32 %v5754_v36, %v4036_v37  ;;  %v5750_v44 = vld [vmem:[#allocation6 + $0x12c] sm:$0xf0] }
  0x5a   :  { %v4292_v39 = vld [vmem:[#allocation6 + $0x370] sm:$0xf0]  ;;  %v4258_v45 = vld [vmem:[#allocation6 + $0x310] sm:$0xf] }
  0x5b   :  { %997 = vmatpush.bf16.msrb.mxu1 %v4187_v43  ;;  %1023 = vmatpush.bf16.msrb.mxu3 %v4191_v48  ;;  %v4002_v43 = vld [vmem:[#allocation6 + $0x110] sm:$0xf]  ;;  %v4295_v46 = vor.u32 %v5818_v38, %v4292_v39  ;;  %v5746_v48 = vld [vmem:[#allocation6 + $0x114] sm:$0xf]  ;;  %v4106_v38 = vld [vmem:[#allocation6 + $0x1d8] sm:$0xf] }
  0x5c   :  { %v5814_v47 = vld [vmem:[#allocation6 + $0x32c] sm:$0xf0]  ;;  %v4004_v49 = vld [vmem:[#allocation6 + $0x130] sm:$0xf0]  ;;  %v4003_v52 = vor.u32 %v5750_v44, %v4002_v43  ;;  %v5775_v39 = vld [vmem:[#allocation6 + $0x1f4] sm:$0xf0] }
  0x5d   :  { %985 = vmatpush.bf16.msrb.mxu0 %v3899_v54  ;;  %1011 = vmatpush.bf16.msrb.mxu2 %v3903_v58  ;;  %v5810_v50 = vld [vmem:[#allocation6 + $0x314] sm:$0xf]  ;;  %v4259_v53 = vor.u32 %v5814_v47, %v4258_v45  ;;  %v4007_v54 = vor.u32 %v5746_v48, %v4004_v49  ;;  %v3970_v55 = vld [vmem:[#allocation6 + $0xd0] sm:$0xf]  ;;  %v5771_v43 = vld [vmem:[#allocation6 + $0x1dc] sm:$0xf] }
  0x5e   :  { %v4260_v51 = vld [vmem:[#allocation6 + $0x330] sm:$0xf0]  ;;  %v5742_v56 = vld [vmem:[#allocation6 + $0xec] sm:$0xf0]  ;;  %v4108_v44 = vld [vmem:[#allocation6 + $0x1f8] sm:$0xf0] }
  0x5f   :  { %998 = vmatpush.bf16.msrb.mxu1 %v4155_v57  ;;  %1024 = vmatpush.bf16.msrb.mxu3 %v4159_v62  ;;  %v4226_v57 = vld [vmem:[#allocation6 + $0x2d0] sm:$0xf]  ;;  %v4263_v58 = vor.u32 %v5810_v50, %v4260_v51  ;;  %v5738_v60 = vld [vmem:[#allocation6 + $0xd4] sm:$0xf]  ;;  %v3971_v0 = vor.u32 %v5742_v56, %v3970_v55  ;;  %v5835_v47 = vld [vmem:[#allocation6 + $0x3dc] sm:$0xf]  ;;  %v4107_v50 = vor.u32 %v5775_v39, %v4106_v38 }
  0x60   :  { %v5806_v59 = vld [vmem:[#allocation6 + $0x2ec] sm:$0xf0]  ;;  %v3972_v61 = vld [vmem:[#allocation6 + $0xf0] sm:$0xf0]  ;;  %v4364_v48 = vld [vmem:[#allocation6 + $0x3f8] sm:$0xf0] }
  0x61   :  { %986 = vmatpush.bf16.msrb.mxu0 %v3867_v5  ;;  %1012 = vmatpush.bf16.msrb.mxu2 %v3871_v10  ;;  %v5802_v62 = vld [vmem:[#allocation6 + $0x2d4] sm:$0xf]  ;;  %v4227_v1 = vor.u32 %v5806_v59, %v4226_v57  ;;  %v3975_v2 = vor.u32 %v5738_v60, %v3972_v61  ;;  %v3938_v3 = vld [vmem:[#allocation6 + $0x90] sm:$0xf]  ;;  %v4330_v55 = vld [vmem:[#allocation6 + $0x398] sm:$0xf]  ;;  %v4367_v56 = vor.u32 %v5835_v47, %v4364_v48 }
  0x62   :  { %v4228_v63 = vld [vmem:[#allocation6 + $0x2f0] sm:$0xf0]  ;;  %v5734_v4 = vld [vmem:[#allocation6 + $0xac] sm:$0xf0]  ;;  %v5831_v57 = vld [vmem:[#allocation6 + $0x3b4] sm:$0xf0] }
  0x63   :  { %999 = vmatpush.bf16.msrb.mxu1 %v4123_v9  ;;  %1025 = vmatpush.bf16.msrb.mxu3 %v4127_v13  ;;  %v4194_v5 = vld [vmem:[#allocation6 + $0x290] sm:$0xf]  ;;  %v4231_v6 = vor.u32 %v5802_v62, %v4228_v63  ;;  %v5730_v8 = vld [vmem:[#allocation6 + $0x94] sm:$0xf]  ;;  %v3939_v12 = vor.u32 %v5734_v4, %v3938_v3  ;;  %v4076_v59 = vld [vmem:[#allocation6 + $0x1b8] sm:$0xf0]  ;;  %v4331_v63 = vor.u32 %v5831_v57, %v4330_v55 }
  0x64   :  { %987 = vmatmul.bf16.vlgmr.msrb.gmra.mxu0 %v6474_v17  ;;  %1013 = vmatmul.bf16.vlgmr.msrb.gmra.mxu2 %v6474_v17  ;;  %v5798_v7 = vld [vmem:[#allocation6 + $0x2ac] sm:$0xf0]  ;;  %v3940_v9 = vld [vmem:[#allocation6 + $0xb0] sm:$0xf0]  ;;  %v5827_v60 = vld [vmem:[#allocation6 + $0x39c] sm:$0xf] }
  0x65   :  { %1031 = vmatpush.bf16.msra.mxu0 %v4099_v14  ;;  %1057 = vmatpush.bf16.msra.mxu2 %v4103_v16  ;;  %v5794_v10 = vld [vmem:[#allocation6 + $0x294] sm:$0xf]  ;;  %v4195_v13 = vor.u32 %v5798_v7, %v4194_v5  ;;  %v3943_v14 = vor.u32 %v5730_v8, %v3940_v9  ;;  %v5726_v16 = vld [vmem:[#allocation6 + $0x6c] sm:$0xf0]  ;;  %v4332_v61 = vld [vmem:[#allocation6 + $0x3b8] sm:$0xf0] }
  0x66   :  { %1000 = vmatmul.bf16.vlgmr.msrb.gmra.mxu1 %v6476_v18  ;;  %1026 = vmatmul.bf16.vlgmr.msrb.gmra.mxu3 %v6476_v18  ;;  %v4196_v11 = vld [vmem:[#allocation6 + $0x2b0] sm:$0xf0]  ;;  %v4162_v19 = vld [vmem:[#allocation6 + $0x250] sm:$0xf]  ;;  %v4298_v3 = vld [vmem:[#allocation6 + $0x358] sm:$0xf]  ;;  %v4335_v4 = vor.u32 %v5827_v60, %v4332_v61 }
  0x67   :  { %1044 = vmatpush.bf16.msra.mxu1 %v4355_v15  ;;  %1070 = vmatpush.bf16.msra.mxu3 %v4359_v22  ;;  %v3906_v15 = vld [vmem:[#allocation6 + $0x50] sm:$0xf]  ;;  %v4199_v20 = vor.u32 %v5794_v10, %v4196_v11  ;;  %v5722_v22 = vld [vmem:[#allocation6 + $0x54] sm:$0xf]  ;;  %v5823_v5 = vld [vmem:[#allocation6 + $0x374] sm:$0xf0] }
  0x68   :  { %v5790_v21 = vld [vmem:[#allocation6 + $0x26c] sm:$0xf0]  ;;  %v3908_v23 = vld [vmem:[#allocation6 + $0x70] sm:$0xf0]  ;;  %v3907_v26 = vor.u32 %v5726_v16, %v3906_v15  ;;  %v4044_v7 = vld [vmem:[#allocation6 + $0x178] sm:$0xf0]  ;;  %v4299_v11 = vor.u32 %v5823_v5, %v4298_v3 }
  0x69   :  { %1032 = vmatpush.bf16.msra.mxu0 %v4067_v28  ;;  %1058 = vmatpush.bf16.msra.mxu2 %v4071_v30  ;;  %v5786_v24 = vld [vmem:[#allocation6 + $0x254] sm:$0xf]  ;;  %v3874_v27 = vld [vmem:[#allocation6 + $0x10] sm:$0xf]  ;;  %v3911_v30 = vor.u32 %v5722_v22, %v3908_v23  ;;  %v5819_v8 = vld [vmem:[#allocation6 + $0x35c] sm:$0xf] }
  0x6a   :  { %v4164_v25 = vld [vmem:[#allocation6 + $0x270] sm:$0xf0]  ;;  %v5718_v28 = vld [vmem:[#allocation6 + $0x2c] sm:$0xf0]  ;;  %v4300_v9 = vld [vmem:[#allocation6 + $0x378] sm:$0xf0] }
  0x6b   :  { %1045 = vmatpush.bf16.msra.mxu1 %v4323_v29  ;;  %1071 = vmatpush.bf16.msra.mxu3 %v4327_v34  ;;  %v4163_v29 = vor.u32 %v5790_v21, %v4162_v19  ;;  %v4130_v31 = vld [vmem:[#allocation6 + $0x210] sm:$0xf]  ;;  %v5714_v33 = vld [vmem:[#allocation6 + $0x14] sm:$0xf]  ;;  %v4167_v34 = vor.u32 %v5786_v24, %v4164_v25  ;;  %v4266_v15 = vld [vmem:[#allocation6 + $0x318] sm:$0xf]  ;;  %v4303_v16 = vor.u32 %v5819_v8, %v4300_v9 }
  0x6c   :  { %v5782_v32 = vld [vmem:[#allocation6 + $0x22c] sm:$0xf0]  ;;  %v3876_v35 = vld [vmem:[#allocation6 + $0x30] sm:$0xf0]  ;;  %v5815_v19 = vld [vmem:[#allocation6 + $0x334] sm:$0xf0] }
  0x6d   :  { %1033 = vmatpush.bf16.msra.mxu0 %v4035_v40  ;;  %1059 = vmatpush.bf16.msra.mxu2 %v4039_v42  ;;  %v5778_v36 = vld [vmem:[#allocation6 + $0x214] sm:$0xf]  ;;  %v4362_v40 = vld [vmem:[#allocation6 + $0x3d8] sm:$0xf]  ;;  %v4131_v45 = vor.u32 %v5782_v32, %v4130_v31  ;;  %v4012_v21 = vld [vmem:[#allocation6 + $0x138] sm:$0xf0]  ;;  %v4267_v25 = vor.u32 %v5815_v19, %v4266_v15 }
  0x6e   :  { %v4132_v37 = vld [vmem:[#allocation6 + $0x230] sm:$0xf0]  ;;  %v5839_v42 = vld [vmem:[#allocation6 + $0x3f4] sm:$0xf0]  ;;  %v5811_v22 = vld [vmem:[#allocation6 + $0x31c] sm:$0xf] }
  0x6f   :  { %1046 = vmatpush.bf16.msra.mxu1 %v4291_v41  ;;  %1072 = vmatpush.bf16.msra.mxu3 %v4295_v46  ;;  %v3875_v41 = vor.u32 %v5718_v28, %v3874_v27  ;;  %v3879_v46 = vor.u32 %v5714_v33, %v3876_v35  ;;  %v4135_v49 = vor.u32 %v5778_v36, %v4132_v37  ;;  %v4268_v23 = vld [vmem:[#allocation6 + $0x338] sm:$0xf0]  ;;  %v3978_v27 = vld [vmem:[#allocation6 + $0xd8] sm:$0xf]  ;;  %v4482_v8 = vld [vmem:[#allocation9 + $0xe0] sm:$0xf] }
  0x70   :  { %v4363_v51 = vor.u32 %v5839_v42, %v4362_v40  ;;  %v5743_v28 = vld [vmem:[#allocation6 + $0xf4] sm:$0xf0]  ;;  %v5739_v32 = vld [vmem:[#allocation6 + $0xdc] sm:$0xf]  ;;  %v4738_v19 = vld [vmem:[#allocation9 + $0x2e0] sm:$0xf] }
  0x71   :  { %1034 = vmatpush.bf16.msra.mxu0 %v4003_v52  ;;  %1060 = vmatpush.bf16.msra.mxu2 %v4007_v54  ;;  %v4111_v52 = vor.u32 %v5771_v43, %v4108_v44  ;;  %v5767_v54 = vld [vmem:[#allocation6 + $0x1b4] sm:$0xf0]  ;;  %v3980_v33 = vld [vmem:[#allocation6 + $0xf8] sm:$0xf0]  ;;  %v3979_v36 = vor.u32 %v5743_v28, %v3978_v27  ;;  %v4450_v28 = vld [vmem:[#allocation9 + $0xa0] sm:$0xf] }
  0x72   :  { %v5807_v31 = vld [vmem:[#allocation6 + $0x2f4] sm:$0xf0]  ;;  %v4236_v35 = vld [vmem:[#allocation6 + $0x2f8] sm:$0xf0]  ;;  %v3983_v38 = vor.u32 %v5739_v32, %v3980_v33 }
  0x73   :  { %1047 = vmatpush.bf16.msra.mxu1 %v4259_v53  ;;  %1073 = vmatpush.bf16.msra.mxu3 %v4263_v58  ;;  %v4074_v53 = vld [vmem:[#allocation6 + $0x198] sm:$0xf]  ;;  %v5763_v58 = vld [vmem:[#allocation6 + $0x19c] sm:$0xf] }
  0x74   :  { %v4075_v62 = vor.u32 %v5767_v54, %v4074_v53  ;;  %v3946_v39 = vld [vmem:[#allocation6 + $0x98] sm:$0xf]  ;;  %v5731_v44 = vld [vmem:[#allocation6 + $0x9c] sm:$0xf] }
  0x75   :  { %1035 = vmatpush.bf16.msra.mxu0 %v3971_v0  ;;  %1061 = vmatpush.bf16.msra.mxu2 %v3975_v2  ;;  %v4079_v0 = vor.u32 %v5763_v58, %v4076_v59  ;;  %v5759_v2 = vld [vmem:[#allocation6 + $0x174] sm:$0xf0]  ;;  %v4204_v47 = vld [vmem:[#allocation6 + $0x2b8] sm:$0xf0] }
  0x76   :  { %v5735_v40 = vld [vmem:[#allocation6 + $0xb4] sm:$0xf0]  ;;  %v3916_v57 = vld [vmem:[#allocation6 + $0x78] sm:$0xf0] }
  0x77   :  { %1048 = vmatpush.bf16.msra.mxu1 %v4227_v1  ;;  %1074 = vmatpush.bf16.msra.mxu3 %v4231_v6  ;;  %v4042_v1 = vld [vmem:[#allocation6 + $0x158] sm:$0xf]  ;;  %v5755_v6 = vld [vmem:[#allocation6 + $0x15c] sm:$0xf]  ;;  %v3947_v48 = vor.u32 %v5735_v40, %v3946_v39  ;;  %v4418_v40 = vld [vmem:[#allocation9 + $0x60] sm:$0xf] }
  0x78   :  { %v4043_v10 = vor.u32 %v5759_v2, %v4042_v1  ;;  %v5799_v43 = vld [vmem:[#allocation6 + $0x2b4] sm:$0xf0]  ;;  %v5787_v58 = vld [vmem:[#allocation6 + $0x25c] sm:$0xf] }
  0x79   :  { %1036 = vmatpush.bf16.msra.mxu0 %v3939_v12  ;;  %1062 = vmatpush.bf16.msra.mxu2 %v3943_v14  ;;  %v4047_v12 = vor.u32 %v5755_v6, %v4044_v7  ;;  %v5751_v14 = vld [vmem:[#allocation6 + $0x134] sm:$0xf0]  ;;  %v4172_v59 = vld [vmem:[#allocation6 + $0x278] sm:$0xf0] }
  0x7a   :  { %v4170_v53 = vld [vmem:[#allocation6 + $0x258] sm:$0xf]  ;;  %v4175_v3 = vor.u32 %v5787_v58, %v4172_v59  ;;  %v3884_v5 = vld [vmem:[#allocation6 + $0x38] sm:$0xf0]  ;;  %v4370_v59 = vld [vmem:[#allocation9] sm:$0xf] }
  0x7b   :  { %1049 = vmatpush.bf16.msra.mxu1 %v4195_v13  ;;  %1075 = vmatpush.bf16.msra.mxu3 %v4199_v20  ;;  %v4010_v13 = vld [vmem:[#allocation6 + $0x118] sm:$0xf]  ;;  %v5747_v20 = vld [vmem:[#allocation6 + $0x11c] sm:$0xf] }
  0x7c   :  { %v4011_v24 = vor.u32 %v5751_v14, %v4010_v13  ;;  %v5791_v55 = vld [vmem:[#allocation6 + $0x274] sm:$0xf0]  ;;  %v5779_v6 = vld [vmem:[#allocation6 + $0x21c] sm:$0xf] }
  0x7d   :  { %1037 = vmatpush.bf16.msra.mxu0 %v3907_v26  ;;  %1063 = vmatpush.bf16.msra.mxu2 %v3911_v30  ;;  %v4015_v26 = vor.u32 %v5747_v20, %v4012_v21  ;;  %v4271_v30 = vor.u32 %v5811_v22, %v4268_v23  ;;  %v3882_v61 = vld [vmem:[#allocation6 + $0x18] sm:$0xf]  ;;  %v4140_v7 = vld [vmem:[#allocation6 + $0x238] sm:$0xf0]  ;;  %v4466_v21 = vld [vmem:[#allocation9 + $0xc0] sm:$0xf] }
  0x7e   :  { %v4138_v1 = vld [vmem:[#allocation6 + $0x218] sm:$0xf]  ;;  %v4143_v15 = vor.u32 %v5779_v6, %v4140_v7  ;;  %v5122_v7 = vld [vmem:[#allocation9 + $0x5e0] sm:$0xf] }
  0x7f   :  { %1050 = vmatpush.bf16.msra.mxu1 %v4163_v29  ;;  %1076 = vmatpush.bf16.msra.mxu3 %v4167_v34  ;;  %v4234_v29 = vld [vmem:[#allocation6 + $0x2d8] sm:$0xf]  ;;  %v5803_v34 = vld [vmem:[#allocation6 + $0x2dc] sm:$0xf] }
  0x80   :  { %v4235_v37 = vor.u32 %v5807_v31, %v4234_v29  ;;  %v4239_v42 = vor.u32 %v5803_v34, %v4236_v35  ;;  %v5783_v2 = vld [vmem:[#allocation6 + $0x234] sm:$0xf0]  ;;  %v4578_v31 = vld [vmem:[#allocation9 + $0x1a0] sm:$0xf] }
  0x81   :  { %1038 = vmatpush.bf16.msra.mxu0 %v3875_v41  ;;  %1064 = vmatpush.bf16.msra.mxu2 %v3879_v46  ;;  %v4202_v41 = vld [vmem:[#allocation6 + $0x298] sm:$0xf]  ;;  %v5795_v46 = vld [vmem:[#allocation6 + $0x29c] sm:$0xf]  ;;  %v4139_v13 = vor.u32 %v5783_v2, %v4138_v1  ;;  %v4434_v34 = vld [vmem:[#allocation9 + $0x80] sm:$0xf] }
  0x82   :  { %v4207_v54 = vor.u32 %v5795_v46, %v4204_v47  ;;  %v5870_v9 = vld [vmem:[#allocation9 + $0xec] sm:$0xf0]  ;;  %v4530_v47 = vld [vmem:[#allocation9 + $0x140] sm:$0xf] }
  0x83   :  { %1051 = vmatpush.bf16.msra.mxu1 %v4131_v45  ;;  %1077 = vmatpush.bf16.msra.mxu3 %v4135_v49  ;;  %v3948_v45 = vld [vmem:[#allocation6 + $0xb8] sm:$0xf0]  ;;  %v4203_v49 = vor.u32 %v5799_v43, %v4202_v41  ;;  %v5934_v20 = vld [vmem:[#allocation9 + $0x2ec] sm:$0xf0] }
  0x84   :  { %1039 = vmatmul.bf16.vlgmr.msra.gmra.mxu0 %v6474_v17  ;;  %1065 = vmatmul.bf16.vlgmr.msra.gmra.mxu2 %v6474_v17  ;;  %v5866_v22 = vld [vmem:[#allocation9 + $0xcc] sm:$0xf0] }
  0x85   :  { %1083 = vmatpush.bf16.msrb.mxu0 %v4107_v50  ;;  %1109 = vmatpush.bf16.msrb.mxu2 %v4111_v52  ;;  %v3951_v50 = vor.u32 %v5731_v44, %v3948_v45  ;;  %v5727_v52 = vld [vmem:[#allocation6 + $0x74] sm:$0xf0]  ;;  %v4467_v27 = vor.u32 %v5866_v22, %v4466_v21  ;;  %v4690_v21 = vld [vmem:[#allocation9 + $0x280] sm:$0xf] }
  0x86   :  { %1052 = vmatmul.bf16.vlgmr.msra.gmra.mxu1 %v6476_v18  ;;  %1078 = vmatmul.bf16.vlgmr.msra.gmra.mxu3 %v6476_v18  ;;  %v5862_v29 = vld [vmem:[#allocation9 + $0xac] sm:$0xf0] }
  0x87   :  { %1096 = vmatpush.bf16.msrb.mxu1 %v4363_v51  ;;  %1122 = vmatpush.bf16.msrb.mxu3 %v4367_v56  ;;  %v3914_v51 = vld [vmem:[#allocation6 + $0x58] sm:$0xf]  ;;  %v5723_v56 = vld [vmem:[#allocation6 + $0x5c] sm:$0xf]  ;;  %v4451_v33 = vor.u32 %v5862_v29, %v4450_v28  ;;  %v4834_v28 = vld [vmem:[#allocation9 + $0x3a0] sm:$0xf] }
  0x88   :  { %v3915_v60 = vor.u32 %v5727_v52, %v3914_v51  ;;  %v5894_v32 = vld [vmem:[#allocation9 + $0x1ac] sm:$0xf0] }
  0x89   :  { %1084 = vmatpush.bf16.msrb.mxu0 %v4075_v62  ;;  %1110 = vmatpush.bf16.msrb.mxu2 %v4079_v0  ;;  %v4171_v62 = vor.u32 %v5791_v55, %v4170_v53  ;;  %v5719_v0 = vld [vmem:[#allocation6 + $0x34] sm:$0xf0]  ;;  %v4386_v53 = vld [vmem:[#allocation9 + $0x20] sm:$0xf] }
  0x8a   :  { %v5858_v35 = vld [vmem:[#allocation9 + $0x8c] sm:$0xf0] }
  0x8b   :  { %1097 = vmatpush.bf16.msrb.mxu1 %v4331_v63  ;;  %1123 = vmatpush.bf16.msrb.mxu3 %v4335_v4  ;;  %v3919_v63 = vor.u32 %v5723_v56, %v3916_v57  ;;  %v5715_v4 = vld [vmem:[#allocation6 + $0x1c] sm:$0xf]  ;;  %v4435_v39 = vor.u32 %v5858_v35, %v4434_v34  ;;  %v5854_v41 = vld [vmem:[#allocation9 + $0x6c] sm:$0xf0]  ;;  %v4514_v56 = vld [vmem:[#allocation9 + $0x120] sm:$0xf] }
  0x8c   :  { %v3887_v14 = vor.u32 %v5715_v4, %v3884_v5  ;;  %v5886_v43 = vld [vmem:[#allocation9 + $0x16c] sm:$0xf0]  ;;  %v4419_v44 = vor.u32 %v5854_v41, %v4418_v40  ;;  %v4706_v5 = vld [vmem:[#allocation9 + $0x2a0] sm:$0xf] }
  0x8d   :  { %1085 = vmatpush.bf16.msrb.mxu0 %v4043_v10  ;;  %1111 = vmatpush.bf16.msrb.mxu2 %v4047_v12  ;;  %v3883_v10 = vor.u32 %v5719_v0, %v3882_v61  ;;  %v5902_v12 = vld [vmem:[#allocation9 + $0x1ec] sm:$0xf0]  ;;  %v4994_v61 = vld [vmem:[#allocation9 + $0x4e0] sm:$0xf] }
  0x8e   :  { %v5850_v45 = vld [vmem:[#allocation9 + $0x4c] sm:$0xf0] }
  0x8f   :  { %1098 = vmatpush.bf16.msrb.mxu1 %v4299_v11  ;;  %1124 = vmatpush.bf16.msrb.mxu3 %v4303_v16  ;;  %v4610_v11 = vld [vmem:[#allocation9 + $0x1e0] sm:$0xf]  ;;  %v4483_v16 = vor.u32 %v5870_v9, %v4482_v8  ;;  %v5878_v57 = vld [vmem:[#allocation9 + $0x12c] sm:$0xf0] }
  0x90   :  { %v4611_v23 = vor.u32 %v5902_v12, %v4610_v11  ;;  %v5966_v0 = vld [vmem:[#allocation9 + $0x3ec] sm:$0xf0]  ;;  %v4850_v11 = vld [vmem:[#allocation9 + $0x3c0] sm:$0xf] }
  0x91   :  { %1086 = vmatpush.bf16.msrb.mxu0 %v4011_v24  ;;  %1112 = vmatpush.bf16.msrb.mxu2 %v4015_v26  ;;  %v4594_v24 = vld [vmem:[#allocation9 + $0x1c0] sm:$0xf]  ;;  %v4739_v26 = vor.u32 %v5934_v20, %v4738_v19  ;;  %v5998_v1 = vld [vmem:[#allocation9 + $0x4ec] sm:$0xf0] }
  0x92   :  { %v5874_v4 = vld [vmem:[#allocation9 + $0x10c] sm:$0xf0]  ;;  %v4995_v12 = vor.u32 %v5998_v1, %v4994_v61  ;;  %v4914_v1 = vld [vmem:[#allocation9 + $0x440] sm:$0xf] }
  0x93   :  { %1099 = vmatpush.bf16.msrb.mxu1 %v4267_v25  ;;  %1125 = vmatpush.bf16.msrb.mxu3 %v4271_v30  ;;  %v5898_v25 = vld [vmem:[#allocation9 + $0x1cc] sm:$0xf0] }
  0x94   :  { %v4595_v30 = vor.u32 %v5898_v25, %v4594_v24  ;;  %v5926_v6 = vld [vmem:[#allocation9 + $0x2ac] sm:$0xf0] }
  0x95   :  { %1087 = vmatpush.bf16.msrb.mxu0 %v3979_v36  ;;  %1113 = vmatpush.bf16.msrb.mxu2 %v3983_v38  ;;  %v4579_v36 = vor.u32 %v5894_v32, %v4578_v31  ;;  %v5890_v38 = vld [vmem:[#allocation9 + $0x18c] sm:$0xf0]  ;;  %v4707_v9 = vor.u32 %v5926_v6, %v4706_v5  ;;  %v4626_v5 = vld [vmem:[#allocation9 + $0x200] sm:$0xf] }
  0x96   :  { %v5922_v22 = vld [vmem:[#allocation9 + $0x28c] sm:$0xf0] }
  0x97   :  { %1100 = vmatpush.bf16.msrb.mxu1 %v4235_v37  ;;  %1126 = vmatpush.bf16.msrb.mxu3 %v4239_v42  ;;  %v4562_v37 = vld [vmem:[#allocation9 + $0x180] sm:$0xf]  ;;  %v4691_v24 = vor.u32 %v5922_v22, %v4690_v21  ;;  %v6026_v25 = vld [vmem:[#allocation9 + $0x5cc] sm:$0xf0] }
  0x98   :  { %v4563_v42 = vor.u32 %v5890_v38, %v4562_v37  ;;  %v5958_v29 = vld [vmem:[#allocation9 + $0x3ac] sm:$0xf0]  ;;  %v4818_v38 = vld [vmem:[#allocation9 + $0x380] sm:$0xf] }
  0x99   :  { %1088 = vmatpush.bf16.msrb.mxu0 %v3947_v48  ;;  %1114 = vmatpush.bf16.msrb.mxu2 %v3951_v50  ;;  %v5882_v48 = vld [vmem:[#allocation9 + $0x14c] sm:$0xf0]  ;;  %v4835_v32 = vor.u32 %v5958_v29, %v4834_v28  ;;  %v5250_v22 = vld [vmem:[#allocation9 + $0x6e0] sm:$0xf] }
  0x9a   :  { %v5930_v50 = vld [vmem:[#allocation9 + $0x2cc] sm:$0xf0]  ;;  %v4531_v55 = vor.u32 %v5882_v48, %v4530_v47  ;;  %v4882_v28 = vld [vmem:[#allocation9 + $0x400] sm:$0xf] }
  0x9b   :  { %1101 = vmatpush.bf16.msrb.mxu1 %v4203_v49  ;;  %1127 = vmatpush.bf16.msrb.mxu3 %v4207_v54  ;;  %v4722_v49 = vld [vmem:[#allocation9 + $0x2c0] sm:$0xf]  ;;  %v5846_v54 = vld [vmem:[#allocation9 + $0x2c] sm:$0xf0] }
  0x9c   :  { %v4723_v51 = vor.u32 %v5930_v50, %v4722_v49  ;;  %v4387_v58 = vor.u32 %v5846_v54, %v4386_v53  ;;  %v5918_v34 = vld [vmem:[#allocation9 + $0x26c] sm:$0xf0]  ;;  %v4802_v49 = vld [vmem:[#allocation9 + $0x360] sm:$0xf] }
  0x9d   :  { %1089 = vmatpush.bf16.msrb.mxu0 %v3915_v60  ;;  %1115 = vmatpush.bf16.msrb.mxu2 %v3919_v63  ;;  %v5842_v60 = vld [vmem:[#allocation9 + $0xc] sm:$0xf0]  ;;  %v4866_v63 = vld [vmem:[#allocation9 + $0x3e0] sm:$0xf] }
  0x9e   :  { %v4867_v2 = vor.u32 %v5966_v0, %v4866_v63  ;;  %v4371_v8 = vor.u32 %v5842_v60, %v4370_v59  ;;  %v6022_v37 = vld [vmem:[#allocation9 + $0x5ac] sm:$0xf0] }
  0x9f   :  { %1102 = vmatpush.bf16.msrb.mxu1 %v4171_v62  ;;  %1128 = vmatpush.bf16.msrb.mxu3 %v4175_v3  ;;  %v4515_v62 = vor.u32 %v5878_v57, %v4514_v56  ;;  %v4498_v3 = vld [vmem:[#allocation9 + $0x100] sm:$0xf]  ;;  %v6018_v47 = vld [vmem:[#allocation9 + $0x58c] sm:$0xf0] }
  0xa0   :  { %v5950_v50 = vld [vmem:[#allocation9 + $0x36c] sm:$0xf0]  ;;  %v4642_v56 = vld [vmem:[#allocation9 + $0x220] sm:$0xf] }
  0xa1   :  { %1090 = vmatpush.bf16.msrb.mxu0 %v3883_v10  ;;  %1116 = vmatpush.bf16.msrb.mxu2 %v3887_v14  ;;  %v6030_v10 = vld [vmem:[#allocation9 + $0x5ec] sm:$0xf0] }
  0xa2   :  { %v5962_v14 = vld [vmem:[#allocation9 + $0x3cc] sm:$0xf0]  ;;  %v5123_v19 = vor.u32 %v6030_v10, %v5122_v7 }
  0xa3   :  { %1103 = vmatpush.bf16.msrb.mxu1 %v4139_v13  ;;  %1129 = vmatpush.bf16.msrb.mxu3 %v4143_v15  ;;  %v4499_v13 = vor.u32 %v5874_v4, %v4498_v3  ;;  %v4978_v15 = vld [vmem:[#allocation9 + $0x4c0] sm:$0xf]  ;;  %v4851_v20 = vor.u32 %v5962_v14, %v4850_v11  ;;  %v5982_v53 = vld [vmem:[#allocation9 + $0x46c] sm:$0xf0] }
  0xa4   :  { %1091 = vmatmul.bf16.vlgmr.msrb.gmra.mxu0 %v6474_v17  ;;  %1117 = vmatmul.bf16.vlgmr.msrb.gmra.mxu2 %v6474_v17  ;;  %v4546_v17 = vld [vmem:[#allocation9 + $0x160] sm:$0xf]  ;;  %v5910_v57 = vld [vmem:[#allocation9 + $0x22c] sm:$0xf0] }
  0xa5   :  { %2705 = vmatpush.bf16.msra.mxu0 %v4483_v16  ;;  %2731 = vmatpush.bf16.msra.mxu2 %v4739_v26  ;;  %v4547_v46 = vor.u32 %v5886_v43, %v4546_v17  ;;  %v5994_v16 = vld [vmem:[#allocation9 + $0x4cc] sm:$0xf0]  ;;  %v4643_v59 = vor.u32 %v5910_v57, %v4642_v56  ;;  %v5864_v56 = vld [vmem:[#allocation9 + $0xc4] sm:$0xf] }
  0xa6   :  { %1104 = vmatmul.bf16.vlgmr.msrb.gmra.mxu1 %v6476_v18  ;;  %1130 = vmatmul.bf16.vlgmr.msrb.gmra.mxu3 %v6476_v18  ;;  %v4402_v18 = vld [vmem:[#allocation9 + $0x40] sm:$0xf]  ;;  %v4979_v26 = vor.u32 %v5994_v16, %v4978_v15  ;;  %v5986_v17 = vld [vmem:[#allocation9 + $0x48c] sm:$0xf0] }
  0xa7   :  { %2718 = vmatpush.bf16.msra.mxu1 %v4611_v23  ;;  %v4403_v52 = vor.u32 %v5850_v45, %v4402_v18  ;;  %2744 = vmatpush.bf16.msra.mxu3 %v4867_v2  ;;  %v5106_v23 = vld [vmem:[#allocation9 + $0x5c0] sm:$0xf]  ;;  %v5914_v18 = vld [vmem:[#allocation9 + $0x24c] sm:$0xf0] }
  0xa8   :  { %v5107_v31 = vor.u32 %v6026_v25, %v5106_v23  ;;  %v5074_v45 = vld [vmem:[#allocation9 + $0x580] sm:$0xf]  ;;  %v6014_v60 = vld [vmem:[#allocation9 + $0x56c] sm:$0xf0] }
  0xa9   :  { %2706 = vmatpush.bf16.msra.mxu0 %v4467_v27  ;;  %2732 = vmatpush.bf16.msra.mxu2 %v4723_v51  ;;  %v4962_v27 = vld [vmem:[#allocation9 + $0x4a0] sm:$0xf]  ;;  %v6494_v51 = vld [vmem:[#allocation8] sm:$0xff]  ;;  %v5075_v54 = vor.u32 %v6018_v47, %v5074_v45  ;;  %v5946_v63 = vld [vmem:[#allocation9 + $0x34c] sm:$0xf0] }
  0xaa   :  { %v271_v0 = vperm.slane %v6494_v51, 0  ;;  %v5978_v2 = vld [vmem:[#allocation9 + $0x44c] sm:$0xf0]  ;;  %v5026_v25 = vld [vmem:[#allocation9 + $0x520] sm:$0xf] }
  0xab   :  { %2719 = vmatpush.bf16.msra.mxu1 %v4595_v30  ;;  %2745 = vmatpush.bf16.msra.mxu3 %v4851_v20  ;;  %v5990_v30 = vld [vmem:[#allocation9 + $0x4ac] sm:$0xf0]  ;;  %v4915_v11 = vor.u32 %v5978_v2, %v4914_v1  ;;  %v5202_v1 = vld [vmem:[#allocation9 + $0x680] sm:$0xf] }
  0xac   :  { %v4963_v40 = vor.u32 %v5990_v30, %v4962_v27  ;;  %v5906_v6 = vld [vmem:[#allocation9 + $0x20c] sm:$0xf0]  ;;  %v272_v27 = vperm.slane %v6494_v51, 1 }
  0xad   :  { %2707 = vmatpush.bf16.msra.mxu0 %v4451_v33  ;;  %2733 = vmatpush.bf16.msra.mxu2 %v4707_v9  ;;  %v4674_v33 = vld [vmem:[#allocation9 + $0x260] sm:$0xf]  ;;  %v4627_v7 = vor.u32 %v5906_v6, %v4626_v5  ;;  %v6010_v9 = vld [vmem:[#allocation9 + $0x54c] sm:$0xf0]  ;;  %v4612_v5 = vld [vmem:[#allocation9 + $0x1f0] sm:$0xf0] }
  0xae   :  { %v4675_v35 = vor.u32 %v5918_v34, %v4674_v33  ;;  %v5942_v14 = vld [vmem:[#allocation9 + $0x32c] sm:$0xf0] }
  0xaf   :  { %2720 = vmatpush.bf16.msra.mxu1 %v4579_v36  ;;  %v5090_v36 = vld [vmem:[#allocation9 + $0x5a0] sm:$0xf]  ;;  %2746 = vmatpush.bf16.msra.mxu3 %v4835_v32  ;;  %v6062_v23 = vld [vmem:[#allocation9 + $0x6ec] sm:$0xf0] }
  0xb0   :  { %v5091_v43 = vor.u32 %v6022_v37, %v5090_v36  ;;  %v6006_v29 = vld [vmem:[#allocation9 + $0x52c] sm:$0xf0]  ;;  %v4754_v32 = vld [vmem:[#allocation9 + $0x300] sm:$0xf] }
  0xb1   :  { %2708 = vmatpush.bf16.msra.mxu0 %v4435_v39  ;;  %2734 = vmatpush.bf16.msra.mxu2 %v4691_v24  ;;  %v5954_v39 = vld [vmem:[#allocation9 + $0x38c] sm:$0xf0]  ;;  %v5251_v24 = vor.u32 %v6062_v23, %v5250_v22  ;;  %v5234_v37 = vld [vmem:[#allocation9 + $0x6c0] sm:$0xf]  ;;  %v5896_v22 = vld [vmem:[#allocation9 + $0x1c4] sm:$0xf] }
  0xb2   :  { %v4819_v41 = vor.u32 %v5954_v39, %v4818_v38  ;;  %v5938_v33 = vld [vmem:[#allocation9 + $0x30c] sm:$0xf0]  ;;  %v5868_v39 = vld [vmem:[#allocation9 + $0xe4] sm:$0xf]  ;;  %v4596_v23 = vld [vmem:[#allocation9 + $0x1d0] sm:$0xf0] }
  0xb3   :  { %2721 = vmatpush.bf16.msra.mxu1 %v4563_v42  ;;  %v4946_v42 = vld [vmem:[#allocation9 + $0x480] sm:$0xf]  ;;  %v4755_v36 = vor.u32 %v5938_v33, %v4754_v32  ;;  %v6058_v38 = vld [vmem:[#allocation9 + $0x6cc] sm:$0xf0]  ;;  %v5892_v32 = vld [vmem:[#allocation9 + $0x1a4] sm:$0xf] }
  0xb4   :  { %2747 = vmatpush.bf16.msra.mxu3 %v4819_v41  ;;  %v4947_v48 = vor.u32 %v5986_v17, %v4946_v42  ;;  %v5235_v41 = vor.u32 %v6058_v38, %v5234_v37  ;;  %v5010_v42 = vld [vmem:[#allocation9 + $0x500] sm:$0xf]  ;;  %v6094_v45 = vld [vmem:[#allocation9 + $0x7ec] sm:$0xf0]  ;;  %v4580_v33 = vld [vmem:[#allocation9 + $0x1b0] sm:$0xf0] }
  0xb5   :  { %2709 = vmatpush.bf16.msra.mxu0 %v4419_v44  ;;  %2735 = vmatpush.bf16.msra.mxu2 %v4675_v35  ;;  %v4658_v44 = vld [vmem:[#allocation9 + $0x240] sm:$0xf]  ;;  %v5027_v35 = vor.u32 %v6006_v29, %v5026_v25  ;;  %v6050_v2 = vld [vmem:[#allocation9 + $0x68c] sm:$0xf0]  ;;  %v4599_v29 = vor.u32 %v5896_v22, %v4596_v23  ;;  %v5880_v23 = vld [vmem:[#allocation9 + $0x144] sm:$0xf] }
  0xb6   :  { %v5203_v6 = vor.u32 %v6050_v2, %v5202_v1  ;;  %v6042_v37 = vld [vmem:[#allocation9 + $0x64c] sm:$0xf0] }
  0xb7   :  { %2722 = vmatpush.bf16.msra.mxu1 %v4547_v46  ;;  %v4659_v46 = vor.u32 %v5914_v18, %v4658_v44  ;;  %v6002_v44 = vld [vmem:[#allocation9 + $0x50c] sm:$0xf0]  ;;  %v5378_v18 = vld [vmem:[#allocation9 + $0x7e0] sm:$0xf] }
  0xb8   :  { %v5011_v57 = vor.u32 %v6002_v44, %v5010_v42  ;;  %v5314_v44 = vld [vmem:[#allocation9 + $0x760] sm:$0xf] }
  0xb9   :  { %2710 = vmatpush.bf16.msra.mxu0 %v4403_v52  ;;  %v4930_v52 = vld [vmem:[#allocation9 + $0x460] sm:$0xf]  ;;  %2736 = vmatpush.bf16.msra.mxu2 %v4659_v46 }
  0xba   :  { %v4931_v61 = vor.u32 %v5982_v53, %v4930_v52  ;;  %v5218_v52 = vld [vmem:[#allocation9 + $0x6a0] sm:$0xf] }
  0xbb   :  { %2723 = vmatpush.bf16.msra.mxu1 %v4531_v55  ;;  %v4803_v55 = vor.u32 %v5950_v50, %v4802_v49  ;;  %v5379_v50 = vor.u32 %v6094_v45, %v5378_v18  ;;  %v6078_v18 = vld [vmem:[#allocation9 + $0x76c] sm:$0xf0]  ;;  %v5888_v45 = vld [vmem:[#allocation9 + $0x184] sm:$0xf] }
  0xbd   :  { %2711 = vmatpush.bf16.msra.mxu0 %v4387_v58  ;;  %v5058_v58 = vld [vmem:[#allocation9 + $0x560] sm:$0xf]  ;;  %2748 = vmatpush.bf16.msra.mxu3 %v4803_v55 }
  0xbe   :  { %2737 = vmatpush.bf16.msra.mxu2 %v4643_v59  ;;  %v5059_v3 = vor.u32 %v6014_v60, %v5058_v58  ;;  %v6054_v58 = vld [vmem:[#allocation9 + $0x6ac] sm:$0xf0]  ;;  %v4468_v60 = vld [vmem:[#allocation9 + $0xd0] sm:$0xf0] }
  0xbf   :  { %2724 = vmatpush.bf16.msra.mxu1 %v4515_v62  ;;  %v4786_v62 = vld [vmem:[#allocation9 + $0x340] sm:$0xf] }
  0xc0   :  { %v4787_v4 = vor.u32 %v5946_v63, %v4786_v62  ;;  %v5362_v62 = vld [vmem:[#allocation9 + $0x7c0] sm:$0xf]  ;;  %v6090_v63 = vld [vmem:[#allocation9 + $0x7cc] sm:$0xf0] }
  0xc1   :  { %2712 = vmatpush.bf16.msra.mxu0 %v4371_v8  ;;  %v5042_v8 = vld [vmem:[#allocation9 + $0x540] sm:$0xf] }
  0xc2   :  { %2749 = vmatpush.bf16.msra.mxu3 %v4787_v4  ;;  %2738 = vmatpush.bf16.msra.mxu2 %v4627_v7  ;;  %v5043_v20 = vor.u32 %v6010_v9, %v5042_v8  ;;  %v5900_v4 = vld [vmem:[#allocation9 + $0x1e4] sm:$0xf]  ;;  %v4471_v7 = vor.u32 %v5864_v56, %v4468_v60  ;;  %v5346_v9 = vld [vmem:[#allocation9 + $0x7a0] sm:$0xf]  ;;  %v4404_v56 = vld [vmem:[#allocation9 + $0x50] sm:$0xf0] }
  0xc3   :  { %2725 = vmatpush.bf16.msra.mxu1 %v4499_v13  ;;  %v4770_v13 = vld [vmem:[#allocation9 + $0x320] sm:$0xf]  ;;  %v5860_v8 = vld [vmem:[#allocation9 + $0xa4] sm:$0xf] }
  0xc4   :  { %v4771_v21 = vor.u32 %v5942_v14, %v4770_v13  ;;  %v5186_v14 = vld [vmem:[#allocation9 + $0x660] sm:$0xf] }
  0xc5   :  { %2757 = vmatpush.bf16.msrb.mxu0 %v4995_v12  ;;  %v936_v10 = vpop.f32.mrf.mxu0  ;;  %v4898_v12 = vld [vmem:[#allocation9 + $0x420] sm:$0xf] }
  0xc6   :  { %v937_v15 = vadd.f32 %v936_v10, %v271_v0  ;;  %2750 = vmatpush.bf16.msra.mxu3 %v4771_v21  ;;  %2783 = vmatpush.bf16.msrb.mxu2 %v5251_v24  ;;  %v5363_v0 = vor.u32 %v6090_v63, %v5362_v62  ;;  %v6086_v10 = vld [vmem:[#allocation9 + $0x7ac] sm:$0xf0]  ;;  %v5298_v60 = vld [vmem:[#allocation9 + $0x740] sm:$0xf]  ;;  %v4548_v62 = vld [vmem:[#allocation9 + $0x170] sm:$0xf0] }
  0xc7   :  { %2770 = vmatpush.bf16.msrb.mxu1 %v5123_v19  ;;  %v949_v16 = vpop.f32.mrf.mxu1  ;;  %v5974_v19 = vld [vmem:[#allocation9 + $0x42c] sm:$0xf0]  ;;  %v5347_v13 = vor.u32 %v6086_v10, %v5346_v9  ;;  %v4388_v10 = vld [vmem:[#allocation9 + $0x30] sm:$0xf0] }
  0xc8   :  { %v4899_v30 = vor.u32 %v5974_v19, %v4898_v12  ;;  %v4452_v12 = vld [vmem:[#allocation9 + $0xb0] sm:$0xf0]  ;;  %v4615_v19 = vor.u32 %v5900_v4, %v4612_v5  ;;  %v6074_v63 = vld [vmem:[#allocation9 + $0x74c] sm:$0xf0]  ;;  %v5138_v5 = vld [vmem:[#allocation9 + $0x600] sm:$0xf] }
  0xc9   :  { %2758 = vmatpush.bf16.msrb.mxu0 %v4979_v26  ;;  %v950_v26 = vadd.f32 %v949_v16, %v937_v15  ;;  %v6046_v15 = vld [vmem:[#allocation9 + $0x66c] sm:$0xf0]  ;;  %v4455_v25 = vor.u32 %v5860_v8, %v4452_v12  ;;  %v5299_v4 = vor.u32 %v6074_v63, %v5298_v60  ;;  %v5932_v12 = vld [vmem:[#allocation9 + $0x2e4] sm:$0xf] }
  0xca   :  { %2751 = vmatpush.bf16.msra.mxu3 %v4755_v36  ;;  %2784 = vmatpush.bf16.msrb.mxu2 %v5235_v41  ;;  %v5187_v24 = vor.u32 %v6046_v15, %v5186_v14  ;;  %v5170_v36 = vld [vmem:[#allocation9 + $0x640] sm:$0xf] }
  0xcb   :  { %2771 = vmatpush.bf16.msrb.mxu1 %v5107_v31  ;;  %v5970_v31 = vld [vmem:[#allocation9 + $0x40c] sm:$0xf0]  ;;  %v1135_v34 = vmul.f32 0.2, %v950_v26  ;;  %v5171_v41 = vor.u32 %v6042_v37, %v5170_v36  ;;  %v5876_v37 = vld [vmem:[#allocation9 + $0x124] sm:$0xf] }
  0xcc   :  { %v4883_v49 = vor.u32 %v5970_v31, %v4882_v28  ;;  %v273_v28 = vperm.slane %v6494_v51, 2  ;;  %v6082_v31 = vld [vmem:[#allocation9 + $0x78c] sm:$0xf0] }
  0xcd   :  { %2759 = vmatpush.bf16.msrb.mxu0 %v4963_v40  ;;  %v4484_v40 = vld [vmem:[#allocation9 + $0xf0] sm:$0xf0]  ;;  %v1143_v17 = vmax.f32 %v950_v26, %v1135_v34  ;;  %v938_v47 = vpop.f32.mrf.mxu0  ;;  %v5856_v26 = vld [vmem:[#allocation9 + $0x84] sm:$0xf] }
  0xce   :  { %v4487_v55 = vor.u32 %v5868_v39, %v4484_v40  ;;  %2796 = vmatpush.bf16.msrb.mxu3 %v5379_v50  ;;  %v5852_v39 = vld [vmem:[#allocation9 + $0x64] sm:$0xf]  ;;  %v4420_v40 = vld [vmem:[#allocation9 + $0x70] sm:$0xf0]  ;;  %v5315_v47 = vor.u32 %v6078_v18, %v5314_v44  ;;  %v5154_v50 = vld [vmem:[#allocation9 + $0x620] sm:$0xf] }
  0xcf   :  { %2772 = vmatpush.bf16.msrb.mxu1 %v5091_v43  ;;  %v962_v43 = vpop.f32.mrf.mxu2  ;;  %v6498_v53 = vpack.c.bf16 %v1143_v17, %v1143_v17 }
  0xd0   :  { %v963_v46 = vadd.f32 %v962_v43, %v272_v27  ;;  %v4436_v27 = vld [vmem:[#allocation9 + $0x90] sm:$0xf0]  ;;  %v4583_v43 = vor.u32 %v5892_v32, %v4580_v33 }
  0xd1   :  { %2760 = vmatpush.bf16.msrb.mxu0 %v4947_v48  ;;  %v975_v48 = vpop.f32.mrf.mxu3  ;;  %v4724_v32 = vld [vmem:[#allocation9 + $0x2d0] sm:$0xf0] }
  0xd2   :  { %v976_v59 = vadd.f32 %v975_v48, %v963_v46  ;;  %2713 = vmatmul.bf16.vlgmr.msra.gmra.mxu0 %v6498_v53  ;;  %2797 = vmatpush.bf16.msrb.mxu3 %v5363_v0  ;;  %v4564_v46 = vld [vmem:[#allocation9 + $0x190] sm:$0xf0] }
  0xd3   :  { %2773 = vmatpush.bf16.msrb.mxu1 %v5075_v54  ;;  %v951_v54 = vpop.f32.mrf.mxu1 }
  0xd4   :  { %v274_v54 = vperm.slane %v6494_v51, 3 }
  0xd5   :  { %2761 = vmatpush.bf16.msrb.mxu0 %v4931_v61  ;;  %v5219_v61 = vor.u32 %v6054_v58, %v5218_v52  ;;  %v6038_v52 = vld [vmem:[#allocation9 + $0x62c] sm:$0xf0] }
  0xd6   :  { %2798 = vmatpush.bf16.msrb.mxu3 %v5347_v13  ;;  %v4740_v13 = vld [vmem:[#allocation9 + $0x2f0] sm:$0xf0] }
  0xd7   :  { %2774 = vmatpush.bf16.msrb.mxu1 %v5059_v3  ;;  %v1136_v3 = vmul.f32 0.2, %v976_v59  ;;  %2785 = vmatpush.bf16.msrb.mxu2 %v5219_v61  ;;  %v964_v16 = vpop.f32.mrf.mxu2  ;;  %v5884_v61 = vld [vmem:[#allocation9 + $0x164] sm:$0xf] }
  0xd8   :  { %v4551_v16 = vor.u32 %v5884_v61, %v4548_v62  ;;  %v5956_v61 = vld [vmem:[#allocation9 + $0x3a4] sm:$0xf]  ;;  %v4836_v62 = vld [vmem:[#allocation9 + $0x3b0] sm:$0xf0] }
  0xd9   :  { %2762 = vmatpush.bf16.msrb.mxu0 %v4915_v11  ;;  %v1144_v11 = vmax.f32 %v976_v59, %v1136_v3  ;;  %v977_v21 = vpop.f32.mrf.mxu3  ;;  %v4567_v59 = vor.u32 %v5888_v45, %v4564_v46  ;;  %v5844_v3 = vld [vmem:[#allocation9 + $0x24] sm:$0xf]  ;;  %v4839_v63 = vor.u32 %v5956_v61, %v4836_v62 }
  0xda   :  { %v5282_v21 = vld [vmem:[#allocation9 + $0x720] sm:$0xf]  ;;  %v5924_v46 = vld [vmem:[#allocation9 + $0x2a4] sm:$0xf] }
  0xdb   :  { %2775 = vmatpush.bf16.msrb.mxu1 %v5043_v20  ;;  %v6501_v20 = vpack.c.bf16 %v1144_v11, %v1144_v11  ;;  %2786 = vmatpush.bf16.msrb.mxu2 %v5203_v6  ;;  %v6034_v6 = vld [vmem:[#allocation9 + $0x60c] sm:$0xf0] }
  0xdc   :  { %v5139_v11 = vor.u32 %v6034_v6, %v5138_v5  ;;  %v275_v5 = vperm.slane %v6494_v51, 4 }
  0xdd   :  { %2763 = vmatpush.bf16.msrb.mxu0 %v4899_v30  ;;  %2726 = vmatmul.bf16.vlgmr.msra.gmra.mxu1 %v6501_v20  ;;  %v5330_v30 = vld [vmem:[#allocation9 + $0x780] sm:$0xf] }
  0xde   :  { %v5331_v34 = vor.u32 %v6082_v31, %v5330_v30  ;;  %v5928_v31 = vld [vmem:[#allocation9 + $0x2c4] sm:$0xf] }
  0xdf   :  { %2776 = vmatpush.bf16.msrb.mxu1 %v5027_v35  ;;  %2787 = vmatpush.bf16.msrb.mxu2 %v5187_v24  ;;  %v4439_v35 = vor.u32 %v5856_v26, %v4436_v27  ;;  %v4532_v24 = vld [vmem:[#allocation9 + $0x150] sm:$0xf0]  ;;  %v4391_v26 = vor.u32 %v5844_v3, %v4388_v10  ;;  %v5840_v27 = vld [vmem:[#allocation9 + $0x4] sm:$0xf] }
  0xe0   :  { %2799 = vmatpush.bf16.msrb.mxu3 %v5331_v34  ;;  %v4535_v33 = vor.u32 %v5880_v23, %v4532_v24  ;;  %v4727_v34 = vor.u32 %v5928_v31, %v4724_v32  ;;  %v5952_v3 = vld [vmem:[#allocation9 + $0x384] sm:$0xf]  ;;  %v276_v24 = vperm.slane %v6494_v51, 5  ;;  %v4628_v32 = vld [vmem:[#allocation9 + $0x210] sm:$0xf0] }
  0xe1   :  { %2764 = vmatpush.bf16.msrb.mxu0 %v4883_v49  ;;  %v988_v38 = vpop.f32.mrf.mxu0  ;;  %v4423_v49 = vor.u32 %v5852_v39, %v4420_v40  ;;  %v6066_v39 = vld [vmem:[#allocation9 + $0x70c] sm:$0xf0]  ;;  %v5904_v31 = vld [vmem:[#allocation9 + $0x204] sm:$0xf] }
  0xe2   :  { %v989_v42 = vadd.f32 %v988_v38, %v273_v28  ;;  %v4372_v28 = vld [vmem:[#allocation9 + $0x10] sm:$0xf0] }
  0xe3   :  { %2777 = vmatpush.bf16.msrb.mxu1 %v5011_v57  ;;  %v1001_v17 = vpop.f32.mrf.mxu1  ;;  %2788 = vmatpush.bf16.msrb.mxu2 %v5171_v41  ;;  %v5155_v57 = vor.u32 %v6038_v52, %v5154_v50  ;;  %v4516_v38 = vld [vmem:[#allocation9 + $0x130] sm:$0xf0]  ;;  %v4375_v41 = vor.u32 %v5840_v27, %v4372_v28  ;;  %v5996_v28 = vld [vmem:[#allocation9 + $0x4e4] sm:$0xf] }
  0xe4   :  { %v1002_v48 = vadd.f32 %v1001_v17, %v989_v42  ;;  %2800 = vmatpush.bf16.msrb.mxu3 %v5315_v47  ;;  %v5964_v17 = vld [vmem:[#allocation9 + $0x3e4] sm:$0xf]  ;;  %v4708_v47 = vld [vmem:[#allocation9 + $0x2b0] sm:$0xf0] }
  0xe5   :  { %2809 = vmatpush.bf16.msra.mxu0 %v4487_v55  ;;  %v5848_v55 = vld [vmem:[#allocation9 + $0x44] sm:$0xf]  ;;  %v4711_v50 = vor.u32 %v5924_v46, %v4708_v47  ;;  %v4500_v52 = vld [vmem:[#allocation9 + $0x110] sm:$0xf0] }
  0xe6   :  { %v1137_v58 = vmul.f32 0.2, %v1002_v48  ;;  %v4407_v2 = vor.u32 %v5848_v55, %v4404_v56  ;;  %v4852_v55 = vld [vmem:[#allocation9 + $0x3d0] sm:$0xf0]  ;;  %v6028_v47 = vld [vmem:[#allocation9 + $0x5e4] sm:$0xf] }
  0xe7   :  { %2822 = vmatpush.bf16.msra.mxu1 %v4615_v19  ;;  %2789 = vmatpush.bf16.msrb.mxu2 %v5155_v57  ;;  %v1014_v1 = vpop.f32.mrf.mxu2  ;;  %v4743_v19 = vor.u32 %v5932_v12, %v4740_v13  ;;  %v5920_v57 = vld [vmem:[#allocation9 + $0x284] sm:$0xf]  ;;  %v4804_v12 = vld [vmem:[#allocation9 + $0x370] sm:$0xf0] }
  0xe8   :  { %v1145_v0 = vmax.f32 %v1002_v48, %v1137_v58  ;;  %2801 = vmatpush.bf16.msrb.mxu3 %v5299_v4  ;;  %v4519_v48 = vor.u32 %v5876_v37, %v4516_v38  ;;  %v4692_v58 = vld [vmem:[#allocation9 + $0x290] sm:$0xf0] }
  0xe9   :  { %2810 = vmatpush.bf16.msra.mxu0 %v4471_v7  ;;  %v1015_v7 = vadd.f32 %v1014_v1, %v274_v54  ;;  %v1027_v8 = vpop.f32.mrf.mxu3  ;;  %v990_v9 = vpop.f32.mrf.mxu0  ;;  %v5960_v54 = vld [vmem:[#allocation9 + $0x3c4] sm:$0xf]  ;;  %v4695_v60 = vor.u32 %v5920_v57, %v4692_v58  ;;  %v4676_v1 = vld [vmem:[#allocation9 + $0x270] sm:$0xf0] }
  0xea   :  { %v6506_v14 = vpack.c.bf16 %v1145_v0, %v1145_v0  ;;  %v4855_v56 = vor.u32 %v5960_v54, %v4852_v55  ;;  %v5916_v0 = vld [vmem:[#allocation9 + $0x264] sm:$0xf]  ;;  %v4820_v4 = vld [vmem:[#allocation9 + $0x390] sm:$0xf0] }
  0xeb   :  { %2823 = vmatpush.bf16.msra.mxu1 %v4599_v29  ;;  %v1003_v15 = vpop.f32.mrf.mxu1  ;;  %v1028_v22 = vadd.f32 %v1027_v8, %v1015_v7  ;;  %2790 = vmatpush.bf16.msrb.mxu2 %v5139_v11  ;;  %v4823_v6 = vor.u32 %v5952_v3, %v4820_v4  ;;  %v5912_v7 = vld [vmem:[#allocation9 + $0x244] sm:$0xf]  ;;  %v4660_v8 = vld [vmem:[#allocation9 + $0x250] sm:$0xf0] }
  0xec   :  { %2739 = vmatmul.bf16.vlgmr.msra.gmra.mxu2 %v6506_v14  ;;  %v4663_v9 = vor.u32 %v5912_v7, %v4660_v8  ;;  %v5948_v11 = vld [vmem:[#allocation9 + $0x364] sm:$0xf]  ;;  %v4964_v55 = vld [vmem:[#allocation9 + $0x4b0] sm:$0xf0] }
  0xed   :  { %2811 = vmatpush.bf16.msra.mxu0 %v4455_v25  ;;  %v6070_v25 = vld [vmem:[#allocation9 + $0x72c] sm:$0xf0]  ;;  %v1138_v30 = vmul.f32 0.2, %v1028_v22  ;;  %v5988_v54 = vld [vmem:[#allocation9 + $0x4a4] sm:$0xf] }
  0xee   :  { %v5283_v29 = vor.u32 %v6070_v25, %v5282_v21  ;;  %v4644_v21 = vld [vmem:[#allocation9 + $0x230] sm:$0xf0]  ;;  %v5944_v25 = vld [vmem:[#allocation9 + $0x344] sm:$0xf]  ;;  %v4967_v62 = vor.u32 %v5988_v54, %v4964_v55 }
  0xef   :  { %2824 = vmatpush.bf16.msra.mxu1 %v4583_v43  ;;  %2835 = vmatpush.bf16.msra.mxu2 %v4743_v19  ;;  %v1146_v36 = vmax.f32 %v1028_v22, %v1138_v30  ;;  %v1016_v40 = vpop.f32.mrf.mxu2  ;;  %v4868_v43 = vld [vmem:[#allocation9 + $0x3f0] sm:$0xf0]  ;;  %v5908_v19 = vld [vmem:[#allocation9 + $0x224] sm:$0xf] }
  0xf0   :  { %2802 = vmatpush.bf16.msrb.mxu3 %v5283_v29  ;;  %v4871_v45 = vor.u32 %v5964_v17, %v4868_v43  ;;  %v4647_v23 = vor.u32 %v5908_v19, %v4644_v21  ;;  %v4996_v29 = vld [vmem:[#allocation9 + $0x4f0] sm:$0xf0]  ;;  %v5940_v40 = vld [vmem:[#allocation9 + $0x324] sm:$0xf]  ;;  %v277_v19 = vperm.slane %v6494_v51, 6 }
  0xf1   :  { %2812 = vmatpush.bf16.msra.mxu0 %v4439_v35  ;;  %v5266_v35 = vld [vmem:[#allocation9 + $0x700] sm:$0xf]  ;;  %v6509_v44 = vpack.c.bf16 %v1146_v36, %v1146_v36  ;;  %v1029_v18 = vpop.f32.mrf.mxu3  ;;  %v4999_v38 = vor.u32 %v5996_v28, %v4996_v29  ;;  %v4980_v17 = vld [vmem:[#allocation9 + $0x4d0] sm:$0xf0]  ;;  %v5980_v8 = vld [vmem:[#allocation9 + $0x464] sm:$0xf] }
  0xf2   :  { %v5267_v42 = vor.u32 %v6066_v39, %v5266_v35  ;;  %v4631_v35 = vor.u32 %v5904_v31, %v4628_v32  ;;  %v4772_v18 = vld [vmem:[#allocation9 + $0x330] sm:$0xf0]  ;;  %v278_v31 = vperm.slane %v6494_v51, 7  ;;  %v6056_v55 = vld [vmem:[#allocation9 + $0x6c4] sm:$0xf] }
  0xf3   :  { %2825 = vmatpush.bf16.msra.mxu1 %v4567_v59  ;;  %2836 = vmatpush.bf16.msra.mxu2 %v4727_v34  ;;  %v4775_v46 = vor.u32 %v5940_v40, %v4772_v18  ;;  %v4948_v3 = vld [vmem:[#allocation9 + $0x490] sm:$0xf0] }
  0xf4   :  { %2803 = vmatpush.bf16.msrb.mxu3 %v5267_v42  ;;  %v5992_v42 = vld [vmem:[#allocation9 + $0x4c4] sm:$0xf]  ;;  %v5092_v7 = vld [vmem:[#allocation9 + $0x5b0] sm:$0xf0] }
  0xf5   :  { %2813 = vmatpush.bf16.msra.mxu0 %v4423_v49  ;;  %v5872_v49 = vld [vmem:[#allocation9 + $0x104] sm:$0xf]  ;;  %2752 = vmatmul.bf16.vlgmr.msra.gmra.mxu3 %v6509_v44 }
  0xf6   :  { %v4503_v59 = vor.u32 %v5872_v49, %v4500_v52  ;;  %v4983_v49 = vor.u32 %v5992_v42, %v4980_v17  ;;  %v5936_v52 = vld [vmem:[#allocation9 + $0x304] sm:$0xf]  ;;  %v4490_v42 = vld [vmem:[#allocation9 + $0xe8] sm:$0xf]  ;;  %v5871_v17 = vld [vmem:[#allocation9 + $0xf4] sm:$0xf0] }
  0xf7   :  { %2826 = vmatpush.bf16.msra.mxu1 %v4551_v16  ;;  %2837 = vmatpush.bf16.msra.mxu2 %v4711_v50  ;;  %v4807_v16 = vor.u32 %v5948_v11, %v4804_v12  ;;  %v5124_v50 = vld [vmem:[#allocation9 + $0x5f0] sm:$0xf0]  ;;  %v6016_v12 = vld [vmem:[#allocation9 + $0x584] sm:$0xf]  ;;  %v4491_v54 = vor.u32 %v5871_v17, %v4490_v42  ;;  %v5895_v42 = vld [vmem:[#allocation9 + $0x1b4] sm:$0xf0] }
  0xf8   :  { %2848 = vmatpush.bf16.msra.mxu3 %v4871_v45  ;;  %v4426_v17 = vld [vmem:[#allocation9 + $0x68] sm:$0xf] }
  0xf9   :  { %2814 = vmatpush.bf16.msra.mxu0 %v4407_v2  ;;  %v4679_v2 = vor.u32 %v5916_v0, %v4676_v1  ;;  %v6024_v0 = vld [vmem:[#allocation9 + $0x5c4] sm:$0xf]  ;;  %v5108_v1 = vld [vmem:[#allocation9 + $0x5d0] sm:$0xf0] }
  0xfa   :  { %v5111_v4 = vor.u32 %v6024_v0, %v5108_v1  ;;  %v6000_v0 = vld [vmem:[#allocation9 + $0x504] sm:$0xf]  ;;  %v5012_v1 = vld [vmem:[#allocation9 + $0x510] sm:$0xf0] }
  0xfb   :  { %2827 = vmatpush.bf16.msra.mxu1 %v4535_v33  ;;  %2838 = vmatpush.bf16.msra.mxu2 %v4695_v60 }
  0xfc   :  { %2849 = vmatpush.bf16.msra.mxu3 %v4855_v56  ;;  %v4756_v56 = vld [vmem:[#allocation9 + $0x310] sm:$0xf0] }
  0xfd   :  { %2815 = vmatpush.bf16.msra.mxu0 %v4391_v26  ;;  %v4788_v26 = vld [vmem:[#allocation9 + $0x350] sm:$0xf0]  ;;  %v4759_v58 = vor.u32 %v5936_v52, %v4756_v56 }
  0xfe   :  { %v4791_v30 = vor.u32 %v5944_v25, %v4788_v26  ;;  %v5972_v26 = vld [vmem:[#allocation9 + $0x424] sm:$0xf] }
  0xff   :  { %2828 = vmatpush.bf16.msra.mxu1 %v4519_v48  ;;  %2839 = vmatpush.bf16.msra.mxu2 %v4679_v2  ;;  %v5984_v2 = vld [vmem:[#allocation9 + $0x484] sm:$0xf] }
 0x100   :  { %2850 = vmatpush.bf16.msra.mxu3 %v4839_v63 }
 0x101   :  { %2816 = vmatpush.bf16.msra.mxu0 %v4375_v41  ;;  %v1040_v10 = vpop.f32.mrf.mxu0 }
 0x102   :  { %v1041_v13 = vadd.f32 %v1040_v10, %v275_v5  ;;  %v4951_v5 = vor.u32 %v5984_v2, %v4948_v3  ;;  %v6092_v2 = vld [vmem:[#allocation9 + $0x7e4] sm:$0xf]  ;;  %v5380_v3 = vld [vmem:[#allocation9 + $0x7f0] sm:$0xf0] }
 0x103   :  { %2829 = vmatpush.bf16.msra.mxu1 %v4503_v59  ;;  %v1053_v15 = vpop.f32.mrf.mxu1  ;;  %2840 = vmatpush.bf16.msra.mxu2 %v4663_v9  ;;  %v5127_v59 = vor.u32 %v6028_v47, %v5124_v50  ;;  %v4932_v9 = vld [vmem:[#allocation9 + $0x470] sm:$0xf0] }
 0x104   :  { %2851 = vmatpush.bf16.msra.mxu3 %v4823_v6  ;;  %v1054_v22 = vadd.f32 %v1053_v15, %v1041_v13  ;;  %v6020_v6 = vld [vmem:[#allocation9 + $0x5a4] sm:$0xf]  ;;  %v4935_v11 = vor.u32 %v5980_v8, %v4932_v9  ;;  %v5076_v13 = vld [vmem:[#allocation9 + $0x590] sm:$0xf0]  ;;  %v5903_v8 = vld [vmem:[#allocation9 + $0x1f4] sm:$0xf0] }
 0x105   :  { %v5095_v10 = vor.u32 %v6020_v6, %v5092_v7  ;;  %v5976_v15 = vld [vmem:[#allocation9 + $0x444] sm:$0xf]  ;;  %v5079_v21 = vor.u32 %v6016_v12, %v5076_v13  ;;  %v5028_v47 = vld [vmem:[#allocation9 + $0x530] sm:$0xf0]  ;;  %v5863_v12 = vld [vmem:[#allocation9 + $0xb4] sm:$0xf0] }
 0x106   :  { %v1139_v27 = vmul.f32 0.2, %v1054_v22  ;;  %v6052_v9 = vld [vmem:[#allocation9 + $0x6a4] sm:$0xf] }
 0x107   :  { %2841 = vmatpush.bf16.msra.mxu2 %v4647_v23  ;;  %v1066_v34 = vpop.f32.mrf.mxu2  ;;  %v6012_v23 = vld [vmem:[#allocation9 + $0x564] sm:$0xf] }
 0x108   :  { %2852 = vmatpush.bf16.msra.mxu3 %v4807_v16  ;;  %v1147_v33 = vmax.f32 %v1054_v22, %v1139_v27  ;;  %v1067_v36 = vadd.f32 %v1066_v34, %v276_v24  ;;  %v4916_v16 = vld [vmem:[#allocation9 + $0x450] sm:$0xf0]  ;;  %v6008_v34 = vld [vmem:[#allocation9 + $0x544] sm:$0xf] }
 0x109   :  { %v1079_v37 = vpop.f32.mrf.mxu3  ;;  %v1042_v39 = vpop.f32.mrf.mxu0  ;;  %v4919_v22 = vor.u32 %v5976_v15, %v4916_v16  ;;  %v5060_v24 = vld [vmem:[#allocation9 + $0x570] sm:$0xf0]  ;;  %v5015_v15 = vor.u32 %v6000_v0, %v5012_v1 }
 0x10a   :  { %v6514_v41 = vpack.c.bf16 %v1147_v33, %v1147_v33  ;;  %v1080_v45 = vadd.f32 %v1079_v37, %v1067_v36  ;;  %v4900_v27 = vld [vmem:[#allocation9 + $0x430] sm:$0xf0]  ;;  %v5968_v36 = vld [vmem:[#allocation9 + $0x404] sm:$0xf] }
 0x10b   :  { %v1055_v43 = vpop.f32.mrf.mxu1  ;;  %2842 = vmatpush.bf16.msra.mxu2 %v4631_v35  ;;  %v4903_v33 = vor.u32 %v5972_v26, %v4900_v27  ;;  %v5044_v35 = vld [vmem:[#allocation9 + $0x550] sm:$0xf0] }
 0x10c   :  { %2853 = vmatpush.bf16.msra.mxu3 %v4791_v30  ;;  %2765 = vmatmul.bf16.vlgmr.msrb.gmra.mxu0 %v6514_v41  ;;  %v1140_v48 = vmul.f32 0.2, %v1080_v45  ;;  %v5063_v30 = vor.u32 %v6012_v23, %v5060_v24  ;;  %v4884_v37 = vld [vmem:[#allocation9 + $0x410] sm:$0xf0]  ;;  %v5047_v43 = vor.u32 %v6008_v34, %v5044_v35 }
 0x10d   :  { %2861 = vmatpush.bf16.msrb.mxu0 %v4999_v38  ;;  %v6060_v38 = vld [vmem:[#allocation9 + $0x6e4] sm:$0xf]  ;;  %v5252_v39 = vld [vmem:[#allocation9 + $0x6f0] sm:$0xf0]  ;;  %v4887_v51 = vor.u32 %v5968_v36, %v4884_v37 }
 0x10e   :  { %v1148_v57 = vmax.f32 %v1080_v45, %v1140_v48  ;;  %v5255_v52 = vor.u32 %v6060_v38, %v5252_v39  ;;  %v5364_v23 = vld [vmem:[#allocation9 + $0x7d0] sm:$0xf0]  ;;  %v6084_v36 = vld [vmem:[#allocation9 + $0x7a4] sm:$0xf] }
 0x10f   :  { %v1068_v60 = vpop.f32.mrf.mxu2  ;;  %v5348_v39 = vld [vmem:[#allocation9 + $0x7b0] sm:$0xf0] }
 0x110   :  { %2854 = vmatpush.bf16.msra.mxu3 %v4775_v46  ;;  %v6517_v61 = vpack.c.bf16 %v1148_v57, %v1148_v57  ;;  %v6004_v46 = vld [vmem:[#allocation9 + $0x524] sm:$0xf]  ;;  %v5867_v60 = vld [vmem:[#allocation9 + $0xd4] sm:$0xf0]  ;;  %v5316_v1 = vld [vmem:[#allocation9 + $0x770] sm:$0xf0] }
 0x111   :  { %2862 = vmatpush.bf16.msrb.mxu0 %v4983_v49  ;;  %v1081_v63 = vpop.f32.mrf.mxu3 }
 0x112   :  { %2778 = vmatmul.bf16.vlgmr.msrb.gmra.mxu1 %v6517_v61  ;;  %v5031_v63 = vor.u32 %v6004_v46, %v5028_v47  ;;  %v6080_v47 = vld [vmem:[#allocation9 + $0x784] sm:$0xf] }
 0x113   :  { %2874 = vmatpush.bf16.msrb.mxu1 %v5127_v59  ;;  %v4474_v59 = vld [vmem:[#allocation9 + $0xc8] sm:$0xf] }
 0x114   :  { %2855 = vmatpush.bf16.msra.mxu3 %v4759_v58  ;;  %v5236_v58 = vld [vmem:[#allocation9 + $0x6d0] sm:$0xf0]  ;;  %v4475_v7 = vor.u32 %v5867_v60, %v4474_v59 }
 0x115   :  { %2863 = vmatpush.bf16.msrb.mxu0 %v4967_v62  ;;  %v5239_v6 = vor.u32 %v6056_v55, %v5236_v58  ;;  %v4410_v55 = vld [vmem:[#allocation9 + $0x48] sm:$0xf]  ;;  %v6040_v58 = vld [vmem:[#allocation9 + $0x644] sm:$0xf]  ;;  %v5172_v59 = vld [vmem:[#allocation9 + $0x650] sm:$0xf0] }
 0x117   :  { %2875 = vmatpush.bf16.msrb.mxu1 %v5111_v4  ;;  %v4618_v4 = vld [vmem:[#allocation9 + $0x1e8] sm:$0xf] }
 0x119   :  { %2864 = vmatpush.bf16.msrb.mxu0 %v4951_v5 }
 0x11b   :  { %2876 = vmatpush.bf16.msrb.mxu1 %v5095_v10  ;;  %v5220_v10 = vld [vmem:[#allocation9 + $0x6b0] sm:$0xf0] }
 0x11c   :  { %2817 = vmatmul.bf16.vlgmr.msra.gmra.mxu0 %v6498_v53  ;;  %v5223_v26 = vor.u32 %v6052_v9, %v5220_v10 }
 0x11d   :  { %2865 = vmatpush.bf16.msrb.mxu0 %v4935_v11  ;;  %v4458_v11 = vld [vmem:[#allocation9 + $0xa8] sm:$0xf] }
 0x11e   :  { %v4459_v27 = vor.u32 %v5863_v12, %v4458_v11  ;;  %v6072_v11 = vld [vmem:[#allocation9 + $0x744] sm:$0xf] }
 0x11f   :  { %2877 = vmatpush.bf16.msrb.mxu1 %v5079_v21  ;;  %v4619_v21 = vor.u32 %v5903_v8, %v4618_v4  ;;  %v5175_v4 = vor.u32 %v6040_v58, %v5172_v59  ;;  %v5156_v8 = vld [vmem:[#allocation9 + $0x630] sm:$0xf0]  ;;  %v4970_v58 = vld [vmem:[#allocation9 + $0x4a8] sm:$0xf]  ;;  %v5991_v59 = vld [vmem:[#allocation9 + $0x4b4] sm:$0xf0] }
 0x121   :  { %v1092_v25 = vpop.f32.mrf.mxu0  ;;  %2866 = vmatpush.bf16.msrb.mxu0 %v4919_v22  ;;  %v6088_v22 = vld [vmem:[#allocation9 + $0x7c4] sm:$0xf] }
 0x122   :  { %v1093_v28 = vadd.f32 %v1092_v25, %v277_v19  ;;  %2830 = vmatmul.bf16.vlgmr.msra.gmra.mxu1 %v6501_v20  ;;  %v5383_v19 = vor.u32 %v6092_v2, %v5380_v3  ;;  %v5367_v34 = vor.u32 %v6088_v22, %v5364_v23  ;;  %v4554_v2 = vld [vmem:[#allocation9 + $0x168] sm:$0xf]  ;;  %v5887_v3 = vld [vmem:[#allocation9 + $0x174] sm:$0xf0] }
 0x123   :  { %v1105_v29 = vpop.f32.mrf.mxu1  ;;  %2878 = vmatpush.bf16.msrb.mxu1 %v5063_v30  ;;  %v6048_v30 = vld [vmem:[#allocation9 + $0x684] sm:$0xf]  ;;  %v4555_v10 = vor.u32 %v5887_v3, %v4554_v2  ;;  %v4378_v22 = vld [vmem:[#allocation9 + $0x8] sm:$0xf]  ;;  %v5843_v23 = vld [vmem:[#allocation9 + $0x14] sm:$0xf0] }
 0x124   :  { %v1106_v32 = vadd.f32 %v1105_v29, %v1093_v28  ;;  %v4602_v28 = vld [vmem:[#allocation9 + $0x1c8] sm:$0xf]  ;;  %v5899_v29 = vld [vmem:[#allocation9 + $0x1d4] sm:$0xf0] }
 0x125   :  { %2867 = vmatpush.bf16.msrb.mxu0 %v4903_v33  ;;  %v5859_v33 = vld [vmem:[#allocation9 + $0x94] sm:$0xf0]  ;;  %v4603_v35 = vor.u32 %v5899_v29, %v4602_v28  ;;  %v4858_v3 = vld [vmem:[#allocation9 + $0x3c8] sm:$0xf] }
 0x126   :  { %v1141_v40 = vmul.f32 0.2, %v1106_v32 }
 0x127   :  { %v1118_v45 = vpop.f32.mrf.mxu2  ;;  %2879 = vmatpush.bf16.msrb.mxu1 %v5047_v43  ;;  %v5855_v43 = vld [vmem:[#allocation9 + $0x74] sm:$0xf0] }
 0x128   :  { %v1149_v18 = vmax.f32 %v1106_v32, %v1141_v40  ;;  %v1119_v48 = vadd.f32 %v1118_v45, %v278_v31  ;;  %v5204_v31 = vld [vmem:[#allocation9 + $0x690] sm:$0xf0]  ;;  %v4442_v32 = vld [vmem:[#allocation9 + $0x88] sm:$0xf] }
 0x129   :  { %v1131_v49 = vpop.f32.mrf.mxu3  ;;  %v1094_v50 = vpop.f32.mrf.mxu0  ;;  %2868 = vmatpush.bf16.msrb.mxu0 %v4887_v51  ;;  %v5207_v37 = vor.u32 %v6048_v30, %v5204_v31  ;;  %v4443_v38 = vor.u32 %v5859_v33, %v4442_v32  ;;  %v4586_v40 = vld [vmem:[#allocation9 + $0x1a8] sm:$0xf]  ;;  %v5188_v45 = vld [vmem:[#allocation9 + $0x670] sm:$0xf0]  ;;  %v5351_v51 = vor.u32 %v6084_v36, %v5348_v39  ;;  %v5935_v31 = vld [vmem:[#allocation9 + $0x2f4] sm:$0xf0]  ;;  %v4379_v33 = vor.u32 %v5843_v23, %v4378_v22 }
 0x12a   :  { %v6524_v56 = vpack.c.bf16 %v1149_v18, %v1149_v18  ;;  %v1132_v62 = vadd.f32 %v1131_v49, %v1119_v48  ;;  %v6044_v18 = vld [vmem:[#allocation9 + $0x664] sm:$0xf]  ;;  %v4587_v46 = vor.u32 %v5895_v42, %v4586_v40  ;;  %v4427_v48 = vor.u32 %v5855_v43, %v4426_v17  ;;  %v5332_v49 = vld [vmem:[#allocation9 + $0x790] sm:$0xf0]  ;;  %v4570_v50 = vld [vmem:[#allocation9 + $0x188] sm:$0xf] }
 0x12b   :  { %v1107_v57 = vpop.f32.mrf.mxu1  ;;  %2880 = vmatpush.bf16.msrb.mxu1 %v5031_v63  ;;  %v5335_v60 = vor.u32 %v6080_v47, %v5332_v49  ;;  %v6076_v63 = vld [vmem:[#allocation9 + $0x764] sm:$0xf]  ;;  %v4746_v30 = vld [vmem:[#allocation9 + $0x2e8] sm:$0xf]  ;;  %v5879_v36 = vld [vmem:[#allocation9 + $0x134] sm:$0xf0] }
 0x12c   :  { %2791 = vmatmul.bf16.vlgmr.msrb.gmra.mxu2 %v6524_v56  ;;  %v1142_v5 = vmul.f32 0.2, %v1132_v62  ;;  %2869 = vmatmul.bf16.vlgmr.msrb.gmra.mxu0 %v6514_v41  ;;  %v5851_v57 = vld [vmem:[#allocation9 + $0x54] sm:$0xf0]  ;;  %v5319_v9 = vor.u32 %v6076_v63, %v5316_v1  ;;  %v6068_v32 = vld [vmem:[#allocation9 + $0x724] sm:$0xf]  ;;  %v4747_v39 = vor.u32 %v5935_v31, %v4746_v30 }
 0x12d   :  { %2887 = vmatpush.bf16.msrb.mxu2 %v5255_v52  ;;  %2913 = vmatpush.bf16.msra.mxu0 %v4491_v54  ;;  %v5891_v52 = vld [vmem:[#allocation9 + $0x194] sm:$0xf0]  ;;  %v5191_v54 = vor.u32 %v6044_v18, %v5188_v45  ;;  %v4411_v0 = vor.u32 %v5851_v57, %v4410_v55  ;;  %v4730_v40 = vld [vmem:[#allocation9 + $0x2c8] sm:$0xf] }
 0x12e   :  { %v1150_v13 = vmax.f32 %v1132_v62, %v1142_v5  ;;  %v4571_v62 = vor.u32 %v5891_v52, %v4570_v50  ;;  %v4394_v5 = vld [vmem:[#allocation9 + $0x28] sm:$0xf]  ;;  %v5995_v17 = vld [vmem:[#allocation9 + $0x4d4] sm:$0xf0] }
 0x12f   :  { %v1120_v16 = vpop.f32.mrf.mxu2  ;;  %2881 = vmatpush.bf16.msrb.mxu1 %v5015_v15  ;;  %v4538_v15 = vld [vmem:[#allocation9 + $0x148] sm:$0xf]  ;;  %v5931_v45 = vld [vmem:[#allocation9 + $0x2d4] sm:$0xf0] }
 0x130   :  { %v6528_v24 = vpack.c.bf16 %v1150_v13, %v1150_v13  ;;  %v5300_v13 = vld [vmem:[#allocation9 + $0x750] sm:$0xf0]  ;;  %v5883_v16 = vld [vmem:[#allocation9 + $0x154] sm:$0xf0]  ;;  %v4986_v42 = vld [vmem:[#allocation9 + $0x4c8] sm:$0xf]  ;;  %v4731_v57 = vor.u32 %v5931_v45, %v4730_v40 }
 0x131   :  { %v1133_v25 = vpop.f32.mrf.mxu3  ;;  %2888 = vmatpush.bf16.msrb.mxu2 %v5239_v6  ;;  %2914 = vmatpush.bf16.msra.mxu0 %v4475_v7  ;;  %v5847_v6 = vld [vmem:[#allocation9 + $0x34] sm:$0xf0]  ;;  %v6036_v7 = vld [vmem:[#allocation9 + $0x624] sm:$0xf]  ;;  %v5303_v28 = vor.u32 %v6072_v11, %v5300_v13  ;;  %v4539_v29 = vor.u32 %v5883_v16, %v4538_v15  ;;  %v4506_v47 = vld [vmem:[#allocation9 + $0x108] sm:$0xf]  ;;  %v4987_v50 = vor.u32 %v5995_v17, %v4986_v42 }
 0x132   :  { %2804 = vmatmul.bf16.vlgmr.msrb.gmra.mxu3 %v6528_v24  ;;  %2882 = vmatmul.bf16.vlgmr.msrb.gmra.mxu1 %v6517_v61  ;;  %v4395_v12 = vor.u32 %v5847_v6, %v4394_v5  ;;  %v5140_v25 = vld [vmem:[#allocation9 + $0x610] sm:$0xf0]  ;;  %v4874_v49 = vld [vmem:[#allocation9 + $0x3e8] sm:$0xf]  ;;  %v5967_v52 = vld [vmem:[#allocation9 + $0x3f4] sm:$0xf0] }
 0x133   :  { %2900 = vmatpush.bf16.msrb.mxu3 %v5383_v19  ;;  %2926 = vmatpush.bf16.msra.mxu1 %v4619_v21  ;;  %v5159_v19 = vor.u32 %v6036_v7, %v5156_v8  ;;  %v6032_v21 = vld [vmem:[#allocation9 + $0x604] sm:$0xf]  ;;  %v6031_v55 = vld [vmem:[#allocation9 + $0x5f4] sm:$0xf0]  ;;  %v4714_v63 = vld [vmem:[#allocation9 + $0x2a8] sm:$0xf]  ;;  %v4875_v1 = vor.u32 %v5967_v52, %v4874_v49 }
 0x134   :  { %v5963_v5 = vld [vmem:[#allocation9 + $0x3d4] sm:$0xf0]  ;;  %v5114_v6 = vld [vmem:[#allocation9 + $0x5c8] sm:$0xf] }
 0x135   :  { %2889 = vmatpush.bf16.msrb.mxu2 %v5223_v26  ;;  %2915 = vmatpush.bf16.msra.mxu0 %v4459_v27  ;;  %v5002_v26 = vld [vmem:[#allocation9 + $0x4e8] sm:$0xf]  ;;  %v5999_v27 = vld [vmem:[#allocation9 + $0x4f4] sm:$0xf0]  ;;  %v4859_v13 = vor.u32 %v5963_v5, %v4858_v3 }
 0x136   :  { %v6027_v7 = vld [vmem:[#allocation9 + $0x5d4] sm:$0xf0]  ;;  %v4698_v11 = vld [vmem:[#allocation9 + $0x288] sm:$0xf] }
 0x137   :  { %2901 = vmatpush.bf16.msrb.mxu3 %v5367_v34  ;;  %2927 = vmatpush.bf16.msra.mxu1 %v4603_v35  ;;  %v5284_v34 = vld [vmem:[#allocation9 + $0x730] sm:$0xf0]  ;;  %v4522_v35 = vld [vmem:[#allocation9 + $0x128] sm:$0xf]  ;;  %v5115_v15 = vor.u32 %v6027_v7, %v5114_v6  ;;  %v6023_v23 = vld [vmem:[#allocation9 + $0x5b4] sm:$0xf0] }
 0x138   :  { %v5287_v43 = vor.u32 %v6068_v32, %v5284_v34  ;;  %v4523_v18 = vor.u32 %v5879_v36, %v4522_v35  ;;  %v4842_v16 = vld [vmem:[#allocation9 + $0x3a8] sm:$0xf]  ;;  %v5955_v35 = vld [vmem:[#allocation9 + $0x394] sm:$0xf0] }
 0x139   :  { %2890 = vmatpush.bf16.msrb.mxu2 %v5207_v37  ;;  %2916 = vmatpush.bf16.msra.mxu0 %v4443_v38  ;;  %v5143_v37 = vor.u32 %v6032_v21, %v5140_v25  ;;  %v5003_v38 = vor.u32 %v5999_v27, %v5002_v26  ;;  %v5959_v21 = vld [vmem:[#allocation9 + $0x3b4] sm:$0xf0]  ;;  %v5098_v22 = vld [vmem:[#allocation9 + $0x5a8] sm:$0xf] }
 0x13a   :  { %v4938_v26 = vld [vmem:[#allocation9 + $0x468] sm:$0xf]  ;;  %v5983_v27 = vld [vmem:[#allocation9 + $0x474] sm:$0xf0]  ;;  %v4843_v30 = vor.u32 %v5959_v21, %v4842_v16  ;;  %v5099_v31 = vor.u32 %v6023_v23, %v5098_v22 }
 0x13b   :  { %2902 = vmatpush.bf16.msrb.mxu3 %v5351_v51  ;;  %2928 = vmatpush.bf16.msra.mxu1 %v4587_v46  ;;  %v6064_v51 = vld [vmem:[#allocation9 + $0x704] sm:$0xf]  ;;  %v5268_v46 = vld [vmem:[#allocation9 + $0x710] sm:$0xf0]  ;;  %v4826_v32 = vld [vmem:[#allocation9 + $0x388] sm:$0xf]  ;;  %v4939_v34 = vor.u32 %v5983_v27, %v4938_v26 }
 0x13c   :  { %2843 = vmatmul.bf16.vlgmr.msra.gmra.mxu2 %v6506_v14  ;;  %v5082_v36 = vld [vmem:[#allocation9 + $0x588] sm:$0xf]  ;;  %v5979_v40 = vld [vmem:[#allocation9 + $0x454] sm:$0xf0]  ;;  %v4827_v45 = vor.u32 %v5955_v35, %v4826_v32  ;;  %v5865_v32 = vld [vmem:[#allocation9 + $0xcc] sm:$0xf] }
 0x13d   :  { %2917 = vmatpush.bf16.msra.mxu0 %v4427_v48  ;;  %2891 = vmatpush.bf16.msrb.mxu2 %v5191_v54  ;;  %v5875_v48 = vld [vmem:[#allocation9 + $0x114] sm:$0xf0]  ;;  %v5130_v54 = vld [vmem:[#allocation9 + $0x5e8] sm:$0xf] }
 0x13e   :  { %v5131_v2 = vor.u32 %v6031_v55, %v5130_v54  ;;  %v4666_v42 = vld [vmem:[#allocation9 + $0x248] sm:$0xf]  ;;  %v5915_v17 = vld [vmem:[#allocation9 + $0x254] sm:$0xf0] }
 0x13f   :  { %2903 = vmatpush.bf16.msrb.mxu3 %v5335_v60  ;;  %2929 = vmatpush.bf16.msra.mxu1 %v4571_v62  ;;  %v5271_v60 = vor.u32 %v6064_v51, %v5268_v46  ;;  %v4507_v62 = vor.u32 %v5875_v48, %v4506_v47  ;;  %v4810_v46 = vld [vmem:[#allocation9 + $0x368] sm:$0xf]  ;;  %v5951_v48 = vld [vmem:[#allocation9 + $0x374] sm:$0xf0]  ;;  %v4667_v52 = vor.u32 %v5915_v17, %v4666_v42 }
 0x140   :  { %v5066_v49 = vld [vmem:[#allocation9 + $0x568] sm:$0xf]  ;;  %v5975_v55 = vld [vmem:[#allocation9 + $0x434] sm:$0xf0] }
 0x141   :  { %2918 = vmatpush.bf16.msra.mxu0 %v4411_v0  ;;  %2892 = vmatpush.bf16.msrb.mxu2 %v5175_v4  ;;  %v5927_v0 = vld [vmem:[#allocation9 + $0x2b4] sm:$0xf0]  ;;  %v4971_v4 = vor.u32 %v5991_v59, %v4970_v58  ;;  %v4906_v54 = vld [vmem:[#allocation9 + $0x428] sm:$0xf] }
 0x142   :  { %2856 = vmatmul.bf16.vlgmr.msra.gmra.mxu3 %v6509_v44  ;;  %v4715_v8 = vor.u32 %v5927_v0, %v4714_v63  ;;  %v5911_v58 = vld [vmem:[#allocation9 + $0x234] sm:$0xf0]  ;;  %v4794_v63 = vld [vmem:[#allocation9 + $0x348] sm:$0xf]  ;;  %v4907_v0 = vor.u32 %v5975_v55, %v4906_v54 }
 0x143   :  { %2904 = vmatpush.bf16.msrb.mxu3 %v5319_v9  ;;  %2930 = vmatpush.bf16.msra.mxu1 %v4555_v10  ;;  %v4954_v9 = vld [vmem:[#allocation9 + $0x488] sm:$0xf]  ;;  %v5987_v10 = vld [vmem:[#allocation9 + $0x494] sm:$0xf0] }
 0x144   :  { %v6011_v3 = vld [vmem:[#allocation9 + $0x554] sm:$0xf0]  ;;  %v4634_v5 = vld [vmem:[#allocation9 + $0x208] sm:$0xf] }
 0x145   :  { %2919 = vmatpush.bf16.msra.mxu0 %v4395_v12  ;;  %2893 = vmatpush.bf16.msrb.mxu2 %v5159_v19  ;;  %v5923_v12 = vld [vmem:[#allocation9 + $0x294] sm:$0xf0]  ;;  %v4955_v19 = vor.u32 %v5987_v10, %v4954_v9  ;;  %v4890_v6 = vld [vmem:[#allocation9 + $0x408] sm:$0xf]  ;;  %v5869_v10 = vld [vmem:[#allocation9 + $0xec] sm:$0xf] }
 0x146   :  { %v4699_v25 = vor.u32 %v5923_v12, %v4698_v11  ;;  %v5971_v7 = vld [vmem:[#allocation9 + $0x414] sm:$0xf0]  ;;  %v4492_v11 = vld [vmem:[#allocation9 + $0xf8] sm:$0xf0]  ;;  %v4778_v22 = vld [vmem:[#allocation9 + $0x328] sm:$0xf] }
 0x147   :  { %2905 = vmatpush.bf16.msrb.mxu3 %v5303_v28  ;;  %2931 = vmatpush.bf16.msra.mxu1 %v4539_v29  ;;  %v4682_v28 = vld [vmem:[#allocation9 + $0x268] sm:$0xf]  ;;  %v5919_v29 = vld [vmem:[#allocation9 + $0x274] sm:$0xf0]  ;;  %v4891_v23 = vor.u32 %v5971_v7, %v4890_v6 }
 0x148   :  { %v5907_v9 = vld [vmem:[#allocation9 + $0x214] sm:$0xf0]  ;;  %v5034_v26 = vld [vmem:[#allocation9 + $0x528] sm:$0xf] }
 0x149   :  { %2920 = vmatpush.bf16.msra.mxu0 %v4379_v33  ;;  %2894 = vmatpush.bf16.msrb.mxu2 %v5143_v37  ;;  %v1415_v33 = vld [vmem:[%s6622_s4] sm:$0xf]  ;;  %v6019_v37 = vld [vmem:[#allocation9 + $0x594] sm:$0xf0] }
 0x14a   :  { %v5083_v51 = vor.u32 %v6019_v37, %v5082_v36  ;;  %v6063_v21 = vld [vmem:[#allocation9 + $0x6f4] sm:$0xf0]  ;;  %v4762_v37 = vld [vmem:[#allocation9 + $0x308] sm:$0xf] }
 0x14b   :  { %2906 = vmatpush.bf16.msrb.mxu3 %v5287_v43  ;;  %2932 = vmatpush.bf16.msra.mxu1 %v4523_v18  ;;  %v1417_v43 = vperm.slane %v1415_v33, 0  ;;  %v6007_v27 = vld [vmem:[#allocation9 + $0x534] sm:$0xf0]  ;;  %v4476_v33 = vld [vmem:[#allocation9 + $0xd8] sm:$0xf0] }
 0x14c   :  { %2921 = vmatmul.bf16.vlgmr.msra.gmra.mxu0 %v6498_v53  ;;  %2895 = vmatmul.bf16.vlgmr.msrb.gmra.mxu2 %v6524_v56  ;;  %v5035_v35 = vor.u32 %v6007_v27, %v5034_v26  ;;  %v6059_v36 = vld [vmem:[#allocation9 + $0x6d4] sm:$0xf0]  ;;  %v5386_v42 = vld [vmem:[#allocation9 + $0x7e8] sm:$0xf]  ;;  %v4479_v17 = vor.u32 %v5865_v32, %v4476_v33  ;;  %v4412_v32 = vld [vmem:[#allocation9 + $0x58] sm:$0xf0] }
 0x14d   :  { %2965 = vmatpush.bf16.msrb.mxu0 %v5003_v38  ;;  %2939 = vmatpush.bf16.msra.mxu2 %v4747_v39  ;;  %v4683_v38 = vor.u32 %v5919_v29, %v4682_v28  ;;  %v4922_v39 = vld [vmem:[#allocation9 + $0x448] sm:$0xf]  ;;  %v4635_v28 = vor.u32 %v5907_v9, %v4634_v5  ;;  %v4495_v29 = vor.u32 %v5869_v10, %v4492_v11  ;;  %v6051_v6 = vld [vmem:[#allocation9 + $0x694] sm:$0xf0]  ;;  %v5893_v10 = vld [vmem:[#allocation9 + $0x1ac] sm:$0xf] }
 0x14e   :  { %v4923_v47 = vor.u32 %v5979_v40, %v4922_v39  ;;  %v5018_v39 = vld [vmem:[#allocation9 + $0x508] sm:$0xf]  ;;  %v6003_v40 = vld [vmem:[#allocation9 + $0x514] sm:$0xf0]  ;;  %v4588_v11 = vld [vmem:[#allocation9 + $0x1b8] sm:$0xf0] }
 0x14f   :  { %2907 = vmatpush.bf16.msrb.mxu3 %v5271_v60  ;;  %2933 = vmatpush.bf16.msra.mxu1 %v4507_v62  ;;  %v2714_v18 = vpop.f32.mrf.mxu0  ;;  %v4811_v60 = vor.u32 %v5951_v48, %v4810_v46  ;;  %v4460_v48 = vld [vmem:[#allocation9 + $0xb8] sm:$0xf0]  ;;  %v5226_v55 = vld [vmem:[#allocation9 + $0x6a8] sm:$0xf]  ;;  %v6087_v9 = vld [vmem:[#allocation9 + $0x7b4] sm:$0xf0] }
 0x150   :  { %v2715_v59 = vadd.f32 %v2714_v18, %v1417_v43  ;;  %v6095_v43 = vld [vmem:[#allocation9 + $0x7f4] sm:$0xf0]  ;;  %v5901_v18 = vld [vmem:[#allocation9 + $0x1ec] sm:$0xf]  ;;  %v5210_v5 = vld [vmem:[#allocation9 + $0x688] sm:$0xf] }
 0x151   :  { %2966 = vmatpush.bf16.msrb.mxu0 %v4987_v50  ;;  %2940 = vmatpush.bf16.msra.mxu2 %v4731_v57  ;;  %v6015_v50 = vld [vmem:[#allocation9 + $0x574] sm:$0xf0]  ;;  %v4650_v57 = vld [vmem:[#allocation9 + $0x228] sm:$0xf] }
 0x152   :  { %2934 = vmatmul.bf16.vlgmr.msra.gmra.mxu1 %v6501_v20  ;;  %2908 = vmatmul.bf16.vlgmr.msrb.gmra.mxu3 %v6528_v24  ;;  %v5067_v62 = vor.u32 %v6015_v50, %v5066_v49  ;;  %v5019_v50 = vor.u32 %v6003_v40, %v5018_v39  ;;  %v5354_v7 = vld [vmem:[#allocation9 + $0x7a8] sm:$0xf]  ;;  %v6083_v27 = vld [vmem:[#allocation9 + $0x794] sm:$0xf0] }
 0x153   :  { %2952 = vmatpush.bf16.msra.mxu3 %v4875_v1  ;;  %2978 = vmatpush.bf16.msrb.mxu1 %v5131_v2  ;;  %v5947_v1 = vld [vmem:[#allocation9 + $0x354] sm:$0xf0]  ;;  %v5050_v2 = vld [vmem:[#allocation9 + $0x548] sm:$0xf] }
 0x154   :  { %v5051_v16 = vor.u32 %v6011_v3, %v5050_v2  ;;  %v6079_v40 = vld [vmem:[#allocation9 + $0x774] sm:$0xf0] }
 0x155   :  { %2967 = vmatpush.bf16.msrb.mxu0 %v4971_v4  ;;  %2941 = vmatpush.bf16.msra.mxu2 %v4715_v8  ;;  %v4651_v4 = vor.u32 %v5911_v58, %v4650_v57  ;;  %v6055_v57 = vld [vmem:[#allocation9 + $0x6b4] sm:$0xf0]  ;;  %v5370_v58 = vld [vmem:[#allocation9 + $0x7c8] sm:$0xf] }
 0x156   :  { %v5227_v2 = vor.u32 %v6055_v57, %v5226_v55  ;;  %v5881_v55 = vld [vmem:[#allocation9 + $0x14c] sm:$0xf]  ;;  %v4540_v57 = vld [vmem:[#allocation9 + $0x158] sm:$0xf0] }
 0x157   :  { %2953 = vmatpush.bf16.msra.mxu3 %v4859_v13  ;;  %2979 = vmatpush.bf16.msrb.mxu1 %v5115_v15  ;;  %v2716_v13 = vpop.f32.mrf.mxu0  ;;  %v4795_v15 = vor.u32 %v5947_v1, %v4794_v63  ;;  %v4604_v63 = vld [vmem:[#allocation9 + $0x1d8] sm:$0xf0] }
 0x158   :  { %v4444_v1 = vld [vmem:[#allocation9 + $0x98] sm:$0xf0]  ;;  %v5853_v13 = vld [vmem:[#allocation9 + $0x6c] sm:$0xf] }
 0x159   :  { %2968 = vmatpush.bf16.msrb.mxu0 %v4955_v19  ;;  %2942 = vmatpush.bf16.msra.mxu2 %v4699_v25  ;;  %v5258_v19 = vld [vmem:[#allocation9 + $0x6e8] sm:$0xf]  ;;  %v5943_v25 = vld [vmem:[#allocation9 + $0x334] sm:$0xf0] }
 0x15a   :  { %v2727_v8 = vpop.f32.mrf.mxu1 }
 0x15b   :  { %2954 = vmatpush.bf16.msra.mxu3 %v4843_v30  ;;  %2980 = vmatpush.bf16.msrb.mxu1 %v5099_v31  ;;  %v6541_v12 = vadd.f32 %v2727_v8, %v2715_v59  ;;  %v5259_v30 = vor.u32 %v6063_v21, %v5258_v19  ;;  %v5242_v31 = vld [vmem:[#allocation9 + $0x6c8] sm:$0xf]  ;;  %v5355_v19 = vor.u32 %v6087_v9, %v5354_v7  ;;  %v4748_v7 = vld [vmem:[#allocation9 + $0x2f8] sm:$0xf0]  ;;  %v6071_v9 = vld [vmem:[#allocation9 + $0x734] sm:$0xf0] }
 0x15c   :  { %v5243_v46 = vor.u32 %v6059_v36, %v5242_v31  ;;  %v4591_v21 = vor.u32 %v5893_v10, %v4588_v11  ;;  %v5849_v31 = vld [vmem:[#allocation9 + $0x4c] sm:$0xf]  ;;  %v5178_v36 = vld [vmem:[#allocation9 + $0x648] sm:$0xf] }
 0x15d   :  { %2969 = vmatpush.bf16.msrb.mxu0 %v4939_v34  ;;  %2943 = vmatpush.bf16.msra.mxu2 %v4683_v38  ;;  %v4779_v34 = vor.u32 %v5943_v25, %v4778_v22  ;;  %v5939_v38 = vld [vmem:[#allocation9 + $0x314] sm:$0xf0]  ;;  %v5194_v22 = vld [vmem:[#allocation9 + $0x668] sm:$0xf]  ;;  %v4415_v39 = vor.u32 %v5849_v31, %v4412_v32  ;;  %v5877_v11 = vld [vmem:[#allocation9 + $0x12c] sm:$0xf] }
 0x15e   :  { %v4763_v49 = vor.u32 %v5939_v38, %v4762_v37  ;;  %v5338_v25 = vld [vmem:[#allocation9 + $0x788] sm:$0xf]  ;;  %v6043_v37 = vld [vmem:[#allocation9 + $0x654] sm:$0xf0]  ;;  %v4508_v31 = vld [vmem:[#allocation9 + $0x118] sm:$0xf0] }
 0x15f   :  { %2955 = vmatpush.bf16.msra.mxu3 %v4827_v45  ;;  %2981 = vmatpush.bf16.msrb.mxu1 %v5083_v51  ;;  %v4620_v45 = vld [vmem:[#allocation9 + $0x1f8] sm:$0xf0]  ;;  %v5322_v38 = vld [vmem:[#allocation9 + $0x768] sm:$0xf] }
 0x160   :  { %v4623_v54 = vor.u32 %v5901_v18, %v4620_v45  ;;  %v4396_v18 = vld [vmem:[#allocation9 + $0x38] sm:$0xf0]  ;;  %v5179_v45 = vor.u32 %v6043_v37, %v5178_v36  ;;  %v6029_v36 = vld [vmem:[#allocation9 + $0x5ec] sm:$0xf] }
 0x161   :  { %2970 = vmatpush.bf16.msrb.mxu0 %v4923_v47  ;;  %2944 = vmatpush.bf16.msra.mxu2 %v4667_v52  ;;  %v5861_v47 = vld [vmem:[#allocation9 + $0xac] sm:$0xf]  ;;  %v5387_v52 = vor.u32 %v6095_v43, %v5386_v42  ;;  %v5132_v37 = vld [vmem:[#allocation9 + $0x5f8] sm:$0xf0] }
 0x162   :  { %v2729_v51 = vpop.f32.mrf.mxu1  ;;  %v4463_v59 = vor.u32 %v5861_v47, %v4460_v48  ;;  %v5885_v42 = vld [vmem:[#allocation9 + $0x16c] sm:$0xf]  ;;  %v5162_v47 = vld [vmem:[#allocation9 + $0x628] sm:$0xf]  ;;  %v6039_v48 = vld [vmem:[#allocation9 + $0x634] sm:$0xf0] }
 0x163   :  { %2956 = vmatpush.bf16.msra.mxu3 %v4811_v60  ;;  %2982 = vmatpush.bf16.msrb.mxu1 %v5067_v62  ;;  %v6091_v60 = vld [vmem:[#allocation9 + $0x7d4] sm:$0xf0]  ;;  %v5897_v62 = vld [vmem:[#allocation9 + $0x1cc] sm:$0xf]  ;;  %v5323_v51 = vor.u32 %v6079_v40, %v5322_v38 }
 0x164   :  { %v5371_v3 = vor.u32 %v6091_v60, %v5370_v58  ;;  %v5845_v43 = vld [vmem:[#allocation9 + $0x2c] sm:$0xf] }
 0x165   :  { %2971 = vmatpush.bf16.msrb.mxu0 %v4907_v0  ;;  %2945 = vmatpush.bf16.msra.mxu2 %v4651_v4  ;;  %v5857_v0 = vld [vmem:[#allocation9 + $0x8c] sm:$0xf]  ;;  %v4607_v4 = vor.u32 %v5897_v62, %v4604_v63  ;;  %v5163_v62 = vor.u32 %v6039_v48, %v5162_v47  ;;  %v4860_v48 = vld [vmem:[#allocation9 + $0x3d8] sm:$0xf0] }
 0x166   :  { %v4447_v8 = vor.u32 %v5857_v0, %v4444_v1  ;;  %v5841_v58 = vld [vmem:[#allocation9 + $0xc] sm:$0xf]  ;;  %v5004_v0 = vld [vmem:[#allocation9 + $0x4f8] sm:$0xf0] }
 0x167   :  { %2957 = vmatpush.bf16.msra.mxu3 %v4795_v15  ;;  %2983 = vmatpush.bf16.msrb.mxu1 %v5051_v16  ;;  %v4428_v15 = vld [vmem:[#allocation9 + $0x78] sm:$0xf0]  ;;  %v5211_v16 = vor.u32 %v6051_v6, %v5210_v5  ;;  %v5997_v63 = vld [vmem:[#allocation9 + $0x4ec] sm:$0xf] }
 0x168   :  { %v4431_v26 = vor.u32 %v5853_v13, %v4428_v15  ;;  %v5933_v5 = vld [vmem:[#allocation9 + $0x2ec] sm:$0xf]  ;;  %v5007_v10 = vor.u32 %v5997_v63, %v5004_v0  ;;  %v4524_v13 = vld [vmem:[#allocation9 + $0x138] sm:$0xf0] }
 0x169   :  { %2972 = vmatpush.bf16.msrb.mxu0 %v4891_v23  ;;  %2946 = vmatpush.bf16.msra.mxu2 %v4635_v28  ;;  %v6047_v23 = vld [vmem:[#allocation9 + $0x674] sm:$0xf0]  ;;  %v5889_v28 = vld [vmem:[#allocation9 + $0x18c] sm:$0xf] }
 0x16a   :  { %v5195_v33 = vor.u32 %v6047_v23, %v5194_v22  ;;  %v5929_v23 = vld [vmem:[#allocation9 + $0x2cc] sm:$0xf] }
 0x16b   :  { %2958 = vmatpush.bf16.msra.mxu3 %v4779_v34  ;;  %2984 = vmatpush.bf16.msrb.mxu1 %v5035_v35  ;;  %v5339_v34 = vor.u32 %v6083_v27, %v5338_v25  ;;  %v4732_v25 = vld [vmem:[#allocation9 + $0x2d8] sm:$0xf0]  ;;  %v4527_v27 = vor.u32 %v5877_v11, %v4524_v13  ;;  %v5989_v38 = vld [vmem:[#allocation9 + $0x4ac] sm:$0xf] }
 0x16c   :  { %2947 = vmatmul.bf16.vlgmr.msra.gmra.mxu2 %v6506_v14  ;;  %2973 = vmatmul.bf16.vlgmr.msrb.gmra.mxu0 %v6514_v41  ;;  %v4735_v40 = vor.u32 %v5929_v23, %v4732_v25  ;;  %v5961_v47 = vld [vmem:[#allocation9 + $0x3cc] sm:$0xf] }
 0x16d   :  { %3017 = vmatpush.bf16.msra.mxu0 %v4495_v29  ;;  %2991 = vmatpush.bf16.msrb.mxu2 %v5259_v30  ;;  %v4572_v29 = vld [vmem:[#allocation9 + $0x198] sm:$0xf0]  ;;  %v5957_v0 = vld [vmem:[#allocation9 + $0x3ac] sm:$0xf] }
 0x16e   :  { %v4575_v35 = vor.u32 %v5889_v28, %v4572_v29  ;;  %v6067_v28 = vld [vmem:[#allocation9 + $0x714] sm:$0xf0]  ;;  %v5873_v29 = vld [vmem:[#allocation9 + $0x10c] sm:$0xf] }
 0x16f   :  { %2959 = vmatpush.bf16.msra.mxu3 %v4763_v49  ;;  %2985 = vmatpush.bf16.msrb.mxu1 %v5019_v50  ;;  %v6547_v30 = vpop.f32.mrf.mxu2  ;;  %v5306_v49 = vld [vmem:[#allocation9 + $0x748] sm:$0xf]  ;;  %v5953_v13 = vld [vmem:[#allocation9 + $0x38c] sm:$0xf] }
 0x171   :  { %3018 = vmatpush.bf16.msra.mxu0 %v4479_v17  ;;  %2992 = vmatpush.bf16.msrb.mxu2 %v5243_v46  ;;  %v4556_v17 = vld [vmem:[#allocation9 + $0x178] sm:$0xf0] }
 0x172   :  { %2960 = vmatmul.bf16.vlgmr.msra.gmra.mxu3 %v6509_v44  ;;  %2986 = vmatmul.bf16.vlgmr.msrb.gmra.mxu1 %v6517_v61  ;;  %v4559_v46 = vor.u32 %v5885_v42, %v4556_v17  ;;  %v4511_v17 = vor.u32 %v5873_v29, %v4508_v31 }
 0x173   :  { %3004 = vmatpush.bf16.msrb.mxu3 %v5387_v52  ;;  %3030 = vmatpush.bf16.msra.mxu1 %v4623_v54  ;;  %v4399_v52 = vor.u32 %v5845_v43, %v4396_v18  ;;  %v6075_v54 = vld [vmem:[#allocation9 + $0x754] sm:$0xf0]  ;;  %v5925_v18 = vld [vmem:[#allocation9 + $0x2ac] sm:$0xf] }
 0x174   :  { %v5307_v1 = vor.u32 %v6075_v54, %v5306_v49  ;;  %v6025_v49 = vld [vmem:[#allocation9 + $0x5cc] sm:$0xf] }
 0x175   :  { %3019 = vmatpush.bf16.msra.mxu0 %v4463_v59  ;;  %2993 = vmatpush.bf16.msrb.mxu2 %v5227_v2  ;;  %v4380_v59 = vld [vmem:[#allocation9 + $0x18] sm:$0xf0]  ;;  %v4543_v2 = vor.u32 %v5881_v55, %v4540_v57  ;;  %v5985_v54 = vld [vmem:[#allocation9 + $0x48c] sm:$0xf] }
 0x176   :  { %v4383_v6 = vor.u32 %v5841_v58, %v4380_v59  ;;  %v4956_v55 = vld [vmem:[#allocation9 + $0x498] sm:$0xf0]  ;;  %v5921_v58 = vld [vmem:[#allocation9 + $0x28c] sm:$0xf] }
 0x177   :  { %3005 = vmatpush.bf16.msrb.mxu3 %v5371_v3  ;;  %3031 = vmatpush.bf16.msra.mxu1 %v4607_v4  ;;  %v2742_v60 = vpop.f32.mrf.mxu2  ;;  %v5146_v3 = vld [vmem:[#allocation9 + $0x608] sm:$0xf]  ;;  %v6035_v4 = vld [vmem:[#allocation9 + $0x614] sm:$0xf0]  ;;  %v4700_v59 = vld [vmem:[#allocation9 + $0x298] sm:$0xf0]  ;;  %v4959_v63 = vor.u32 %v5985_v54, %v4956_v55 }
 0x178   :  { %v6549_v50 = vpop.f32.mrf.mxu3  ;;  %v5147_v15 = vor.u32 %v6035_v4, %v5146_v3  ;;  %v5100_v3 = vld [vmem:[#allocation9 + $0x5b8] sm:$0xf0]  ;;  %v5981_v4 = vld [vmem:[#allocation9 + $0x46c] sm:$0xf]  ;;  %v6111_v54 = vld [vmem:[#allocation11 + $0x74] sm:$0xf0] }
 0x179   :  { %3020 = vmatpush.bf16.msra.mxu0 %v4447_v8  ;;  %2994 = vmatpush.bf16.msrb.mxu2 %v5211_v16  ;;  %v5290_v8 = vld [vmem:[#allocation9 + $0x728] sm:$0xf]  ;;  %v5993_v16 = vld [vmem:[#allocation9 + $0x4cc] sm:$0xf] }
 0x17a   :  { %v5291_v22 = vor.u32 %v6071_v9, %v5290_v8  ;;  %v5917_v8 = vld [vmem:[#allocation9 + $0x26c] sm:$0xf]  ;;  %v4684_v9 = vld [vmem:[#allocation9 + $0x278] sm:$0xf0] }
 0x17b   :  { %3006 = vmatpush.bf16.msrb.mxu3 %v5355_v19  ;;  %3032 = vmatpush.bf16.msra.mxu1 %v4591_v21  ;;  %v4988_v19 = vld [vmem:[#allocation9 + $0x4d8] sm:$0xf0]  ;;  %v4751_v21 = vor.u32 %v5933_v5, %v4748_v7  ;;  %v4687_v23 = vor.u32 %v5917_v8, %v4684_v9  ;;  %v5442_v8 = vld [vmem:[#allocation11 + $0x60] sm:$0xf]  ;;  %v6109_v9 = vld [vmem:[#allocation11 + $0x64] sm:$0xf0] }
 0x17c   :  { %v4940_v5 = vld [vmem:[#allocation9 + $0x478] sm:$0xf0] }
 0x17d   :  { %3021 = vmatpush.bf16.msra.mxu0 %v4431_v26  ;;  %2995 = vmatpush.bf16.msrb.mxu2 %v5195_v33  ;;  %v5274_v26 = vld [vmem:[#allocation9 + $0x708] sm:$0xf]  ;;  %v4991_v33 = vor.u32 %v5993_v16, %v4988_v19  ;;  %v4943_v11 = vor.u32 %v5981_v4, %v4940_v5  ;;  %v6017_v16 = vld [vmem:[#allocation9 + $0x58c] sm:$0xf]  ;;  %v5084_v19 = vld [vmem:[#allocation9 + $0x598] sm:$0xf0] }
 0x17e   :  { %v5275_v42 = vor.u32 %v6067_v28, %v5274_v26  ;;  %v5913_v26 = vld [vmem:[#allocation9 + $0x24c] sm:$0xf]  ;;  %v5087_v29 = vor.u32 %v6017_v16, %v5084_v19 }
 0x17f   :  { %3007 = vmatpush.bf16.msrb.mxu3 %v5339_v34  ;;  %3033 = vmatpush.bf16.msra.mxu1 %v4575_v35  ;;  %v5965_v34 = vld [vmem:[#allocation9 + $0x3ec] sm:$0xf]  ;;  %v4876_v35 = vld [vmem:[#allocation9 + $0x3f8] sm:$0xf0] }
 0x180   :  { %v2755_v32 = vpop.f32.mrf.mxu3  ;;  %v4879_v43 = vor.u32 %v5965_v34, %v4876_v35  ;;  %v6013_v34 = vld [vmem:[#allocation9 + $0x56c] sm:$0xf]  ;;  %v5068_v35 = vld [vmem:[#allocation9 + $0x578] sm:$0xf0] }
 0x181   :  { %3022 = vmatpush.bf16.msra.mxu0 %v4415_v39  ;;  %2996 = vmatpush.bf16.msrb.mxu2 %v5179_v45  ;;  %v4972_v39 = vld [vmem:[#allocation9 + $0x4b8] sm:$0xf0]  ;;  %v5949_v32 = vld [vmem:[#allocation9 + $0x36c] sm:$0xf] }
 0x182   :  { %v4716_v45 = vld [vmem:[#allocation9 + $0x2b8] sm:$0xf0]  ;;  %v6005_v5 = vld [vmem:[#allocation9 + $0x52c] sm:$0xf] }
 0x183   :  { %3008 = vmatpush.bf16.msrb.mxu3 %v5323_v51  ;;  %3034 = vmatpush.bf16.msra.mxu1 %v4559_v46  ;;  %v5135_v51 = vor.u32 %v6029_v36, %v5132_v37  ;;  %v4975_v46 = vor.u32 %v5989_v38, %v4972_v39  ;;  %v4719_v57 = vor.u32 %v5925_v18, %v4716_v45  ;;  %v5973_v36 = vld [vmem:[#allocation9 + $0x42c] sm:$0xf]  ;;  %v4908_v37 = vld [vmem:[#allocation9 + $0x438] sm:$0xf0] }
 0x184   :  { %v5945_v18 = vld [vmem:[#allocation9 + $0x34c] sm:$0xf]  ;;  %v4796_v45 = vld [vmem:[#allocation9 + $0x358] sm:$0xf0] }
 0x185   :  { %3023 = vmatpush.bf16.msra.mxu0 %v4399_v52  ;;  %2997 = vmatpush.bf16.msrb.mxu2 %v5163_v62  ;;  %v5116_v52 = vld [vmem:[#allocation9 + $0x5d8] sm:$0xf0]  ;;  %v5937_v16 = vld [vmem:[#allocation9 + $0x30c] sm:$0xf] }
 0x186   :  { %v5119_v62 = vor.u32 %v6025_v49, %v5116_v52  ;;  %v5450_v52 = vld [vmem:[#allocation11 + $0x70] sm:$0xf] }
 0x187   :  { %3009 = vmatpush.bf16.msrb.mxu3 %v5307_v1  ;;  %3035 = vmatpush.bf16.msra.mxu1 %v4543_v2  ;;  %v4844_v1 = vld [vmem:[#allocation9 + $0x3b8] sm:$0xf0]  ;;  %v6021_v2 = vld [vmem:[#allocation9 + $0x5ac] sm:$0xf]  ;;  %v5451_v4 = vor.u32 %v6111_v54, %v5450_v52 }
 0x188   :  { %v4847_v7 = vor.u32 %v5957_v0, %v4844_v1  ;;  %v5260_v1 = vld [vmem:[#allocation9 + $0x6f8] sm:$0xf0] }
 0x189   :  { %3024 = vmatpush.bf16.msra.mxu0 %v4383_v6  ;;  %2998 = vmatpush.bf16.msrb.mxu2 %v5147_v15  ;;  %v6553_v60 = vpop.f32.mrf.mxu0  ;;  %v4703_v6 = vor.u32 %v5921_v58, %v4700_v59  ;;  %v4828_v15 = vld [vmem:[#allocation9 + $0x398] sm:$0xf0]  ;;  %v6061_v59 = vld [vmem:[#allocation9 + $0x6ec] sm:$0xf] }
 0x18a   :  { %v4831_v25 = vor.u32 %v5953_v13, %v4828_v15  ;;  %v4636_v58 = vld [vmem:[#allocation9 + $0x218] sm:$0xf0]  ;;  %v6057_v13 = vld [vmem:[#allocation9 + $0x6cc] sm:$0xf] }
 0x18b   :  { %3010 = vmatpush.bf16.msrb.mxu3 %v5291_v22  ;;  %3036 = vmatpush.bf16.msra.mxu1 %v4527_v27  ;;  %v4924_v22 = vld [vmem:[#allocation9 + $0x458] sm:$0xf0] }
 0x18c   :  { %3025 = vmatmul.bf16.vlgmr.msra.gmra.mxu0 %v6498_v53  ;;  %2999 = vmatmul.bf16.vlgmr.msrb.gmra.mxu2 %v6524_v56  ;;  %v4863_v53 = vor.u32 %v5961_v47, %v4860_v48  ;;  %v4668_v27 = vld [vmem:[#allocation9 + $0x258] sm:$0xf0]  ;;  %v5969_v47 = vld [vmem:[#allocation9 + $0x40c] sm:$0xf] }
 0x18d   :  { %3069 = vmatpush.bf16.msrb.mxu0 %v5007_v10  ;;  %3043 = vmatpush.bf16.msra.mxu2 %v4751_v21  ;;  %v5103_v10 = vor.u32 %v6021_v2, %v5100_v3  ;;  %v5977_v21 = vld [vmem:[#allocation9 + $0x44c] sm:$0xf]  ;;  %v4671_v38 = vor.u32 %v5913_v26, %v4668_v27  ;;  %v4892_v48 = vld [vmem:[#allocation9 + $0x418] sm:$0xf0] }
 0x18e   :  { %v4927_v31 = vor.u32 %v5977_v21, %v4924_v22  ;;  %v4895_v0 = vor.u32 %v5969_v47, %v4892_v48  ;;  %v5941_v2 = vld [vmem:[#allocation9 + $0x32c] sm:$0xf]  ;;  %v4780_v3 = vld [vmem:[#allocation9 + $0x338] sm:$0xf0]  ;;  %v6125_v47 = vld [vmem:[#allocation11 + $0xe4] sm:$0xf0] }
 0x18f   :  { %3011 = vmatpush.bf16.msrb.mxu3 %v5275_v42  ;;  %3037 = vmatpush.bf16.msra.mxu1 %v4511_v17  ;;  %v4652_v42 = vld [vmem:[#allocation9 + $0x238] sm:$0xf0]  ;;  %v5071_v17 = vor.u32 %v6013_v34, %v5068_v35  ;;  %v6001_v22 = vld [vmem:[#allocation9 + $0x50c] sm:$0xf] }
 0x190   :  { %v5244_v15 = vld [vmem:[#allocation9 + $0x6d8] sm:$0xf0]  ;;  %v6093_v26 = vld [vmem:[#allocation9 + $0x7ec] sm:$0xf] }
 0x191   :  { %3070 = vmatpush.bf16.msrb.mxu0 %v4991_v33  ;;  %3044 = vmatpush.bf16.msra.mxu2 %v4735_v40  ;;  %v2768_v28 = vpop.f32.mrf.mxu0  ;;  %v4812_v33 = vld [vmem:[#allocation9 + $0x378] sm:$0xf0]  ;;  %v5909_v40 = vld [vmem:[#allocation9 + $0x22c] sm:$0xf]  ;;  %v5247_v34 = vor.u32 %v6057_v13, %v5244_v15  ;;  %v6121_v13 = vld [vmem:[#allocation11 + $0xc4] sm:$0xf0] }
 0x192   :  { %3012 = vmatmul.bf16.vlgmr.msrb.gmra.mxu3 %v6528_v24  ;;  %3038 = vmatmul.bf16.vlgmr.msra.gmra.mxu1 %v6501_v20  ;;  %v6557_v20 = vpop.f32.mrf.mxu1  ;;  %v4815_v39 = vor.u32 %v5949_v32, %v4812_v33  ;;  %v4655_v49 = vor.u32 %v5909_v40, %v4652_v42  ;;  %v4764_v21 = vld [vmem:[#allocation9 + $0x318] sm:$0xf0]  ;;  %v5434_v28 = vld [vmem:[#allocation11 + $0x50] sm:$0xf]  ;;  %v6127_v32 = vld [vmem:[#allocation11 + $0xf4] sm:$0xf0] }
 0x193   :  { %3056 = vmatpush.bf16.msra.mxu3 %v4879_v43  ;;  %3082 = vmatpush.bf16.msrb.mxu1 %v5135_v51  ;;  %v4911_v43 = vor.u32 %v5973_v36, %v4908_v37  ;;  %v6009_v51 = vld [vmem:[#allocation9 + $0x54c] sm:$0xf]  ;;  %v5388_v27 = vld [vmem:[#allocation9 + $0x7f8] sm:$0xf0]  ;;  %v4767_v35 = vor.u32 %v5937_v16, %v4764_v21 }
 0x194   :  { %v5228_v40 = vld [vmem:[#allocation9 + $0x6b8] sm:$0xf0] }
 0x195   :  { %3071 = vmatpush.bf16.msrb.mxu0 %v4975_v46  ;;  %3045 = vmatpush.bf16.msra.mxu2 %v4719_v57  ;;  %v5052_v46 = vld [vmem:[#allocation9 + $0x558] sm:$0xf0]  ;;  %v4799_v57 = vor.u32 %v5945_v18, %v4796_v45  ;;  %v5426_v18 = vld [vmem:[#allocation11 + $0x40] sm:$0xf] }
 0x196   :  { %v5212_v52 = vld [vmem:[#allocation9 + $0x698] sm:$0xf0] }
 0x197   :  { %3057 = vmatpush.bf16.msra.mxu3 %v4863_v53  ;;  %3083 = vmatpush.bf16.msrb.mxu1 %v5119_v62  ;;  %v5905_v53 = vld [vmem:[#allocation9 + $0x20c] sm:$0xf] }
 0x199   :  { %3072 = vmatpush.bf16.msrb.mxu0 %v4959_v63  ;;  %3046 = vmatpush.bf16.msra.mxu2 %v4703_v6  ;;  %v6559_v62 = vpop.f32.mrf.mxu0  ;;  %v5055_v63 = vor.u32 %v6009_v51, %v5052_v46  ;;  %v5036_v6 = vld [vmem:[#allocation9 + $0x538] sm:$0xf0]  ;;  %v6105_v51 = vld [vmem:[#allocation11 + $0x44] sm:$0xf0]  ;;  %v5506_v46 = vld [vmem:[#allocation11 + $0xe0] sm:$0xf] }
 0x19a   :  { %v2781_v55 = vpop.f32.mrf.mxu1  ;;  %v5039_v19 = vor.u32 %v6005_v5, %v5036_v6  ;;  %v5427_v54 = vor.u32 %v6105_v51, %v5426_v18  ;;  %v5196_v5 = vld [vmem:[#allocation9 + $0x678] sm:$0xf0]  ;;  %v2741_v6 = vadd.f32 %v6547_v30, %v6541_v12  ;;  %v6097_v51 = vld [vmem:[#allocation11 + $0x4] sm:$0xf0] }
 0x19b   :  { %3058 = vmatpush.bf16.msra.mxu3 %v4847_v7  ;;  %3084 = vmatpush.bf16.msrb.mxu1 %v5103_v10  ;;  %v4639_v7 = vor.u32 %v5905_v53, %v4636_v58  ;;  %v5263_v10 = vor.u32 %v6061_v59, %v5260_v1  ;;  %v5356_v55 = vld [vmem:[#allocation9 + $0x7b8] sm:$0xf0]  ;;  %v5507_v53 = vor.u32 %v6125_v47, %v5506_v46  ;;  %v6103_v58 = vld [vmem:[#allocation11 + $0x34] sm:$0xf0]  ;;  %v5498_v59 = vld [vmem:[#allocation11 + $0xd0] sm:$0xf] }
 0x19c   :  { %v2754_v15 = vadd.f32 %v6549_v50, %v2741_v6  ;;  %v6117_v46 = vld [vmem:[#allocation11 + $0xa4] sm:$0xf0] }
 0x19d   :  { %3073 = vmatpush.bf16.msrb.mxu0 %v4943_v11  ;;  %3047 = vmatpush.bf16.msra.mxu2 %v4687_v23  ;;  %v4783_v11 = vor.u32 %v5941_v2, %v4780_v3  ;;  %v5020_v23 = vld [vmem:[#allocation9 + $0x518] sm:$0xf0] }
 0x19e   :  { %v5023_v37 = vor.u32 %v6001_v22, %v5020_v23  ;;  %v6041_v22 = vld [vmem:[#allocation9 + $0x64c] sm:$0xf]  ;;  %v5180_v23 = vld [vmem:[#allocation9 + $0x658] sm:$0xf0]  ;;  %v2767_v12 = vadd.f32 %v6553_v60, %v2754_v15 }
 0x19f   :  { %3059 = vmatpush.bf16.msra.mxu3 %v4831_v25  ;;  %3085 = vmatpush.bf16.msrb.mxu1 %v5087_v29  ;;  %v5443_v25 = vor.u32 %v6109_v9, %v5442_v8  ;;  %v6107_v29 = vld [vmem:[#allocation11 + $0x54] sm:$0xf0]  ;;  %v5340_v8 = vld [vmem:[#allocation9 + $0x798] sm:$0xf0]  ;;  %v5410_v9 = vld [vmem:[#allocation11 + $0x20] sm:$0xf] }
 0x1a0   :  { %v5435_v42 = vor.u32 %v6107_v29, %v5434_v28  ;;  %v6099_v29 = vld [vmem:[#allocation11 + $0x14] sm:$0xf0]  ;;  %v2780_v50 = vadd.f32 %v6557_v20, %v2767_v12  ;;  %v6037_v60 = vld [vmem:[#allocation9 + $0x62c] sm:$0xf]  ;;  %v5474_v20 = vld [vmem:[#allocation11 + $0xa0] sm:$0xf] }
 0x1a1   :  { %3074 = vmatpush.bf16.msrb.mxu0 %v4927_v31  ;;  %3048 = vmatpush.bf16.msra.mxu2 %v4671_v38  ;;  %v5514_v31 = vld [vmem:[#allocation11 + $0xf0] sm:$0xf]  ;;  %v2820_v36 = vpop.f32.mrf.mxu0  ;;  %v5391_v38 = vor.u32 %v6093_v26, %v5388_v27  ;;  %v5324_v26 = vld [vmem:[#allocation9 + $0x778] sm:$0xf0] }
 0x1a2   :  { %v6561_v33 = vpop.f32.mrf.mxu1  ;;  %v5515_v45 = vor.u32 %v6127_v32, %v5514_v31  ;;  %v5402_v27 = vld [vmem:[#allocation11 + $0x10] sm:$0xf]  ;;  %v6119_v32 = vld [vmem:[#allocation11 + $0xb4] sm:$0xf0]  ;;  %v5516_v12 = vld [vmem:[#allocation11 + $0xf8] sm:$0xf0] }
 0x1a3   :  { %3060 = vmatpush.bf16.msra.mxu3 %v4815_v39  ;;  %3086 = vmatpush.bf16.msrb.mxu1 %v5071_v17  ;;  %v6053_v39 = vld [vmem:[#allocation9 + $0x6ac] sm:$0xf]  ;;  %v5482_v31 = vld [vmem:[#allocation11 + $0xb0] sm:$0xf] }
 0x1a4   :  { %v6089_v17 = vld [vmem:[#allocation9 + $0x7cc] sm:$0xf]  ;;  %v5231_v48 = vor.u32 %v6053_v39, %v5228_v40  ;;  %v5403_v40 = vor.u32 %v6099_v29, %v5402_v27  ;;  %v5483_v18 = vor.u32 %v6119_v32, %v5482_v31  ;;  %v6104_v31 = vld [vmem:[#allocation11 + $0x44] sm:$0xf] }
 0x1a5   :  { %3075 = vmatpush.bf16.msrb.mxu0 %v4911_v43  ;;  %3049 = vmatpush.bf16.msra.mxu2 %v4655_v49  ;;  %v5372_v43 = vld [vmem:[#allocation9 + $0x7d8] sm:$0xf0]  ;;  %v6049_v49 = vld [vmem:[#allocation9 + $0x68c] sm:$0xf] }
 0x1a6   :  { %v5215_v1 = vor.u32 %v6049_v49, %v5212_v52  ;;  %v6110_v49 = vld [vmem:[#allocation11 + $0x74] sm:$0xf]  ;;  %v5452_v52 = vld [vmem:[#allocation11 + $0x78] sm:$0xf0]  ;;  %v6582_v27 = vld [vmem:[%s6622_s4] sm:$0xf] }
 0x1a7   :  { %3061 = vmatpush.bf16.msra.mxu3 %v4799_v57  ;;  %3087 = vmatpush.bf16.msrb.mxu1 %v5055_v63  ;;  %v5418_v57 = vld [vmem:[#allocation11 + $0x30] sm:$0xf]  ;;  %v6123_v63 = vld [vmem:[#allocation11 + $0xd4] sm:$0xf0] }
 0x1a9   :  { %3076 = vmatpush.bf16.msrb.mxu0 %v4895_v0  ;;  %3050 = vmatpush.bf16.msra.mxu2 %v4639_v7  ;;  %v6567_v2 = vpop.f32.mrf.mxu0  ;;  %v5419_v7 = vor.u32 %v6103_v58, %v5418_v57  ;;  %v6069_v58 = vld [vmem:[#allocation9 + $0x72c] sm:$0xf] }
 0x1aa   :  { %v2833_v0 = vpop.f32.mrf.mxu1 }
 0x1ab   :  { %3062 = vmatpush.bf16.msra.mxu3 %v4783_v11  ;;  %3088 = vmatpush.bf16.msrb.mxu1 %v5039_v19  ;;  %v5490_v11 = vld [vmem:[#allocation11 + $0xc0] sm:$0xf]  ;;  %v5455_v0 = vor.u32 %v6110_v49, %v5452_v52  ;;  %v5578_v49 = vld [vmem:[#allocation11 + $0x170] sm:$0xf]  ;;  %v6143_v52 = vld [vmem:[#allocation11 + $0x174] sm:$0xf0] }
 0x1ac   :  { %3077 = vmatmul.bf16.vlgmr.msrb.gmra.mxu0 %v6514_v41  ;;  %3051 = vmatmul.bf16.vlgmr.msra.gmra.mxu2 %v6506_v14  ;;  %v5375_v41 = vor.u32 %v6089_v17, %v5372_v43  ;;  %v6085_v14 = vld [vmem:[#allocation9 + $0x7ac] sm:$0xf]  ;;  %v5491_v28 = vor.u32 %v6121_v13, %v5490_v11  ;;  %v5308_v17 = vld [vmem:[#allocation9 + $0x758] sm:$0xf0]  ;;  %v5394_v43 = vld [vmem:[#allocation11] sm:$0xf] }
 0x1ad   :  { %3523 = vmatpush.bf16.msra.mxu0 %v5451_v4  ;;  %3095 = vmatpush.bf16.msrb.mxu2 %v5263_v10  ;;  %v5359_v3 = vor.u32 %v6085_v14, %v5356_v55  ;;  %v6045_v4 = vld [vmem:[#allocation9 + $0x66c] sm:$0xf]  ;;  %v5499_v10 = vor.u32 %v6123_v63, %v5498_v59  ;;  %v5148_v55 = vld [vmem:[#allocation9 + $0x618] sm:$0xf0]  ;;  %v5475_v63 = vor.u32 %v6117_v46, %v5474_v20 }
 0x1ae   :  { %v5199_v19 = vor.u32 %v6045_v4, %v5196_v5  ;;  %v6033_v14 = vld [vmem:[#allocation9 + $0x60c] sm:$0xf]  ;;  %v5292_v59 = vld [vmem:[#allocation9 + $0x738] sm:$0xf0] }
 0x1af   :  { %3063 = vmatpush.bf16.msra.mxu3 %v4767_v35  ;;  %3089 = vmatpush.bf16.msrb.mxu1 %v5023_v37  ;;  %v2792_v16 = vpop.f32.mrf.mxu2  ;;  %v5183_v35 = vor.u32 %v6041_v22, %v5180_v23  ;;  %v5151_v6 = vor.u32 %v6033_v14, %v5148_v55  ;;  %v5436_v22 = vld [vmem:[#allocation11 + $0x58] sm:$0xf0]  ;;  %v6126_v23 = vld [vmem:[#allocation11 + $0xf4] sm:$0xf]  ;;  %v5412_v46 = vld [vmem:[#allocation11 + $0x28] sm:$0xf0] }
 0x1b0   :  { %v2793_v39 = vadd.f32 %v2792_v16, %v2780_v50  ;;  %v6106_v16 = vld [vmem:[#allocation11 + $0x54] sm:$0xf]  ;;  %v5519_v32 = vor.u32 %v6126_v23, %v5516_v12  ;;  %v5428_v50 = vld [vmem:[#allocation11 + $0x48] sm:$0xf0]  ;;  %v5554_v23 = vld [vmem:[#allocation11 + $0x140] sm:$0xf] }
 0x1b1   :  { %3524 = vmatpush.bf16.msra.mxu0 %v5443_v25  ;;  %3096 = vmatpush.bf16.msrb.mxu2 %v5247_v34  ;;  %v6077_v25 = vld [vmem:[#allocation9 + $0x76c] sm:$0xf]  ;;  %v2872_v36 = vpop.f32.mrf.mxu0  ;;  %v5439_v29 = vor.u32 %v6106_v16, %v5436_v22  ;;  %v6137_v12 = vld [vmem:[#allocation11 + $0x144] sm:$0xf0] }
 0x1b2   :  { %3064 = vmatmul.bf16.vlgmr.msra.gmra.mxu3 %v6509_v44  ;;  %3090 = vmatmul.bf16.vlgmr.msrb.gmra.mxu1 %v6517_v61  ;;  %v6081_v44 = vld [vmem:[#allocation9 + $0x78c] sm:$0xf]  ;;  %v6101_v61 = vld [vmem:[#allocation11 + $0x24] sm:$0xf0]  ;;  %v6574_v34 = vpop.f32.mrf.mxu1  ;;  %v5327_v37 = vor.u32 %v6077_v25, %v5324_v26 }
 0x1b3   :  { %3108 = vmatpush.bf16.msrb.mxu3 %v5391_v38  ;;  %3536 = vmatpush.bf16.msra.mxu1 %v5515_v45  ;;  %v5343_v21 = vor.u32 %v6081_v44, %v5340_v8  ;;  %v5411_v30 = vor.u32 %v6101_v61, %v5410_v9  ;;  %v5164_v38 = vld [vmem:[#allocation9 + $0x638] sm:$0xf0]  ;;  %v5444_v44 = vld [vmem:[#allocation11 + $0x68] sm:$0xf0]  ;;  %v5295_v8 = vor.u32 %v6069_v58, %v5292_v59  ;;  %v6118_v58 = vld [vmem:[#allocation11 + $0xb4] sm:$0xf] }
 0x1b4   :  { %v5276_v61 = vld [vmem:[#allocation9 + $0x718] sm:$0xf0]  ;;  %v5508_v36 = vld [vmem:[#allocation11 + $0xe8] sm:$0xf0] }
 0x1b5   :  { %3525 = vmatpush.bf16.msra.mxu0 %v5435_v42  ;;  %3097 = vmatpush.bf16.msrb.mxu2 %v5231_v48  ;;  %v6073_v42 = vld [vmem:[#allocation9 + $0x74c] sm:$0xf]  ;;  %v2805_v45 = vpop.f32.mrf.mxu3  ;;  %v5484_v59 = vld [vmem:[#allocation11 + $0xb8] sm:$0xf0] }
 0x1b6   :  { %v2806_v47 = vadd.f32 %v2805_v45, %v2793_v39  ;;  %v6102_v39 = vld [vmem:[#allocation11 + $0x34] sm:$0xf] }
 0x1b7   :  { %3109 = vmatpush.bf16.msrb.mxu3 %v5375_v41  ;;  %3537 = vmatpush.bf16.msra.mxu1 %v5507_v53  ;;  %v2794_v48 = vpop.f32.mrf.mxu2  ;;  %v5167_v41 = vor.u32 %v6037_v60, %v5164_v38  ;;  %v5395_v53 = vor.u32 %v6097_v51, %v5394_v43  ;;  %v5431_v38 = vor.u32 %v6104_v31, %v5428_v50 }
 0x1b8   :  { %v3121_v57 = vmul.f32 0.2, %v2806_v47  ;;  %v6120_v48 = vld [vmem:[#allocation11 + $0xc4] sm:$0xf] }
 0x1b9   :  { %3526 = vmatpush.bf16.msra.mxu0 %v5427_v54  ;;  %3098 = vmatpush.bf16.msrb.mxu2 %v5215_v1  ;;  %v5311_v54 = vor.u32 %v6073_v42, %v5308_v17  ;;  %v5466_v1 = vld [vmem:[#allocation11 + $0x90] sm:$0xf]  ;;  %v6122_v42 = vld [vmem:[#allocation11 + $0xd4] sm:$0xf]  ;;  %v5500_v17 = vld [vmem:[#allocation11 + $0xd8] sm:$0xf0] }
 0x1ba   :  { %v3125_v4 = vmax.f32 %v2806_v47, %v3121_v57  ;;  %v2885_v5 = vpop.f32.mrf.mxu1  ;;  %v5503_v47 = vor.u32 %v6122_v42, %v5500_v17  ;;  %v5404_v57 = vld [vmem:[#allocation11 + $0x18] sm:$0xf0] }
 0x1bb   :  { %3110 = vmatpush.bf16.msrb.mxu3 %v5359_v3  ;;  %3538 = vmatpush.bf16.msra.mxu1 %v5499_v10  ;;  %v6115_v3 = vld [vmem:[#allocation11 + $0x94] sm:$0xf0]  ;;  %v6065_v10 = vld [vmem:[#allocation9 + $0x70c] sm:$0xf] }
 0x1bc   :  { %v6576_v9 = vpack.c.bf16 %v3125_v4, %v3125_v4  ;;  %v5467_v11 = vor.u32 %v6115_v3, %v5466_v1  ;;  %v5279_v25 = vor.u32 %v6065_v10, %v5276_v61  ;;  %v5487_v10 = vor.u32 %v6118_v58, %v5484_v59  ;;  %v6116_v61 = vld [vmem:[#allocation11 + $0xa4] sm:$0xf]  ;;  %v5564_v58 = vld [vmem:[#allocation11 + $0x158] sm:$0xf0] }
 0x1bd   :  { %3527 = vmatpush.bf16.msra.mxu0 %v5419_v7  ;;  %3099 = vmatpush.bf16.msrb.mxu2 %v5199_v19  ;;  %v6108_v7 = vld [vmem:[#allocation11 + $0x64] sm:$0xf]  ;;  %v2807_v13 = vpop.f32.mrf.mxu3  ;;  %v5458_v19 = vld [vmem:[#allocation11 + $0x80] sm:$0xf] }
 0x1be   :  { %v5447_v15 = vor.u32 %v6108_v7, %v5444_v44  ;;  %v6096_v44 = vld [vmem:[#allocation11 + $0x4] sm:$0xf]  ;;  %v5562_v13 = vld [vmem:[#allocation11 + $0x150] sm:$0xf] }
 0x1bf   :  { %3111 = vmatpush.bf16.msrb.mxu3 %v5343_v21  ;;  %3539 = vmatpush.bf16.msra.mxu1 %v5491_v28  ;;  %v6113_v21 = vld [vmem:[#allocation11 + $0x84] sm:$0xf0]  ;;  %v1418_v28 = vperm.slane %v6582_v27, 1 }
 0x1c0   :  { %v5459_v26 = vor.u32 %v6113_v21, %v5458_v19 }
 0x1c1   :  { %3528 = vmatpush.bf16.msra.mxu0 %v5411_v30  ;;  %3100 = vmatpush.bf16.msrb.mxu2 %v5183_v35  ;;  %v2844_v30 = vpop.f32.mrf.mxu2  ;;  %v6124_v35 = vld [vmem:[#allocation11 + $0xe4] sm:$0xf] }
 0x1c3   :  { %3112 = vmatpush.bf16.msrb.mxu3 %v5327_v37  ;;  %3540 = vmatpush.bf16.msra.mxu1 %v5483_v18  ;;  %v2819_v37 = vadd.f32 %v6559_v62, %v1418_v28  ;;  %v6100_v62 = vld [vmem:[#allocation11 + $0x24] sm:$0xf]  ;;  %v5555_v28 = vor.u32 %v6137_v12, %v5554_v23  ;;  %v5524_v12 = vld [vmem:[#allocation11 + $0x108] sm:$0xf0] }
 0x1c4   :  { %v5415_v55 = vor.u32 %v6100_v62, %v5412_v46  ;;  %v5522_v46 = vld [vmem:[#allocation11 + $0x100] sm:$0xf]  ;;  %v6128_v23 = vld [vmem:[#allocation11 + $0x104] sm:$0xf] }
 0x1c5   :  { %3529 = vmatpush.bf16.msra.mxu0 %v5403_v40  ;;  %3101 = vmatpush.bf16.msrb.mxu2 %v5167_v41  ;;  %v2857_v60 = vpop.f32.mrf.mxu3  ;;  %v5511_v40 = vor.u32 %v6124_v35, %v5508_v36  ;;  %v2832_v43 = vadd.f32 %v6561_v33, %v2819_v37  ;;  %v5492_v41 = vld [vmem:[#allocation11 + $0xc8] sm:$0xf0]  ;;  %v6098_v33 = vld [vmem:[#allocation11 + $0x14] sm:$0xf]  ;;  %v6112_v35 = vld [vmem:[#allocation11 + $0x84] sm:$0xf] }
 0x1c6   :  { %v5407_v7 = vor.u32 %v6098_v33, %v5404_v57  ;;  %v5460_v36 = vld [vmem:[#allocation11 + $0x88] sm:$0xf0]  ;;  %v5546_v37 = vld [vmem:[#allocation11 + $0x130] sm:$0xf] }
 0x1c7   :  { %3113 = vmatpush.bf16.msrb.mxu3 %v5311_v54  ;;  %3541 = vmatpush.bf16.msra.mxu1 %v5475_v63  ;;  %v2845_v45 = vadd.f32 %v2844_v30, %v2832_v43  ;;  %v5579_v54 = vor.u32 %v6143_v52, %v5578_v49  ;;  %v5570_v63 = vld [vmem:[#allocation11 + $0x160] sm:$0xf]  ;;  %v5463_v17 = vor.u32 %v6112_v35, %v5460_v36  ;;  %v6142_v49 = vld [vmem:[#allocation11 + $0x174] sm:$0xf]  ;;  %v5580_v52 = vld [vmem:[#allocation11 + $0x178] sm:$0xf0] }
 0x1c9   :  { %3530 = vmatpush.bf16.msra.mxu0 %v5395_v53  ;;  %3102 = vmatpush.bf16.msrb.mxu2 %v5151_v6  ;;  %v2846_v18 = vpop.f32.mrf.mxu2  ;;  %v6589_v51 = vpop.f32.mrf.mxu0  ;;  %v5495_v53 = vor.u32 %v6120_v48, %v5492_v41 }
 0x1cb   :  { %3114 = vmatpush.bf16.msrb.mxu3 %v5295_v8  ;;  %3542 = vmatpush.bf16.msra.mxu1 %v5467_v11  ;;  %v5396_v8 = vld [vmem:[#allocation11 + $0x8] sm:$0xf0] }
 0x1cc   :  { %3531 = vmatmul.bf16.vlgmr.msra.gmra.mxu0 %v6576_v9  ;;  %3103 = vmatmul.bf16.vlgmr.msrb.gmra.mxu2 %v6524_v56  ;;  %v5420_v56 = vld [vmem:[#allocation11 + $0x38] sm:$0xf0]  ;;  %v5476_v11 = vld [vmem:[#allocation11 + $0xa8] sm:$0xf0]  ;;  %v5399_v21 = vor.u32 %v6096_v44, %v5396_v8 }
 0x1cd   :  { %3575 = vmatpush.bf16.msrb.mxu0 %v5455_v0  ;;  %v5423_v20 = vor.u32 %v6102_v39, %v5420_v56  ;;  %v2859_v14 = vpop.f32.mrf.mxu3  ;;  %3549 = vmatpush.bf16.msra.mxu2 %v5579_v54  ;;  %v6141_v0 = vld [vmem:[#allocation11 + $0x164] sm:$0xf0]  ;;  %v5479_v22 = vor.u32 %v6116_v61, %v5476_v11  ;;  %v5572_v54 = vld [vmem:[#allocation11 + $0x168] sm:$0xf0]  ;;  %v5548_v44 = vld [vmem:[#allocation11 + $0x138] sm:$0xf0] }
 0x1ce   :  { %v5571_v5 = vor.u32 %v6141_v0, %v5570_v63  ;;  %v6133_v56 = vld [vmem:[#allocation11 + $0x124] sm:$0xf0]  ;;  %v6136_v0 = vld [vmem:[#allocation11 + $0x144] sm:$0xf]  ;;  %v5540_v61 = vld [vmem:[#allocation11 + $0x128] sm:$0xf0] }
 0x1cf   :  { %3115 = vmatpush.bf16.msrb.mxu3 %v5279_v25  ;;  %3543 = vmatpush.bf16.msra.mxu1 %v5459_v26  ;;  %v6592_v3 = vpop.f32.mrf.mxu1  ;;  %v6114_v25 = vld [vmem:[#allocation11 + $0x94] sm:$0xf]  ;;  %v5468_v26 = vld [vmem:[#allocation11 + $0x98] sm:$0xf0]  ;;  %v1419_v11 = vperm.slane %v6582_v27, 2 }
 0x1d1   :  { %3576 = vmatpush.bf16.msrb.mxu0 %v5447_v15  ;;  %v2896_v4 = vpop.f32.mrf.mxu2  ;;  %v2924_v6 = vpop.f32.mrf.mxu0  ;;  %3550 = vmatpush.bf16.msra.mxu2 %v5571_v5  ;;  %v6139_v15 = vld [vmem:[#allocation11 + $0x154] sm:$0xf0] }
 0x1d2   :  { %3116 = vmatmul.bf16.vlgmr.msrb.gmra.mxu3 %v6528_v24  ;;  %v2858_v24 = vadd.f32 %v2857_v60, %v2845_v45  ;;  %v5563_v19 = vor.u32 %v6139_v15, %v5562_v13  ;;  %v6135_v60 = vld [vmem:[#allocation11 + $0x134] sm:$0xf0]  ;;  %v5530_v45 = vld [vmem:[#allocation11 + $0x110] sm:$0xf] }
 0x1d3   :  { %3588 = vmatpush.bf16.msrb.mxu1 %v5519_v32  ;;  %v5547_v39 = vor.u32 %v6135_v60, %v5546_v37 }
 0x1d4   :  { %v2871_v1 = vadd.f32 %v6567_v2, %v2858_v24  ;;  %v6140_v24 = vld [vmem:[#allocation11 + $0x164] sm:$0xf] }
 0x1d5   :  { %3577 = vmatpush.bf16.msrb.mxu0 %v5439_v29  ;;  %v2909_v30 = vpop.f32.mrf.mxu3  ;;  %3551 = vmatpush.bf16.msra.mxu2 %v5563_v19  ;;  %v5575_v33 = vor.u32 %v6140_v24, %v5572_v54  ;;  %v6130_v19 = vld [vmem:[#allocation11 + $0x114] sm:$0xf] }
 0x1d6   :  { %v2884_v16 = vadd.f32 %v6574_v34, %v2871_v1  ;;  %v5471_v34 = vor.u32 %v6114_v25, %v5468_v26  ;;  %v5556_v1 = vld [vmem:[#allocation11 + $0x148] sm:$0xf0]  ;;  %v5527_v26 = vor.u32 %v6128_v23, %v5524_v12  ;;  %v6150_v23 = vld [vmem:[#allocation11 + $0x1b4] sm:$0xf]  ;;  %v5612_v12 = vld [vmem:[#allocation11 + $0x1b8] sm:$0xf0] }
 0x1d7   :  { %3589 = vmatpush.bf16.msrb.mxu1 %v5511_v40  ;;  %v2937_v31 = vpop.f32.mrf.mxu1  ;;  %v5538_v40 = vld [vmem:[#allocation11 + $0x120] sm:$0xf]  ;;  %v5559_v6 = vor.u32 %v6136_v0, %v5556_v1  ;;  %v6158_v0 = vld [vmem:[#allocation11 + $0x1f4] sm:$0xf]  ;;  %v5644_v1 = vld [vmem:[#allocation11 + $0x1f8] sm:$0xf0] }
 0x1d8   :  { %v2897_v2 = vadd.f32 %v2896_v4, %v2884_v16  ;;  %v5539_v18 = vor.u32 %v6133_v56, %v5538_v40  ;;  %v2923_v16 = vadd.f32 %v6589_v51, %v1419_v11  ;;  %v6159_v31 = vld [vmem:[#allocation11 + $0x1f4] sm:$0xf0]  ;;  %v5628_v11 = vld [vmem:[#allocation11 + $0x1d8] sm:$0xf0] }
 0x1d9   :  { %3578 = vmatpush.bf16.msrb.mxu0 %v5431_v38  ;;  %v2898_v32 = vpop.f32.mrf.mxu2  ;;  %3552 = vmatpush.bf16.msra.mxu2 %v5555_v28 }
 0x1da   :  { %v2910_v29 = vadd.f32 %v2909_v30, %v2897_v2  ;;  %v5532_v2 = vld [vmem:[#allocation11 + $0x118] sm:$0xf0] }
 0x1db   :  { %3590 = vmatpush.bf16.msrb.mxu1 %v5503_v47  ;;  %v6129_v47 = vld [vmem:[#allocation11 + $0x104] sm:$0xf0] }
 0x1dc   :  { %v3122_v50 = vmul.f32 0.2, %v2910_v29  ;;  %v5523_v41 = vor.u32 %v6129_v47, %v5522_v46 }
 0x1dd   :  { %3579 = vmatpush.bf16.msrb.mxu0 %v5423_v20  ;;  %v2911_v43 = vpop.f32.mrf.mxu3  ;;  %3553 = vmatpush.bf16.msra.mxu2 %v5547_v39  ;;  %v6131_v20 = vld [vmem:[#allocation11 + $0x114] sm:$0xf0] }
 0x1de   :  { %v3126_v38 = vmax.f32 %v2910_v29, %v3122_v50  ;;  %v5531_v62 = vor.u32 %v6131_v20, %v5530_v45  ;;  %v5642_v29 = vld [vmem:[#allocation11 + $0x1f0] sm:$0xf]  ;;  %v5634_v50 = vld [vmem:[#allocation11 + $0x1e0] sm:$0xf]  ;;  %v6155_v39 = vld [vmem:[#allocation11 + $0x1d4] sm:$0xf0] }
 0x1df   :  { %3591 = vmatpush.bf16.msrb.mxu1 %v5495_v53  ;;  %v6138_v53 = vld [vmem:[#allocation11 + $0x154] sm:$0xf]  ;;  %v5643_v32 = vor.u32 %v6159_v31, %v5642_v29  ;;  %v6153_v43 = vld [vmem:[#allocation11 + $0x1c4] sm:$0xf0]  ;;  %v1420_v29 = vperm.slane %v6582_v27, 3 }
 0x1e0   :  { %v3130_v42 = vpack.c.bf16 %v3126_v38, %v3126_v38  ;;  %v5567_v59 = vor.u32 %v6138_v53, %v5564_v58  ;;  %v5626_v38 = vld [vmem:[#allocation11 + $0x1d0] sm:$0xf]  ;;  %v5586_v53 = vld [vmem:[#allocation11 + $0x180] sm:$0xf]  ;;  %v6145_v58 = vld [vmem:[#allocation11 + $0x184] sm:$0xf0] }
 0x1e1   :  { %3580 = vmatpush.bf16.msrb.mxu0 %v5415_v55  ;;  %3554 = vmatpush.bf16.msra.mxu2 %v5539_v18  ;;  %v5627_v40 = vor.u32 %v6155_v39, %v5626_v38  ;;  %v6144_v38 = vld [vmem:[#allocation11 + $0x184] sm:$0xf]  ;;  %v5588_v39 = vld [vmem:[#allocation11 + $0x188] sm:$0xf0] }
 0x1e2   :  { %3544 = vmatmul.bf16.vlgmr.msra.gmra.mxu1 %v3130_v42  ;;  %3562 = vmatpush.bf16.msra.mxu3 %v5643_v32 }
 0x1e3   :  { %3592 = vmatpush.bf16.msrb.mxu1 %v5487_v10  ;;  %v6132_v10 = vld [vmem:[#allocation11 + $0x124] sm:$0xf] }
 0x1e4   :  { %v5543_v15 = vor.u32 %v6132_v10, %v5540_v61  ;;  %v6154_v61 = vld [vmem:[#allocation11 + $0x1d4] sm:$0xf] }
 0x1e5   :  { %3581 = vmatpush.bf16.msrb.mxu0 %v5407_v7  ;;  %3555 = vmatpush.bf16.msra.mxu2 %v5531_v62  ;;  %v6134_v7 = vld [vmem:[#allocation11 + $0x134] sm:$0xf] }
 0x1e6   :  { %v5551_v8 = vor.u32 %v6134_v7, %v5548_v44 }
 0x1e7   :  { %3593 = vmatpush.bf16.msrb.mxu1 %v5479_v22  ;;  %v5535_v22 = vor.u32 %v6130_v19, %v5532_v2  ;;  %v5620_v19 = vld [vmem:[#allocation11 + $0x1c8] sm:$0xf0] }
 0x1e9   :  { %3582 = vmatpush.bf16.msrb.mxu0 %v5399_v21  ;;  %v2974_v48 = vpop.f32.mrf.mxu0  ;;  %3556 = vmatpush.bf16.msra.mxu2 %v5523_v41  ;;  %v2936_v21 = vadd.f32 %v6592_v3, %v2923_v16  ;;  %v6151_v41 = vld [vmem:[#allocation11 + $0x1b4] sm:$0xf0]  ;;  %v6152_v16 = vld [vmem:[#allocation11 + $0x1c4] sm:$0xf] }
 0x1ea   :  { %v5623_v2 = vor.u32 %v6152_v16, %v5620_v19  ;;  %v6172_v16 = vld [vmem:[#allocation12 + $0x60] sm:$0xff]  ;;  %v6171_v19 = vld [vmem:[#allocation12 + $0x58] sm:$0xff] }
 0x1eb   :  { %3594 = vmatpush.bf16.msrb.mxu1 %v5471_v34  ;;  %v6157_v34 = vld [vmem:[#allocation11 + $0x1e4] sm:$0xf0] }
 0x1ec   :  { %3583 = vmatmul.bf16.vlgmr.msrb.gmra.mxu0 %v6576_v9  ;;  %v5583_v9 = vor.u32 %v6142_v49, %v5580_v52  ;;  %v5635_v35 = vor.u32 %v6157_v34, %v5634_v50  ;;  %v5602_v49 = vld [vmem:[#allocation11 + $0x1a0] sm:$0xf]  ;;  %v6146_v50 = vld [vmem:[#allocation11 + $0x194] sm:$0xf]  ;;  %v5596_v34 = vld [vmem:[#allocation11 + $0x198] sm:$0xf0] }
 0x1ee   :  { %3601 = vmatpush.bf16.msrb.mxu2 %v5583_v9  ;;  %3563 = vmatpush.bf16.msra.mxu3 %v5635_v35  ;;  %v6149_v9 = vld [vmem:[#allocation11 + $0x1a4] sm:$0xf0] }
 0x1ef   :  { %3595 = vmatpush.bf16.msrb.mxu1 %v5463_v17  ;;  %v2948_v14 = vpop.f32.mrf.mxu2  ;;  %v2987_v55 = vpop.f32.mrf.mxu1  ;;  %v5618_v17 = vld [vmem:[#allocation11 + $0x1c0] sm:$0xf] }
 0x1f0   :  { %v2949_v30 = vadd.f32 %v2948_v14, %v2936_v21  ;;  %v5619_v45 = vor.u32 %v6153_v43, %v5618_v17  ;;  %v5603_v14 = vor.u32 %v6149_v9, %v5602_v49 }
 0x1f1   :  { %v2976_v57 = vpop.f32.mrf.mxu0 }
 0x1f2   :  { %3596 = vmatmul.bf16.vlgmr.msrb.gmra.mxu1 %v3130_v42  ;;  %3602 = vmatpush.bf16.msrb.mxu2 %v5575_v33  ;;  %v6147_v33 = vld [vmem:[#allocation11 + $0x194] sm:$0xf0] }
 0x1f3   :  { %3564 = vmatpush.bf16.msra.mxu3 %v5627_v40 }
 0x1f5   :  { %v2961_v63 = vpop.f32.mrf.mxu3 }
 0x1f6   :  { %3603 = vmatpush.bf16.msrb.mxu2 %v5567_v59  ;;  %v2962_v28 = vadd.f32 %v2961_v63, %v2949_v30  ;;  %v5587_v59 = vor.u32 %v6145_v58, %v5586_v53  ;;  %v5615_v30 = vor.u32 %v6150_v23, %v5612_v12 }
 0x1f7   :  { %v2950_v4 = vpop.f32.mrf.mxu2  ;;  %v2989_v5 = vpop.f32.mrf.mxu1  ;;  %3565 = vmatpush.bf16.msra.mxu3 %v5619_v45 }
 0x1f8   :  { %v2975_v51 = vadd.f32 %v2974_v48, %v2962_v28  ;;  %v5610_v48 = vld [vmem:[#allocation11 + $0x1b0] sm:$0xf]  ;;  %v5647_v4 = vor.u32 %v6158_v0, %v5644_v1  ;;  %v6156_v5 = vld [vmem:[#allocation11 + $0x1e4] sm:$0xf]  ;;  %v5604_v28 = vld [vmem:[#allocation11 + $0x1a8] sm:$0xf0] }
 0x1f9   :  { %v5611_v52 = vor.u32 %v6151_v41, %v5610_v48  ;;  %v3197_v48 = vld [vmem:[%s6624_s6] sm:$0x3]  ;;  %v6166_v0 = vld [vmem:[#allocation12 + $0x30] sm:$0xff] }
 0x1fa   :  { %3604 = vmatpush.bf16.msrb.mxu2 %v5559_v6  ;;  %v2988_v60 = vadd.f32 %v2987_v55, %v2975_v51  ;;  %v5594_v55 = vld [vmem:[#allocation11 + $0x190] sm:$0xf]  ;;  %v5636_v6 = vld [vmem:[#allocation11 + $0x1e8] sm:$0xf0]  ;;  %v3199_v41 = vperm.slane %v3197_v48, 0 }
 0x1fb   :  { %3566 = vmatpush.bf16.msra.mxu3 %v5611_v52  ;;  %v5595_v57 = vor.u32 %v6147_v33, %v5594_v55  ;;  %v5639_v7 = vor.u32 %v6156_v5, %v5636_v6  ;;  %v3200_v55 = vperm.slane %v3197_v48, 1  ;;  %v6174_v1 = vld [vmem:[#allocation12 + $0x70] sm:$0xff]  ;;  %v6164_v6 = vld [vmem:[#allocation12 + $0x20] sm:$0xff] }
 0x1fd   :  { %v2963_v13 = vpop.f32.mrf.mxu3 }
 0x1fe   :  { %3605 = vmatpush.bf16.msrb.mxu2 %v5551_v8  ;;  %v5631_v13 = vor.u32 %v6154_v61, %v5628_v11  ;;  %v6161_v11 = vld [vmem:[#allocation12 + $0x8] sm:$0xff] }
 0x1ff   :  { %3567 = vmatpush.bf16.msra.mxu3 %v5603_v14 }
 0x202   :  { %3606 = vmatpush.bf16.msrb.mxu2 %v5543_v15 }
 0x203   :  { %3568 = vmatpush.bf16.msra.mxu3 %v5595_v57 }
 0x206   :  { %3607 = vmatpush.bf16.msrb.mxu2 %v5535_v22 }
 0x207   :  { %3569 = vmatpush.bf16.msra.mxu3 %v5587_v59  ;;  %v6167_v59 = vld [vmem:[#allocation12 + $0x38] sm:$0xff] }
 0x208   :  { %3765 = vmatpush.bf16.msra.mxu0 %v6167_v59 }
 0x209   :  { %v6599_v25 = vpop.f32.mrf.mxu0 }
 0x20a   :  { %3608 = vmatpush.bf16.msrb.mxu2 %v5527_v26  ;;  %v6148_v26 = vld [vmem:[#allocation11 + $0x1a4] sm:$0xf]  ;;  %v3027_v51 = vadd.f32 %v6599_v25, %v1420_v29 }
 0x20b   :  { %3614 = vmatpush.bf16.msrb.mxu3 %v5647_v4  ;;  %v5607_v32 = vor.u32 %v6148_v26, %v5604_v28  ;;  %v6165_v4 = vld [vmem:[#allocation12 + $0x28] sm:$0xff] }
 0x20c   :  { %3766 = vmatpush.bf16.msra.mxu0 %v6166_v0 }
 0x20f   :  { %v3000_v36 = vpop.f32.mrf.mxu2  ;;  %v6601_v3 = vpop.f32.mrf.mxu1  ;;  %3615 = vmatpush.bf16.msrb.mxu3 %v5639_v7  ;;  %v6163_v7 = vld [vmem:[#allocation12 + $0x18] sm:$0xff] }
 0x210   :  { %v3001_v56 = vadd.f32 %v3000_v36, %v2988_v60  ;;  %v3040_v35 = vadd.f32 %v6601_v3, %v3027_v51  ;;  %v5599_v36 = vor.u32 %v6146_v50, %v5596_v34  ;;  %3767 = vmatpush.bf16.msra.mxu0 %v6165_v4 }
 0x211   :  { %v3028_v37 = vpop.f32.mrf.mxu0 }
 0x213   :  { %3616 = vmatpush.bf16.msrb.mxu3 %v5631_v13  ;;  %v6173_v13 = vld [vmem:[#allocation12 + $0x68] sm:$0xff] }
 0x214   :  { %3768 = vmatpush.bf16.msra.mxu0 %v6164_v6 }
 0x215   :  { %v3013_v42 = vpop.f32.mrf.mxu3 }
 0x216   :  { %v3014_v18 = vadd.f32 %v3013_v42, %v3001_v56  ;;  %v5591_v56 = vor.u32 %v6144_v38, %v5588_v39  ;;  %v3795_v38 = vld [vmem:[#allocation2] sm:$0x1]  ;;  %v6391_v39 = vmov 0  }
 0x217   :  { %v3002_v62 = vpop.f32.mrf.mxu2  ;;  %v3041_v46 = vpop.f32.mrf.mxu1  ;;  %3617 = vmatpush.bf16.msrb.mxu3 %v5623_v2  ;;  %v6170_v2 = vld [vmem:[#allocation12 + $0x50] sm:$0xff]  ;;  %6192 = vset.pattern.permute.xlu0 %v6391_v39 }
 0x218   :  { %v3123_v20 = vmul.f32 0.2, %v3014_v18  ;;  %3769 = vmatpush.bf16.msra.mxu0 %v6163_v7  ;;  %3798 = vperm.xlu0 %6192, %v3795_v38  }
 0x21a   :  { %v3127_v47 = vmax.f32 %v3014_v18, %v3123_v20 }
 0x21b   :  { %3618 = vmatpush.bf16.msrb.mxu3 %v5615_v30 }
 0x21c   :  { %v3131_v24 = vpack.c.bf16 %v3127_v47, %v3127_v47 }
 0x21d   :  { %v3015_v54 = vpop.f32.mrf.mxu3 }
 0x21e   :  { %3557 = vmatmul.bf16.vlgmr.msra.gmra.mxu2 %v3131_v24 }
 0x21f   :  { %3619 = vmatpush.bf16.msrb.mxu3 %v5607_v32 }
 0x223   :  { %3620 = vmatpush.bf16.msrb.mxu3 %v5599_v36 }
 0x227   :  { %3621 = vmatpush.bf16.msrb.mxu3 %v5591_v56  ;;  %v6193_v56 = vld [vmem:[%s6626_s8] ss:$0 sm:$0xff]  ;;  %s6392_s8 = smov [#allocation14]  }
 0x229   :  { %v3078_v63 = vpop.f32.mrf.mxu0 }
 0x22e   :  { %3609 = vmatmul.bf16.vlgmr.msrb.gmra.mxu2 %v3131_v24 }
 0x22f   :  { %v3052_v44 = vpop.f32.mrf.mxu2  ;;  %v3091_v8 = vpop.f32.mrf.mxu1 }
 0x230   :  { %v3053_v37 = vadd.f32 %v3052_v44, %v3040_v35 }
 0x231   :  { %v3080_v10 = vpop.f32.mrf.mxu0 }
 0x235   :  { %v3065_v15 = vpop.f32.mrf.mxu3 }
 0x236   :  { %v3066_v40 = vadd.f32 %v3065_v15, %v3053_v37  ;;  %v6160_v15 = vld [vmem:[#allocation12] sm:$0xff] }
 0x237   :  { %v3054_v21 = vpop.f32.mrf.mxu2  ;;  %v3093_v22 = vpop.f32.mrf.mxu1 }
 0x238   :  { %v3079_v27 = vadd.f32 %v3078_v63, %v3066_v40  ;;  %v6175_v63 = vld [vmem:[#allocation12 + $0x78] sm:$0xff]  ;;  %v6169_v21 = vld [vmem:[#allocation12 + $0x48] sm:$0xff]  ;;  %v6168_v22 = vld [vmem:[#allocation12 + $0x40] sm:$0xff] }
 0x239   :  { %3778 = vmatpush.bf16.msra.mxu1 %v6175_v63 }
 0x23a   :  { %v3092_v43 = vadd.f32 %v3091_v8, %v3079_v27  ;;  %v6162_v8 = vld [vmem:[#allocation12 + $0x10] sm:$0xff] }
 0x23b   :  { %3770 = vmatpush.bf16.msra.mxu0 %v6162_v8 }
 0x23d   :  { %v3067_v31 = vpop.f32.mrf.mxu3  ;;  %3779 = vmatpush.bf16.msra.mxu1 %v6174_v1 }
 0x23f   :  { %3771 = vmatpush.bf16.msra.mxu0 %v6161_v11 }
 0x241   :  { %3780 = vmatpush.bf16.msra.mxu1 %v6173_v13 }
 0x243   :  { %3772 = vmatpush.bf16.msra.mxu0 %v6160_v15 }
 0x245   :  { %3781 = vmatpush.bf16.msra.mxu1 %v6172_v16 }
 0x249   :  { %v3532_v60 = vpop.f32.mrf.mxu0  ;;  %3782 = vmatpush.bf16.msra.mxu1 %v6171_v19 }
 0x24a   :  { %v3533_v52 = vadd.f32 %v3532_v60, %v3199_v41 }
 0x24d   :  { %3783 = vmatpush.bf16.msra.mxu1 %v6170_v2 }
 0x24f   :  { %v3104_v42 = vpop.f32.mrf.mxu2 }
 0x250   :  { %v3105_v18 = vadd.f32 %v3104_v42, %v3092_v43 }
 0x251   :  { %v3534_v17 = vpop.f32.mrf.mxu0  ;;  %3784 = vmatpush.bf16.msra.mxu1 %v6169_v21 }
 0x255   :  { %v3117_v25 = vpop.f32.mrf.mxu3  ;;  %3785 = vmatpush.bf16.msra.mxu1 %v6168_v22 }
 0x256   :  { %v3118_v45 = vadd.f32 %v3117_v25, %v3105_v18 }
 0x257   :  { %v3106_v62 = vpop.f32.mrf.mxu2 }
 0x258   :  { %v3124_v20 = vmul.f32 0.2, %v3118_v45 }
 0x25a   :  { %v3128_v46 = vmax.f32 %v3118_v45, %v3124_v20  ;;  %v3793_v20 = vld [vmem:[%s6627_s9] sm:$0x1]  ;;  %s3841_s9 = sshll.u32 %s6392_s8, 4  ;;  %s3842_s9 = int_to_ptr.vmem [resolvable:$true] %s3841_s9 }
 0x25c   :  { %v3132_v3 = vpack.c.bf16 %v3128_v46, %v3128_v46 }
 0x25d   :  { %v3119_v47 = vpop.f32.mrf.mxu3 }
 0x25e   :  { %3570 = vmatmul.bf16.vlgmr.msra.gmra.mxu3 %v3132_v3 }
 0x25f   :  { %v3545_v9 = vpop.f32.mrf.mxu1 }
 0x260   :  { %v3546_v24 = vadd.f32 %v3545_v9, %v3533_v52 }
 0x267   :  { %v3547_v14 = vpop.f32.mrf.mxu1 }
 0x269   :  { %v3584_v49 = vpop.f32.mrf.mxu0 }
 0x26a   :  { %v3585_v33 = vadd.f32 %v3584_v49, %v3200_v55 }
 0x26e   :  { %3622 = vmatmul.bf16.vlgmr.msrb.gmra.mxu3 %v3132_v3 }
 0x26f   :  { %v3597_v57 = vpop.f32.mrf.mxu1 }
 0x270   :  { %v3598_v53 = vadd.f32 %v3597_v57, %v3585_v33 }
 0x271   :  { %v3586_v54 = vpop.f32.mrf.mxu0 }
 0x277   :  { %v3599_v58 = vpop.f32.mrf.mxu1 }
 0x28a   :  { %v3799_v62 = vpop.permute.xlu0 %3798 }
 0x28b   :  { %v3801_v46 = vperm.slane %v3799_v62, 0 }
 0x2a1   :  { %v3558_v5 = vpop.f32.mrf.mxu2 }
 0x2a2   :  { %v3559_v23 = vadd.f32 %v3558_v5, %v3546_v24 }
 0x2a9   :  { %v3560_v44 = vpop.f32.mrf.mxu2 }
 0x2b1   :  { %v3610_v10 = vpop.f32.mrf.mxu2 }
 0x2b2   :  { %v3611_v32 = vadd.f32 %v3610_v10, %v3598_v53 }
 0x2b9   :  { %v3612_v61 = vpop.f32.mrf.mxu2 }
 0x2e1   :  { %v3571_v12 = vpop.f32.mrf.mxu3 }
 0x2e2   :  { %v3572_v30 = vadd.f32 %v3571_v12, %v3559_v23 }
 0x2e4   :  { %v3627_v26 = vmul.f32 0.2, %v3572_v30 }
 0x2e6   :  { %v3629_v28 = vmax.f32 %v3572_v30, %v3627_v26 }
 0x2e8   :  { %v3631_v29 = vpack.c.bf16 %v3629_v28, %v3629_v28 }
 0x2e9   :  { %v3573_v31 = vpop.f32.mrf.mxu3 }
 0x2ea   :  { %3773 = vmatmul.bf16.vlgmr.msra.gmra.mxu0 %v3631_v29 }
 0x2f1   :  { %v3623_v51 = vpop.f32.mrf.mxu3 }
 0x2f2   :  { %v3624_v50 = vadd.f32 %v3623_v51, %v3611_v32 }
 0x2f4   :  { %v3628_v34 = vmul.f32 0.2, %v3624_v50 }
 0x2f6   :  { %v3630_v35 = vmax.f32 %v3624_v50, %v3628_v34 }
 0x2f8   :  { %v3632_v36 = vpack.c.bf16 %v3630_v35, %v3630_v35 }
 0x2f9   :  { %v3625_v37 = vpop.f32.mrf.mxu3 }
 0x2fa   :  { %3786 = vmatmul.bf16.vlgmr.msra.gmra.mxu1 %v3632_v36 }
 0x367   :  { %v3774_v60 = vpop.f32.mrf.mxu0 }
 0x368   :  { %v3775_v27 = vadd.f32 %v6193_v56, %v3774_v60 }
 0x36f   :  { %v3776_v40 = vpop.f32.mrf.mxu0 }
 0x377   :  { %v3787_v42 = vpop.f32.mrf.mxu1 }
 0x378   :  { %v3788_v17 = vadd.f32 %v3787_v42, %v3775_v27 }
 0x37a   :  { %v3791_v43 = vmul.f32 0.2, %v3788_v17 }
 0x37c   :  { %v3792_v18 = vmax.f32 %v3788_v17, %v3791_v43 }
 0x37e   :  { %v3794_v25 = vpack.c.bf16 %v3792_v18, %v3792_v18 }
 0x37f   :  { %v3789_v45 = vpop.f32.mrf.mxu1 }
 0x380   :  { %3809 = vmatpush.bf16.xpose.msra.mxu2 %v3794_v25 }
 0x387   :  { %3810 = vmatmul.bf16.vlgmr.msra.gmra.mxu2 %v3793_v20 }
 0x40a   :  { %v3811_v3 = vpop.f32.mrf.mxu2 }
 0x40b   :  { %v3812_v47 = vadd.f32 %v3811_v3, %v3801_v46 }
 0x40d   :  { %v3815_v48 = vsub.f32 0.0, %v3812_v47 }
 0x40f   :  { %v3816_v41 = vmul.f32 1.442695, %v3815_v48 }
 0x411   :  { %6194 = vpow2.f32 %v3816_v41 }
 0x412   :  { %v3813_v49 = vpop.f32.mrf.mxu2 }
 0x417   :  { %v6195_v52 = vpop.eup %6194 }
 0x418   :  { %v3818_v9 = vadd.f32 1.0, %v6195_v52 }
 0x41a   :  { %6196 = vrcp.f32 %v3818_v9  ;;  %v3830_v55 = vand.u32 2147483648, %v3818_v9  ;;  %v3828_v57 = vand.u32 2147483647, %v3818_v9  ;;  %vm3824_vm1 = vweird.f32 %v3818_v9 }
 0x41c   :  { %v3831_v58 = vor.u32 1.1754944e-38, %v3830_v55  ;;  %vm3829_vm4 = vcmp.eq.f32.partialorder %v3828_v57, 8.507059e+37 }
 0x420   :  { %v6197_v24 = vpop.eup %6196 }
 0x421   :  { %v3820_v54 = vmul.f32 %v6197_v24, %v3818_v9  ;;  %vm3825_vm0 = vweird.f32 %v6197_v24 }
 0x422   :  { %vm3826_vm2 = vmor %vm3824_vm1, %vm3825_vm0 }
 0x423   :  { %v3821_v14 = vsub.f32 1.0, %v3820_v54 }
 0x425   :  { %v3822_v33 = vmul.f32 %v6197_v24, %v3821_v14 }
 0x427   :  { %v3823_v53 = vadd.f32 %v6197_v24, %v3822_v33 }
 0x429   :  { %v3827_v59 = vsel %vm3826_vm2, %v6197_v24, %v3823_v53 }
 0x42a   :  { %v3832_v63 = vsel %vm3829_vm4, %v3831_v58, %v3827_v59 }
 0x42b   :  { %3835 = vst.msk [vmem:[#allocation14] sm:$0x1] %vm3834_vm3, %v3832_v63 }
 0x42c   :  { %3846 = dma.vmem_to_hbm [thread:$0]  %s3842_s9, 16, %s3844_s19, [#allocation5]  }
 0x42d   :  { %6375 = dma.done.wait [#allocation5], 16  }
 0x42e   :  { %6376 = vsyncadd [#allocation5], 4294967280 }
 0x42f   :  { %3851 = vsyncpa [#allocation4], 1 }
 0x430   :  { %3852 = vsyncpa [#allocation7], 1 }
 0x431   :  { %3853 = vsyncpa [#allocation10], 1 }
 0x432   :  { %3854 = vsyncpa [#allocation13], 1 }
 0x433   :  { %3855 = vsyncpa [#allocation5], 1 }

</bundles_post_ra>
